<compile_context>
chip_gen: v7x
topology: tpu7x:2x2x1
jax: 0.10.0
libtpu: 0.0.40
codegen_flags: <defaults>
</compile_context>

<pallas_src>
import functools
import math

import numpy as np
import jax
import jax.numpy as jnp
from jax.experimental import pallas as pl
from jax.experimental.pallas import tpu as pltpu

D_MODEL = 9
PATCH = 16
N_CHANNELS = 1
N_HEADS = 3
N_LAYERS = 3
R_MLP = 4
LN_EPS = 1e-5
CONV_C1 = 8            # hidden channels of the 2-layer CNN
DNN_H1, DNN_H2 = 64, 32
PAD = 128              # left/right lane padding for the shifted-window conv loads

_NT = (((1,), (1,)), ((), ()))   # dot_general dims: contract last dim of both (A @ B.T)


# --------------------------------------------------------------------------
# Fused whole-model Pallas kernel
# --------------------------------------------------------------------------
def _trcnn_kernel(
    # ---- inputs -----------------------------------------------------------
    x_ref,            # (B, H*W)              flattened input image
    c1m_ref,          # (C1*B, 9*B)           conv1 taps stacked along contraction
    c1b_ref,          # (C1*B, 1)
    c2m_ref,          # (B, 9*C1*B)           conv2 taps stacked along contraction
    c2b_ref,          # (1, 1)
    cmask_ref,        # (9, 1, H*W)           validity mask per 3x3 tap (zero padding)
    pmask_ref,        # (P, 1, H*W)           per-patch pixel masks
    wall_ref,         # (H*W, D)              dense patch-embed weight (pixel -> D)
    tok_bias_ref,     # (S*B, D)              cls token / patch bias / positional enc
    attn_bias_ref,    # (S*B, S*B)            0 within a batch element, -1e30 across
    hmask_ref,        # (n_heads, 1, D)       per-head lane masks
    wqkv_ref,         # (L, D, 3*D)           fused Wq|Wk|Wv
    bqkv_ref,         # (L, 1, 3*D)
    wo_ref,           # (L, D, D)
    bo_ref,           # (L, 1, D)
    ln_g_ref,         # (L, 2, 1, D)
    ln_b_ref,         # (L, 2, 1, D)
    mlp_w1_ref,       # (L, D, R*D)
    mlp_b1_ref,       # (L, 1, R*D)
    mlp_w2_ref,       # (L, R*D, D)
    mlp_b2_ref,       # (L, 1, D)
    cls_w_ref,        # (D, n_factor)
    cls_b_ref,        # (1, n_factor)
    d1w_ref, d1b_ref, d2w_ref, d2b_ref, d3w_ref, d3b_ref,
    # ---- outputs ----------------------------------------------------------
    o_ref,            # (B, 1)
    # ---- scratch ----------------------------------------------------------
    xpad_ref,         # (B, H*W + 2*PAD)
    h1pad_ref,        # (C1*B, H*W + 2*PAD)
    win1_ref,         # (9*B, H*W)            staged masked windows for conv1
    win2_ref,         # (9*C1*B, H*W)         staged masked windows for conv2
    plhs_ref,         # (P*B, H*W)            masked patch rows for patch embedding
    tok_ref,          # (S*B, D)
    *, shifts, n_heads, n_layers, batch, hw, n_patches):
  f32 = jnp.float32
  cb = c1b_ref.shape[0]                                   # C1 * B

  # ---------------- CNN: two 3x3 same-padding convs (+ ReLU) ----------------
  # Zero only the PAD-wide borders; interiors are fully overwritten.
  xpad_ref[:, pl.ds(0, PAD)] = jnp.zeros((batch, PAD), f32)
  xpad_ref[:, pl.ds(PAD + hw, PAD)] = jnp.zeros((batch, PAD), f32)
  xpad_ref[:, pl.ds(PAD, hw)] = x_ref[...]
  h1pad_ref[:, pl.ds(0, PAD)] = jnp.zeros((cb, PAD), f32)
  h1pad_ref[:, pl.ds(PAD + hw, PAD)] = jnp.zeros((cb, PAD), f32)

  # conv1: stage the 9 masked shifted windows, then ONE matmul (K = 9*B).
  for t, sh in enumerate(shifts):
    win1_ref[pl.ds(t * batch, batch), :] = (
        cmask_ref[t] * xpad_ref[:, pl.ds(PAD + sh, hw)])
  h1 = jnp.maximum(
      jnp.dot(c1m_ref[...], win1_ref[...], preferred_element_type=f32)
      + c1b_ref[...], 0.0)                                # (C1*B, HW)
  h1pad_ref[:, pl.ds(PAD, hw)] = h1

  # conv2: same stacked-tap trick, ONE matmul (K = 9*C1*B).
  for t, sh in enumerate(shifts):
    win2_ref[pl.ds(t * cb, cb), :] = (
        cmask_ref[t] * h1pad_ref[:, pl.ds(PAD + sh, hw)])
  img = jnp.maximum(
      jnp.dot(c2m_ref[...], win2_ref[...], preferred_element_type=f32)
      + c2b_ref[...], 0.0)                                # (B, HW)

  # ---------------- ViT: patch embedding (ONE matmul) + cls + pos enc -------
  d = tok_ref.shape[1]
  for p in range(n_patches):
    plhs_ref[pl.ds(p * batch, batch), :] = img * pmask_ref[p]
  emb = jnp.dot(plhs_ref[...], wall_ref[...],
                preferred_element_type=f32)               # (P*B, D)
  tok_ref[pl.ds(0, batch), :] = jnp.zeros((batch, d), f32)    # cls rows
  tok_ref[pl.ds(batch, n_patches * batch), :] = emb
  x_tok = tok_ref[...] + tok_bias_ref[...]                # (S*B, D), row = s*B + b

  # ---------------- Transformer encoder (pre-LN), n_layers blocks -----------
  hd = d // n_heads
  scale = 1.0 / math.sqrt(hd)
  ab = attn_bias_ref[...]                                 # (S*B, S*B)

  def layer_norm(v, g, b):
    mu = jnp.mean(v, axis=-1, keepdims=True)
    var = jnp.mean((v - mu) * (v - mu), axis=-1, keepdims=True)
    return (v - mu) * jax.lax.rsqrt(var + LN_EPS) * g + b

  for l in range(n_layers):
    xn = layer_norm(x_tok, ln_g_ref[l, 0], ln_b_ref[l, 0])
    # Fused QKV: one matmul, q/k/v as static lane slices of the 3D-wide result.
    qkv = jnp.dot(xn, wqkv_ref[l], preferred_element_type=f32) + bqkv_ref[l]
    q = qkv[:, 0:d]
    kk = qkv[:, d:2 * d]
    vv = qkv[:, 2 * d:3 * d]
    attn = jnp.zeros_like(x_tok)
    # Per-head loop kept (block-diagonal lane-mask trick); the sublane-batched
    # variant needs 10-row slices crossing (8,128) tiles -> skipped per review.
    for h in range(n_heads):
      hm = hmask_ref[h]                                   # (1, D) lane mask of head h
      s = jax.lax.dot_general(q * hm, kk, _NT,
                              preferred_element_type=f32) * scale + ab
      m = jnp.max(s, axis=-1, keepdims=True)
      e = jnp.exp(s - m)
      p_att = e * pl.reciprocal(jnp.sum(e, axis=-1, keepdims=True), approx=True)
      attn = attn + jnp.dot(p_att, vv * hm, preferred_element_type=f32)
    attn = jnp.dot(attn, wo_ref[l], preferred_element_type=f32) + bo_ref[l]
    x1 = x_tok + attn
    xn2 = layer_norm(x1, ln_g_ref[l, 1], ln_b_ref[l, 1])
    # TODO(synk): reference MLP activation not shown; GELU (tanh approx) assumed.
    hmid = jax.nn.gelu(
        jnp.dot(xn2, mlp_w1_ref[l], preferred_element_type=f32) + mlp_b1_ref[l],
        approximate=True)
    x_tok = x1 + jnp.dot(hmid, mlp_w2_ref[l], preferred_element_type=f32) + mlp_b2_ref[l]

  # ---------------- softmax classifier head + dense regressor ---------------
  cls = x_tok[0:batch, :]                                 # cls-token rows -> (B, D)
  logits = jnp.dot(cls, cls_w_ref[...], preferred_element_type=f32) + cls_b_ref[...]
  m = jnp.max(logits, axis=-1, keepdims=True)
  e = jnp.exp(logits - m)
  probs = e / jnp.sum(e, axis=-1, keepdims=True)          # exact (feeds regressor)

  hdn = jnp.maximum(
      jnp.dot(probs, d1w_ref[...], preferred_element_type=f32) + d1b_ref[...], 0.0)
  hdn = jnp.maximum(
      jnp.dot(hdn, d2w_ref[...], preferred_element_type=f32) + d2b_ref[...], 0.0)
  y = jnp.dot(hdn, d3w_ref[...], preferred_element_type=f32) + d3b_ref[...]
  o_ref[...] = y.astype(o_ref.dtype)


# --------------------------------------------------------------------------
# Parameter preprocessing (runs once, outside the kernel)
# --------------------------------------------------------------------------
def _prepare_operands(params, batch, H, W):
  B = batch
  HW = H * W
  cnn, vit, dnn = params["cnn"], params["vit"], params["dnn"]
  C1 = cnn["w1"].shape[-1]
  py_n, px_n = H // PATCH, W // PATCH
  n_patches = py_n * px_n
  S = n_patches + 1

  # static 3x3 tap shifts on the row-major flattened image + validity masks
  shifts = tuple((dy - 1) * W + (dx - 1) for dy in range(3) for dx in range(3))
  yy, xx = np.divmod(np.arange(HW), W)
  cmask = np.zeros((9, 1, HW), np.float32)
  for dy in range(3):
    for dx in range(3):
      ok = ((yy + dy - 1 >= 0) & (yy + dy - 1 < H) &
            (xx + dx - 1 >= 0) & (xx + dx - 1 < W))
      cmask[dy * 3 + dx, 0] = ok

  # stacked-tap conv matrices: ONE matmul per conv layer in the kernel
  eye_b = jnp.eye(B, dtype=jnp.float32)
  w1 = cnn["w1"].reshape(9, C1)                  # [tap, cout]  (Cin = 1)
  w2 = cnn["w2"].reshape(9, C1)                  # [tap, cin]   (Cout = 1)
  # c1m[c*B+b, t*B+b'] = w1[t,c] * (b==b')
  c1m = jnp.einsum("tc,bd->cbtd", w1, eye_b).reshape(C1 * B, 9 * B)
  # c2m[b, t*C1*B + c*B + b'] = w2[t,c] * (b==b')
  c2m = jnp.einsum("tc,bd->btcd", w2, eye_b).reshape(B, 9 * C1 * B)
  c1b = jnp.repeat(cnn["b1"], B)[:, None]        # (C1*B, 1), row = cout*B + b
  c2b = cnn["b2"].reshape(1, 1)

  # patch masks + dense patch-embedding weight (pixel position -> D)
  pw = np.asarray(vit["patch_w"])                # (PATCH*PATCH*C, D), C = 1
  pmask = np.zeros((n_patches, 1, HW), np.float32)
  wall = np.zeros((HW, D_MODEL), np.float32)
  for pY in range(py_n):
    for pX in range(px_n):
      p = pY * px_n + pX
      for py in range(PATCH):
        for px in range(PATCH):
          j = (pY * PATCH + py) * W + (pX * PATCH + px)
          pmask[p, 0, j] = 1.0
          wall[j] = pw[py * PATCH + px]

  # additive token term: cls token / patch bias + sinusoidal positional encoding
  base = jnp.concatenate(
      [vit["cls_token"] + vit["pos_enc"][0:1],
       vit["pos_enc"][1:] + vit["patch_b"][None, :]], axis=0)        # (S, D)
  tok_bias = jnp.repeat(base, B, axis=0)                             # (S*B, D), row = s*B + b

  # attention constants: cross-batch additive mask, per-head lane masks
  r = np.arange(S * B)
  attn_bias = np.where((r[:, None] % B) == (r[None, :] % B), 0.0, -1e30).astype(np.float32)
  hd = D_MODEL // N_HEADS
  hmask = np.zeros((N_HEADS, 1, D_MODEL), np.float32)
  for h in range(N_HEADS):
    hmask[h, 0, h * hd:(h + 1) * hd] = 1.0

  # stacked encoder-layer weights (QKV fused along the output dim)
  lyr = vit["layers"]
  wqkv = jnp.stack([jnp.concatenate([l["wq"], l["wk"], l["wv"]], axis=1) for l in lyr])
  bqkv = jnp.stack([jnp.concatenate([l["bq"], l["bk"], l["bv"]], axis=1) for l in lyr])
  wo = jnp.stack([l["wo"] for l in lyr])
  bo = jnp.stack([l["bo"] for l in lyr])
  ln_g = jnp.stack([jnp.stack([l["ln1_g"], l["ln2_g"]]) for l in lyr])
  ln_b = jnp.stack([jnp.stack([l["ln1_b"], l["ln2_b"]]) for l in lyr])
  mlp_w1 = jnp.stack([l["w1"] for l in lyr])
  mlp_b1 = jnp.stack([l["b1"] for l in lyr])
  mlp_w2 = jnp.stack([l["w2"] for l in lyr])
  mlp_b2 = jnp.stack([l["b2"] for l in lyr])

  operands = (
      c1m, c1b, c2m, c2b, jnp.asarray(cmask), jnp.asarray(pmask),
      jnp.asarray(wall), tok_bias, jnp.asarray(attn_bias), jnp.asarray(hmask),
      wqkv, bqkv, wo, bo, ln_g, ln_b, mlp_w1, mlp_b1, mlp_w2, mlp_b2,
      vit["cls_w"], vit["cls_b"].reshape(1, -1),
      dnn["w1"], dnn["b1"].reshape(1, -1),
      dnn["w2"], dnn["b2"].reshape(1, -1),
      dnn["w3"], dnn["b3"].reshape(1, -1),
  )
  static = dict(shifts=shifts, n_heads=N_HEADS, n_layers=len(lyr),
                batch=B, hw=HW, n_patches=n_patches)
  return operands, static, C1, S


def make_trcnn_forward(params, batch, H, W):
  """Returns forward(x) with x: (batch, 1, H, W) -> (batch, 1)."""
  operands, static, c1, seq = _prepare_operands(params, batch, H, W)
  hw = H * W
  n_patches = seq - 1
  kern = functools.partial(_trcnn_kernel, **static)
  # NOTE: gridless single program on purpose; total operands + scratch < 1 MiB,
  # so no vmem_limit / tiling changes are needed on any TPU generation.
  call = pl.pallas_call(
      kern,
      out_shape=jax.ShapeDtypeStruct((batch, 1), jnp.float32),
      scratch_shapes=[
          pltpu.VMEM((batch, hw + 2 * PAD), jnp.float32),        # xpad
          pltpu.VMEM((c1 * batch, hw + 2 * PAD), jnp.float32),   # h1pad
          pltpu.VMEM((9 * batch, hw), jnp.float32),              # win1 (stacked taps)
          pltpu.VMEM((9 * c1 * batch, hw), jnp.float32),         # win2 (stacked taps)
          pltpu.VMEM((n_patches * batch, hw), jnp.float32),      # masked patch rows
          pltpu.VMEM((seq * batch, D_MODEL), jnp.float32),       # tokens
      ],
  )

  def forward(x):
    x2 = x.reshape(batch, hw).astype(jnp.float32)
    return call(x2, *operands)

  return forward


# --------------------------------------------------------------------------
# Deterministic parameter initialization (PyTorch-module-like structure)
# --------------------------------------------------------------------------
def _sinusoidal_pe(seq_len, d_model):
  pe = np.zeros((seq_len, d_model), np.float32)
  for pos in range(seq_len):
    for i in range(d_model):
      if i % 2 == 0:
        pe[pos, i] = np.sin(pos / (10000 ** (i / d_model)))
      else:
        pe[pos, i] = np.cos(pos / (10000 ** ((i - 1) / d_model)))
  return jnp.asarray(pe)


def _normal(key, shape, scale=0.02):
  return scale * jax.random.normal(key, shape, jnp.float32)


def init_params(key, dx, dy, n_factor):
  keys = iter(jax.random.split(key, 128))
  nk = lambda: next(keys)

  cnn = dict(
      w1=_normal(nk(), (3, 3, 1, CONV_C1), 0.1), b1=jnp.zeros((CONV_C1,), jnp.float32),
      w2=_normal(nk(), (3, 3, CONV_C1, 1), 0.1), b2=jnp.zeros((1,), jnp.float32),
  )

  n_patches = (dx // PATCH) * (dy // PATCH)
  seq = n_patches + 1
  layers = []
  for _ in range(N_LAYERS):
    layers.append(dict(
        ln1_g=jnp.ones((1, D_MODEL), jnp.float32),
        ln1_b=jnp.zeros((1, D_MODEL), jnp.float32),
        wq=_normal(nk(), (D_MODEL, D_MODEL)), bq=jnp.zeros((1, D_MODEL), jnp.float32),
        wk=_normal(nk(), (D_MODEL, D_MODEL)), bk=jnp.zeros((1, D_MODEL), jnp.float32),
        wv=_normal(nk(), (D_MODEL, D_MODEL)), bv=jnp.zeros((1, D_MODEL), jnp.float32),
        wo=_normal(nk(), (D_MODEL, D_MODEL)), bo=jnp.zeros((1, D_MODEL), jnp.float32),
        ln2_g=jnp.ones((1, D_MODEL), jnp.float32),
        ln2_b=jnp.zeros((1, D_MODEL), jnp.float32),
        w1=_normal(nk(), (D_MODEL, D_MODEL * R_MLP)),
        b1=jnp.zeros((1, D_MODEL * R_MLP), jnp.float32),
        w2=_normal(nk(), (D_MODEL * R_MLP, D_MODEL)),
        b2=jnp.zeros((1, D_MODEL), jnp.float32),
    ))

  vit = dict(
      patch_w=_normal(nk(), (PATCH * PATCH * N_CHANNELS, D_MODEL)),
      patch_b=jnp.zeros((D_MODEL,), jnp.float32),
      cls_token=_normal(nk(), (1, D_MODEL), 1.0),
      pos_enc=_sinusoidal_pe(seq, D_MODEL),
      layers=layers,
      cls_w=_normal(nk(), (D_MODEL, n_factor)),
      cls_b=jnp.zeros((n_factor,), jnp.float32),
  )

  dnn = dict(
      w1=_normal(nk(), (n_factor, DNN_H1)), b1=jnp.zeros((DNN_H1,), jnp.float32),
      w2=_normal(nk(), (DNN_H1, DNN_H2)), b2=jnp.zeros((DNN_H2,), jnp.float32),
      w3=_normal(nk(), (DNN_H2, 1)), b3=jnp.zeros((1,), jnp.float32),
  )
  return dict(cnn=cnn, vit=vit, dnn=dnn)


# --------------------------------------------------------------------------
if __name__ == "__main__":
  DIFF_X = DIFF_Y = 32        # img_size; 16x16 patches -> 4 patches (+1 cls token)
  N_FACTOR = 4
  BATCH = 2

  key = jax.random.PRNGKey(0)
  params = init_params(key, DIFF_X, DIFF_Y, N_FACTOR)
  x = jax.random.normal(jax.random.fold_in(key, 123),
                        (BATCH, N_CHANNELS, DIFF_X, DIFF_Y), jnp.float32)

  fwd = jax.jit(make_trcnn_forward(params, BATCH, DIFF_X, DIFF_Y))
  y = jax.block_until_ready(fwd(x))
  assert y.shape == (BATCH, 1), y.shape
  assert bool(jnp.all(jnp.isfinite(y)))
  print("KERNEL_OK")
</pallas_src>

<mosaic_0001>
module attributes {stable_mosaic.version = 11 : i64} {
  func.func @_trcnn_kernel(%arg0: memref<2x1024xf32, #tpu.memory_space<vmem>>, %arg1: memref<16x18xf32, #tpu.memory_space<vmem>>, %arg2: memref<16x1xf32, #tpu.memory_space<vmem>>, %arg3: memref<2x144xf32, #tpu.memory_space<vmem>>, %arg4: memref<1x1xf32, #tpu.memory_space<vmem>>, %arg5: memref<9x1x1024xf32, #tpu.memory_space<vmem>>, %arg6: memref<4x1x1024xf32, #tpu.memory_space<vmem>>, %arg7: memref<1024x9xf32, #tpu.memory_space<vmem>>, %arg8: memref<10x9xf32, #tpu.memory_space<vmem>>, %arg9: memref<10x10xf32, #tpu.memory_space<vmem>>, %arg10: memref<3x1x9xf32, #tpu.memory_space<vmem>>, %arg11: memref<3x9x27xf32, #tpu.memory_space<vmem>>, %arg12: memref<3x1x27xf32, #tpu.memory_space<vmem>>, %arg13: memref<3x9x9xf32, #tpu.memory_space<vmem>>, %arg14: memref<3x1x9xf32, #tpu.memory_space<vmem>>, %arg15: memref<3x2x1x9xf32, #tpu.memory_space<vmem>>, %arg16: memref<3x2x1x9xf32, #tpu.memory_space<vmem>>, %arg17: memref<3x9x36xf32, #tpu.memory_space<vmem>>, %arg18: memref<3x1x36xf32, #tpu.memory_space<vmem>>, %arg19: memref<3x36x9xf32, #tpu.memory_space<vmem>>, %arg20: memref<3x1x9xf32, #tpu.memory_space<vmem>>, %arg21: memref<9x4xf32, #tpu.memory_space<vmem>>, %arg22: memref<1x4xf32, #tpu.memory_space<vmem>>, %arg23: memref<4x64xf32, #tpu.memory_space<vmem>>, %arg24: memref<1x64xf32, #tpu.memory_space<vmem>>, %arg25: memref<64x32xf32, #tpu.memory_space<vmem>>, %arg26: memref<1x32xf32, #tpu.memory_space<vmem>>, %arg27: memref<32x1xf32, #tpu.memory_space<vmem>>, %arg28: memref<1x1xf32, #tpu.memory_space<vmem>>, %arg29: memref<2x1xf32, #tpu.memory_space<vmem>>, %arg30: memref<2x1280xf32, #tpu.memory_space<vmem>>, %arg31: memref<16x1280xf32, #tpu.memory_space<vmem>>, %arg32: memref<18x1024xf32, #tpu.memory_space<vmem>>, %arg33: memref<144x1024xf32, #tpu.memory_space<vmem>>, %arg34: memref<8x1024xf32, #tpu.memory_space<vmem>>, %arg35: memref<10x9xf32, #tpu.memory_space<vmem>>) attributes {dimension_semantics = [], scalar_prefetch = 0 : i64, scratch_operands = 6 : i64, tpu.core_type = #tpu.core_type<tc>} {
    %cst = arith.constant 0.000000e+00 : f32
    %0 = vector.broadcast %cst : f32 to vector<2x128xf32>
    %c0 = arith.constant 0 : index
    %c0_0 = arith.constant 0 : index
    %1 = vector.load %arg30[%c0, %c0_0] : memref<2x1280xf32, #tpu.memory_space<vmem>>, vector<2x128xf32>
    tpu.vector_store %arg30[%c0, %c0_0], %0 {strides = array<i32>} : memref<2x1280xf32, #tpu.memory_space<vmem>>, vector<2x128xf32>,
    %cst_1 = arith.constant 0.000000e+00 : f32
    %2 = vector.broadcast %cst_1 : f32 to vector<2x128xf32>
    %c0_2 = arith.constant 0 : index
    %c1152 = arith.constant 1152 : index
    %3 = vector.load %arg30[%c0_2, %c1152] : memref<2x1280xf32, #tpu.memory_space<vmem>>, vector<2x128xf32>
    tpu.vector_store %arg30[%c0_2, %c1152], %2 {strides = array<i32>} : memref<2x1280xf32, #tpu.memory_space<vmem>>, vector<2x128xf32>,
    %c0_3 = arith.constant 0 : index
    %c0_4 = arith.constant 0 : index
    %4 = vector.load %arg0[%c0_3, %c0_4] : memref<2x1024xf32, #tpu.memory_space<vmem>>, vector<2x1024xf32>
    %c0_5 = arith.constant 0 : index
    %c128 = arith.constant 128 : index
    %5 = vector.load %arg30[%c0_5, %c128] : memref<2x1280xf32, #tpu.memory_space<vmem>>, vector<2x1024xf32>
    tpu.vector_store %arg30[%c0_5, %c128], %4 {strides = array<i32>} : memref<2x1280xf32, #tpu.memory_space<vmem>>, vector<2x1024xf32>,
    %cst_6 = arith.constant 0.000000e+00 : f32
    %6 = vector.broadcast %cst_6 : f32 to vector<16x128xf32>
    %c0_7 = arith.constant 0 : index
    %c0_8 = arith.constant 0 : index
    %7 = vector.load %arg31[%c0_7, %c0_8] : memref<16x1280xf32, #tpu.memory_space<vmem>>, vector<16x128xf32>
    tpu.vector_store %arg31[%c0_7, %c0_8], %6 {strides = array<i32>} : memref<16x1280xf32, #tpu.memory_space<vmem>>, vector<16x128xf32>,
    %cst_9 = arith.constant 0.000000e+00 : f32
    %8 = vector.broadcast %cst_9 : f32 to vector<16x128xf32>
    %c0_10 = arith.constant 0 : index
    %c1152_11 = arith.constant 1152 : index
    %9 = vector.load %arg31[%c0_10, %c1152_11] : memref<16x1280xf32, #tpu.memory_space<vmem>>, vector<16x128xf32>
    tpu.vector_store %arg31[%c0_10, %c1152_11], %8 {strides = array<i32>} : memref<16x1280xf32, #tpu.memory_space<vmem>>, vector<16x128xf32>,
    %c0_12 = arith.constant 0 : index
    %c0_13 = arith.constant 0 : index
    %c0_14 = arith.constant 0 : index
    %10 = vector.load %arg5[%c0_12, %c0_13, %c0_14] : memref<9x1x1024xf32, #tpu.memory_space<vmem>>, vector<1x1x1024xf32>
    %11 = vector.shape_cast %10 : vector<1x1x1024xf32> to vector<1x1024xf32>
    %c0_15 = arith.constant 0 : index
    %c95 = arith.constant 95 : index
    %12 = vector.load %arg30[%c0_15, %c95] : memref<2x1280xf32, #tpu.memory_space<vmem>>, vector<2x1024xf32>
    %13 = vector.broadcast %11 : vector<1x1024xf32> to vector<2x1024xf32>
    %14 = arith.mulf %13, %12 : vector<2x1024xf32>
    %c0_16 = arith.constant 0 : index
    %c0_17 = arith.constant 0 : index
    %15 = vector.load %arg32[%c0_16, %c0_17] : memref<18x1024xf32, #tpu.memory_space<vmem>>, vector<2x1024xf32>
    tpu.vector_store %arg32[%c0_16, %c0_17], %14 {strides = array<i32>} : memref<18x1024xf32, #tpu.memory_space<vmem>>, vector<2x1024xf32>,
    %c1 = arith.constant 1 : index
    %c0_18 = arith.constant 0 : index
    %c0_19 = arith.constant 0 : index
    %16 = vector.load %arg5[%c1, %c0_18, %c0_19] : memref<9x1x1024xf32, #tpu.memory_space<vmem>>, vector<1x1x1024xf32>
    %17 = vector.shape_cast %16 : vector<1x1x1024xf32> to vector<1x1024xf32>
    %c0_20 = arith.constant 0 : index
    %c96 = arith.constant 96 : index
    %18 = vector.load %arg30[%c0_20, %c96] : memref<2x1280xf32, #tpu.memory_space<vmem>>, vector<2x1024xf32>
    %19 = vector.broadcast %17 : vector<1x1024xf32> to vector<2x1024xf32>
    %20 = arith.mulf %19, %18 : vector<2x1024xf32>
    %c2 = arith.constant 2 : index
    %c0_21 = arith.constant 0 : index
    %21 = vector.load %arg32[%c2, %c0_21] : memref<18x1024xf32, #tpu.memory_space<vmem>>, vector<2x1024xf32>
    tpu.vector_store %arg32[%c2, %c0_21], %20 {strides = array<i32>} : memref<18x1024xf32, #tpu.memory_space<vmem>>, vector<2x1024xf32>,
    %c2_22 = arith.constant 2 : index
    %c0_23 = arith.constant 0 : index
    %c0_24 = arith.constant 0 : index
    %22 = vector.load %arg5[%c2_22, %c0_23, %c0_24] : memref<9x1x1024xf32, #tpu.memory_space<vmem>>, vector<1x1x1024xf32>
    %23 = vector.shape_cast %22 : vector<1x1x1024xf32> to vector<1x1024xf32>
    %c0_25 = arith.constant 0 : index
    %c97 = arith.constant 97 : index
    %24 = vector.load %arg30[%c0_25, %c97] : memref<2x1280xf32, #tpu.memory_space<vmem>>, vector<2x1024xf32>
    %25 = vector.broadcast %23 : vector<1x1024xf32> to vector<2x1024xf32>
    %26 = arith.mulf %25, %24 : vector<2x1024xf32>
    %c4 = arith.constant 4 : index
    %c0_26 = arith.constant 0 : index
    %27 = vector.load %arg32[%c4, %c0_26] : memref<18x1024xf32, #tpu.memory_space<vmem>>, vector<2x1024xf32>
    tpu.vector_store %arg32[%c4, %c0_26], %26 {strides = array<i32>} : memref<18x1024xf32, #tpu.memory_space<vmem>>, vector<2x1024xf32>,
    %c3 = arith.constant 3 : index
    %c0_27 = arith.constant 0 : index
    %c0_28 = arith.constant 0 : index
    %28 = vector.load %arg5[%c3, %c0_27, %c0_28] : memref<9x1x1024xf32, #tpu.memory_space<vmem>>, vector<1x1x1024xf32>
    %29 = vector.shape_cast %28 : vector<1x1x1024xf32> to vector<1x1024xf32>
    %c0_29 = arith.constant 0 : index
    %c127 = arith.constant 127 : index
    %30 = vector.load %arg30[%c0_29, %c127] : memref<2x1280xf32, #tpu.memory_space<vmem>>, vector<2x1024xf32>
    %31 = vector.broadcast %29 : vector<1x1024xf32> to vector<2x1024xf32>
    %32 = arith.mulf %31, %30 : vector<2x1024xf32>
    %c6 = arith.constant 6 : index
    %c0_30 = arith.constant 0 : index
    %33 = vector.load %arg32[%c6, %c0_30] : memref<18x1024xf32, #tpu.memory_space<vmem>>, vector<2x1024xf32>
    tpu.vector_store %arg32[%c6, %c0_30], %32 {strides = array<i32>} : memref<18x1024xf32, #tpu.memory_space<vmem>>, vector<2x1024xf32>,
    %c4_31 = arith.constant 4 : index
    %c0_32 = arith.constant 0 : index
    %c0_33 = arith.constant 0 : index
    %34 = vector.load %arg5[%c4_31, %c0_32, %c0_33] : memref<9x1x1024xf32, #tpu.memory_space<vmem>>, vector<1x1x1024xf32>
    %35 = vector.shape_cast %34 : vector<1x1x1024xf32> to vector<1x1024xf32>
    %c0_34 = arith.constant 0 : index
    %c128_35 = arith.constant 128 : index
    %36 = vector.load %arg30[%c0_34, %c128_35] : memref<2x1280xf32, #tpu.memory_space<vmem>>, vector<2x1024xf32>
    %37 = vector.broadcast %35 : vector<1x1024xf32> to vector<2x1024xf32>
    %38 = arith.mulf %37, %36 : vector<2x1024xf32>
    %c8 = arith.constant 8 : index
    %c0_36 = arith.constant 0 : index
    %39 = vector.load %arg32[%c8, %c0_36] : memref<18x1024xf32, #tpu.memory_space<vmem>>, vector<2x1024xf32>
    tpu.vector_store %arg32[%c8, %c0_36], %38 {strides = array<i32>} : memref<18x1024xf32, #tpu.memory_space<vmem>>, vector<2x1024xf32>,
    %c5 = arith.constant 5 : index
    %c0_37 = arith.constant 0 : index
    %c0_38 = arith.constant 0 : index
    %40 = vector.load %arg5[%c5, %c0_37, %c0_38] : memref<9x1x1024xf32, #tpu.memory_space<vmem>>, vector<1x1x1024xf32>
    %41 = vector.shape_cast %40 : vector<1x1x1024xf32> to vector<1x1024xf32>
    %c0_39 = arith.constant 0 : index
    %c129 = arith.constant 129 : index
    %42 = vector.load %arg30[%c0_39, %c129] : memref<2x1280xf32, #tpu.memory_space<vmem>>, vector<2x1024xf32>
    %43 = vector.broadcast %41 : vector<1x1024xf32> to vector<2x1024xf32>
    %44 = arith.mulf %43, %42 : vector<2x1024xf32>
    %c10 = arith.constant 10 : index
    %c0_40 = arith.constant 0 : index
    %45 = vector.load %arg32[%c10, %c0_40] : memref<18x1024xf32, #tpu.memory_space<vmem>>, vector<2x1024xf32>
    tpu.vector_store %arg32[%c10, %c0_40], %44 {strides = array<i32>} : memref<18x1024xf32, #tpu.memory_space<vmem>>, vector<2x1024xf32>,
    %c6_41 = arith.constant 6 : index
    %c0_42 = arith.constant 0 : index
    %c0_43 = arith.constant 0 : index
    %46 = vector.load %arg5[%c6_41, %c0_42, %c0_43] : memref<9x1x1024xf32, #tpu.memory_space<vmem>>, vector<1x1x1024xf32>
    %47 = vector.shape_cast %46 : vector<1x1x1024xf32> to vector<1x1024xf32>
    %c0_44 = arith.constant 0 : index
    %c159 = arith.constant 159 : index
    %48 = vector.load %arg30[%c0_44, %c159] : memref<2x1280xf32, #tpu.memory_space<vmem>>, vector<2x1024xf32>
    %49 = vector.broadcast %47 : vector<1x1024xf32> to vector<2x1024xf32>
    %50 = arith.mulf %49, %48 : vector<2x1024xf32>
    %c12 = arith.constant 12 : index
    %c0_45 = arith.constant 0 : index
    %51 = vector.load %arg32[%c12, %c0_45] : memref<18x1024xf32, #tpu.memory_space<vmem>>, vector<2x1024xf32>
    tpu.vector_store %arg32[%c12, %c0_45], %50 {strides = array<i32>} : memref<18x1024xf32, #tpu.memory_space<vmem>>, vector<2x1024xf32>,
    %c7 = arith.constant 7 : index
    %c0_46 = arith.constant 0 : index
    %c0_47 = arith.constant 0 : index
    %52 = vector.load %arg5[%c7, %c0_46, %c0_47] : memref<9x1x1024xf32, #tpu.memory_space<vmem>>, vector<1x1x1024xf32>
    %53 = vector.shape_cast %52 : vector<1x1x1024xf32> to vector<1x1024xf32>
    %c0_48 = arith.constant 0 : index
    %c160 = arith.constant 160 : index
    %54 = vector.load %arg30[%c0_48, %c160] : memref<2x1280xf32, #tpu.memory_space<vmem>>, vector<2x1024xf32>
    %55 = vector.broadcast %53 : vector<1x1024xf32> to vector<2x1024xf32>
    %56 = arith.mulf %55, %54 : vector<2x1024xf32>
    %c14 = arith.constant 14 : index
    %c0_49 = arith.constant 0 : index
    %57 = vector.load %arg32[%c14, %c0_49] : memref<18x1024xf32, #tpu.memory_space<vmem>>, vector<2x1024xf32>
    tpu.vector_store %arg32[%c14, %c0_49], %56 {strides = array<i32>} : memref<18x1024xf32, #tpu.memory_space<vmem>>, vector<2x1024xf32>,
    %c8_50 = arith.constant 8 : index
    %c0_51 = arith.constant 0 : index
    %c0_52 = arith.constant 0 : index
    %58 = vector.load %arg5[%c8_50, %c0_51, %c0_52] : memref<9x1x1024xf32, #tpu.memory_space<vmem>>, vector<1x1x1024xf32>
    %59 = vector.shape_cast %58 : vector<1x1x1024xf32> to vector<1x1024xf32>
    %c0_53 = arith.constant 0 : index
    %c161 = arith.constant 161 : index
    %60 = vector.load %arg30[%c0_53, %c161] : memref<2x1280xf32, #tpu.memory_space<vmem>>, vector<2x1024xf32>
    %61 = vector.broadcast %59 : vector<1x1024xf32> to vector<2x1024xf32>
    %62 = arith.mulf %61, %60 : vector<2x1024xf32>
    %c16 = arith.constant 16 : index
    %c0_54 = arith.constant 0 : index
    %63 = vector.load %arg32[%c16, %c0_54] : memref<18x1024xf32, #tpu.memory_space<vmem>>, vector<2x1024xf32>
    tpu.vector_store %arg32[%c16, %c0_54], %62 {strides = array<i32>} : memref<18x1024xf32, #tpu.memory_space<vmem>>, vector<2x1024xf32>,
    %c0_55 = arith.constant 0 : index
    %c0_56 = arith.constant 0 : index
    %64 = vector.load %arg1[%c0_55, %c0_56] : memref<16x18xf32, #tpu.memory_space<vmem>>, vector<16x18xf32>
    %c0_57 = arith.constant 0 : index
    %c0_58 = arith.constant 0 : index
    %65 = vector.load %arg32[%c0_57, %c0_58] : memref<18x1024xf32, #tpu.memory_space<vmem>>, vector<18x1024xf32>
    %cst_59 = arith.constant dense<0.000000e+00> : vector<16x1024xf32>
    %66 = tpu.matmul %64, %65, %cst_59 {dimension_numbers = #tpu.dot_dimension_numbers<[1], [0], [0], [1], [0, 0, 1, 1], [], []>} : vector<16x18xf32>, vector<18x1024xf32>, vector<16x1024xf32> -> vector<16x1024xf32>
    %c0_60 = arith.constant 0 : index
    %c0_61 = arith.constant 0 : index
    %67 = vector.load %arg2[%c0_60, %c0_61] : memref<16x1xf32, #tpu.memory_space<vmem>>, vector<16x1xf32>
    %68 = vector.broadcast %67 : vector<16x1xf32> to vector<16x1024xf32>
    %69 = arith.addf %66, %68 : vector<16x1024xf32>
    %cst_62 = arith.constant 0.000000e+00 : f32
    %70 = vector.broadcast %cst_62 : f32 to vector<16x1024xf32>
    %71 = arith.maximumf %69, %70 : vector<16x1024xf32>
    %c0_63 = arith.constant 0 : index
    %c128_64 = arith.constant 128 : index
    %72 = vector.load %arg31[%c0_63, %c128_64] : memref<16x1280xf32, #tpu.memory_space<vmem>>, vector<16x1024xf32>
    tpu.vector_store %arg31[%c0_63, %c128_64], %71 {strides = array<i32>} : memref<16x1280xf32, #tpu.memory_space<vmem>>, vector<16x1024xf32>,
    %c0_65 = arith.constant 0 : index
    %c0_66 = arith.constant 0 : index
    %c0_67 = arith.constant 0 : index
    %73 = vector.load %arg5[%c0_65, %c0_66, %c0_67] : memref<9x1x1024xf32, #tpu.memory_space<vmem>>, vector<1x1x1024xf32>
    %74 = vector.shape_cast %73 : vector<1x1x1024xf32> to vector<1x1024xf32>
    %c0_68 = arith.constant 0 : index
    %c95_69 = arith.constant 95 : index
    %75 = vector.load %arg31[%c0_68, %c95_69] : memref<16x1280xf32, #tpu.memory_space<vmem>>, vector<16x1024xf32>
    %76 = vector.broadcast %74 : vector<1x1024xf32> to vector<16x1024xf32>
    %77 = arith.mulf %76, %75 : vector<16x1024xf32>
    %c0_70 = arith.constant 0 : index
    %c0_71 = arith.constant 0 : index
    %78 = vector.load %arg33[%c0_70, %c0_71] : memref<144x1024xf32, #tpu.memory_space<vmem>>, vector<16x1024xf32>
    tpu.vector_store %arg33[%c0_70, %c0_71], %77 {strides = array<i32>} : memref<144x1024xf32, #tpu.memory_space<vmem>>, vector<16x1024xf32>,
    %c1_72 = arith.constant 1 : index
    %c0_73 = arith.constant 0 : index
    %c0_74 = arith.constant 0 : index
    %79 = vector.load %arg5[%c1_72, %c0_73, %c0_74] : memref<9x1x1024xf32, #tpu.memory_space<vmem>>, vector<1x1x1024xf32>
    %80 = vector.shape_cast %79 : vector<1x1x1024xf32> to vector<1x1024xf32>
    %c0_75 = arith.constant 0 : index
    %c96_76 = arith.constant 96 : index
    %81 = vector.load %arg31[%c0_75, %c96_76] : memref<16x1280xf32, #tpu.memory_space<vmem>>, vector<16x1024xf32>
    %82 = vector.broadcast %80 : vector<1x1024xf32> to vector<16x1024xf32>
    %83 = arith.mulf %82, %81 : vector<16x1024xf32>
    %c16_77 = arith.constant 16 : index
    %c0_78 = arith.constant 0 : index
    %84 = vector.load %arg33[%c16_77, %c0_78] : memref<144x1024xf32, #tpu.memory_space<vmem>>, vector<16x1024xf32>
    tpu.vector_store %arg33[%c16_77, %c0_78], %83 {strides = array<i32>} : memref<144x1024xf32, #tpu.memory_space<vmem>>, vector<16x1024xf32>,
    %c2_79 = arith.constant 2 : index
    %c0_80 = arith.constant 0 : index
    %c0_81 = arith.constant 0 : index
    %85 = vector.load %arg5[%c2_79, %c0_80, %c0_81] : memref<9x1x1024xf32, #tpu.memory_space<vmem>>, vector<1x1x1024xf32>
    %86 = vector.shape_cast %85 : vector<1x1x1024xf32> to vector<1x1024xf32>
    %c0_82 = arith.constant 0 : index
    %c97_83 = arith.constant 97 : index
    %87 = vector.load %arg31[%c0_82, %c97_83] : memref<16x1280xf32, #tpu.memory_space<vmem>>, vector<16x1024xf32>
    %88 = vector.broadcast %86 : vector<1x1024xf32> to vector<16x1024xf32>
    %89 = arith.mulf %88, %87 : vector<16x1024xf32>
    %c32 = arith.constant 32 : index
    %c0_84 = arith.constant 0 : index
    %90 = vector.load %arg33[%c32, %c0_84] : memref<144x1024xf32, #tpu.memory_space<vmem>>, vector<16x1024xf32>
    tpu.vector_store %arg33[%c32, %c0_84], %89 {strides = array<i32>} : memref<144x1024xf32, #tpu.memory_space<vmem>>, vector<16x1024xf32>,
    %c3_85 = arith.constant 3 : index
    %c0_86 = arith.constant 0 : index
    %c0_87 = arith.constant 0 : index
    %91 = vector.load %arg5[%c3_85, %c0_86, %c0_87] : memref<9x1x1024xf32, #tpu.memory_space<vmem>>, vector<1x1x1024xf32>
    %92 = vector.shape_cast %91 : vector<1x1x1024xf32> to vector<1x1024xf32>
    %c0_88 = arith.constant 0 : index
    %c127_89 = arith.constant 127 : index
    %93 = vector.load %arg31[%c0_88, %c127_89] : memref<16x1280xf32, #tpu.memory_space<vmem>>, vector<16x1024xf32>
    %94 = vector.broadcast %92 : vector<1x1024xf32> to vector<16x1024xf32>
    %95 = arith.mulf %94, %93 : vector<16x1024xf32>
    %c48 = arith.constant 48 : index
    %c0_90 = arith.constant 0 : index
    %96 = vector.load %arg33[%c48, %c0_90] : memref<144x1024xf32, #tpu.memory_space<vmem>>, vector<16x1024xf32>
    tpu.vector_store %arg33[%c48, %c0_90], %95 {strides = array<i32>} : memref<144x1024xf32, #tpu.memory_space<vmem>>, vector<16x1024xf32>,
    %c4_91 = arith.constant 4 : index
    %c0_92 = arith.constant 0 : index
    %c0_93 = arith.constant 0 : index
    %97 = vector.load %arg5[%c4_91, %c0_92, %c0_93] : memref<9x1x1024xf32, #tpu.memory_space<vmem>>, vector<1x1x1024xf32>
    %98 = vector.shape_cast %97 : vector<1x1x1024xf32> to vector<1x1024xf32>
    %c0_94 = arith.constant 0 : index
    %c128_95 = arith.constant 128 : index
    %99 = vector.load %arg31[%c0_94, %c128_95] : memref<16x1280xf32, #tpu.memory_space<vmem>>, vector<16x1024xf32>
    %100 = vector.broadcast %98 : vector<1x1024xf32> to vector<16x1024xf32>
    %101 = arith.mulf %100, %99 : vector<16x1024xf32>
    %c64 = arith.constant 64 : index
    %c0_96 = arith.constant 0 : index
    %102 = vector.load %arg33[%c64, %c0_96] : memref<144x1024xf32, #tpu.memory_space<vmem>>, vector<16x1024xf32>
    tpu.vector_store %arg33[%c64, %c0_96], %101 {strides = array<i32>} : memref<144x1024xf32, #tpu.memory_space<vmem>>, vector<16x1024xf32>,
    %c5_97 = arith.constant 5 : index
    %c0_98 = arith.constant 0 : index
    %c0_99 = arith.constant 0 : index
    %103 = vector.load %arg5[%c5_97, %c0_98, %c0_99] : memref<9x1x1024xf32, #tpu.memory_space<vmem>>, vector<1x1x1024xf32>
    %104 = vector.shape_cast %103 : vector<1x1x1024xf32> to vector<1x1024xf32>
    %c0_100 = arith.constant 0 : index
    %c129_101 = arith.constant 129 : index
    %105 = vector.load %arg31[%c0_100, %c129_101] : memref<16x1280xf32, #tpu.memory_space<vmem>>, vector<16x1024xf32>
    %106 = vector.broadcast %104 : vector<1x1024xf32> to vector<16x1024xf32>
    %107 = arith.mulf %106, %105 : vector<16x1024xf32>
    %c80 = arith.constant 80 : index
    %c0_102 = arith.constant 0 : index
    %108 = vector.load %arg33[%c80, %c0_102] : memref<144x1024xf32, #tpu.memory_space<vmem>>, vector<16x1024xf32>
    tpu.vector_store %arg33[%c80, %c0_102], %107 {strides = array<i32>} : memref<144x1024xf32, #tpu.memory_space<vmem>>, vector<16x1024xf32>,
    %c6_103 = arith.constant 6 : index
    %c0_104 = arith.constant 0 : index
    %c0_105 = arith.constant 0 : index
    %109 = vector.load %arg5[%c6_103, %c0_104, %c0_105] : memref<9x1x1024xf32, #tpu.memory_space<vmem>>, vector<1x1x1024xf32>
    %110 = vector.shape_cast %109 : vector<1x1x1024xf32> to vector<1x1024xf32>
    %c0_106 = arith.constant 0 : index
    %c159_107 = arith.constant 159 : index
    %111 = vector.load %arg31[%c0_106, %c159_107] : memref<16x1280xf32, #tpu.memory_space<vmem>>, vector<16x1024xf32>
    %112 = vector.broadcast %110 : vector<1x1024xf32> to vector<16x1024xf32>
    %113 = arith.mulf %112, %111 : vector<16x1024xf32>
    %c96_108 = arith.constant 96 : index
    %c0_109 = arith.constant 0 : index
    %114 = vector.load %arg33[%c96_108, %c0_109] : memref<144x1024xf32, #tpu.memory_space<vmem>>, vector<16x1024xf32>
    tpu.vector_store %arg33[%c96_108, %c0_109], %113 {strides = array<i32>} : memref<144x1024xf32, #tpu.memory_space<vmem>>, vector<16x1024xf32>,
    %c7_110 = arith.constant 7 : index
    %c0_111 = arith.constant 0 : index
    %c0_112 = arith.constant 0 : index
    %115 = vector.load %arg5[%c7_110, %c0_111, %c0_112] : memref<9x1x1024xf32, #tpu.memory_space<vmem>>, vector<1x1x1024xf32>
    %116 = vector.shape_cast %115 : vector<1x1x1024xf32> to vector<1x1024xf32>
    %c0_113 = arith.constant 0 : index
    %c160_114 = arith.constant 160 : index
    %117 = vector.load %arg31[%c0_113, %c160_114] : memref<16x1280xf32, #tpu.memory_space<vmem>>, vector<16x1024xf32>
    %118 = vector.broadcast %116 : vector<1x1024xf32> to vector<16x1024xf32>
    %119 = arith.mulf %118, %117 : vector<16x1024xf32>
    %c112 = arith.constant 112 : index
    %c0_115 = arith.constant 0 : index
    %120 = vector.load %arg33[%c112, %c0_115] : memref<144x1024xf32, #tpu.memory_space<vmem>>, vector<16x1024xf32>
    tpu.vector_store %arg33[%c112, %c0_115], %119 {strides = array<i32>} : memref<144x1024xf32, #tpu.memory_space<vmem>>, vector<16x1024xf32>,
    %c8_116 = arith.constant 8 : index
    %c0_117 = arith.constant 0 : index
    %c0_118 = arith.constant 0 : index
    %121 = vector.load %arg5[%c8_116, %c0_117, %c0_118] : memref<9x1x1024xf32, #tpu.memory_space<vmem>>, vector<1x1x1024xf32>
    %122 = vector.shape_cast %121 : vector<1x1x1024xf32> to vector<1x1024xf32>
    %c0_119 = arith.constant 0 : index
    %c161_120 = arith.constant 161 : index
    %123 = vector.load %arg31[%c0_119, %c161_120] : memref<16x1280xf32, #tpu.memory_space<vmem>>, vector<16x1024xf32>
    %124 = vector.broadcast %122 : vector<1x1024xf32> to vector<16x1024xf32>
    %125 = arith.mulf %124, %123 : vector<16x1024xf32>
    %c128_121 = arith.constant 128 : index
    %c0_122 = arith.constant 0 : index
    %126 = vector.load %arg33[%c128_121, %c0_122] : memref<144x1024xf32, #tpu.memory_space<vmem>>, vector<16x1024xf32>
    tpu.vector_store %arg33[%c128_121, %c0_122], %125 {strides = array<i32>} : memref<144x1024xf32, #tpu.memory_space<vmem>>, vector<16x1024xf32>,
    %c0_123 = arith.constant 0 : index
    %c0_124 = arith.constant 0 : index
    %127 = vector.load %arg3[%c0_123, %c0_124] : memref<2x144xf32, #tpu.memory_space<vmem>>, vector<2x144xf32>
    %c0_125 = arith.constant 0 : index
    %c0_126 = arith.constant 0 : index
    %128 = vector.load %arg33[%c0_125, %c0_126] : memref<144x1024xf32, #tpu.memory_space<vmem>>, vector<144x1024xf32>
    %cst_127 = arith.constant dense<0.000000e+00> : vector<2x1024xf32>
    %129 = tpu.matmul %127, %128, %cst_127 {dimension_numbers = #tpu.dot_dimension_numbers<[1], [0], [0], [1], [0, 0, 1, 1], [], []>} : vector<2x144xf32>, vector<144x1024xf32>, vector<2x1024xf32> -> vector<2x1024xf32>
    %c0_128 = arith.constant 0 : index
    %c0_129 = arith.constant 0 : index
    %130 = vector.load %arg4[%c0_128, %c0_129] : memref<1x1xf32, #tpu.memory_space<vmem>>, vector<1x1xf32>
    %131 = vector.broadcast %130 : vector<1x1xf32> to vector<2x1024xf32>
    %132 = arith.addf %129, %131 : vector<2x1024xf32>
    %cst_130 = arith.constant 0.000000e+00 : f32
    %133 = vector.broadcast %cst_130 : f32 to vector<2x1024xf32>
    %134 = arith.maximumf %132, %133 : vector<2x1024xf32>
    %c0_131 = arith.constant 0 : index
    %c0_132 = arith.constant 0 : index
    %c0_133 = arith.constant 0 : index
    %135 = vector.load %arg6[%c0_131, %c0_132, %c0_133] : memref<4x1x1024xf32, #tpu.memory_space<vmem>>, vector<1x1x1024xf32>
    %136 = vector.shape_cast %135 : vector<1x1x1024xf32> to vector<1x1024xf32>
    %137 = vector.broadcast %136 : vector<1x1024xf32> to vector<2x1024xf32>
    %138 = arith.mulf %134, %137 : vector<2x1024xf32>
    %c0_134 = arith.constant 0 : index
    %c0_135 = arith.constant 0 : index
    %139 = vector.load %arg34[%c0_134, %c0_135] : memref<8x1024xf32, #tpu.memory_space<vmem>>, vector<2x1024xf32>
    tpu.vector_store %arg34[%c0_134, %c0_135], %138 {strides = array<i32>} : memref<8x1024xf32, #tpu.memory_space<vmem>>, vector<2x1024xf32>,
    %c1_136 = arith.constant 1 : index
    %c0_137 = arith.constant 0 : index
    %c0_138 = arith.constant 0 : index
    %140 = vector.load %arg6[%c1_136, %c0_137, %c0_138] : memref<4x1x1024xf32, #tpu.memory_space<vmem>>, vector<1x1x1024xf32>
    %141 = vector.shape_cast %140 : vector<1x1x1024xf32> to vector<1x1024xf32>
    %142 = vector.broadcast %141 : vector<1x1024xf32> to vector<2x1024xf32>
    %143 = arith.mulf %134, %142 : vector<2x1024xf32>
    %c2_139 = arith.constant 2 : index
    %c0_140 = arith.constant 0 : index
    %144 = vector.load %arg34[%c2_139, %c0_140] : memref<8x1024xf32, #tpu.memory_space<vmem>>, vector<2x1024xf32>
    tpu.vector_store %arg34[%c2_139, %c0_140], %143 {strides = array<i32>} : memref<8x1024xf32, #tpu.memory_space<vmem>>, vector<2x1024xf32>,
    %c2_141 = arith.constant 2 : index
    %c0_142 = arith.constant 0 : index
    %c0_143 = arith.constant 0 : index
    %145 = vector.load %arg6[%c2_141, %c0_142, %c0_143] : memref<4x1x1024xf32, #tpu.memory_space<vmem>>, vector<1x1x1024xf32>
    %146 = vector.shape_cast %145 : vector<1x1x1024xf32> to vector<1x1024xf32>
    %147 = vector.broadcast %146 : vector<1x1024xf32> to vector<2x1024xf32>
    %148 = arith.mulf %134, %147 : vector<2x1024xf32>
    %c4_144 = arith.constant 4 : index
    %c0_145 = arith.constant 0 : index
    %149 = vector.load %arg34[%c4_144, %c0_145] : memref<8x1024xf32, #tpu.memory_space<vmem>>, vector<2x1024xf32>
    tpu.vector_store %arg34[%c4_144, %c0_145], %148 {strides = array<i32>} : memref<8x1024xf32, #tpu.memory_space<vmem>>, vector<2x1024xf32>,
    %c3_146 = arith.constant 3 : index
    %c0_147 = arith.constant 0 : index
    %c0_148 = arith.constant 0 : index
    %150 = vector.load %arg6[%c3_146, %c0_147, %c0_148] : memref<4x1x1024xf32, #tpu.memory_space<vmem>>, vector<1x1x1024xf32>
    %151 = vector.shape_cast %150 : vector<1x1x1024xf32> to vector<1x1024xf32>
    %152 = vector.broadcast %151 : vector<1x1024xf32> to vector<2x1024xf32>
    %153 = arith.mulf %134, %152 : vector<2x1024xf32>
    %c6_149 = arith.constant 6 : index
    %c0_150 = arith.constant 0 : index
    %154 = vector.load %arg34[%c6_149, %c0_150] : memref<8x1024xf32, #tpu.memory_space<vmem>>, vector<2x1024xf32>
    tpu.vector_store %arg34[%c6_149, %c0_150], %153 {strides = array<i32>} : memref<8x1024xf32, #tpu.memory_space<vmem>>, vector<2x1024xf32>,
    %c0_151 = arith.constant 0 : index
    %c0_152 = arith.constant 0 : index
    %155 = vector.load %arg34[%c0_151, %c0_152] : memref<8x1024xf32, #tpu.memory_space<vmem>>, vector<8x1024xf32>
    %c0_153 = arith.constant 0 : index
    %c0_154 = arith.constant 0 : index
    %156 = vector.load %arg7[%c0_153, %c0_154] : memref<1024x9xf32, #tpu.memory_space<vmem>>, vector<1024x9xf32>
    %cst_155 = arith.constant dense<0.000000e+00> : vector<8x9xf32>
    %157 = tpu.matmul %155, %156, %cst_155 {dimension_numbers = #tpu.dot_dimension_numbers<[1], [0], [0], [1], [0, 0, 1, 1], [], []>} : vector<8x1024xf32>, vector<1024x9xf32>, vector<8x9xf32> -> vector<8x9xf32>
    %cst_156 = arith.constant 0.000000e+00 : f32
    %158 = vector.broadcast %cst_156 : f32 to vector<2x9xf32>
    %c0_157 = arith.constant 0 : index
    %c0_158 = arith.constant 0 : index
    %159 = vector.load %arg35[%c0_157, %c0_158] : memref<10x9xf32, #tpu.memory_space<vmem>>, vector<2x9xf32>
    tpu.vector_store %arg35[%c0_157, %c0_158], %158 {strides = array<i32>} : memref<10x9xf32, #tpu.memory_space<vmem>>, vector<2x9xf32>,
    %c2_159 = arith.constant 2 : index
    %c0_160 = arith.constant 0 : index
    %160 = vector.load %arg35[%c2_159, %c0_160] : memref<10x9xf32, #tpu.memory_space<vmem>>, vector<8x9xf32>
    tpu.vector_store %arg35[%c2_159, %c0_160], %157 {strides = array<i32>} : memref<10x9xf32, #tpu.memory_space<vmem>>, vector<8x9xf32>,
    %c0_161 = arith.constant 0 : index
    %c0_162 = arith.constant 0 : index
    %161 = vector.load %arg35[%c0_161, %c0_162] : memref<10x9xf32, #tpu.memory_space<vmem>>, vector<10x9xf32>
    %c0_163 = arith.constant 0 : index
    %c0_164 = arith.constant 0 : index
    %162 = vector.load %arg8[%c0_163, %c0_164] : memref<10x9xf32, #tpu.memory_space<vmem>>, vector<10x9xf32>
    %163 = arith.addf %161, %162 : vector<10x9xf32>
    %c0_165 = arith.constant 0 : index
    %c0_166 = arith.constant 0 : index
    %164 = vector.load %arg9[%c0_165, %c0_166] : memref<10x10xf32, #tpu.memory_space<vmem>>, vector<10x10xf32>
    %c0_167 = arith.constant 0 : index
    %c0_168 = arith.constant 0 : index
    %c0_169 = arith.constant 0 : index
    %c0_170 = arith.constant 0 : index
    %165 = vector.load %arg15[%c0_167, %c0_168, %c0_169, %c0_170] : memref<3x2x1x9xf32, #tpu.memory_space<vmem>>, vector<1x1x1x9xf32>
    %166 = vector.shape_cast %165 : vector<1x1x1x9xf32> to vector<1x9xf32>
    %c0_171 = arith.constant 0 : index
    %c0_172 = arith.constant 0 : index
    %c0_173 = arith.constant 0 : index
    %c0_174 = arith.constant 0 : index
    %167 = vector.load %arg16[%c0_171, %c0_172, %c0_173, %c0_174] : memref<3x2x1x9xf32, #tpu.memory_space<vmem>>, vector<1x1x1x9xf32>
    %168 = vector.shape_cast %167 : vector<1x1x1x9xf32> to vector<1x9xf32>
    %cst_175 = arith.constant dense<0.000000e+00> : vector<10xf32>
    %169 = vector.multi_reduction <add>, %163, %cst_175 [1] : vector<10x9xf32> to vector<10xf32>
    %170 = vector.shape_cast %169 : vector<10xf32> to vector<10x1xf32>
    %cst_176 = arith.constant 9.000000e+00 : f32
    %171 = vector.broadcast %cst_176 : f32 to vector<10x1xf32>
    %172 = arith.divf %170, %171 : vector<10x1xf32>
    %173 = vector.broadcast %172 : vector<10x1xf32> to vector<10x9xf32>
    %174 = arith.subf %163, %173 : vector<10x9xf32>
    %175 = vector.broadcast %172 : vector<10x1xf32> to vector<10x9xf32>
    %176 = arith.subf %163, %175 : vector<10x9xf32>
    %177 = arith.mulf %174, %176 : vector<10x9xf32>
    %cst_177 = arith.constant dense<0.000000e+00> : vector<10xf32>
    %178 = vector.multi_reduction <add>, %177, %cst_177 [1] : vector<10x9xf32> to vector<10xf32>
    %179 = vector.shape_cast %178 : vector<10xf32> to vector<10x1xf32>
    %cst_178 = arith.constant 9.000000e+00 : f32
    %180 = vector.broadcast %cst_178 : f32 to vector<10x1xf32>
    %181 = arith.divf %179, %180 : vector<10x1xf32>
    %182 = vector.broadcast %172 : vector<10x1xf32> to vector<10x9xf32>
    %183 = arith.subf %163, %182 : vector<10x9xf32>
    %cst_179 = arith.constant 9.99999974E-6 : f32
    %184 = vector.broadcast %cst_179 : f32 to vector<10x1xf32>
    %185 = arith.addf %181, %184 : vector<10x1xf32>
    %186 = math.rsqrt %185 : vector<10x1xf32>
    %187 = vector.broadcast %186 : vector<10x1xf32> to vector<10x9xf32>
    %188 = arith.mulf %183, %187 : vector<10x9xf32>
    %189 = vector.broadcast %166 : vector<1x9xf32> to vector<10x9xf32>
    %190 = arith.mulf %188, %189 : vector<10x9xf32>
    %191 = vector.broadcast %168 : vector<1x9xf32> to vector<10x9xf32>
    %192 = arith.addf %190, %191 : vector<10x9xf32>
    %c0_180 = arith.constant 0 : index
    %c0_181 = arith.constant 0 : index
    %c0_182 = arith.constant 0 : index
    %193 = vector.load %arg11[%c0_180, %c0_181, %c0_182] : memref<3x9x27xf32, #tpu.memory_space<vmem>>, vector<1x9x27xf32>
    %194 = vector.shape_cast %193 : vector<1x9x27xf32> to vector<9x27xf32>
    %cst_183 = arith.constant dense<0.000000e+00> : vector<10x27xf32>
    %195 = tpu.matmul %192, %194, %cst_183 {dimension_numbers = #tpu.dot_dimension_numbers<[1], [0], [0], [1], [0, 0, 1, 1], [], []>} : vector<10x9xf32>, vector<9x27xf32>, vector<10x27xf32> -> vector<10x27xf32>
    %c0_184 = arith.constant 0 : index
    %c0_185 = arith.constant 0 : index
    %c0_186 = arith.constant 0 : index
    %196 = vector.load %arg12[%c0_184, %c0_185, %c0_186] : memref<3x1x27xf32, #tpu.memory_space<vmem>>, vector<1x1x27xf32>
    %197 = vector.shape_cast %196 : vector<1x1x27xf32> to vector<1x27xf32>
    %198 = vector.broadcast %197 : vector<1x27xf32> to vector<10x27xf32>
    %199 = arith.addf %195, %198 : vector<10x27xf32>
    %200 = vector.extract_strided_slice %199 {offsets = [0, 0], sizes = [10, 9], strides = [1, 1]} : vector<10x27xf32> to vector<10x9xf32>
    %201 = vector.extract_strided_slice %199 {offsets = [0, 9], sizes = [10, 9], strides = [1, 1]} : vector<10x27xf32> to vector<10x9xf32>
    %202 = vector.extract_strided_slice %199 {offsets = [0, 18], sizes = [10, 9], strides = [1, 1]} : vector<10x27xf32> to vector<10x9xf32>
    %cst_187 = arith.constant 0.000000e+00 : f32
    %203 = vector.broadcast %cst_187 : f32 to vector<10x9xf32>
    %c0_188 = arith.constant 0 : index
    %c0_189 = arith.constant 0 : index
    %c0_190 = arith.constant 0 : index
    %204 = vector.load %arg10[%c0_188, %c0_189, %c0_190] : memref<3x1x9xf32, #tpu.memory_space<vmem>>, vector<1x1x9xf32>
    %205 = vector.shape_cast %204 : vector<1x1x9xf32> to vector<1x9xf32>
    %206 = vector.broadcast %205 : vector<1x9xf32> to vector<10x9xf32>
    %207 = arith.mulf %200, %206 : vector<10x9xf32>
    %cst_191 = arith.constant dense<0.000000e+00> : vector<10x10xf32>
    %208 = tpu.matmul %207, %201, %cst_191 {dimension_numbers = #tpu.dot_dimension_numbers<[1], [1], [0], [0], [0, 0, 1, 0], [], []>} : vector<10x9xf32>, vector<10x9xf32>, vector<10x10xf32> -> vector<10x10xf32>
    %cst_192 = arith.constant 0.577350259 : f32
    %209 = vector.broadcast %cst_192 : f32 to vector<10x10xf32>
    %210 = arith.mulf %208, %209 : vector<10x10xf32>
    %211 = arith.addf %210, %164 : vector<10x10xf32>
    %cst_193 = arith.constant dense<0xFF800000> : vector<10xf32>
    %212 = vector.multi_reduction <maximumf>, %211, %cst_193 [1] : vector<10x10xf32> to vector<10xf32>
    %213 = vector.shape_cast %212 : vector<10xf32> to vector<10x1xf32>
    %214 = vector.broadcast %213 : vector<10x1xf32> to vector<10x10xf32>
    %215 = arith.subf %211, %214 : vector<10x10xf32>
    %216 = math.exp %215 : vector<10x10xf32>
    %cst_194 = arith.constant dense<0.000000e+00> : vector<10xf32>
    %217 = vector.multi_reduction <add>, %216, %cst_194 [1] : vector<10x10xf32> to vector<10xf32>
    %218 = vector.shape_cast %217 : vector<10xf32> to vector<10x1xf32>
    %219 = tpu.reciprocal %218 {approx = true} : vector<10x1xf32> -> vector<10x1xf32>
    %220 = vector.broadcast %219 : vector<10x1xf32> to vector<10x10xf32>
    %221 = arith.mulf %216, %220 : vector<10x10xf32>
    %222 = vector.broadcast %205 : vector<1x9xf32> to vector<10x9xf32>
    %223 = arith.mulf %202, %222 : vector<10x9xf32>
    %cst_195 = arith.constant dense<0.000000e+00> : vector<10x9xf32>
    %224 = tpu.matmul %221, %223, %cst_195 {dimension_numbers = #tpu.dot_dimension_numbers<[1], [0], [0], [1], [0, 0, 1, 1], [], []>} : vector<10x10xf32>, vector<10x9xf32>, vector<10x9xf32> -> vector<10x9xf32>
    %225 = arith.addf %203, %224 : vector<10x9xf32>
    %c1_196 = arith.constant 1 : index
    %c0_197 = arith.constant 0 : index
    %c0_198 = arith.constant 0 : index
    %226 = vector.load %arg10[%c1_196, %c0_197, %c0_198] : memref<3x1x9xf32, #tpu.memory_space<vmem>>, vector<1x1x9xf32>
    %227 = vector.shape_cast %226 : vector<1x1x9xf32> to vector<1x9xf32>
    %228 = vector.broadcast %227 : vector<1x9xf32> to vector<10x9xf32>
    %229 = arith.mulf %200, %228 : vector<10x9xf32>
    %cst_199 = arith.constant dense<0.000000e+00> : vector<10x10xf32>
    %230 = tpu.matmul %229, %201, %cst_199 {dimension_numbers = #tpu.dot_dimension_numbers<[1], [1], [0], [0], [0, 0, 1, 0], [], []>} : vector<10x9xf32>, vector<10x9xf32>, vector<10x10xf32> -> vector<10x10xf32>
    %cst_200 = arith.constant 0.577350259 : f32
    %231 = vector.broadcast %cst_200 : f32 to vector<10x10xf32>
    %232 = arith.mulf %230, %231 : vector<10x10xf32>
    %233 = arith.addf %232, %164 : vector<10x10xf32>
    %cst_201 = arith.constant dense<0xFF800000> : vector<10xf32>
    %234 = vector.multi_reduction <maximumf>, %233, %cst_201 [1] : vector<10x10xf32> to vector<10xf32>
    %235 = vector.shape_cast %234 : vector<10xf32> to vector<10x1xf32>
    %236 = vector.broadcast %235 : vector<10x1xf32> to vector<10x10xf32>
    %237 = arith.subf %233, %236 : vector<10x10xf32>
    %238 = math.exp %237 : vector<10x10xf32>
    %cst_202 = arith.constant dense<0.000000e+00> : vector<10xf32>
    %239 = vector.multi_reduction <add>, %238, %cst_202 [1] : vector<10x10xf32> to vector<10xf32>
    %240 = vector.shape_cast %239 : vector<10xf32> to vector<10x1xf32>
    %241 = tpu.reciprocal %240 {approx = true} : vector<10x1xf32> -> vector<10x1xf32>
    %242 = vector.broadcast %241 : vector<10x1xf32> to vector<10x10xf32>
    %243 = arith.mulf %238, %242 : vector<10x10xf32>
    %244 = vector.broadcast %227 : vector<1x9xf32> to vector<10x9xf32>
    %245 = arith.mulf %202, %244 : vector<10x9xf32>
    %cst_203 = arith.constant dense<0.000000e+00> : vector<10x9xf32>
    %246 = tpu.matmul %243, %245, %cst_203 {dimension_numbers = #tpu.dot_dimension_numbers<[1], [0], [0], [1], [0, 0, 1, 1], [], []>} : vector<10x10xf32>, vector<10x9xf32>, vector<10x9xf32> -> vector<10x9xf32>
    %247 = arith.addf %225, %246 : vector<10x9xf32>
    %c2_204 = arith.constant 2 : index
    %c0_205 = arith.constant 0 : index
    %c0_206 = arith.constant 0 : index
    %248 = vector.load %arg10[%c2_204, %c0_205, %c0_206] : memref<3x1x9xf32, #tpu.memory_space<vmem>>, vector<1x1x9xf32>
    %249 = vector.shape_cast %248 : vector<1x1x9xf32> to vector<1x9xf32>
    %250 = vector.broadcast %249 : vector<1x9xf32> to vector<10x9xf32>
    %251 = arith.mulf %200, %250 : vector<10x9xf32>
    %cst_207 = arith.constant dense<0.000000e+00> : vector<10x10xf32>
    %252 = tpu.matmul %251, %201, %cst_207 {dimension_numbers = #tpu.dot_dimension_numbers<[1], [1], [0], [0], [0, 0, 1, 0], [], []>} : vector<10x9xf32>, vector<10x9xf32>, vector<10x10xf32> -> vector<10x10xf32>
    %cst_208 = arith.constant 0.577350259 : f32
    %253 = vector.broadcast %cst_208 : f32 to vector<10x10xf32>
    %254 = arith.mulf %252, %253 : vector<10x10xf32>
    %255 = arith.addf %254, %164 : vector<10x10xf32>
    %cst_209 = arith.constant dense<0xFF800000> : vector<10xf32>
    %256 = vector.multi_reduction <maximumf>, %255, %cst_209 [1] : vector<10x10xf32> to vector<10xf32>
    %257 = vector.shape_cast %256 : vector<10xf32> to vector<10x1xf32>
    %258 = vector.broadcast %257 : vector<10x1xf32> to vector<10x10xf32>
    %259 = arith.subf %255, %258 : vector<10x10xf32>
    %260 = math.exp %259 : vector<10x10xf32>
    %cst_210 = arith.constant dense<0.000000e+00> : vector<10xf32>
    %261 = vector.multi_reduction <add>, %260, %cst_210 [1] : vector<10x10xf32> to vector<10xf32>
    %262 = vector.shape_cast %261 : vector<10xf32> to vector<10x1xf32>
    %263 = tpu.reciprocal %262 {approx = true} : vector<10x1xf32> -> vector<10x1xf32>
    %264 = vector.broadcast %263 : vector<10x1xf32> to vector<10x10xf32>
    %265 = arith.mulf %260, %264 : vector<10x10xf32>
    %266 = vector.broadcast %249 : vector<1x9xf32> to vector<10x9xf32>
    %267 = arith.mulf %202, %266 : vector<10x9xf32>
    %cst_211 = arith.constant dense<0.000000e+00> : vector<10x9xf32>
    %268 = tpu.matmul %265, %267, %cst_211 {dimension_numbers = #tpu.dot_dimension_numbers<[1], [0], [0], [1], [0, 0, 1, 1], [], []>} : vector<10x10xf32>, vector<10x9xf32>, vector<10x9xf32> -> vector<10x9xf32>
    %269 = arith.addf %247, %268 : vector<10x9xf32>
    %c0_212 = arith.constant 0 : index
    %c0_213 = arith.constant 0 : index
    %c0_214 = arith.constant 0 : index
    %270 = vector.load %arg13[%c0_212, %c0_213, %c0_214] : memref<3x9x9xf32, #tpu.memory_space<vmem>>, vector<1x9x9xf32>
    %271 = vector.shape_cast %270 : vector<1x9x9xf32> to vector<9x9xf32>
    %cst_215 = arith.constant dense<0.000000e+00> : vector<10x9xf32>
    %272 = tpu.matmul %269, %271, %cst_215 {dimension_numbers = #tpu.dot_dimension_numbers<[1], [0], [0], [1], [0, 0, 1, 1], [], []>} : vector<10x9xf32>, vector<9x9xf32>, vector<10x9xf32> -> vector<10x9xf32>
    %c0_216 = arith.constant 0 : index
    %c0_217 = arith.constant 0 : index
    %c0_218 = arith.constant 0 : index
    %273 = vector.load %arg14[%c0_216, %c0_217, %c0_218] : memref<3x1x9xf32, #tpu.memory_space<vmem>>, vector<1x1x9xf32>
    %274 = vector.shape_cast %273 : vector<1x1x9xf32> to vector<1x9xf32>
    %275 = vector.broadcast %274 : vector<1x9xf32> to vector<10x9xf32>
    %276 = arith.addf %272, %275 : vector<10x9xf32>
    %277 = arith.addf %163, %276 : vector<10x9xf32>
    %c0_219 = arith.constant 0 : index
    %c1_220 = arith.constant 1 : index
    %c0_221 = arith.constant 0 : index
    %c0_222 = arith.constant 0 : index
    %278 = vector.load %arg15[%c0_219, %c1_220, %c0_221, %c0_222] : memref<3x2x1x9xf32, #tpu.memory_space<vmem>>, vector<1x1x1x9xf32>
    %279 = vector.shape_cast %278 : vector<1x1x1x9xf32> to vector<1x9xf32>
    %c0_223 = arith.constant 0 : index
    %c1_224 = arith.constant 1 : index
    %c0_225 = arith.constant 0 : index
    %c0_226 = arith.constant 0 : index
    %280 = vector.load %arg16[%c0_223, %c1_224, %c0_225, %c0_226] : memref<3x2x1x9xf32, #tpu.memory_space<vmem>>, vector<1x1x1x9xf32>
    %281 = vector.shape_cast %280 : vector<1x1x1x9xf32> to vector<1x9xf32>
    %cst_227 = arith.constant dense<0.000000e+00> : vector<10xf32>
    %282 = vector.multi_reduction <add>, %277, %cst_227 [1] : vector<10x9xf32> to vector<10xf32>
    %283 = vector.shape_cast %282 : vector<10xf32> to vector<10x1xf32>
    %cst_228 = arith.constant 9.000000e+00 : f32
    %284 = vector.broadcast %cst_228 : f32 to vector<10x1xf32>
    %285 = arith.divf %283, %284 : vector<10x1xf32>
    %286 = vector.broadcast %285 : vector<10x1xf32> to vector<10x9xf32>
    %287 = arith.subf %277, %286 : vector<10x9xf32>
    %288 = vector.broadcast %285 : vector<10x1xf32> to vector<10x9xf32>
    %289 = arith.subf %277, %288 : vector<10x9xf32>
    %290 = arith.mulf %287, %289 : vector<10x9xf32>
    %cst_229 = arith.constant dense<0.000000e+00> : vector<10xf32>
    %291 = vector.multi_reduction <add>, %290, %cst_229 [1] : vector<10x9xf32> to vector<10xf32>
    %292 = vector.shape_cast %291 : vector<10xf32> to vector<10x1xf32>
    %cst_230 = arith.constant 9.000000e+00 : f32
    %293 = vector.broadcast %cst_230 : f32 to vector<10x1xf32>
    %294 = arith.divf %292, %293 : vector<10x1xf32>
    %295 = vector.broadcast %285 : vector<10x1xf32> to vector<10x9xf32>
    %296 = arith.subf %277, %295 : vector<10x9xf32>
    %cst_231 = arith.constant 9.99999974E-6 : f32
    %297 = vector.broadcast %cst_231 : f32 to vector<10x1xf32>
    %298 = arith.addf %294, %297 : vector<10x1xf32>
    %299 = math.rsqrt %298 : vector<10x1xf32>
    %300 = vector.broadcast %299 : vector<10x1xf32> to vector<10x9xf32>
    %301 = arith.mulf %296, %300 : vector<10x9xf32>
    %302 = vector.broadcast %279 : vector<1x9xf32> to vector<10x9xf32>
    %303 = arith.mulf %301, %302 : vector<10x9xf32>
    %304 = vector.broadcast %281 : vector<1x9xf32> to vector<10x9xf32>
    %305 = arith.addf %303, %304 : vector<10x9xf32>
    %c0_232 = arith.constant 0 : index
    %c0_233 = arith.constant 0 : index
    %c0_234 = arith.constant 0 : index
    %306 = vector.load %arg17[%c0_232, %c0_233, %c0_234] : memref<3x9x36xf32, #tpu.memory_space<vmem>>, vector<1x9x36xf32>
    %307 = vector.shape_cast %306 : vector<1x9x36xf32> to vector<9x36xf32>
    %cst_235 = arith.constant dense<0.000000e+00> : vector<10x36xf32>
    %308 = tpu.matmul %305, %307, %cst_235 {dimension_numbers = #tpu.dot_dimension_numbers<[1], [0], [0], [1], [0, 0, 1, 1], [], []>} : vector<10x9xf32>, vector<9x36xf32>, vector<10x36xf32> -> vector<10x36xf32>
    %c0_236 = arith.constant 0 : index
    %c0_237 = arith.constant 0 : index
    %c0_238 = arith.constant 0 : index
    %309 = vector.load %arg18[%c0_236, %c0_237, %c0_238] : memref<3x1x36xf32, #tpu.memory_space<vmem>>, vector<1x1x36xf32>
    %310 = vector.shape_cast %309 : vector<1x1x36xf32> to vector<1x36xf32>
    %311 = vector.broadcast %310 : vector<1x36xf32> to vector<10x36xf32>
    %312 = arith.addf %308, %311 : vector<10x36xf32>
    %313 = arith.mulf %312, %312 : vector<10x36xf32>
    %314 = arith.mulf %312, %313 : vector<10x36xf32>
    %cst_239 = arith.constant 4.471500e-02 : f32
    %315 = vector.broadcast %cst_239 : f32 to vector<10x36xf32>
    %316 = arith.mulf %315, %314 : vector<10x36xf32>
    %317 = arith.addf %312, %316 : vector<10x36xf32>
    %cst_240 = arith.constant 0.797884583 : f32
    %318 = vector.broadcast %cst_240 : f32 to vector<10x36xf32>
    %319 = arith.mulf %318, %317 : vector<10x36xf32>
    %320 = math.tanh %319 : vector<10x36xf32>
    %cst_241 = arith.constant 1.000000e+00 : f32
    %321 = vector.broadcast %cst_241 : f32 to vector<10x36xf32>
    %322 = arith.addf %321, %320 : vector<10x36xf32>
    %cst_242 = arith.constant 5.000000e-01 : f32
    %323 = vector.broadcast %cst_242 : f32 to vector<10x36xf32>
    %324 = arith.mulf %323, %322 : vector<10x36xf32>
    %325 = arith.mulf %312, %324 : vector<10x36xf32>
    %c0_243 = arith.constant 0 : index
    %c0_244 = arith.constant 0 : index
    %c0_245 = arith.constant 0 : index
    %326 = vector.load %arg19[%c0_243, %c0_244, %c0_245] : memref<3x36x9xf32, #tpu.memory_space<vmem>>, vector<1x36x9xf32>
    %327 = vector.shape_cast %326 : vector<1x36x9xf32> to vector<36x9xf32>
    %cst_246 = arith.constant dense<0.000000e+00> : vector<10x9xf32>
    %328 = tpu.matmul %325, %327, %cst_246 {dimension_numbers = #tpu.dot_dimension_numbers<[1], [0], [0], [1], [0, 0, 1, 1], [], []>} : vector<10x36xf32>, vector<36x9xf32>, vector<10x9xf32> -> vector<10x9xf32>
    %329 = arith.addf %277, %328 : vector<10x9xf32>
    %c0_247 = arith.constant 0 : index
    %c0_248 = arith.constant 0 : index
    %c0_249 = arith.constant 0 : index
    %330 = vector.load %arg20[%c0_247, %c0_248, %c0_249] : memref<3x1x9xf32, #tpu.memory_space<vmem>>, vector<1x1x9xf32>
    %331 = vector.shape_cast %330 : vector<1x1x9xf32> to vector<1x9xf32>
    %332 = vector.broadcast %331 : vector<1x9xf32> to vector<10x9xf32>
    %333 = arith.addf %329, %332 : vector<10x9xf32>
    %c1_250 = arith.constant 1 : index
    %c0_251 = arith.constant 0 : index
    %c0_252 = arith.constant 0 : index
    %c0_253 = arith.constant 0 : index
    %334 = vector.load %arg15[%c1_250, %c0_251, %c0_252, %c0_253] : memref<3x2x1x9xf32, #tpu.memory_space<vmem>>, vector<1x1x1x9xf32>
    %335 = vector.shape_cast %334 : vector<1x1x1x9xf32> to vector<1x9xf32>
    %c1_254 = arith.constant 1 : index
    %c0_255 = arith.constant 0 : index
    %c0_256 = arith.constant 0 : index
    %c0_257 = arith.constant 0 : index
    %336 = vector.load %arg16[%c1_254, %c0_255, %c0_256, %c0_257] : memref<3x2x1x9xf32, #tpu.memory_space<vmem>>, vector<1x1x1x9xf32>
    %337 = vector.shape_cast %336 : vector<1x1x1x9xf32> to vector<1x9xf32>
    %cst_258 = arith.constant dense<0.000000e+00> : vector<10xf32>
    %338 = vector.multi_reduction <add>, %333, %cst_258 [1] : vector<10x9xf32> to vector<10xf32>
    %339 = vector.shape_cast %338 : vector<10xf32> to vector<10x1xf32>
    %cst_259 = arith.constant 9.000000e+00 : f32
    %340 = vector.broadcast %cst_259 : f32 to vector<10x1xf32>
    %341 = arith.divf %339, %340 : vector<10x1xf32>
    %342 = vector.broadcast %341 : vector<10x1xf32> to vector<10x9xf32>
    %343 = arith.subf %333, %342 : vector<10x9xf32>
    %344 = vector.broadcast %341 : vector<10x1xf32> to vector<10x9xf32>
    %345 = arith.subf %333, %344 : vector<10x9xf32>
    %346 = arith.mulf %343, %345 : vector<10x9xf32>
    %cst_260 = arith.constant dense<0.000000e+00> : vector<10xf32>
    %347 = vector.multi_reduction <add>, %346, %cst_260 [1] : vector<10x9xf32> to vector<10xf32>
    %348 = vector.shape_cast %347 : vector<10xf32> to vector<10x1xf32>
    %cst_261 = arith.constant 9.000000e+00 : f32
    %349 = vector.broadcast %cst_261 : f32 to vector<10x1xf32>
    %350 = arith.divf %348, %349 : vector<10x1xf32>
    %351 = vector.broadcast %341 : vector<10x1xf32> to vector<10x9xf32>
    %352 = arith.subf %333, %351 : vector<10x9xf32>
    %cst_262 = arith.constant 9.99999974E-6 : f32
    %353 = vector.broadcast %cst_262 : f32 to vector<10x1xf32>
    %354 = arith.addf %350, %353 : vector<10x1xf32>
    %355 = math.rsqrt %354 : vector<10x1xf32>
    %356 = vector.broadcast %355 : vector<10x1xf32> to vector<10x9xf32>
    %357 = arith.mulf %352, %356 : vector<10x9xf32>
    %358 = vector.broadcast %335 : vector<1x9xf32> to vector<10x9xf32>
    %359 = arith.mulf %357, %358 : vector<10x9xf32>
    %360 = vector.broadcast %337 : vector<1x9xf32> to vector<10x9xf32>
    %361 = arith.addf %359, %360 : vector<10x9xf32>
    %c1_263 = arith.constant 1 : index
    %c0_264 = arith.constant 0 : index
    %c0_265 = arith.constant 0 : index
    %362 = vector.load %arg11[%c1_263, %c0_264, %c0_265] : memref<3x9x27xf32, #tpu.memory_space<vmem>>, vector<1x9x27xf32>
    %363 = vector.shape_cast %362 : vector<1x9x27xf32> to vector<9x27xf32>
    %cst_266 = arith.constant dense<0.000000e+00> : vector<10x27xf32>
    %364 = tpu.matmul %361, %363, %cst_266 {dimension_numbers = #tpu.dot_dimension_numbers<[1], [0], [0], [1], [0, 0, 1, 1], [], []>} : vector<10x9xf32>, vector<9x27xf32>, vector<10x27xf32> -> vector<10x27xf32>
    %c1_267 = arith.constant 1 : index
    %c0_268 = arith.constant 0 : index
    %c0_269 = arith.constant 0 : index
    %365 = vector.load %arg12[%c1_267, %c0_268, %c0_269] : memref<3x1x27xf32, #tpu.memory_space<vmem>>, vector<1x1x27xf32>
    %366 = vector.shape_cast %365 : vector<1x1x27xf32> to vector<1x27xf32>
    %367 = vector.broadcast %366 : vector<1x27xf32> to vector<10x27xf32>
    %368 = arith.addf %364, %367 : vector<10x27xf32>
    %369 = vector.extract_strided_slice %368 {offsets = [0, 0], sizes = [10, 9], strides = [1, 1]} : vector<10x27xf32> to vector<10x9xf32>
    %370 = vector.extract_strided_slice %368 {offsets = [0, 9], sizes = [10, 9], strides = [1, 1]} : vector<10x27xf32> to vector<10x9xf32>
    %371 = vector.extract_strided_slice %368 {offsets = [0, 18], sizes = [10, 9], strides = [1, 1]} : vector<10x27xf32> to vector<10x9xf32>
    %cst_270 = arith.constant 0.000000e+00 : f32
    %372 = vector.broadcast %cst_270 : f32 to vector<10x9xf32>
    %c0_271 = arith.constant 0 : index
    %c0_272 = arith.constant 0 : index
    %c0_273 = arith.constant 0 : index
    %373 = vector.load %arg10[%c0_271, %c0_272, %c0_273] : memref<3x1x9xf32, #tpu.memory_space<vmem>>, vector<1x1x9xf32>
    %374 = vector.shape_cast %373 : vector<1x1x9xf32> to vector<1x9xf32>
    %375 = vector.broadcast %374 : vector<1x9xf32> to vector<10x9xf32>
    %376 = arith.mulf %369, %375 : vector<10x9xf32>
    %cst_274 = arith.constant dense<0.000000e+00> : vector<10x10xf32>
    %377 = tpu.matmul %376, %370, %cst_274 {dimension_numbers = #tpu.dot_dimension_numbers<[1], [1], [0], [0], [0, 0, 1, 0], [], []>} : vector<10x9xf32>, vector<10x9xf32>, vector<10x10xf32> -> vector<10x10xf32>
    %cst_275 = arith.constant 0.577350259 : f32
    %378 = vector.broadcast %cst_275 : f32 to vector<10x10xf32>
    %379 = arith.mulf %377, %378 : vector<10x10xf32>
    %380 = arith.addf %379, %164 : vector<10x10xf32>
    %cst_276 = arith.constant dense<0xFF800000> : vector<10xf32>
    %381 = vector.multi_reduction <maximumf>, %380, %cst_276 [1] : vector<10x10xf32> to vector<10xf32>
    %382 = vector.shape_cast %381 : vector<10xf32> to vector<10x1xf32>
    %383 = vector.broadcast %382 : vector<10x1xf32> to vector<10x10xf32>
    %384 = arith.subf %380, %383 : vector<10x10xf32>
    %385 = math.exp %384 : vector<10x10xf32>
    %cst_277 = arith.constant dense<0.000000e+00> : vector<10xf32>
    %386 = vector.multi_reduction <add>, %385, %cst_277 [1] : vector<10x10xf32> to vector<10xf32>
    %387 = vector.shape_cast %386 : vector<10xf32> to vector<10x1xf32>
    %388 = tpu.reciprocal %387 {approx = true} : vector<10x1xf32> -> vector<10x1xf32>
    %389 = vector.broadcast %388 : vector<10x1xf32> to vector<10x10xf32>
    %390 = arith.mulf %385, %389 : vector<10x10xf32>
    %391 = vector.broadcast %374 : vector<1x9xf32> to vector<10x9xf32>
    %392 = arith.mulf %371, %391 : vector<10x9xf32>
    %cst_278 = arith.constant dense<0.000000e+00> : vector<10x9xf32>
    %393 = tpu.matmul %390, %392, %cst_278 {dimension_numbers = #tpu.dot_dimension_numbers<[1], [0], [0], [1], [0, 0, 1, 1], [], []>} : vector<10x10xf32>, vector<10x9xf32>, vector<10x9xf32> -> vector<10x9xf32>
    %394 = arith.addf %372, %393 : vector<10x9xf32>
    %c1_279 = arith.constant 1 : index
    %c0_280 = arith.constant 0 : index
    %c0_281 = arith.constant 0 : index
    %395 = vector.load %arg10[%c1_279, %c0_280, %c0_281] : memref<3x1x9xf32, #tpu.memory_space<vmem>>, vector<1x1x9xf32>
    %396 = vector.shape_cast %395 : vector<1x1x9xf32> to vector<1x9xf32>
    %397 = vector.broadcast %396 : vector<1x9xf32> to vector<10x9xf32>
    %398 = arith.mulf %369, %397 : vector<10x9xf32>
    %cst_282 = arith.constant dense<0.000000e+00> : vector<10x10xf32>
    %399 = tpu.matmul %398, %370, %cst_282 {dimension_numbers = #tpu.dot_dimension_numbers<[1], [1], [0], [0], [0, 0, 1, 0], [], []>} : vector<10x9xf32>, vector<10x9xf32>, vector<10x10xf32> -> vector<10x10xf32>
    %cst_283 = arith.constant 0.577350259 : f32
    %400 = vector.broadcast %cst_283 : f32 to vector<10x10xf32>
    %401 = arith.mulf %399, %400 : vector<10x10xf32>
    %402 = arith.addf %401, %164 : vector<10x10xf32>
    %cst_284 = arith.constant dense<0xFF800000> : vector<10xf32>
    %403 = vector.multi_reduction <maximumf>, %402, %cst_284 [1] : vector<10x10xf32> to vector<10xf32>
    %404 = vector.shape_cast %403 : vector<10xf32> to vector<10x1xf32>
    %405 = vector.broadcast %404 : vector<10x1xf32> to vector<10x10xf32>
    %406 = arith.subf %402, %405 : vector<10x10xf32>
    %407 = math.exp %406 : vector<10x10xf32>
    %cst_285 = arith.constant dense<0.000000e+00> : vector<10xf32>
    %408 = vector.multi_reduction <add>, %407, %cst_285 [1] : vector<10x10xf32> to vector<10xf32>
    %409 = vector.shape_cast %408 : vector<10xf32> to vector<10x1xf32>
    %410 = tpu.reciprocal %409 {approx = true} : vector<10x1xf32> -> vector<10x1xf32>
    %411 = vector.broadcast %410 : vector<10x1xf32> to vector<10x10xf32>
    %412 = arith.mulf %407, %411 : vector<10x10xf32>
    %413 = vector.broadcast %396 : vector<1x9xf32> to vector<10x9xf32>
    %414 = arith.mulf %371, %413 : vector<10x9xf32>
    %cst_286 = arith.constant dense<0.000000e+00> : vector<10x9xf32>
    %415 = tpu.matmul %412, %414, %cst_286 {dimension_numbers = #tpu.dot_dimension_numbers<[1], [0], [0], [1], [0, 0, 1, 1], [], []>} : vector<10x10xf32>, vector<10x9xf32>, vector<10x9xf32> -> vector<10x9xf32>
    %416 = arith.addf %394, %415 : vector<10x9xf32>
    %c2_287 = arith.constant 2 : index
    %c0_288 = arith.constant 0 : index
    %c0_289 = arith.constant 0 : index
    %417 = vector.load %arg10[%c2_287, %c0_288, %c0_289] : memref<3x1x9xf32, #tpu.memory_space<vmem>>, vector<1x1x9xf32>
    %418 = vector.shape_cast %417 : vector<1x1x9xf32> to vector<1x9xf32>
    %419 = vector.broadcast %418 : vector<1x9xf32> to vector<10x9xf32>
    %420 = arith.mulf %369, %419 : vector<10x9xf32>
    %cst_290 = arith.constant dense<0.000000e+00> : vector<10x10xf32>
    %421 = tpu.matmul %420, %370, %cst_290 {dimension_numbers = #tpu.dot_dimension_numbers<[1], [1], [0], [0], [0, 0, 1, 0], [], []>} : vector<10x9xf32>, vector<10x9xf32>, vector<10x10xf32> -> vector<10x10xf32>
    %cst_291 = arith.constant 0.577350259 : f32
    %422 = vector.broadcast %cst_291 : f32 to vector<10x10xf32>
    %423 = arith.mulf %421, %422 : vector<10x10xf32>
    %424 = arith.addf %423, %164 : vector<10x10xf32>
    %cst_292 = arith.constant dense<0xFF800000> : vector<10xf32>
    %425 = vector.multi_reduction <maximumf>, %424, %cst_292 [1] : vector<10x10xf32> to vector<10xf32>
    %426 = vector.shape_cast %425 : vector<10xf32> to vector<10x1xf32>
    %427 = vector.broadcast %426 : vector<10x1xf32> to vector<10x10xf32>
    %428 = arith.subf %424, %427 : vector<10x10xf32>
    %429 = math.exp %428 : vector<10x10xf32>
    %cst_293 = arith.constant dense<0.000000e+00> : vector<10xf32>
    %430 = vector.multi_reduction <add>, %429, %cst_293 [1] : vector<10x10xf32> to vector<10xf32>
    %431 = vector.shape_cast %430 : vector<10xf32> to vector<10x1xf32>
    %432 = tpu.reciprocal %431 {approx = true} : vector<10x1xf32> -> vector<10x1xf32>
    %433 = vector.broadcast %432 : vector<10x1xf32> to vector<10x10xf32>
    %434 = arith.mulf %429, %433 : vector<10x10xf32>
    %435 = vector.broadcast %418 : vector<1x9xf32> to vector<10x9xf32>
    %436 = arith.mulf %371, %435 : vector<10x9xf32>
    %cst_294 = arith.constant dense<0.000000e+00> : vector<10x9xf32>
    %437 = tpu.matmul %434, %436, %cst_294 {dimension_numbers = #tpu.dot_dimension_numbers<[1], [0], [0], [1], [0, 0, 1, 1], [], []>} : vector<10x10xf32>, vector<10x9xf32>, vector<10x9xf32> -> vector<10x9xf32>
    %438 = arith.addf %416, %437 : vector<10x9xf32>
    %c1_295 = arith.constant 1 : index
    %c0_296 = arith.constant 0 : index
    %c0_297 = arith.constant 0 : index
    %439 = vector.load %arg13[%c1_295, %c0_296, %c0_297] : memref<3x9x9xf32, #tpu.memory_space<vmem>>, vector<1x9x9xf32>
    %440 = vector.shape_cast %439 : vector<1x9x9xf32> to vector<9x9xf32>
    %cst_298 = arith.constant dense<0.000000e+00> : vector<10x9xf32>
    %441 = tpu.matmul %438, %440, %cst_298 {dimension_numbers = #tpu.dot_dimension_numbers<[1], [0], [0], [1], [0, 0, 1, 1], [], []>} : vector<10x9xf32>, vector<9x9xf32>, vector<10x9xf32> -> vector<10x9xf32>
    %c1_299 = arith.constant 1 : index
    %c0_300 = arith.constant 0 : index
    %c0_301 = arith.constant 0 : index
    %442 = vector.load %arg14[%c1_299, %c0_300, %c0_301] : memref<3x1x9xf32, #tpu.memory_space<vmem>>, vector<1x1x9xf32>
    %443 = vector.shape_cast %442 : vector<1x1x9xf32> to vector<1x9xf32>
    %444 = vector.broadcast %443 : vector<1x9xf32> to vector<10x9xf32>
    %445 = arith.addf %441, %444 : vector<10x9xf32>
    %446 = arith.addf %333, %445 : vector<10x9xf32>
    %c1_302 = arith.constant 1 : index
    %c1_303 = arith.constant 1 : index
    %c0_304 = arith.constant 0 : index
    %c0_305 = arith.constant 0 : index
    %447 = vector.load %arg15[%c1_302, %c1_303, %c0_304, %c0_305] : memref<3x2x1x9xf32, #tpu.memory_space<vmem>>, vector<1x1x1x9xf32>
    %448 = vector.shape_cast %447 : vector<1x1x1x9xf32> to vector<1x9xf32>
    %c1_306 = arith.constant 1 : index
    %c1_307 = arith.constant 1 : index
    %c0_308 = arith.constant 0 : index
    %c0_309 = arith.constant 0 : index
    %449 = vector.load %arg16[%c1_306, %c1_307, %c0_308, %c0_309] : memref<3x2x1x9xf32, #tpu.memory_space<vmem>>, vector<1x1x1x9xf32>
    %450 = vector.shape_cast %449 : vector<1x1x1x9xf32> to vector<1x9xf32>
    %cst_310 = arith.constant dense<0.000000e+00> : vector<10xf32>
    %451 = vector.multi_reduction <add>, %446, %cst_310 [1] : vector<10x9xf32> to vector<10xf32>
    %452 = vector.shape_cast %451 : vector<10xf32> to vector<10x1xf32>
    %cst_311 = arith.constant 9.000000e+00 : f32
    %453 = vector.broadcast %cst_311 : f32 to vector<10x1xf32>
    %454 = arith.divf %452, %453 : vector<10x1xf32>
    %455 = vector.broadcast %454 : vector<10x1xf32> to vector<10x9xf32>
    %456 = arith.subf %446, %455 : vector<10x9xf32>
    %457 = vector.broadcast %454 : vector<10x1xf32> to vector<10x9xf32>
    %458 = arith.subf %446, %457 : vector<10x9xf32>
    %459 = arith.mulf %456, %458 : vector<10x9xf32>
    %cst_312 = arith.constant dense<0.000000e+00> : vector<10xf32>
    %460 = vector.multi_reduction <add>, %459, %cst_312 [1] : vector<10x9xf32> to vector<10xf32>
    %461 = vector.shape_cast %460 : vector<10xf32> to vector<10x1xf32>
    %cst_313 = arith.constant 9.000000e+00 : f32
    %462 = vector.broadcast %cst_313 : f32 to vector<10x1xf32>
    %463 = arith.divf %461, %462 : vector<10x1xf32>
    %464 = vector.broadcast %454 : vector<10x1xf32> to vector<10x9xf32>
    %465 = arith.subf %446, %464 : vector<10x9xf32>
    %cst_314 = arith.constant 9.99999974E-6 : f32
    %466 = vector.broadcast %cst_314 : f32 to vector<10x1xf32>
    %467 = arith.addf %463, %466 : vector<10x1xf32>
    %468 = math.rsqrt %467 : vector<10x1xf32>
    %469 = vector.broadcast %468 : vector<10x1xf32> to vector<10x9xf32>
    %470 = arith.mulf %465, %469 : vector<10x9xf32>
    %471 = vector.broadcast %448 : vector<1x9xf32> to vector<10x9xf32>
    %472 = arith.mulf %470, %471 : vector<10x9xf32>
    %473 = vector.broadcast %450 : vector<1x9xf32> to vector<10x9xf32>
    %474 = arith.addf %472, %473 : vector<10x9xf32>
    %c1_315 = arith.constant 1 : index
    %c0_316 = arith.constant 0 : index
    %c0_317 = arith.constant 0 : index
    %475 = vector.load %arg17[%c1_315, %c0_316, %c0_317] : memref<3x9x36xf32, #tpu.memory_space<vmem>>, vector<1x9x36xf32>
    %476 = vector.shape_cast %475 : vector<1x9x36xf32> to vector<9x36xf32>
    %cst_318 = arith.constant dense<0.000000e+00> : vector<10x36xf32>
    %477 = tpu.matmul %474, %476, %cst_318 {dimension_numbers = #tpu.dot_dimension_numbers<[1], [0], [0], [1], [0, 0, 1, 1], [], []>} : vector<10x9xf32>, vector<9x36xf32>, vector<10x36xf32> -> vector<10x36xf32>
    %c1_319 = arith.constant 1 : index
    %c0_320 = arith.constant 0 : index
    %c0_321 = arith.constant 0 : index
    %478 = vector.load %arg18[%c1_319, %c0_320, %c0_321] : memref<3x1x36xf32, #tpu.memory_space<vmem>>, vector<1x1x36xf32>
    %479 = vector.shape_cast %478 : vector<1x1x36xf32> to vector<1x36xf32>
    %480 = vector.broadcast %479 : vector<1x36xf32> to vector<10x36xf32>
    %481 = arith.addf %477, %480 : vector<10x36xf32>
    %482 = arith.mulf %481, %481 : vector<10x36xf32>
    %483 = arith.mulf %481, %482 : vector<10x36xf32>
    %cst_322 = arith.constant 4.471500e-02 : f32
    %484 = vector.broadcast %cst_322 : f32 to vector<10x36xf32>
    %485 = arith.mulf %484, %483 : vector<10x36xf32>
    %486 = arith.addf %481, %485 : vector<10x36xf32>
    %cst_323 = arith.constant 0.797884583 : f32
    %487 = vector.broadcast %cst_323 : f32 to vector<10x36xf32>
    %488 = arith.mulf %487, %486 : vector<10x36xf32>
    %489 = math.tanh %488 : vector<10x36xf32>
    %cst_324 = arith.constant 1.000000e+00 : f32
    %490 = vector.broadcast %cst_324 : f32 to vector<10x36xf32>
    %491 = arith.addf %490, %489 : vector<10x36xf32>
    %cst_325 = arith.constant 5.000000e-01 : f32
    %492 = vector.broadcast %cst_325 : f32 to vector<10x36xf32>
    %493 = arith.mulf %492, %491 : vector<10x36xf32>
    %494 = arith.mulf %481, %493 : vector<10x36xf32>
    %c1_326 = arith.constant 1 : index
    %c0_327 = arith.constant 0 : index
    %c0_328 = arith.constant 0 : index
    %495 = vector.load %arg19[%c1_326, %c0_327, %c0_328] : memref<3x36x9xf32, #tpu.memory_space<vmem>>, vector<1x36x9xf32>
    %496 = vector.shape_cast %495 : vector<1x36x9xf32> to vector<36x9xf32>
    %cst_329 = arith.constant dense<0.000000e+00> : vector<10x9xf32>
    %497 = tpu.matmul %494, %496, %cst_329 {dimension_numbers = #tpu.dot_dimension_numbers<[1], [0], [0], [1], [0, 0, 1, 1], [], []>} : vector<10x36xf32>, vector<36x9xf32>, vector<10x9xf32> -> vector<10x9xf32>
    %498 = arith.addf %446, %497 : vector<10x9xf32>
    %c1_330 = arith.constant 1 : index
    %c0_331 = arith.constant 0 : index
    %c0_332 = arith.constant 0 : index
    %499 = vector.load %arg20[%c1_330, %c0_331, %c0_332] : memref<3x1x9xf32, #tpu.memory_space<vmem>>, vector<1x1x9xf32>
    %500 = vector.shape_cast %499 : vector<1x1x9xf32> to vector<1x9xf32>
    %501 = vector.broadcast %500 : vector<1x9xf32> to vector<10x9xf32>
    %502 = arith.addf %498, %501 : vector<10x9xf32>
    %c2_333 = arith.constant 2 : index
    %c0_334 = arith.constant 0 : index
    %c0_335 = arith.constant 0 : index
    %c0_336 = arith.constant 0 : index
    %503 = vector.load %arg15[%c2_333, %c0_334, %c0_335, %c0_336] : memref<3x2x1x9xf32, #tpu.memory_space<vmem>>, vector<1x1x1x9xf32>
    %504 = vector.shape_cast %503 : vector<1x1x1x9xf32> to vector<1x9xf32>
    %c2_337 = arith.constant 2 : index
    %c0_338 = arith.constant 0 : index
    %c0_339 = arith.constant 0 : index
    %c0_340 = arith.constant 0 : index
    %505 = vector.load %arg16[%c2_337, %c0_338, %c0_339, %c0_340] : memref<3x2x1x9xf32, #tpu.memory_space<vmem>>, vector<1x1x1x9xf32>
    %506 = vector.shape_cast %505 : vector<1x1x1x9xf32> to vector<1x9xf32>
    %cst_341 = arith.constant dense<0.000000e+00> : vector<10xf32>
    %507 = vector.multi_reduction <add>, %502, %cst_341 [1] : vector<10x9xf32> to vector<10xf32>
    %508 = vector.shape_cast %507 : vector<10xf32> to vector<10x1xf32>
    %cst_342 = arith.constant 9.000000e+00 : f32
    %509 = vector.broadcast %cst_342 : f32 to vector<10x1xf32>
    %510 = arith.divf %508, %509 : vector<10x1xf32>
    %511 = vector.broadcast %510 : vector<10x1xf32> to vector<10x9xf32>
    %512 = arith.subf %502, %511 : vector<10x9xf32>
    %513 = vector.broadcast %510 : vector<10x1xf32> to vector<10x9xf32>
    %514 = arith.subf %502, %513 : vector<10x9xf32>
    %515 = arith.mulf %512, %514 : vector<10x9xf32>
    %cst_343 = arith.constant dense<0.000000e+00> : vector<10xf32>
    %516 = vector.multi_reduction <add>, %515, %cst_343 [1] : vector<10x9xf32> to vector<10xf32>
    %517 = vector.shape_cast %516 : vector<10xf32> to vector<10x1xf32>
    %cst_344 = arith.constant 9.000000e+00 : f32
    %518 = vector.broadcast %cst_344 : f32 to vector<10x1xf32>
    %519 = arith.divf %517, %518 : vector<10x1xf32>
    %520 = vector.broadcast %510 : vector<10x1xf32> to vector<10x9xf32>
    %521 = arith.subf %502, %520 : vector<10x9xf32>
    %cst_345 = arith.constant 9.99999974E-6 : f32
    %522 = vector.broadcast %cst_345 : f32 to vector<10x1xf32>
    %523 = arith.addf %519, %522 : vector<10x1xf32>
    %524 = math.rsqrt %523 : vector<10x1xf32>
    %525 = vector.broadcast %524 : vector<10x1xf32> to vector<10x9xf32>
    %526 = arith.mulf %521, %525 : vector<10x9xf32>
    %527 = vector.broadcast %504 : vector<1x9xf32> to vector<10x9xf32>
    %528 = arith.mulf %526, %527 : vector<10x9xf32>
    %529 = vector.broadcast %506 : vector<1x9xf32> to vector<10x9xf32>
    %530 = arith.addf %528, %529 : vector<10x9xf32>
    %c2_346 = arith.constant 2 : index
    %c0_347 = arith.constant 0 : index
    %c0_348 = arith.constant 0 : index
    %531 = vector.load %arg11[%c2_346, %c0_347, %c0_348] : memref<3x9x27xf32, #tpu.memory_space<vmem>>, vector<1x9x27xf32>
    %532 = vector.shape_cast %531 : vector<1x9x27xf32> to vector<9x27xf32>
    %cst_349 = arith.constant dense<0.000000e+00> : vector<10x27xf32>
    %533 = tpu.matmul %530, %532, %cst_349 {dimension_numbers = #tpu.dot_dimension_numbers<[1], [0], [0], [1], [0, 0, 1, 1], [], []>} : vector<10x9xf32>, vector<9x27xf32>, vector<10x27xf32> -> vector<10x27xf32>
    %c2_350 = arith.constant 2 : index
    %c0_351 = arith.constant 0 : index
    %c0_352 = arith.constant 0 : index
    %534 = vector.load %arg12[%c2_350, %c0_351, %c0_352] : memref<3x1x27xf32, #tpu.memory_space<vmem>>, vector<1x1x27xf32>
    %535 = vector.shape_cast %534 : vector<1x1x27xf32> to vector<1x27xf32>
    %536 = vector.broadcast %535 : vector<1x27xf32> to vector<10x27xf32>
    %537 = arith.addf %533, %536 : vector<10x27xf32>
    %538 = vector.extract_strided_slice %537 {offsets = [0, 0], sizes = [10, 9], strides = [1, 1]} : vector<10x27xf32> to vector<10x9xf32>
    %539 = vector.extract_strided_slice %537 {offsets = [0, 9], sizes = [10, 9], strides = [1, 1]} : vector<10x27xf32> to vector<10x9xf32>
    %540 = vector.extract_strided_slice %537 {offsets = [0, 18], sizes = [10, 9], strides = [1, 1]} : vector<10x27xf32> to vector<10x9xf32>
    %cst_353 = arith.constant 0.000000e+00 : f32
    %541 = vector.broadcast %cst_353 : f32 to vector<10x9xf32>
    %c0_354 = arith.constant 0 : index
    %c0_355 = arith.constant 0 : index
    %c0_356 = arith.constant 0 : index
    %542 = vector.load %arg10[%c0_354, %c0_355, %c0_356] : memref<3x1x9xf32, #tpu.memory_space<vmem>>, vector<1x1x9xf32>
    %543 = vector.shape_cast %542 : vector<1x1x9xf32> to vector<1x9xf32>
    %544 = vector.broadcast %543 : vector<1x9xf32> to vector<10x9xf32>
    %545 = arith.mulf %538, %544 : vector<10x9xf32>
    %cst_357 = arith.constant dense<0.000000e+00> : vector<10x10xf32>
    %546 = tpu.matmul %545, %539, %cst_357 {dimension_numbers = #tpu.dot_dimension_numbers<[1], [1], [0], [0], [0, 0, 1, 0], [], []>} : vector<10x9xf32>, vector<10x9xf32>, vector<10x10xf32> -> vector<10x10xf32>
    %cst_358 = arith.constant 0.577350259 : f32
    %547 = vector.broadcast %cst_358 : f32 to vector<10x10xf32>
    %548 = arith.mulf %546, %547 : vector<10x10xf32>
    %549 = arith.addf %548, %164 : vector<10x10xf32>
    %cst_359 = arith.constant dense<0xFF800000> : vector<10xf32>
    %550 = vector.multi_reduction <maximumf>, %549, %cst_359 [1] : vector<10x10xf32> to vector<10xf32>
    %551 = vector.shape_cast %550 : vector<10xf32> to vector<10x1xf32>
    %552 = vector.broadcast %551 : vector<10x1xf32> to vector<10x10xf32>
    %553 = arith.subf %549, %552 : vector<10x10xf32>
    %554 = math.exp %553 : vector<10x10xf32>
    %cst_360 = arith.constant dense<0.000000e+00> : vector<10xf32>
    %555 = vector.multi_reduction <add>, %554, %cst_360 [1] : vector<10x10xf32> to vector<10xf32>
    %556 = vector.shape_cast %555 : vector<10xf32> to vector<10x1xf32>
    %557 = tpu.reciprocal %556 {approx = true} : vector<10x1xf32> -> vector<10x1xf32>
    %558 = vector.broadcast %557 : vector<10x1xf32> to vector<10x10xf32>
    %559 = arith.mulf %554, %558 : vector<10x10xf32>
    %560 = vector.broadcast %543 : vector<1x9xf32> to vector<10x9xf32>
    %561 = arith.mulf %540, %560 : vector<10x9xf32>
    %cst_361 = arith.constant dense<0.000000e+00> : vector<10x9xf32>
    %562 = tpu.matmul %559, %561, %cst_361 {dimension_numbers = #tpu.dot_dimension_numbers<[1], [0], [0], [1], [0, 0, 1, 1], [], []>} : vector<10x10xf32>, vector<10x9xf32>, vector<10x9xf32> -> vector<10x9xf32>
    %563 = arith.addf %541, %562 : vector<10x9xf32>
    %c1_362 = arith.constant 1 : index
    %c0_363 = arith.constant 0 : index
    %c0_364 = arith.constant 0 : index
    %564 = vector.load %arg10[%c1_362, %c0_363, %c0_364] : memref<3x1x9xf32, #tpu.memory_space<vmem>>, vector<1x1x9xf32>
    %565 = vector.shape_cast %564 : vector<1x1x9xf32> to vector<1x9xf32>
    %566 = vector.broadcast %565 : vector<1x9xf32> to vector<10x9xf32>
    %567 = arith.mulf %538, %566 : vector<10x9xf32>
    %cst_365 = arith.constant dense<0.000000e+00> : vector<10x10xf32>
    %568 = tpu.matmul %567, %539, %cst_365 {dimension_numbers = #tpu.dot_dimension_numbers<[1], [1], [0], [0], [0, 0, 1, 0], [], []>} : vector<10x9xf32>, vector<10x9xf32>, vector<10x10xf32> -> vector<10x10xf32>
    %cst_366 = arith.constant 0.577350259 : f32
    %569 = vector.broadcast %cst_366 : f32 to vector<10x10xf32>
    %570 = arith.mulf %568, %569 : vector<10x10xf32>
    %571 = arith.addf %570, %164 : vector<10x10xf32>
    %cst_367 = arith.constant dense<0xFF800000> : vector<10xf32>
    %572 = vector.multi_reduction <maximumf>, %571, %cst_367 [1] : vector<10x10xf32> to vector<10xf32>
    %573 = vector.shape_cast %572 : vector<10xf32> to vector<10x1xf32>
    %574 = vector.broadcast %573 : vector<10x1xf32> to vector<10x10xf32>
    %575 = arith.subf %571, %574 : vector<10x10xf32>
    %576 = math.exp %575 : vector<10x10xf32>
    %cst_368 = arith.constant dense<0.000000e+00> : vector<10xf32>
    %577 = vector.multi_reduction <add>, %576, %cst_368 [1] : vector<10x10xf32> to vector<10xf32>
    %578 = vector.shape_cast %577 : vector<10xf32> to vector<10x1xf32>
    %579 = tpu.reciprocal %578 {approx = true} : vector<10x1xf32> -> vector<10x1xf32>
    %580 = vector.broadcast %579 : vector<10x1xf32> to vector<10x10xf32>
    %581 = arith.mulf %576, %580 : vector<10x10xf32>
    %582 = vector.broadcast %565 : vector<1x9xf32> to vector<10x9xf32>
    %583 = arith.mulf %540, %582 : vector<10x9xf32>
    %cst_369 = arith.constant dense<0.000000e+00> : vector<10x9xf32>
    %584 = tpu.matmul %581, %583, %cst_369 {dimension_numbers = #tpu.dot_dimension_numbers<[1], [0], [0], [1], [0, 0, 1, 1], [], []>} : vector<10x10xf32>, vector<10x9xf32>, vector<10x9xf32> -> vector<10x9xf32>
    %585 = arith.addf %563, %584 : vector<10x9xf32>
    %c2_370 = arith.constant 2 : index
    %c0_371 = arith.constant 0 : index
    %c0_372 = arith.constant 0 : index
    %586 = vector.load %arg10[%c2_370, %c0_371, %c0_372] : memref<3x1x9xf32, #tpu.memory_space<vmem>>, vector<1x1x9xf32>
    %587 = vector.shape_cast %586 : vector<1x1x9xf32> to vector<1x9xf32>
    %588 = vector.broadcast %587 : vector<1x9xf32> to vector<10x9xf32>
    %589 = arith.mulf %538, %588 : vector<10x9xf32>
    %cst_373 = arith.constant dense<0.000000e+00> : vector<10x10xf32>
    %590 = tpu.matmul %589, %539, %cst_373 {dimension_numbers = #tpu.dot_dimension_numbers<[1], [1], [0], [0], [0, 0, 1, 0], [], []>} : vector<10x9xf32>, vector<10x9xf32>, vector<10x10xf32> -> vector<10x10xf32>
    %cst_374 = arith.constant 0.577350259 : f32
    %591 = vector.broadcast %cst_374 : f32 to vector<10x10xf32>
    %592 = arith.mulf %590, %591 : vector<10x10xf32>
    %593 = arith.addf %592, %164 : vector<10x10xf32>
    %cst_375 = arith.constant dense<0xFF800000> : vector<10xf32>
    %594 = vector.multi_reduction <maximumf>, %593, %cst_375 [1] : vector<10x10xf32> to vector<10xf32>
    %595 = vector.shape_cast %594 : vector<10xf32> to vector<10x1xf32>
    %596 = vector.broadcast %595 : vector<10x1xf32> to vector<10x10xf32>
    %597 = arith.subf %593, %596 : vector<10x10xf32>
    %598 = math.exp %597 : vector<10x10xf32>
    %cst_376 = arith.constant dense<0.000000e+00> : vector<10xf32>
    %599 = vector.multi_reduction <add>, %598, %cst_376 [1] : vector<10x10xf32> to vector<10xf32>
    %600 = vector.shape_cast %599 : vector<10xf32> to vector<10x1xf32>
    %601 = tpu.reciprocal %600 {approx = true} : vector<10x1xf32> -> vector<10x1xf32>
    %602 = vector.broadcast %601 : vector<10x1xf32> to vector<10x10xf32>
    %603 = arith.mulf %598, %602 : vector<10x10xf32>
    %604 = vector.broadcast %587 : vector<1x9xf32> to vector<10x9xf32>
    %605 = arith.mulf %540, %604 : vector<10x9xf32>
    %cst_377 = arith.constant dense<0.000000e+00> : vector<10x9xf32>
    %606 = tpu.matmul %603, %605, %cst_377 {dimension_numbers = #tpu.dot_dimension_numbers<[1], [0], [0], [1], [0, 0, 1, 1], [], []>} : vector<10x10xf32>, vector<10x9xf32>, vector<10x9xf32> -> vector<10x9xf32>
    %607 = arith.addf %585, %606 : vector<10x9xf32>
    %c2_378 = arith.constant 2 : index
    %c0_379 = arith.constant 0 : index
    %c0_380 = arith.constant 0 : index
    %608 = vector.load %arg13[%c2_378, %c0_379, %c0_380] : memref<3x9x9xf32, #tpu.memory_space<vmem>>, vector<1x9x9xf32>
    %609 = vector.shape_cast %608 : vector<1x9x9xf32> to vector<9x9xf32>
    %cst_381 = arith.constant dense<0.000000e+00> : vector<10x9xf32>
    %610 = tpu.matmul %607, %609, %cst_381 {dimension_numbers = #tpu.dot_dimension_numbers<[1], [0], [0], [1], [0, 0, 1, 1], [], []>} : vector<10x9xf32>, vector<9x9xf32>, vector<10x9xf32> -> vector<10x9xf32>
    %c2_382 = arith.constant 2 : index
    %c0_383 = arith.constant 0 : index
    %c0_384 = arith.constant 0 : index
    %611 = vector.load %arg14[%c2_382, %c0_383, %c0_384] : memref<3x1x9xf32, #tpu.memory_space<vmem>>, vector<1x1x9xf32>
    %612 = vector.shape_cast %611 : vector<1x1x9xf32> to vector<1x9xf32>
    %613 = vector.broadcast %612 : vector<1x9xf32> to vector<10x9xf32>
    %614 = arith.addf %610, %613 : vector<10x9xf32>
    %615 = arith.addf %502, %614 : vector<10x9xf32>
    %c2_385 = arith.constant 2 : index
    %c1_386 = arith.constant 1 : index
    %c0_387 = arith.constant 0 : index
    %c0_388 = arith.constant 0 : index
    %616 = vector.load %arg15[%c2_385, %c1_386, %c0_387, %c0_388] : memref<3x2x1x9xf32, #tpu.memory_space<vmem>>, vector<1x1x1x9xf32>
    %617 = vector.shape_cast %616 : vector<1x1x1x9xf32> to vector<1x9xf32>
    %c2_389 = arith.constant 2 : index
    %c1_390 = arith.constant 1 : index
    %c0_391 = arith.constant 0 : index
    %c0_392 = arith.constant 0 : index
    %618 = vector.load %arg16[%c2_389, %c1_390, %c0_391, %c0_392] : memref<3x2x1x9xf32, #tpu.memory_space<vmem>>, vector<1x1x1x9xf32>
    %619 = vector.shape_cast %618 : vector<1x1x1x9xf32> to vector<1x9xf32>
    %cst_393 = arith.constant dense<0.000000e+00> : vector<10xf32>
    %620 = vector.multi_reduction <add>, %615, %cst_393 [1] : vector<10x9xf32> to vector<10xf32>
    %621 = vector.shape_cast %620 : vector<10xf32> to vector<10x1xf32>
    %cst_394 = arith.constant 9.000000e+00 : f32
    %622 = vector.broadcast %cst_394 : f32 to vector<10x1xf32>
    %623 = arith.divf %621, %622 : vector<10x1xf32>
    %624 = vector.broadcast %623 : vector<10x1xf32> to vector<10x9xf32>
    %625 = arith.subf %615, %624 : vector<10x9xf32>
    %626 = vector.broadcast %623 : vector<10x1xf32> to vector<10x9xf32>
    %627 = arith.subf %615, %626 : vector<10x9xf32>
    %628 = arith.mulf %625, %627 : vector<10x9xf32>
    %cst_395 = arith.constant dense<0.000000e+00> : vector<10xf32>
    %629 = vector.multi_reduction <add>, %628, %cst_395 [1] : vector<10x9xf32> to vector<10xf32>
    %630 = vector.shape_cast %629 : vector<10xf32> to vector<10x1xf32>
    %cst_396 = arith.constant 9.000000e+00 : f32
    %631 = vector.broadcast %cst_396 : f32 to vector<10x1xf32>
    %632 = arith.divf %630, %631 : vector<10x1xf32>
    %633 = vector.broadcast %623 : vector<10x1xf32> to vector<10x9xf32>
    %634 = arith.subf %615, %633 : vector<10x9xf32>
    %cst_397 = arith.constant 9.99999974E-6 : f32
    %635 = vector.broadcast %cst_397 : f32 to vector<10x1xf32>
    %636 = arith.addf %632, %635 : vector<10x1xf32>
    %637 = math.rsqrt %636 : vector<10x1xf32>
    %638 = vector.broadcast %637 : vector<10x1xf32> to vector<10x9xf32>
    %639 = arith.mulf %634, %638 : vector<10x9xf32>
    %640 = vector.broadcast %617 : vector<1x9xf32> to vector<10x9xf32>
    %641 = arith.mulf %639, %640 : vector<10x9xf32>
    %642 = vector.broadcast %619 : vector<1x9xf32> to vector<10x9xf32>
    %643 = arith.addf %641, %642 : vector<10x9xf32>
    %c2_398 = arith.constant 2 : index
    %c0_399 = arith.constant 0 : index
    %c0_400 = arith.constant 0 : index
    %644 = vector.load %arg17[%c2_398, %c0_399, %c0_400] : memref<3x9x36xf32, #tpu.memory_space<vmem>>, vector<1x9x36xf32>
    %645 = vector.shape_cast %644 : vector<1x9x36xf32> to vector<9x36xf32>
    %cst_401 = arith.constant dense<0.000000e+00> : vector<10x36xf32>
    %646 = tpu.matmul %643, %645, %cst_401 {dimension_numbers = #tpu.dot_dimension_numbers<[1], [0], [0], [1], [0, 0, 1, 1], [], []>} : vector<10x9xf32>, vector<9x36xf32>, vector<10x36xf32> -> vector<10x36xf32>
    %c2_402 = arith.constant 2 : index
    %c0_403 = arith.constant 0 : index
    %c0_404 = arith.constant 0 : index
    %647 = vector.load %arg18[%c2_402, %c0_403, %c0_404] : memref<3x1x36xf32, #tpu.memory_space<vmem>>, vector<1x1x36xf32>
    %648 = vector.shape_cast %647 : vector<1x1x36xf32> to vector<1x36xf32>
    %649 = vector.broadcast %648 : vector<1x36xf32> to vector<10x36xf32>
    %650 = arith.addf %646, %649 : vector<10x36xf32>
    %651 = arith.mulf %650, %650 : vector<10x36xf32>
    %652 = arith.mulf %650, %651 : vector<10x36xf32>
    %cst_405 = arith.constant 4.471500e-02 : f32
    %653 = vector.broadcast %cst_405 : f32 to vector<10x36xf32>
    %654 = arith.mulf %653, %652 : vector<10x36xf32>
    %655 = arith.addf %650, %654 : vector<10x36xf32>
    %cst_406 = arith.constant 0.797884583 : f32
    %656 = vector.broadcast %cst_406 : f32 to vector<10x36xf32>
    %657 = arith.mulf %656, %655 : vector<10x36xf32>
    %658 = math.tanh %657 : vector<10x36xf32>
    %cst_407 = arith.constant 1.000000e+00 : f32
    %659 = vector.broadcast %cst_407 : f32 to vector<10x36xf32>
    %660 = arith.addf %659, %658 : vector<10x36xf32>
    %cst_408 = arith.constant 5.000000e-01 : f32
    %661 = vector.broadcast %cst_408 : f32 to vector<10x36xf32>
    %662 = arith.mulf %661, %660 : vector<10x36xf32>
    %663 = arith.mulf %650, %662 : vector<10x36xf32>
    %c2_409 = arith.constant 2 : index
    %c0_410 = arith.constant 0 : index
    %c0_411 = arith.constant 0 : index
    %664 = vector.load %arg19[%c2_409, %c0_410, %c0_411] : memref<3x36x9xf32, #tpu.memory_space<vmem>>, vector<1x36x9xf32>
    %665 = vector.shape_cast %664 : vector<1x36x9xf32> to vector<36x9xf32>
    %cst_412 = arith.constant dense<0.000000e+00> : vector<10x9xf32>
    %666 = tpu.matmul %663, %665, %cst_412 {dimension_numbers = #tpu.dot_dimension_numbers<[1], [0], [0], [1], [0, 0, 1, 1], [], []>} : vector<10x36xf32>, vector<36x9xf32>, vector<10x9xf32> -> vector<10x9xf32>
    %667 = arith.addf %615, %666 : vector<10x9xf32>
    %c2_413 = arith.constant 2 : index
    %c0_414 = arith.constant 0 : index
    %c0_415 = arith.constant 0 : index
    %668 = vector.load %arg20[%c2_413, %c0_414, %c0_415] : memref<3x1x9xf32, #tpu.memory_space<vmem>>, vector<1x1x9xf32>
    %669 = vector.shape_cast %668 : vector<1x1x9xf32> to vector<1x9xf32>
    %670 = vector.broadcast %669 : vector<1x9xf32> to vector<10x9xf32>
    %671 = arith.addf %667, %670 : vector<10x9xf32>
    %672 = vector.extract_strided_slice %671 {offsets = [0, 0], sizes = [2, 9], strides = [1, 1]} : vector<10x9xf32> to vector<2x9xf32>
    %c0_416 = arith.constant 0 : index
    %c0_417 = arith.constant 0 : index
    %673 = vector.load %arg21[%c0_416, %c0_417] : memref<9x4xf32, #tpu.memory_space<vmem>>, vector<9x4xf32>
    %cst_418 = arith.constant dense<0.000000e+00> : vector<2x4xf32>
    %674 = tpu.matmul %672, %673, %cst_418 {dimension_numbers = #tpu.dot_dimension_numbers<[1], [0], [0], [1], [0, 0, 1, 1], [], []>} : vector<2x9xf32>, vector<9x4xf32>, vector<2x4xf32> -> vector<2x4xf32>
    %c0_419 = arith.constant 0 : index
    %c0_420 = arith.constant 0 : index
    %675 = vector.load %arg22[%c0_419, %c0_420] : memref<1x4xf32, #tpu.memory_space<vmem>>, vector<1x4xf32>
    %676 = vector.broadcast %675 : vector<1x4xf32> to vector<2x4xf32>
    %677 = arith.addf %674, %676 : vector<2x4xf32>
    %cst_421 = arith.constant dense<0xFF800000> : vector<2xf32>
    %678 = vector.multi_reduction <maximumf>, %677, %cst_421 [1] : vector<2x4xf32> to vector<2xf32>
    %679 = vector.shape_cast %678 : vector<2xf32> to vector<2x1xf32>
    %680 = vector.broadcast %679 : vector<2x1xf32> to vector<2x4xf32>
    %681 = arith.subf %677, %680 : vector<2x4xf32>
    %682 = math.exp %681 : vector<2x4xf32>
    %cst_422 = arith.constant dense<0.000000e+00> : vector<2xf32>
    %683 = vector.multi_reduction <add>, %682, %cst_422 [1] : vector<2x4xf32> to vector<2xf32>
    %684 = vector.shape_cast %683 : vector<2xf32> to vector<2x1xf32>
    %685 = vector.broadcast %684 : vector<2x1xf32> to vector<2x4xf32>
    %686 = arith.divf %682, %685 : vector<2x4xf32>
    %c0_423 = arith.constant 0 : index
    %c0_424 = arith.constant 0 : index
    %687 = vector.load %arg23[%c0_423, %c0_424] : memref<4x64xf32, #tpu.memory_space<vmem>>, vector<4x64xf32>
    %cst_425 = arith.constant dense<0.000000e+00> : vector<2x64xf32>
    %688 = tpu.matmul %686, %687, %cst_425 {dimension_numbers = #tpu.dot_dimension_numbers<[1], [0], [0], [1], [0, 0, 1, 1], [], []>} : vector<2x4xf32>, vector<4x64xf32>, vector<2x64xf32> -> vector<2x64xf32>
    %c0_426 = arith.constant 0 : index
    %c0_427 = arith.constant 0 : index
    %689 = vector.load %arg24[%c0_426, %c0_427] : memref<1x64xf32, #tpu.memory_space<vmem>>, vector<1x64xf32>
    %690 = vector.broadcast %689 : vector<1x64xf32> to vector<2x64xf32>
    %691 = arith.addf %688, %690 : vector<2x64xf32>
    %cst_428 = arith.constant 0.000000e+00 : f32
    %692 = vector.broadcast %cst_428 : f32 to vector<2x64xf32>
    %693 = arith.maximumf %691, %692 : vector<2x64xf32>
    %c0_429 = arith.constant 0 : index
    %c0_430 = arith.constant 0 : index
    %694 = vector.load %arg25[%c0_429, %c0_430] : memref<64x32xf32, #tpu.memory_space<vmem>>, vector<64x32xf32>
    %cst_431 = arith.constant dense<0.000000e+00> : vector<2x32xf32>
    %695 = tpu.matmul %693, %694, %cst_431 {dimension_numbers = #tpu.dot_dimension_numbers<[1], [0], [0], [1], [0, 0, 1, 1], [], []>} : vector<2x64xf32>, vector<64x32xf32>, vector<2x32xf32> -> vector<2x32xf32>
    %c0_432 = arith.constant 0 : index
    %c0_433 = arith.constant 0 : index
    %696 = vector.load %arg26[%c0_432, %c0_433] : memref<1x32xf32, #tpu.memory_space<vmem>>, vector<1x32xf32>
    %697 = vector.broadcast %696 : vector<1x32xf32> to vector<2x32xf32>
    %698 = arith.addf %695, %697 : vector<2x32xf32>
    %cst_434 = arith.constant 0.000000e+00 : f32
    %699 = vector.broadcast %cst_434 : f32 to vector<2x32xf32>
    %700 = arith.maximumf %698, %699 : vector<2x32xf32>
    %c0_435 = arith.constant 0 : index
    %c0_436 = arith.constant 0 : index
    %701 = vector.load %arg27[%c0_435, %c0_436] : memref<32x1xf32, #tpu.memory_space<vmem>>, vector<32x1xf32>
    %cst_437 = arith.constant dense<0.000000e+00> : vector<2x1xf32>
    %702 = tpu.matmul %700, %701, %cst_437 {dimension_numbers = #tpu.dot_dimension_numbers<[1], [0], [0], [1], [0, 0, 1, 1], [], []>} : vector<2x32xf32>, vector<32x1xf32>, vector<2x1xf32> -> vector<2x1xf32>
    %c0_438 = arith.constant 0 : index
    %c0_439 = arith.constant 0 : index
    %703 = vector.load %arg28[%c0_438, %c0_439] : memref<1x1xf32, #tpu.memory_space<vmem>>, vector<1x1xf32>
    %704 = vector.broadcast %703 : vector<1x1xf32> to vector<2x1xf32>
    %705 = arith.addf %702, %704 : vector<2x1xf32>
    %c0_440 = arith.constant 0 : index
    %c0_441 = arith.constant 0 : index
    %706 = vector.load %arg29[%c0_440, %c0_441] : memref<2x1xf32, #tpu.memory_space<vmem>>, vector<2x1xf32>
    tpu.vector_store %arg29[%c0_440, %c0_441], %705 {strides = array<i32>} : memref<2x1xf32, #tpu.memory_space<vmem>>, vector<2x1xf32>,
    return
  }
}

</mosaic_0001>

<bundles_post_ra>
// kernel: forward.1
= control target key start
LH: loop header
LB: loop body
LE: loop exit
PB: predicated region body
PF: predicated region fallthrough
CT: control target
= control target key end

     0   :  { %s10383_s6 = smov 1   ;;  %s10384_s10 = smov 2   ;;  %s12867_s0 = inlined_call_operand.smem [shape: u32[30], index: -1, kind: input, shape index: {}] }
   0x1   :  { %s10451_s5 = sld [smem:[%s12867_s0]]   ;;  %s10385_s14 = smov 3  }
   0x2   :  { %s10456_s9 = sld [smem:[%s12867_s0 + %s10383_s6]]   ;;  %s10386_s18 = smov 4  }
   0x3   :  { %s10461_s13 = sld [smem:[%s12867_s0 + %s10384_s10]]   ;;  %s10387_s22 = smov 5  }
   0x4   :  { %s10466_s17 = sld [smem:[%s12867_s0 + %s10385_s14]]   ;;  %s10388_s26 = smov 6  }
   0x5   :  { %s8532_s21 = sld [smem:[%s12867_s0 + %s10386_s18]]   ;;  %s10389_s30 = smov 7  }
   0x6   :  { %s10474_s25 = sld [smem:[%s12867_s0 + %s10387_s22]]   ;;  %s10390_s4 = smov 8  }
   0x7   :  { %s10479_s29 = sld [smem:[%s12867_s0 + %s10388_s26]]   ;;  %s10391_s10 = smov 9  }
   0x8   :  { %s10484_s3 = sld [smem:[%s12867_s0 + %s10389_s30]]   ;;  %s10392_s15 = smov 10  }
   0x9   :  { %s10489_s8 = sld [smem:[%s12867_s0 + %s10390_s4]]   ;;  %s10393_s20 = smov 11  }
   0xa   :  { %s10494_s14 = sld [smem:[%s12867_s0 + %s10391_s10]]   ;;  %s10394_s26 = smov 12  }
   0xb   :  { %s10499_s19 = sld [smem:[%s12867_s0 + %s10392_s15]]   ;;  %v64_v0 = vstv %s8532_s21  ;;  %s10395_s1 = smov 13  }
   0xc   :  { %s10504_s24 = sld [smem:[%s12867_s0 + %s10393_s20]]   ;;  %65 = vst [vmem:[#allocation8] sm:$0x1] %v64_v0  ;;  %s10396_s21 = smov 14  }
   0xd   :  { %s10509_s30 = sld [smem:[%s12867_s0 + %s10394_s26]]   ;;  %s10397_s12 = smov 15  }
   0xe   :  { %s10514_s6 = sld [smem:[%s12867_s0 + %s10395_s1]]   ;;  %s10398_s20 = smov 16  }
   0xf   :  { %s10519_s11 = sld [smem:[%s12867_s0 + %s10396_s21]]   ;;  %s10399_s27 = smov 17  }
  0x10   :  { %s10524_s18 = sld [smem:[%s12867_s0 + %s10397_s12]]   ;;  %s10400_s4 = smov 18  }
  0x11   :  { %12934 = sst [smem:[#allocation36_spill]] %s10499_s19  ;;  %s10401_s12 = smov 19  }
  0x12   :  { %s10529_s26 = sld [smem:[%s12867_s0 + %s10398_s20]]   ;;  %s10402_s20 = smov 20  }
  0x13   :  { %12935 = sst [smem:[#allocation37_spill]] %s10509_s30 }
  0x14   :  { %s10534_s2 = sld [smem:[%s12867_s0 + %s10399_s27]]   ;;  %s10403_s27 = smov 21  }
  0x15   :  { %12936 = sst [smem:[#allocation38_spill]] %s10519_s11 }
  0x16   :  { %s10539_s10 = sld [smem:[%s12867_s0 + %s10400_s4]]   ;;  %s10404_s4 = smov 22  }
  0x17   :  { %s10544_s11 = sld [smem:[%s12867_s0 + %s10401_s12]]   ;;  %s10405_s12 = smov 23  }
  0x18   :  { %12937 = sst [smem:[#allocation39_spill]] %s10529_s26 }
  0x19   :  { %s10549_s19 = sld [smem:[%s12867_s0 + %s10402_s20]]   ;;  %s10406_s20 = smov 24  }
  0x1a   :  { %s10554_s30 = sld [smem:[%s12867_s0 + %s10403_s27]]   ;;  %s10407_s27 = smov 25  }
  0x1b   :  { %s10574_s26 = sld [smem:[%s12867_s0 + %s10407_s27]]   ;;  %s10411_s27 = smov 28  }
  0x1c   :  { %12938 = sst [smem:[#allocation40_spill]] %s10539_s10 }
  0x1d   :  { %12939 = sst [smem:[#allocation41_spill]] %s10544_s11 }
  0x1e   :  { %s10559_s10 = sld [smem:[%s12867_s0 + %s10404_s4]]   ;;  %s10408_s4 = smov 26  }
  0x1f   :  { %12940 = sst [smem:[#allocation42_spill]] %s10549_s19 }
  0x20   :  { %s10564_s11 = sld [smem:[%s12867_s0 + %s10405_s12]]   ;;  %s10409_s12 = smov 27  }
  0x21   :  { %s10569_s19 = sld [smem:[%s12867_s0 + %s10406_s20]]   ;;  %s10410_s20 = smov 29  }
  0x22   :  { %12944 = sst [smem:[#allocation46_spill]] %s10574_s26 }
  0x23   :  { %s8556_s26 = sld [smem:[%s12867_s0 + %s10411_s27]]  }
  0x24   :  { %12941 = sst [smem:[#allocation43_spill]] %s10559_s10 }
  0x25   :  { %s10579_s10 = sld [smem:[%s12867_s0 + %s10408_s4]]  }
  0x26   :  { %12942 = sst [smem:[#allocation44_spill]] %s10564_s11 }
  0x27   :  { %12943 = sst [smem:[#allocation45_spill]] %s10569_s19 }
  0x28   :  { %s10584_s11 = sld [smem:[%s12867_s0 + %s10409_s12]]  }
  0x29   :  { %s10589_s19 = sld [smem:[%s12867_s0 + %s10410_s20]]   ;;  %v66_v1 = vstv %s8556_s26 }
  0x2a   :  { %67 = vst [vmem:[#allocation9] sm:$0x1] %v66_v1 }
  0x2b   :  { %68 = vsyncpa [#allocation11], 0 }
  0x2c   :  { %69 = vsyncpa [#allocation13], 0 }
  0x2d   :  { %70 = vsyncpa [#allocation16], 0 }
  0x2e   :  { %71 = vsyncpa [#allocation19], 0 }
  0x2f   :  { %72 = vsyncpa [#allocation22], 0 }
  0x30   :  { %73 = vsyncpa [#allocation25], 0 }
  0x31   :  { %74 = vsyncpa [#allocation28], 0  ;;  %s10412_s4 = smov [#allocation12]   ;;  %s10105_s7 = scalar_lea.hbm %s10466_s17, 64 }
  0x32   :  { %s97_s21 = sshll.u32 %s10412_s4, 4  ;;  %p10106_p0 = scmp.ne.s32.totalorder %s10466_s17, %s10105_s7  ;;  %s98_s21 = int_to_ptr.vmem [resolvable:$true] %s97_s21 }
  0x33   :  { %p10109_p1 = scmp.lt.u32.totalorder %s10105_s7, %s10466_s17 }
  0x35   :  { %p10111_p2 = pnand %p10109_p1, %p10106_p0 }
  0x37   :  { %10114 = shalt.err (!%p10111_p2)
}
  0x38   :  { %s10115_s0 = scalar_lea.vmem %s98_s21, 64  ;;  %p10120_p4 = scmp.lt.s32.totalorder %s98_s21, %s98_s21 }
  0x39   :  { %p10116_p3 = scmp.ne.s32.totalorder %s98_s21, %s10115_s0  ;;  %p10121_p5 = scmp.lt.s32.totalorder %s10115_s0, %s10115_s0 }
  0x3b   :  { %p10122_p6 = por %p10121_p5, %p10120_p4 }
  0x3d   :  { %p10123_p7 = pnand %p10122_p6, %p10116_p3 }
  0x3f   :  { %10126 = shalt.err (!%p10123_p7)
}
  0x40   :  { %100 = dma.hbm_to_vmem [thread:$0]  %s10466_s17, 64, %s98_s21, [#allocation13]  }
  0x41   :  { %s10413_s26 = smov [#allocation15]   ;;  %s10414_s15 = smov [#allocation18]  }
  0x42   :  { %s120_s12 = sshll.u32 %s10413_s26, 4  ;;  %s144_s16 = sshll.u32 %s10414_s15, 4  ;;  %s121_s12 = int_to_ptr.vmem [resolvable:$true] %s120_s12  ;;  %s145_s16 = int_to_ptr.vmem [resolvable:$true] %s144_s16 }
  0x43   :  { %s10127_s20 = scalar_lea.hbm %s10479_s29, 512 }
  0x44   :  { %p10128_p8 = scmp.ne.s32.totalorder %s10479_s29, %s10127_s20  ;;  %p10131_p9 = scmp.lt.u32.totalorder %s10127_s20, %s10479_s29 }
  0x46   :  { %p10133_p10 = pnand %p10131_p9, %p10128_p8 }
  0x48   :  { %10136 = shalt.err (!%p10133_p10)
}
  0x49   :  { %s10137_s22 = scalar_lea.vmem %s121_s12, 512  ;;  %p10142_p12 = scmp.lt.s32.totalorder %s121_s12, %s121_s12 }
  0x4a   :  { %p10138_p11 = scmp.ne.s32.totalorder %s121_s12, %s10137_s22  ;;  %p10143_p13 = scmp.lt.s32.totalorder %s10137_s22, %s10137_s22 }
  0x4c   :  { %p10144_p0 = por %p10143_p13, %p10142_p12 }
  0x4e   :  { %p10145_p1 = pnand %p10144_p0, %p10138_p11 }
  0x50   :  { %10148 = shalt.err (!%p10145_p1)
}
  0x51   :  { %s10415_s23 = smov 128   ;;  %s10416_s17 = smov 8  }
  0x52   :  { %126 = dma.hbm_to_vmem [thread:$0]  %s10479_s29, 512, %s121_s12, [#allocation16], %s10415_s23, %s10415_s23, %s10416_s17  }
  0x53   :  { %s10149_s27 = scalar_lea.hbm %s10489_s8, 256 }
  0x54   :  { %p10150_p2 = scmp.ne.s32.totalorder %s10489_s8, %s10149_s27  ;;  %p10153_p3 = scmp.lt.u32.totalorder %s10149_s27, %s10489_s8 }
  0x56   :  { %p10155_p4 = pnand %p10153_p3, %p10150_p2 }
  0x58   :  { %10158 = shalt.err (!%p10155_p4)
}
  0x59   :  { %s10159_s28 = scalar_lea.vmem %s145_s16, 256  ;;  %p10164_p6 = scmp.lt.s32.totalorder %s145_s16, %s145_s16 }
  0x5a   :  { %p10160_p5 = scmp.ne.s32.totalorder %s145_s16, %s10159_s28  ;;  %p10165_p7 = scmp.lt.s32.totalorder %s10159_s28, %s10159_s28 }
  0x5c   :  { %p10166_p8 = por %p10165_p7, %p10164_p6 }
  0x5e   :  { %p10167_p9 = pnand %p10166_p8, %p10160_p5 }
  0x60   :  { %10170 = shalt.err (!%p10167_p9)
}
  0x61   :  { %150 = dma.hbm_to_vmem [thread:$0]  %s10489_s8, 256, %s145_s16, [#allocation19], %s10415_s23, %s10415_s23, %s10416_s17  }
  0x62   :  { %s10417_s29 = smov [#allocation21]   ;;  %s10418_s4 = smov [#allocation24]  }
  0x63   :  { %s170_s1 = sshll.u32 %s10417_s29, 4  ;;  %s202_s21 = sshll.u32 %s10418_s4, 4  ;;  %s171_s1 = int_to_ptr.vmem [resolvable:$true] %s170_s1  ;;  %s203_s21 = int_to_ptr.vmem [resolvable:$true] %s202_s21 }
  0x64   :  { %s10171_s7 = scalar_lea.hbm %s10504_s24, 768 }
  0x65   :  { %p10172_p10 = scmp.ne.s32.totalorder %s10504_s24, %s10171_s7  ;;  %p10175_p11 = scmp.lt.u32.totalorder %s10171_s7, %s10504_s24 }
  0x67   :  { %p10177_p12 = pnand %p10175_p11, %p10172_p10 }
  0x69   :  { %10180 = shalt.err (!%p10177_p12)
}
  0x6a   :  { %s10181_s0 = scalar_lea.vmem %s171_s1, 768  ;;  %p10186_p0 = scmp.lt.s32.totalorder %s171_s1, %s171_s1 }
  0x6b   :  { %p10182_p13 = scmp.ne.s32.totalorder %s171_s1, %s10181_s0  ;;  %p10187_p1 = scmp.lt.s32.totalorder %s10181_s0, %s10181_s0 }
  0x6d   :  { %p10188_p2 = por %p10187_p1, %p10186_p0 }
  0x6f   :  { %p10189_p3 = pnand %p10188_p2, %p10182_p13 }
  0x71   :  { %10192 = shalt.err (!%p10189_p3)
}
  0x72   :  { %176 = dma.hbm_to_vmem [thread:$0]  %s10504_s24, 768, %s171_s1, [#allocation22], %s10415_s23, %s10415_s23, %s10416_s17  }
  0x73   :  { %s10193_s8 = scalar_lea.hbm %s10534_s2, 768 }
  0x74   :  { %p10194_p4 = scmp.ne.s32.totalorder %s10534_s2, %s10193_s8  ;;  %p10197_p5 = scmp.lt.u32.totalorder %s10193_s8, %s10534_s2 }
  0x76   :  { %p10199_p6 = pnand %p10197_p5, %p10194_p4 }
  0x78   :  { %10202 = shalt.err (!%p10199_p6)
}
  0x79   :  { %s10203_s26 = scalar_lea.vmem %s203_s21, 768  ;;  %p10208_p8 = scmp.lt.s32.totalorder %s203_s21, %s203_s21 }
  0x7a   :  { %p10204_p7 = scmp.ne.s32.totalorder %s203_s21, %s10203_s26  ;;  %p10209_p9 = scmp.lt.s32.totalorder %s10203_s26, %s10203_s26 }
  0x7c   :  { %p10210_p10 = por %p10209_p9, %p10208_p8 }
  0x7e   :  { %p10211_p11 = pnand %p10210_p10, %p10204_p7 }
  0x80   :  { %10214 = shalt.err (!%p10211_p11)
}
  0x81   :  { %208 = dma.hbm_to_vmem [thread:$0]  %s10534_s2, 768, %s203_s21, [#allocation25], %s10415_s23, %s10415_s23, %s10416_s17  }
  0x82   :  { %s10419_s24 = smov [#allocation10]   ;;  %s10420_s15 = smov [#allocation14]  }
  0x83   :  { %s82_s12 = sshll.u32 %s10419_s24, 4  ;;  %s108_s16 = sshll.u32 %s10420_s15, 4  ;;  %s83_s12 = int_to_ptr.vmem [resolvable:$true] %s82_s12  ;;  %s109_s16 = int_to_ptr.vmem [resolvable:$true] %s108_s16 }
  0x84   :  { %s10215_s20 = scalar_lea.hbm %s10456_s9, 256 }
  0x85   :  { %p10216_p12 = scmp.ne.s32.totalorder %s10456_s9, %s10215_s20  ;;  %p10219_p13 = scmp.lt.u32.totalorder %s10215_s20, %s10456_s9 }
  0x87   :  { %p10221_p0 = pnand %p10219_p13, %p10216_p12 }
  0x89   :  { %10224 = shalt.err (!%p10221_p0)
}
  0x8a   :  { %s10225_s22 = scalar_lea.vmem %s83_s12, 256  ;;  %p10230_p2 = scmp.lt.s32.totalorder %s83_s12, %s83_s12 }
  0x8b   :  { %p10226_p1 = scmp.ne.s32.totalorder %s83_s12, %s10225_s22  ;;  %p10231_p3 = scmp.lt.s32.totalorder %s10225_s22, %s10225_s22 }
  0x8d   :  { %p10232_p4 = por %p10231_p3, %p10230_p2 }
  0x8f   :  { %p10233_p5 = pnand %p10232_p4, %p10226_p1 }
  0x91   :  { %10236 = shalt.err (!%p10233_p5)
}
  0x92   :  { %88 = dma.hbm_to_vmem [thread:$0]  %s10456_s9, 256, %s83_s12, [#allocation11], %s10415_s23, %s10415_s23, %s10416_s17  }
  0x93   :  { %s10237_s2 = scalar_lea.hbm %s10474_s25, 1152 }
  0x94   :  { %p10238_p6 = scmp.ne.s32.totalorder %s10474_s25, %s10237_s2  ;;  %p10241_p7 = scmp.lt.u32.totalorder %s10237_s2, %s10474_s25 }
  0x96   :  { %p10243_p8 = pnand %p10241_p7, %p10238_p6 }
  0x98   :  { %10246 = shalt.err (!%p10243_p8)
}
  0x99   :  { %s10247_s27 = scalar_lea.vmem %s109_s16, 1152  ;;  %p10252_p10 = scmp.lt.s32.totalorder %s109_s16, %s109_s16 }
  0x9a   :  { %p10248_p9 = scmp.ne.s32.totalorder %s109_s16, %s10247_s27  ;;  %p10253_p11 = scmp.lt.s32.totalorder %s10247_s27, %s10247_s27 }
  0x9c   :  { %p10254_p12 = por %p10253_p11, %p10252_p10 }
  0x9e   :  { %p10255_p13 = pnand %p10254_p12, %p10248_p9 }
  0xa0   :  { %10258 = shalt.err (!%p10255_p13)
}
  0xa1   :  { %114 = dma.hbm_to_vmem [thread:$0]  %s10474_s25, 1152, %s109_s16, [#allocation13], %s10415_s23, %s10415_s23, %s10416_s17  }
  0xa2   :  { %s10421_s9 = smov [#allocation17]   ;;  %s10422_s29 = smov [#allocation20]  }
  0xa3   :  { %s132_s28 = sshll.u32 %s10421_s9, 4  ;;  %s156_s1 = sshll.u32 %s10422_s29, 4  ;;  %s133_s28 = int_to_ptr.vmem [resolvable:$true] %s132_s28  ;;  %s157_s1 = int_to_ptr.vmem [resolvable:$true] %s156_s1 }
  0xa4   :  { %s10259_s4 = scalar_lea.hbm %s10484_s3, 16384 }
  0xa5   :  { %p10260_p0 = scmp.ne.s32.totalorder %s10484_s3, %s10259_s4  ;;  %p10263_p1 = scmp.lt.u32.totalorder %s10259_s4, %s10484_s3 }
  0xa7   :  { %p10265_p2 = pnand %p10263_p1, %p10260_p0 }
  0xa9   :  { %10268 = shalt.err (!%p10265_p2)
}
  0xaa   :  { %s10269_s21 = scalar_lea.vmem %s133_s28, 16384  ;;  %p10274_p4 = scmp.lt.s32.totalorder %s133_s28, %s133_s28 }
  0xab   :  { %p10270_p3 = scmp.ne.s32.totalorder %s133_s28, %s10269_s21  ;;  %p10275_p5 = scmp.lt.s32.totalorder %s10269_s21, %s10269_s21 }
  0xad   :  { %p10276_p6 = por %p10275_p5, %p10274_p4 }
  0xaf   :  { %p10277_p7 = pnand %p10276_p6, %p10270_p3 }
  0xb1   :  { %10280 = shalt.err (!%p10277_p7)
}
  0xb2   :  { %138 = dma.hbm_to_vmem [thread:$0]  %s10484_s3, 16384, %s133_s28, [#allocation16], %s10415_s23, %s10415_s23, %s10416_s17  }
  0xb3   :  { %s10281_s25 = scalar_lea.hbm %s10494_s14, 256 }
  0xb4   :  { %p10282_p8 = scmp.ne.s32.totalorder %s10494_s14, %s10281_s25  ;;  %p10285_p9 = scmp.lt.u32.totalorder %s10281_s25, %s10494_s14 }
  0xb6   :  { %p10287_p10 = pnand %p10285_p9, %p10282_p8 }
  0xb8   :  { %10290 = shalt.err (!%p10287_p10)
}
  0xb9   :  { %s10291_s7 = scalar_lea.vmem %s157_s1, 256  ;;  %p10296_p12 = scmp.lt.s32.totalorder %s157_s1, %s157_s1 }
  0xba   :  { %p10292_p11 = scmp.ne.s32.totalorder %s157_s1, %s10291_s7  ;;  %p10297_p13 = scmp.lt.s32.totalorder %s10291_s7, %s10291_s7 }
  0xbc   :  { %p10298_p0 = por %p10297_p13, %p10296_p12 }
  0xbe   :  { %p10299_p1 = pnand %p10298_p0, %p10292_p11 }
  0xc0   :  { %10302 = shalt.err (!%p10299_p1)
}
  0xc1   :  { %162 = dma.hbm_to_vmem [thread:$0]  %s10494_s14, 256, %s157_s1, [#allocation19], %s10415_s23, %s10415_s23, %s10416_s17  }
  0xc2   :  { %s10423_s3 = smov [#allocation23]   ;;  %s10424_s8 = smov [#allocation26]  }
  0xc3   :  { %s184_s0 = sshll.u32 %s10423_s3, 4  ;;  %s220_s26 = sshll.u32 %s10424_s8, 4  ;;  %s185_s0 = int_to_ptr.vmem [resolvable:$true] %s184_s0  ;;  %s221_s26 = int_to_ptr.vmem [resolvable:$true] %s220_s26 }
  0xc4   :  { %s10303_s24 = scalar_lea.hbm %s10514_s6, 768 }
  0xc5   :  { %p10304_p2 = scmp.ne.s32.totalorder %s10514_s6, %s10303_s24  ;;  %p10307_p3 = scmp.lt.u32.totalorder %s10303_s24, %s10514_s6 }
  0xc7   :  { %p10309_p4 = pnand %p10307_p3, %p10304_p2 }
  0xc9   :  { %10312 = shalt.err (!%p10309_p4)
}
  0xca   :  { %s10313_s12 = scalar_lea.vmem %s185_s0, 768  ;;  %p10318_p6 = scmp.lt.s32.totalorder %s185_s0, %s185_s0 }
  0xcb   :  { %p10314_p5 = scmp.ne.s32.totalorder %s185_s0, %s10313_s12  ;;  %p10319_p7 = scmp.lt.s32.totalorder %s10313_s12, %s10313_s12 }
  0xcd   :  { %p10320_p8 = por %p10319_p7, %p10318_p6 }
  0xcf   :  { %p10321_p9 = pnand %p10320_p8, %p10314_p5 }
  0xd1   :  { %10324 = shalt.err (!%p10321_p9)
}
  0xd2   :  { %190 = dma.hbm_to_vmem [thread:$0]  %s10514_s6, 768, %s185_s0, [#allocation22], %s10415_s23, %s10415_s23, %s10416_s17  }
  0xd3   :  { %s10325_s14 = scalar_lea.hbm %s10554_s30, 256 }
  0xd4   :  { %p10326_p10 = scmp.ne.s32.totalorder %s10554_s30, %s10325_s14  ;;  %p10329_p11 = scmp.lt.u32.totalorder %s10325_s14, %s10554_s30 }
  0xd6   :  { %p10331_p12 = pnand %p10329_p11, %p10326_p10 }
  0xd8   :  { %10334 = shalt.err (!%p10331_p12)
}
  0xd9   :  { %s10335_s15 = scalar_lea.vmem %s221_s26, 256  ;;  %p10340_p0 = scmp.lt.s32.totalorder %s221_s26, %s221_s26 }
  0xda   :  { %p10336_p13 = scmp.ne.s32.totalorder %s221_s26, %s10335_s15  ;;  %p10341_p1 = scmp.lt.s32.totalorder %s10335_s15, %s10335_s15 }
  0xdc   :  { %p10342_p2 = por %p10341_p1, %p10340_p0 }
  0xde   :  { %p10343_p3 = pnand %p10342_p2, %p10336_p13 }
  0xe0   :  { %10346 = shalt.err (!%p10343_p3)
}
  0xe1   :  { %226 = dma.hbm_to_vmem [thread:$0]  %s10554_s30, 256, %s221_s26, [#allocation25], %s10415_s23, %s10415_s23, %s10416_s17  }
  0xe2   :  { %s10425_s6 = smov [#allocation27]   ;;  %s10347_s20 = scalar_lea.hbm %s10584_s11, 512 }
  0xe3   :  { %s242_s16 = sshll.u32 %s10425_s6, 4  ;;  %p10348_p4 = scmp.ne.s32.totalorder %s10584_s11, %s10347_s20  ;;  %s243_s16 = int_to_ptr.vmem [resolvable:$true] %s242_s16 }
  0xe4   :  { %p10351_p5 = scmp.lt.u32.totalorder %s10347_s20, %s10584_s11 }
  0xe6   :  { %p10353_p6 = pnand %p10351_p5, %p10348_p4 }
  0xe8   :  { %10356 = shalt.err (!%p10353_p6)
}
  0xe9   :  { %s10357_s22 = scalar_lea.vmem %s243_s16, 512  ;;  %p10362_p8 = scmp.lt.s32.totalorder %s243_s16, %s243_s16 }
  0xea   :  { %p10358_p7 = scmp.ne.s32.totalorder %s243_s16, %s10357_s22  ;;  %p10363_p9 = scmp.lt.s32.totalorder %s10357_s22, %s10357_s22 }
  0xec   :  { %p10364_p10 = por %p10363_p9, %p10362_p8 }
  0xee   :  { %p10365_p11 = pnand %p10364_p10, %p10358_p7 }
  0xf0   :  { %10368 = shalt.err (!%p10365_p11)
}
  0xf1   :  { %248 = dma.hbm_to_vmem [thread:$0]  %s10584_s11, 512, %s243_s16, [#allocation28], %s10415_s23, %s10415_s23, %s10416_s17  }
  0xf2   :  { %10369 = dma.done.wait [#allocation11], 256  }
  0xf3   :  { %10370 = vsyncadd [#allocation11], 4294967040 }
  0xf4   :  { %10371 = dma.done.wait [#allocation13], 1216  }
  0xf5   :  { %10372 = vsyncadd [#allocation13], 4294966080 }
  0xf6   :  { %10373 = dma.done.wait [#allocation16], 16896  }
  0xf7   :  { %10374 = vsyncadd [#allocation16], 4294950400 }
  0xf8   :  { %10375 = dma.done.wait [#allocation19], 512  }
  0xf9   :  { %10376 = vsyncadd [#allocation19], 4294966784 }
  0xfa   :  { %10377 = dma.done.wait [#allocation22], 1536  }
  0xfb   :  { %10378 = vsyncadd [#allocation22], 4294965760 }
  0xfc   :  { %10379 = dma.done.wait [#allocation25], 1024  }
  0xfd   :  { %10380 = vsyncadd [#allocation25], 4294966272 }
  0xfe   :  { %10381 = dma.done.wait [#allocation28], 512  }
  0xff   :  { %10382 = vsyncadd [#allocation28], 4294966784  ;;  %v12876_v2 = vmov 0.0   ;;  %v302_v3 = vlaneseq  ;;  %v10427_v4 = vmov 1983009808   ;;  %v289_v6 = vld [vmem:[%s10451_s5] sm:$0xff] }
 0x100   :  { %287 = vst [vmem:[#allocation2] sm:$0x3] %v12876_v2  ;;  %288 = vst [vmem:[#allocation2 + $0x12] sm:$0x3] %v12876_v2  ;;  %1807 = vmatprep.mubr.f32.mxu0 %v12876_v2  ;;  %1884 = vmatprep.mubr.f32.mxu1 %v12876_v2  ;;  %v347_v5 = vunpack.c.l.s4 %v10427_v4  ;;  %v10681_v7 = vld [vmem:[%s10451_s5 + $0x8] sm:$0xff]  ;;  %s10428_s30 = smov 31   ;;  %v1086_v16 = vcombine.high %v289_v6, %v289_v6 }
 0x101   :  { %291 = vst [vmem:[#allocation2 + $0x2] sm:$0xff] %v289_v6  ;;  %v10683_v8 = vshrl.u32 %v302_v3, 7  ;;  %292 = vst [vmem:[#allocation2 + $0xa] sm:$0xff] %v10681_v7  ;;  %s10429_s5 = smov 32   ;;  %v10705_v19 = vld [vmem:[#allocation14 + $0x20] sm:$0xff]  ;;  %s10430_s11 = smov 1   ;;  %v1103_v41 = vcombine.high %v10681_v7, %v10681_v7 }
 0x102   :  { %v348_v9 = vunpack.c.0.s8 %v347_v5  ;;  %s10431_s23 = smov 127   ;;  %s10432_s17 = smov 97   ;;  %v10819_v52 = vld [vmem:[#allocation14 + $0x10] sm:$0xff]  ;;  %v10821_v53 = vld [vmem:[#allocation14 + $0x8] sm:$0xff]  ;;  %vm710_vm0 = vcmask 252928   ;;  %vm545_vm1 = vcmask 261120  }
 0x103   :  { %v10703_v18 = vsub.s32 1, %v10683_v8  ;;  %v10719_v24 = vsub.s32 0, %v10683_v8  ;;  %s10433_s2 = smov 96   ;;  %s10434_s27 = smov 33   ;;  %v10746_v30 = vsub.s32 2, %v10683_v8  ;;  %v10749_v31 = vsub.s32 3, %v10683_v8 }
 0x104   :  { %v10687_v10 = vsub.s32 %v348_v9, %v10683_v8  ;;  %s10435_s9 = smov 95   ;;  %v10783_v42 = vsub.s32 4, %v10683_v8  ;;  %v10791_v45 = vsub.s32 5, %v10683_v8  ;;  %v10835_v58 = vld [vmem:[#allocation14 + $0x18] sm:$0xff]  ;;  %vm875_vm2 = vcmask 7168   ;;  %s13044_s28 = sld [smem:[#allocation37_spill]] }
 0x105   :  { %12945 = vst [vmem:[#allocation47_spill] sm:$0xff] %v10703_v18  ;;  %v944_v22 = vrot.slane %v10705_v19, %v10703_v18  ;;  %12946 = vst [vmem:[#allocation48_spill] sm:$0xff] %v10719_v24  ;;  %v940_v25 = vrot.slane %v10705_v19, %v10719_v24  ;;  %v952_v34 = vrot.slane %v10705_v19, %v10749_v31  ;;  %v10858_v4 = vsub.s32 7, %v10683_v8  ;;  %s13045_s29 = sld [smem:[#allocation36_spill]]  ;;  %s10438_s1 = smov 119  }
 0x106   :  { %v10700_v17 = vrot.slane %v289_v6, %v10687_v10  ;;  %v1100_v20 = vrot.slane %v1086_v16, %v10687_v10  ;;  %12947 = vst [vmem:[#allocation49_spill] sm:$0xff] %v10749_v31  ;;  %v1110_v32 = vrot.slane %v10681_v7, %v10687_v10  ;;  %v948_v35 = vrot.slane %v10705_v19, %v10746_v30  ;;  %v10862_v6 = vld [vmem:[#allocation14 + $0x28] sm:$0xff]  ;;  %s10439_s4 = smov 18   ;;  %s10440_s21 = smov 110  }
 0x107   :  { %12948 = vst [vmem:[#allocation50_spill] sm:$0xff] %v10783_v42  ;;  %v10788_v44 = vrot.slane %v1103_v41, %v10687_v10  ;;  %12949 = vst [vmem:[#allocation51_spill] sm:$0xff] %v10791_v45  ;;  %v956_v46 = vrot.slane %v10705_v19, %v10783_v42  ;;  %v960_v47 = vrot.slane %v10705_v19, %v10791_v45  ;;  %v10860_v5 = vld.sshfl [vmem:[#allocation2 + $0x12] sm:$0x3 pattern:$0x76325410] }
 0x108   :  { %v604_v11 = vld [vmem:[#allocation2] sm:$0xff]  ;;  %v1101_v21 = vcombine.high %v10700_v17, %v10700_v17  ;;  %v1021_v26 = vmul.f32 %v10700_v17, %v940_v25  ;;  %v440_v27 = vld [vmem:[#allocation2 + $0x8] sm:$0xff]  ;;  %v1102_v33 = vcombine.high %v1100_v20, %v1100_v20  ;;  %v1023_v37 = vmul.f32 %v1100_v20, %v948_v35  ;;  %v10813_v51 = vld.sshfl [vmem:[#allocation2 + $0x10] sm:$0x3 pattern:$0x76325410] }
 0x109   :  { %v10690_v12 = vrot.slane %v604_v11, %v10687_v10  ;;  %v651_v13 = vcombine.high %v604_v11, %v604_v11  ;;  %v510_v29 = vrot.slane %v440_v27, %v10687_v10  ;;  %v503_v38 = vcombine.high %v440_v27, %v440_v27  ;;  %12950 = vst [vmem:[#allocation52_spill] sm:$0xff] %v10858_v4  ;;  %s13050_s25 = sld [smem:[#allocation38_spill]]  ;;  %s13051_s7 = sld [smem:[#allocation41_spill]] }
 0x10a   :  { %v1022_v23 = vmul.f32 %v1101_v21, %v944_v22  ;;  %1029 = vst [vmem:[#allocation4 + $0x40] sm:$0x3] %v1021_v26  ;;  %v1024_v36 = vmul.f32 %v1102_v33, %v952_v34  ;;  %1031 = vst [vmem:[#allocation4 + $0x50] sm:$0x3] %v1023_v37  ;;  %v1118_v43 = vcombine.high %v1110_v32, %v1110_v32  ;;  %v10865_v7 = vsub.s32 6, %v10683_v8  ;;  %s13052_s3 = sld [smem:[#allocation40_spill]] }
 0x10b   :  { %v666_v14 = vcombine.high %v10690_v12, %v10690_v12  ;;  %v665_v15 = vrot.slane %v651_v13, %v10687_v10  ;;  %v518_v39 = vcombine.high %v510_v29, %v510_v29  ;;  %v517_v40 = vrot.slane %v503_v38, %v10687_v10  ;;  %s13053_s0 = sld [smem:[#allocation42_spill]]  ;;  %s13055_s8 = sld [smem:[#allocation44_spill]] }
 0x10c   :  { %1030 = vst [vmem:[#allocation4 + $0x48] sm:$0x3] %v1022_v23  ;;  %1032 = vst [vmem:[#allocation4 + $0x58] sm:$0x3] %v1024_v36  ;;  %v1025_v48 = vmul.f32 %v1110_v32, %v956_v46  ;;  %v1026_v49 = vmul.f32 %v1118_v43, %v960_v47  ;;  %v615_v56 = vrot.slane %v10819_v52, %v10703_v18  ;;  %vm1145_vm3 = vcmask 1039360   ;;  %s13056_s26 = sld [smem:[#allocation46_spill]] }
 0x10d   :  { %694 = vrot.lane.b32.xlu1 %v666_v14, %s10428_s30  ;;  %529 = vrot.lane.b32.xlu0 %v666_v14, %s10429_s5  ;;  %v502_v28 = vcombine.high %v665_v15, %v665_v15  ;;  %v10811_v50 = vcombine.high %v517_v40, %v517_v40  ;;  %v450_v57 = vrot.slane %v10821_v53, %v10703_v18  ;;  %vm1310_vm4 = vcmask 793600   ;;  %s13057_s24 = sld [smem:[#allocation45_spill]] }
 0x10e   :  { %1033 = vst [vmem:[#allocation4 + $0x60] sm:$0x3] %v1025_v48  ;;  %1034 = vst [vmem:[#allocation4 + $0x68] sm:$0x3] %v1026_v49  ;;  %v780_v63 = vrot.slane %v10835_v58, %v10703_v18  ;;  %v10855_v3 = vcombine.high %v10788_v44, %v10788_v44  ;;  %v968_v13 = vrot.slane %v10705_v19, %v10858_v4  ;;  %vm1475_vm5 = vcmask 785408  }
 0x10f   :  { %12951 = vst [vmem:[#allocation53_spill] sm:$0xff] %v10865_v7  ;;  %v1050_v16 = vrot.slane %v10862_v6, %v10703_v18  ;;  %vm404_vm6 = vcmask 269312   ;;  %vm1640_vm7 = vcmask 777216   ;;  %vm1718_vm8 = vcmask 1041408  }
 0x110   :  { %vm1711_vm9 = vcmask 146432   ;;  %vm3762_vm10 = vcmask 130048   ;;  %vm4780_vm11 = vcmask 66560   ;;  %vm4782_vm12 = vcmask 72704  }
 0x111   :  { %696 = vrot.lane.b32.xlu1 %v665_v15, %s10428_s30  ;;  %531 = vrot.lane.b32.xlu0 %v665_v15, %s10429_s5  ;;  %vm4852_vm13 = vcmask 1040384   ;;  %vm10437_vm14 = vmmov 1  }
 0x112   :  { %vm12361_vm15 = vmpackc.low %vm4852_vm13, %vm10437_vm14 }
 0x115   :  { %861 = vrot.lane.b32.xlu1 %v665_v15, %s10430_s11  ;;  %859 = vrot.lane.b32.xlu0 %v666_v14, %s10430_s11 }
 0x119   :  { %1131 = vrot.lane.b32.xlu1 %v1100_v20, %s10431_s23  ;;  %1129 = vrot.lane.b32.xlu0 %v1101_v21, %s10431_s23 }
 0x11d   :  { %1296 = vrot.lane.b32.xlu1 %v1100_v20, %s10432_s17  ;;  %1294 = vrot.lane.b32.xlu0 %v1101_v21, %s10432_s17 }
 0x121   :  { %1461 = vrot.lane.b32.xlu1 %v1100_v20, %s10433_s2  ;;  %1459 = vrot.lane.b32.xlu0 %v1101_v21, %s10433_s2 }
 0x125   :  { %692 = vrot.lane.b32.xlu1 %v10690_v12, %s10428_s30  ;;  %527 = vrot.lane.b32.xlu0 %v10690_v12, %s10429_s5 }
 0x129   :  { %1127 = vrot.lane.b32.xlu1 %v10700_v17, %s10431_s23  ;;  %857 = vrot.lane.b32.xlu0 %v10690_v12, %s10430_s11 }
 0x12d   :  { %1457 = vrot.lane.b32.xlu1 %v10700_v17, %s10433_s2  ;;  %1292 = vrot.lane.b32.xlu0 %v10700_v17, %s10432_s17 }
 0x131   :  { %388 = vrot.lane.b32.xlu0 %v666_v14, %s10434_s27  ;;  %390 = vrot.lane.b32.xlu1 %v665_v15, %s10434_s27  ;;  %v964_v15 = vrot.slane %v10705_v19, %v10865_v7 }
 0x135   :  { %533 = vrot.lane.b32.xlu0 %v502_v28, %s10429_s5  ;;  %535 = vrot.lane.b32.xlu1 %v510_v29, %s10429_s5 }
 0x139   :  { %698 = vrot.lane.b32.xlu0 %v502_v28, %s10428_s30  ;;  %700 = vrot.lane.b32.xlu1 %v510_v29, %s10428_s30 }
 0x13d   :  { %863 = vrot.lane.b32.xlu0 %v502_v28, %s10430_s11  ;;  %865 = vrot.lane.b32.xlu1 %v510_v29, %s10430_s11 }
 0x141   :  { %1133 = vrot.lane.b32.xlu0 %v1102_v33, %s10431_s23  ;;  %1135 = vrot.lane.b32.xlu1 %v1110_v32, %s10431_s23 }
 0x145   :  { %1298 = vrot.lane.b32.xlu0 %v1102_v33, %s10432_s17  ;;  %1300 = vrot.lane.b32.xlu1 %v1110_v32, %s10432_s17 }
 0x149   :  { %1463 = vrot.lane.b32.xlu0 %v1102_v33, %s10433_s2  ;;  %1465 = vrot.lane.b32.xlu1 %v1110_v32, %s10433_s2 }
 0x14d   :  { %386 = vrot.lane.b32.xlu0 %v10690_v12, %s10434_s27  ;;  %392 = vrot.lane.b32.xlu1 %v502_v28, %s10434_s27  ;;  %v10898_v28 = vld [vmem:[#allocation14 + $0x38] sm:$0xff] }
 0x14e   :  { %v1380_v36 = vrot.slane %v10898_v28, %v10703_v18 }
 0x151   :  { %394 = vrot.lane.b32.xlu0 %v510_v29, %s10434_s27  ;;  %1624 = vrot.lane.b32.xlu1 %v1101_v21, %s10435_s9  ;;  %v1027_v21 = vmul.f32 %v10788_v44, %v964_v15 }
 0x153   :  { %1035 = vst [vmem:[#allocation4 + $0x70] sm:$0x3] %v1027_v21  ;;  %v1700_v21 = vld [vmem:[%s10461_s13 + $0x8] sm:$0xff] }
 0x155   :  { %1626 = vrot.lane.b32.xlu0 %v1100_v20, %s10435_s9  ;;  %1622 = vrot.lane.b32.xlu1 %v10700_v17, %s10435_s9  ;;  %v10884_v17 = vld [vmem:[#allocation14 + $0x30] sm:$0xff]  ;;  %v1028_v20 = vmul.f32 %v10855_v3, %v968_v13 }
 0x156   :  { %v1215_v27 = vrot.slane %v10884_v17, %v10703_v18  ;;  %v1211_v13 = vrot.slane %v10884_v17, %v10719_v24 }
 0x157   :  { %1036 = vst [vmem:[#allocation4 + $0x78] sm:$0x3] %v1028_v20 }
 0x159   :  { %1628 = vrot.lane.b32.xlu0 %v1102_v33, %s10435_s9  ;;  %1630 = vrot.lane.b32.xlu1 %v1110_v32, %s10435_s9 }
 0x15d   :  { %537 = vrot.lane.b32.xlu0 %v518_v39, %s10429_s5  ;;  %539 = vrot.lane.b32.xlu1 %v517_v40, %s10429_s5 }
 0x161   :  { %702 = vrot.lane.b32.xlu0 %v518_v39, %s10428_s30  ;;  %704 = vrot.lane.b32.xlu1 %v517_v40, %s10428_s30 }
 0x165   :  { %867 = vrot.lane.b32.xlu0 %v518_v39, %s10430_s11  ;;  %869 = vrot.lane.b32.xlu1 %v517_v40, %s10430_s11 }
 0x169   :  { %1137 = vrot.lane.b32.xlu0 %v1118_v43, %s10431_s23  ;;  %1139 = vrot.lane.b32.xlu1 %v10788_v44, %s10431_s23 }
 0x16d   :  { %1302 = vrot.lane.b32.xlu0 %v1118_v43, %s10432_s17  ;;  %1304 = vrot.lane.b32.xlu1 %v10788_v44, %s10432_s17 }
 0x171   :  { %1467 = vrot.lane.b32.xlu0 %v1118_v43, %s10433_s2  ;;  %1469 = vrot.lane.b32.xlu1 %v10788_v44, %s10433_s2 }
 0x175   :  { %396 = vrot.lane.b32.xlu0 %v518_v39, %s10434_s27  ;;  %398 = vrot.lane.b32.xlu1 %v517_v40, %s10434_s27 }
 0x179   :  { %1632 = vrot.lane.b32.xlu0 %v1118_v43, %s10435_s9  ;;  %1634 = vrot.lane.b32.xlu1 %v10788_v44, %s10435_s9  ;;  %v611_v43 = vrot.slane %v10819_v52, %v10719_v24  ;;  %v446_v44 = vrot.slane %v10821_v53, %v10719_v24 }
 0x17d   :  { %541 = vrot.lane.b32.xlu0 %v10811_v50, %s10429_s5  ;;  %543 = vrot.lane.b32.xlu1 %v10813_v51, %s10429_s5 }
 0x17f   :  { %v10823_v54 = vpop.permute.xlu1 %694  ;;  %v10825_v55 = vpop.permute.xlu0 %529 }
 0x181   :  { %706 = vrot.lane.b32.xlu0 %v10811_v50, %s10428_s30  ;;  %708 = vrot.lane.b32.xlu1 %v10813_v51, %s10428_s30 }
 0x183   :  { %v10837_v59 = vpop.permute.xlu1 %696  ;;  %v10839_v60 = vpop.permute.xlu0 %531 }
 0x184   :  { %v712_v61 = vsel %vm710_vm0, %v10823_v54, %v10837_v59  ;;  %v547_v62 = vsel %vm545_vm1, %v10825_v55, %v10839_v60 }
 0x185   :  { %v728_v0 = vmul.f32 %v712_v61, %v615_v56  ;;  %v563_v1 = vmul.f32 %v547_v62, %v450_v57  ;;  %871 = vrot.lane.b32.xlu0 %v10811_v50, %s10430_s11  ;;  %873 = vrot.lane.b32.xlu1 %v10813_v51, %s10430_s11  ;;  %v776_v61 = vrot.slane %v10835_v58, %v10719_v24 }
 0x187   :  { %v744_v9 = vrot.slane %v728_v0, 4  ;;  %v579_v10 = vrot.slane %v563_v1, 6  ;;  %v10867_v11 = vpop.permute.xlu1 %861  ;;  %v10869_v12 = vpop.permute.xlu0 %859 }
 0x188   :  { %v877_v14 = vsel %vm875_vm2, %v10869_v12, %v10867_v11 }
 0x189   :  { %760 = vst [vmem:[#allocation4 + $0x8] sm:$0x30] %v744_v9  ;;  %595 = vst [vmem:[#allocation4 + $0x8] sm:$0xc] %v579_v10  ;;  %v893_v8 = vmul.f32 %v877_v14, %v780_v63  ;;  %1141 = vrot.lane.b32.xlu0 %v10855_v3, %s10431_s23  ;;  %1143 = vrot.lane.b32.xlu1 %v10860_v5, %s10431_s23  ;;  %v10937_v9 = vld [vmem:[#allocation14] sm:$0xff] }
 0x18a   :  { %v309_v20 = vrot.slane %v10937_v9, %v10703_v18 }
 0x18b   :  { %v909_v19 = vrot.slane %v893_v8, 2  ;;  %v10888_v22 = vpop.permute.xlu1 %1131  ;;  %v1130_v23 = vpop.permute.xlu0 %1129 }
 0x18c   :  { %v1147_v25 = vsel %vm1145_vm3, %v1130_v23, %v10888_v22 }
 0x18d   :  { %925 = vst [vmem:[#allocation4 + $0x8] sm:$0xc0] %v909_v19  ;;  %v1163_v26 = vmul.f32 %v1147_v25, %v1050_v16  ;;  %1306 = vrot.lane.b32.xlu0 %v10855_v3, %s10432_s17  ;;  %1308 = vrot.lane.b32.xlu1 %v10860_v5, %s10432_s17  ;;  %v10436_v25 = vmov 0  }
 0x18e   :  { %9880 = vset.pattern.permute.xlu0 %v10436_v25  ;;  %9881 = vset.pattern.permute.xlu1 %v10436_v25 }
 0x18f   :  { %v1179_v29 = vrot.slane %v1163_v26, 6  ;;  %v10900_v32 = vpop.permute.xlu1 %1296  ;;  %v1295_v33 = vpop.permute.xlu0 %1294 }
 0x190   :  { %v1312_v34 = vsel %vm1310_vm4, %v1295_v33, %v10900_v32 }
 0x191   :  { %1195 = vst [vmem:[#allocation4 + $0x48] sm:$0xc] %v1179_v29  ;;  %v1328_v35 = vmul.f32 %v1312_v34, %v1215_v27  ;;  %1471 = vrot.lane.b32.xlu0 %v10855_v3, %s10433_s2  ;;  %1473 = vrot.lane.b32.xlu1 %v10860_v5, %s10433_s2 }
 0x193   :  { %v1344_v37 = vrot.slane %v1328_v35, 4  ;;  %v10910_v38 = vpop.permute.xlu1 %1461  ;;  %v1460_v39 = vpop.permute.xlu0 %1459 }
 0x194   :  { %v1477_v40 = vsel %vm1475_vm5, %v1460_v39, %v10910_v38 }
 0x195   :  { %1360 = vst [vmem:[#allocation4 + $0x48] sm:$0x30] %v1344_v37  ;;  %v1493_v41 = vmul.f32 %v1477_v40, %v1380_v36  ;;  %400 = vrot.lane.b32.xlu0 %v10811_v50, %s10434_s27  ;;  %402 = vrot.lane.b32.xlu1 %v10813_v51, %s10434_s27  ;;  %v1046_v50 = vrot.slane %v10862_v6, %v10719_v24 }
 0x196   :  { %v454_v37 = vrot.slane %v10821_v53, %v10746_v30  ;;  %v458_v40 = vrot.slane %v10821_v53, %v10749_v31 }
 0x197   :  { %v1509_v46 = vrot.slane %v1493_v41, 2  ;;  %v693_v47 = vpop.permute.xlu1 %692  ;;  %v528_v48 = vpop.permute.xlu0 %527 }
 0x198   :  { %v711_v49 = vsel %vm710_vm0, %v693_v47, %v10823_v54  ;;  %v546_v56 = vsel %vm545_vm1, %v528_v48, %v10825_v55 }
 0x199   :  { %1525 = vst [vmem:[#allocation4 + $0x48] sm:$0xc0] %v1509_v46  ;;  %v727_v51 = vmul.f32 %v711_v49, %v611_v43  ;;  %v562_v57 = vmul.f32 %v546_v56, %v446_v44  ;;  %1636 = vrot.lane.b32.xlu0 %v10855_v3, %s10435_s9  ;;  %1638 = vrot.lane.b32.xlu1 %v10860_v5, %s10435_s9 }
 0x19a   :  { %v1376_v5 = vrot.slane %v10898_v28, %v10719_v24  ;;  %v619_v49 = vrot.slane %v10819_v52, %v10746_v30  ;;  %v623_v56 = vrot.slane %v10819_v52, %v10749_v31 }
 0x19b   :  { %v743_v62 = vrot.slane %v727_v51, 4  ;;  %v578_v54 = vrot.slane %v562_v57, 6  ;;  %v1128_v63 = vpop.permute.xlu1 %1127  ;;  %v858_v55 = vpop.permute.xlu0 %857 }
 0x19c   :  { %v1146_v0 = vsel %vm1145_vm3, %v1128_v63, %v1130_v23  ;;  %v876_v1 = vsel %vm875_vm2, %v858_v55, %v10869_v12  ;;  %v1699_v12 = vld [vmem:[%s10461_s13] sm:$0xff]  ;;  %v784_v55 = vrot.slane %v10835_v58, %v10746_v30  ;;  %s13043_s13 = sld [smem:[#allocation39_spill]] }
 0x19d   :  { %759 = vst [vmem:[#allocation4] sm:$0x30] %v743_v62  ;;  %594 = vst [vmem:[#allocation4] sm:$0xc] %v578_v54  ;;  %v1162_v10 = vmul.f32 %v1146_v0, %v1046_v50  ;;  %v892_v3 = vmul.f32 %v876_v1, %v776_v61  ;;  %1703 = vperm.xlu0 %9880, %v1699_v12   ;;  %1708 = vperm.xlu1 %9881, %v1700_v21  }
 0x19e   :  { %v788_v0 = vrot.slane %v10835_v58, %v10749_v31  ;;  %v1054_v12 = vrot.slane %v10862_v6, %v10746_v30  ;;  %v1058_v21 = vrot.slane %v10862_v6, %v10749_v31 }
 0x19f   :  { %v1178_v14 = vrot.slane %v1162_v10, 6  ;;  %v908_v15 = vrot.slane %v892_v3, 2  ;;  %v1458_v8 = vpop.permute.xlu1 %1457  ;;  %v1293_v16 = vpop.permute.xlu0 %1292 }
 0x1a0   :  { %v1476_v19 = vsel %vm1475_vm5, %v1458_v8, %v1460_v39  ;;  %v1311_v23 = vsel %vm1310_vm4, %v1293_v16, %v1295_v33  ;;  %v1684_v10 = vld [vmem:[#allocation4 + $0x48] sm:$0xff] }
 0x1a1   :  { %1194 = vst [vmem:[#allocation4 + $0x40] sm:$0xc] %v1178_v14  ;;  %924 = vst [vmem:[#allocation4] sm:$0xc0] %v908_v15  ;;  %v1492_v26 = vmul.f32 %v1476_v19, %v1376_v5  ;;  %v1327_v27 = vmul.f32 %v1311_v23, %v1211_v13  ;;  %9888 = vrot.lane.b32.xlu0 %v12876_v2, %s10429_s5  ;;  %9883 = vrot.lane.b32.xlu1 %v12876_v2, %s10434_s27 }
 0x1a3   :  { %v1508_v29 = vrot.slane %v1492_v26, 2  ;;  %v1343_v34 = vrot.slane %v1327_v27, 4  ;;  %v10949_v35 = vpop.permute.xlu0 %388  ;;  %v10951_v36 = vpop.permute.xlu1 %390 }
 0x1a4   :  { %v406_v33 = vsel %vm404_vm6, %v10949_v35, %v10951_v36 }
 0x1a5   :  { %1524 = vst [vmem:[#allocation4 + $0x40] sm:$0xc0] %v1508_v29  ;;  %1359 = vst [vmem:[#allocation4 + $0x40] sm:$0x30] %v1343_v34  ;;  %v422_v39 = vmul.f32 %v406_v33, %v309_v20  ;;  %9898 = vrot.lane.b32.xlu0 %v12876_v2, %s10430_s11  ;;  %v1219_v33 = vrot.slane %v10884_v17, %v10746_v30  ;;  %9893 = vrot.lane.b32.xlu1 %v12876_v2, %s10428_s30 }
 0x1a7   :  { %430 = vst [vmem:[#allocation4 + $0x8] sm:$0x3] %v422_v39  ;;  %v534_v41 = vpop.permute.xlu0 %533  ;;  %v10964_v43 = vpop.permute.xlu1 %535 }
 0x1a8   :  { %v548_v44 = vsel %vm545_vm1, %v10839_v60, %v534_v41  ;;  %v549_v46 = vsel %vm545_vm1, %v534_v41, %v10964_v43 }
 0x1a9   :  { %v564_v47 = vmul.f32 %v548_v44, %v454_v37  ;;  %v565_v48 = vmul.f32 %v549_v46, %v458_v40  ;;  %v1223_v37 = vrot.slane %v10884_v17, %v10749_v31  ;;  %9903 = vrot.lane.b32.xlu0 %v12876_v2, %s10431_s23 }
 0x1ab   :  { %v580_v50 = vrot.slane %v564_v47, 6  ;;  %v581_v51 = vrot.slane %v565_v48, 6  ;;  %v699_v57 = vpop.permute.xlu0 %698  ;;  %v10976_v61 = vpop.permute.xlu1 %700 }
 0x1ac   :  { %v713_v60 = vsel %vm710_vm0, %v10837_v59, %v699_v57  ;;  %v714_v62 = vsel %vm710_vm0, %v699_v57, %v10976_v61 }
 0x1ad   :  { %596 = vst [vmem:[#allocation4 + $0x10] sm:$0xc] %v580_v50  ;;  %597 = vst [vmem:[#allocation4 + $0x18] sm:$0xc] %v581_v51  ;;  %v729_v54 = vmul.f32 %v713_v60, %v619_v49  ;;  %v730_v63 = vmul.f32 %v714_v62, %v623_v56  ;;  %v1384_v49 = vrot.slane %v10898_v28, %v10746_v30 }
 0x1ae   :  { %v1676_v1 = vld [vmem:[#allocation4 + $0x8] sm:$0xff]  ;;  %v1388_v56 = vrot.slane %v10898_v28, %v10749_v31 }
 0x1af   :  { %v745_v3 = vrot.slane %v729_v54, 4  ;;  %v746_v5 = vrot.slane %v730_v63, 4  ;;  %v864_v13 = vpop.permute.xlu0 %863  ;;  %v10986_v14 = vpop.permute.xlu1 %865  ;;  %v9312_v59 = vpack.c.bf16 %v1684_v10, %v1676_v1 }
 0x1b0   :  { %v878_v15 = vsel %vm875_vm2, %v10867_v11, %v864_v13  ;;  %v879_v8 = vsel %vm875_vm2, %v864_v13, %v10986_v14 }
 0x1b1   :  { %761 = vst [vmem:[#allocation4 + $0x10] sm:$0x30] %v745_v3  ;;  %762 = vst [vmem:[#allocation4 + $0x18] sm:$0x30] %v746_v5  ;;  %v894_v16 = vmul.f32 %v878_v15, %v784_v55  ;;  %v895_v20 = vmul.f32 %v879_v8, %v788_v0  ;;  %9313 = vmatprep.subr.bf16.mxu0 %v9312_v59  ;;  %v305_v55 = vrot.slane %v10937_v9, %v10719_v24 }
 0x1b2   :  { %v313_v0 = vrot.slane %v10937_v9, %v10746_v30  ;;  %v317_v8 = vrot.slane %v10937_v9, %v10749_v31 }
 0x1b3   :  { %v910_v19 = vrot.slane %v894_v16, 2  ;;  %v911_v23 = vrot.slane %v895_v20, 2  ;;  %v1134_v25 = vpop.permute.xlu0 %1133  ;;  %v10996_v26 = vpop.permute.xlu1 %1135  ;;  %v11032_v16 = vld [vmem:[#allocation14 + $0x40] sm:$0xff] }
 0x1b4   :  { %v1148_v11 = vsel %vm1145_vm3, %v10888_v22, %v1134_v25  ;;  %v1149_v27 = vsel %vm1145_vm3, %v1134_v25, %v10996_v26 }
 0x1b5   :  { %926 = vst [vmem:[#allocation4 + $0x10] sm:$0xc0] %v910_v19  ;;  %927 = vst [vmem:[#allocation4 + $0x18] sm:$0xc0] %v911_v23  ;;  %v1164_v29 = vmul.f32 %v1148_v11, %v1054_v12  ;;  %v1165_v34 = vmul.f32 %v1149_v27, %v1058_v21  ;;  %v1541_v19 = vrot.slane %v11032_v16, %v10719_v24 }
 0x1b7   :  { %v1180_v39 = vrot.slane %v1164_v29, 6  ;;  %v1181_v40 = vrot.slane %v1165_v34, 6  ;;  %v1299_v41 = vpop.permute.xlu0 %1298  ;;  %v11006_v44 = vpop.permute.xlu1 %1300 }
 0x1b8   :  { %v1313_v22 = vsel %vm1310_vm4, %v10900_v32, %v1299_v41  ;;  %v1314_v46 = vsel %vm1310_vm4, %v1299_v41, %v11006_v44 }
 0x1b9   :  { %1196 = vst [vmem:[#allocation4 + $0x50] sm:$0xc] %v1180_v39  ;;  %1197 = vst [vmem:[#allocation4 + $0x58] sm:$0xc] %v1181_v40  ;;  %v1329_v47 = vmul.f32 %v1313_v22, %v1219_v33  ;;  %v1330_v48 = vmul.f32 %v1314_v46, %v1223_v37  ;;  %v1549_v33 = vrot.slane %v11032_v16, %v10746_v30  ;;  %v1683_v40 = vld [vmem:[#allocation4 + $0x40] sm:$0xff] }
 0x1ba   :  { %v1553_v37 = vrot.slane %v11032_v16, %v10749_v31 }
 0x1bb   :  { %v1345_v50 = vrot.slane %v1329_v47, 4  ;;  %v1346_v51 = vrot.slane %v1330_v48, 4  ;;  %v1464_v57 = vpop.permute.xlu0 %1463  ;;  %v11016_v60 = vpop.permute.xlu1 %1465 }
 0x1bc   :  { %v1478_v32 = vsel %vm1475_vm5, %v10910_v38, %v1464_v57  ;;  %v1479_v62 = vsel %vm1475_vm5, %v1464_v57, %v11016_v60 }
 0x1bd   :  { %1361 = vst [vmem:[#allocation4 + $0x50] sm:$0x30] %v1345_v50  ;;  %1362 = vst [vmem:[#allocation4 + $0x58] sm:$0x30] %v1346_v51  ;;  %v1494_v54 = vmul.f32 %v1478_v32, %v1384_v49  ;;  %v1495_v63 = vmul.f32 %v1479_v62, %v1388_v56  ;;  %v462_v50 = vrot.slane %v10821_v53, %v10783_v42 }
 0x1be   :  { %v466_v51 = vrot.slane %v10821_v53, %v10791_v45 }
 0x1bf   :  { %v1510_v1 = vrot.slane %v1494_v54, 2  ;;  %v1511_v10 = vrot.slane %v1495_v63, 2  ;;  %v387_v3 = vpop.permute.xlu0 %386  ;;  %v393_v5 = vpop.permute.xlu1 %392 }
 0x1c0   :  { %v405_v38 = vsel %vm404_vm6, %v387_v3, %v10949_v35  ;;  %v407_v13 = vsel %vm404_vm6, %v10951_v36, %v393_v5  ;;  %v1545_v36 = vrot.slane %v11032_v16, %v10703_v18 }
 0x1c1   :  { %1526 = vst [vmem:[#allocation4 + $0x50] sm:$0xc0] %v1510_v1  ;;  %1527 = vst [vmem:[#allocation4 + $0x58] sm:$0xc0] %v1511_v10  ;;  %v421_v59 = vmul.f32 %v405_v38, %v305_v55  ;;  %v423_v15 = vmul.f32 %v407_v13, %v313_v0  ;;  %v627_v13 = vrot.slane %v10819_v52, %v10783_v42 }
 0x1c3   :  { %429 = vst [vmem:[#allocation4] sm:$0x3] %v421_v59  ;;  %431 = vst [vmem:[#allocation4 + $0x10] sm:$0x3] %v423_v15  ;;  %v11034_v20 = vpop.permute.xlu0 %394  ;;  %v1625_v12 = vpop.permute.xlu1 %1624  ;;  %v631_v59 = vrot.slane %v10819_v52, %v10791_v45 }
 0x1c4   :  { %v408_v35 = vsel %vm404_vm6, %v393_v5, %v11034_v20 }
 0x1c5   :  { %v424_v21 = vmul.f32 %v408_v35, %v317_v8 }
 0x1c7   :  { %432 = vst [vmem:[#allocation4 + $0x18] sm:$0x3] %v424_v21  ;;  %v1627_v23 = vpop.permute.xlu0 %1626  ;;  %v1623_v25 = vpop.permute.xlu1 %1622 }
 0x1c8   :  { %v1642_v11 = vsel %vm1640_vm7, %v1625_v12, %v1627_v23  ;;  %v1641_v27 = vsel %vm1640_vm7, %v1623_v25, %v1625_v12  ;;  %v1686_v62 = vld [vmem:[#allocation4 + $0x58] sm:$0xff]  ;;  %v1685_v0 = vld [vmem:[#allocation4 + $0x50] sm:$0xff] }
 0x1c9   :  { %v1658_v29 = vmul.f32 %v1642_v11, %v1545_v36  ;;  %v1657_v34 = vmul.f32 %v1641_v27, %v1541_v19  ;;  %v11067_v12 = vld [vmem:[#allocation10] sm:$0xff]  ;;  %v792_v27 = vrot.slane %v10835_v58, %v10783_v42 }
 0x1ca   :  { %v1675_v39 = vld [vmem:[#allocation4] sm:$0xff]  ;;  %v1677_v57 = vld [vmem:[#allocation4 + $0x10] sm:$0xff] }
 0x1cb   :  { %1666 = vst [vmem:[#allocation4 + $0x88] sm:$0x3] %v1658_v29  ;;  %1665 = vst [vmem:[#allocation4 + $0x80] sm:$0x3] %v1657_v34  ;;  %v1629_v41 = vpop.permute.xlu0 %1628  ;;  %v11048_v22 = vpop.permute.xlu1 %1630  ;;  %v9314_v46 = vpack.c.bf16 %v1683_v40, %v1675_v39  ;;  %v9318_v3 = vpack.c.bf16 %v1685_v0, %v1677_v57  ;;  %v796_v29 = vrot.slane %v10835_v58, %v10791_v45 }
 0x1cc   :  { %v1643_v47 = vsel %vm1640_vm7, %v1627_v23, %v1629_v41  ;;  %v1644_v48 = vsel %vm1640_vm7, %v1629_v41, %v11048_v22 }
 0x1cd   :  { %v1659_v49 = vmul.f32 %v1643_v47, %v1549_v33  ;;  %v1660_v56 = vmul.f32 %v1644_v48, %v1553_v37  ;;  %9315 = vmatpush1.bf16.msra.mxu0 %v9314_v46  ;;  %v11084_v33 = vld [vmem:[#allocation10 + $0x8] sm:$0xff]  ;;  %v1062_v48 = vrot.slane %v10862_v6, %v10783_v42 }
 0x1ce   :  { %v1678_v32 = vld [vmem:[#allocation4 + $0x18] sm:$0xff] }
 0x1cf   :  { %1667 = vst [vmem:[#allocation4 + $0x90] sm:$0x3] %v1659_v49  ;;  %1668 = vst [vmem:[#allocation4 + $0x98] sm:$0x3] %v1660_v56  ;;  %v538_v54 = vpop.permute.xlu0 %537  ;;  %v11057_v63 = vpop.permute.xlu1 %539  ;;  %v9316_v55 = vpack.c.bf16 %v1686_v62, %v1678_v32 }
 0x1d0   :  { %v550_v1 = vsel %vm545_vm1, %v10964_v43, %v538_v54  ;;  %v551_v10 = vsel %vm545_vm1, %v538_v54, %v11057_v63 }
 0x1d1   :  { %v566_v5 = vmul.f32 %v550_v1, %v462_v50  ;;  %v567_v38 = vmul.f32 %v551_v10, %v466_v51  ;;  %9317 = vmatprep.subr.bf16.mxu1 %v9316_v55  ;;  %v1227_v1 = vrot.slane %v10884_v17, %v10783_v42  ;;  %v1231_v10 = vrot.slane %v10884_v17, %v10791_v45 }
 0x1d2   :  { %9319 = vmatpush1.bf16.msra.mxu1 %v9318_v3  ;;  %v1692_v15 = vld [vmem:[#allocation4 + $0x88] sm:$0x3]  ;;  %v1691_v8 = vld [vmem:[#allocation4 + $0x80] sm:$0x3] }
 0x1d3   :  { %v582_v43 = vrot.slane %v566_v5, 6  ;;  %v583_v35 = vrot.slane %v567_v38, 6  ;;  %v703_v21 = vpop.permute.xlu0 %702  ;;  %8566 = vmatprep.subr.msk.mxu0 %vm1718_vm8, %v1692_v15  ;;  %v11070_v36 = vpop.permute.xlu1 %704 }
 0x1d4   :  { %v715_v19 = vsel %vm710_vm0, %v10976_v61, %v703_v21  ;;  %v716_v23 = vsel %vm710_vm0, %v703_v21, %v11070_v36  ;;  %8567 = vmatpush1.msk.msra.mxu0 %vm1718_vm8, %v1691_v8 }
 0x1d5   :  { %598 = vst [vmem:[#allocation4 + $0x20] sm:$0xc] %v582_v43  ;;  %599 = vst [vmem:[#allocation4 + $0x28] sm:$0xc] %v583_v35  ;;  %v731_v25 = vmul.f32 %v715_v19, %v627_v13  ;;  %v732_v11 = vmul.f32 %v716_v23, %v631_v59  ;;  %8568 = vmatmul.mubr.msk.f32.vlgmr.msra.gmra.mrb[0].mxu0 %vm1711_vm9, %v11067_v12  ;;  %v1392_v43 = vrot.slane %v10898_v28, %v10783_v42 }
 0x1d6   :  { %v1694_v34 = vld [vmem:[#allocation4 + $0x98] sm:$0x3]  ;;  %1813 = vmatprep.mubr.f32.mxu0 %v12876_v2  ;;  %v1693_v61 = vld [vmem:[#allocation4 + $0x90] sm:$0x3]  ;;  %v1396_v35 = vrot.slane %v10898_v28, %v10791_v45 }
 0x1d7   :  { %v747_v37 = vrot.slane %v731_v25, 4  ;;  %v748_v39 = vrot.slane %v732_v11, 4  ;;  %v868_v40 = vpop.permute.xlu0 %867  ;;  %8570 = vmatprep.subr.msk.mxu1 %vm1718_vm8, %v1694_v34  ;;  %v11087_v41 = vpop.permute.xlu1 %869  ;;  %v321_v34 = vrot.slane %v10937_v9, %v10783_v42 }
 0x1d8   :  { %v880_v46 = vsel %vm875_vm2, %v10986_v14, %v868_v40  ;;  %v881_v47 = vsel %vm875_vm2, %v868_v40, %v11087_v41  ;;  %8571 = vmatpush1.msk.msra.mxu1 %vm1718_vm8, %v1693_v61  ;;  %v1066_v14 = vrot.slane %v10862_v6, %v10791_v45  ;;  %v325_v61 = vrot.slane %v10937_v9, %v10791_v45 }
 0x1d9   :  { %763 = vst [vmem:[#allocation4 + $0x20] sm:$0x30] %v747_v37  ;;  %764 = vst [vmem:[#allocation4 + $0x28] sm:$0x30] %v748_v39  ;;  %v896_v49 = vmul.f32 %v880_v46, %v792_v27  ;;  %v897_v56 = vmul.f32 %v881_v47, %v796_v29  ;;  %8569 = vmatmul.mubr.msk.f32.gmra.mrb[2].mxu0 %vm1711_vm9, %v11084_v33  ;;  %8572 = vmatmul.mubr.msk.f32.vlgmr.msra.gmra.mrb[0].mxu1 %vm1711_vm9, %v11067_v12 }
 0x1da   :  { %1890 = vmatprep.mubr.f32.mxu1 %v12876_v2  ;;  %1961 = vmatprep.mubr.f32.mxu0 %v12876_v2 }
 0x1db   :  { %v912_v50 = vrot.slane %v896_v49, 2  ;;  %v913_v51 = vrot.slane %v897_v56, 2  ;;  %v1138_v57 = vpop.permute.xlu0 %1137  ;;  %v11104_v32 = vpop.permute.xlu1 %1139  ;;  %v1557_v56 = vrot.slane %v11032_v16, %v10783_v42 }
 0x1dc   :  { %v1150_v62 = vsel %vm1145_vm3, %v10996_v26, %v1138_v57  ;;  %v1151_v54 = vsel %vm1145_vm3, %v1138_v57, %v11104_v32 }
 0x1dd   :  { %928 = vst [vmem:[#allocation4 + $0x20] sm:$0xc0] %v912_v50  ;;  %929 = vst [vmem:[#allocation4 + $0x28] sm:$0xc0] %v913_v51  ;;  %v1166_v55 = vmul.f32 %v1150_v62, %v1062_v48  ;;  %v1167_v0 = vmul.f32 %v1151_v54, %v1066_v14  ;;  %8573 = vmatmul.mubr.msk.f32.gmra.mrb[2].mxu1 %vm1711_vm9, %v11084_v33  ;;  %v1561_v14 = vrot.slane %v11032_v16, %v10791_v45 }
 0x1de   :  { %2038 = vmatprep.mubr.f32.mxu1 %v12876_v2 }
 0x1df   :  { %v1182_v3 = vrot.slane %v1166_v55, 6  ;;  %v1183_v26 = vrot.slane %v1167_v0, 6  ;;  %v1303_v5 = vpop.permute.xlu0 %1302  ;;  %v11117_v38 = vpop.permute.xlu1 %1304  ;;  %v470_v55 = vrot.slane %v10821_v53, %v10865_v7  ;;  %v474_v0 = vrot.slane %v10821_v53, %v10858_v4 }
 0x1e0   :  { %v1315_v13 = vsel %vm1310_vm4, %v11006_v44, %v1303_v5  ;;  %v1316_v59 = vsel %vm1310_vm4, %v1303_v5, %v11117_v38 }
 0x1e1   :  { %1198 = vst [vmem:[#allocation4 + $0x60] sm:$0xc] %v1182_v3  ;;  %1199 = vst [vmem:[#allocation4 + $0x68] sm:$0xc] %v1183_v26  ;;  %v1331_v15 = vmul.f32 %v1315_v13, %v1227_v1  ;;  %v1332_v8 = vmul.f32 %v1316_v59, %v1231_v10  ;;  %v635_v59 = vrot.slane %v10819_v52, %v10865_v7 }
 0x1e3   :  { %v1347_v21 = vrot.slane %v1331_v15, 4  ;;  %v1348_v19 = vrot.slane %v1332_v8, 4  ;;  %v1468_v23 = vpop.permute.xlu0 %1467  ;;  %v11127_v25 = vpop.permute.xlu1 %1469  ;;  %v639_v15 = vrot.slane %v10819_v52, %v10858_v4  ;;  %v800_v52 = vrot.slane %v10835_v58, %v10865_v7 }
 0x1e4   :  { %v1480_v44 = vsel %vm1475_vm5, %v11016_v60, %v1468_v23  ;;  %v1481_v11 = vsel %vm1475_vm5, %v1468_v23, %v11127_v25 }
 0x1e5   :  { %1363 = vst [vmem:[#allocation4 + $0x60] sm:$0x30] %v1347_v21  ;;  %1364 = vst [vmem:[#allocation4 + $0x68] sm:$0x30] %v1348_v19  ;;  %v1496_v27 = vmul.f32 %v1480_v44, %v1392_v43  ;;  %v1497_v29 = vmul.f32 %v1481_v11, %v1396_v35 }
 0x1e7   :  { %v1512_v37 = vrot.slane %v1496_v27, 2  ;;  %v1513_v39 = vrot.slane %v1497_v29, 2  ;;  %v397_v40 = vpop.permute.xlu0 %396  ;;  %v11137_v46 = vpop.permute.xlu1 %398 }
 0x1e8   :  { %v409_v60 = vsel %vm404_vm6, %v11034_v20, %v397_v40  ;;  %v410_v47 = vsel %vm404_vm6, %v397_v40, %v11137_v46 }
 0x1e9   :  { %1528 = vst [vmem:[#allocation4 + $0x60] sm:$0xc0] %v1512_v37  ;;  %1529 = vst [vmem:[#allocation4 + $0x68] sm:$0xc0] %v1513_v39  ;;  %v425_v48 = vmul.f32 %v409_v60, %v321_v34  ;;  %v426_v49 = vmul.f32 %v410_v47, %v325_v61  ;;  %v804_v61 = vrot.slane %v10835_v58, %v10858_v4 }
 0x1ea   :  { %v1070_v58 = vrot.slane %v10862_v6, %v10865_v7 }
 0x1eb   :  { %433 = vst [vmem:[#allocation4 + $0x20] sm:$0x3] %v425_v48  ;;  %434 = vst [vmem:[#allocation4 + $0x28] sm:$0x3] %v426_v49  ;;  %v1633_v50 = vpop.permute.xlu0 %1632  ;;  %v11147_v51 = vpop.permute.xlu1 %1634 }
 0x1ec   :  { %v1645_v20 = vsel %vm1640_vm7, %v11048_v22, %v1633_v50  ;;  %v1646_v57 = vsel %vm1640_vm7, %v1633_v50, %v11147_v51  ;;  %v1074_v50 = vrot.slane %v10862_v6, %v10858_v4 }
 0x1ed   :  { %v1661_v62 = vmul.f32 %v1645_v20, %v1557_v56  ;;  %v1662_v54 = vmul.f32 %v1646_v57, %v1561_v14 }
 0x1ef   :  { %1669 = vst [vmem:[#allocation4 + $0xa0] sm:$0x3] %v1661_v62  ;;  %1670 = vst [vmem:[#allocation4 + $0xa8] sm:$0x3] %v1662_v54  ;;  %v542_v1 = vpop.permute.xlu0 %541  ;;  %v544_v10 = vpop.permute.xlu1 %543 }
 0x1f0   :  { %v552_v3 = vsel %vm545_vm1, %v11057_v63, %v542_v1  ;;  %v553_v22 = vsel %vm545_vm1, %v542_v1, %v544_v10  ;;  %v1688_v26 = vld [vmem:[#allocation4 + $0x68] sm:$0xff]  ;;  %v1687_v43 = vld [vmem:[#allocation4 + $0x60] sm:$0xff]  ;;  %v1235_v1 = vrot.slane %v10884_v17, %v10865_v7  ;;  %v1239_v10 = vrot.slane %v10884_v17, %v10858_v4 }
 0x1f1   :  { %v568_v5 = vmul.f32 %v552_v3, %v470_v55  ;;  %v569_v13 = vmul.f32 %v553_v22, %v474_v0  ;;  %v1404_v17 = vrot.slane %v10898_v28, %v10858_v4 }
 0x1f2   :  { %v1680_v8 = vld [vmem:[#allocation4 + $0x28] sm:$0xff]  ;;  %v1679_v53 = vld [vmem:[#allocation4 + $0x20] sm:$0xff] }
 0x1f3   :  { %v584_v35 = vrot.slane %v568_v5, 6  ;;  %v585_v21 = vrot.slane %v569_v13, 6  ;;  %v707_v19 = vpop.permute.xlu0 %706  ;;  %v709_v23 = vpop.permute.xlu1 %708  ;;  %v9320_v44 = vpack.c.bf16 %v1688_v26, %v1680_v8  ;;  %v9322_v63 = vpack.c.bf16 %v1687_v43, %v1679_v53 }
 0x1f4   :  { %v717_v11 = vsel %vm710_vm0, %v11070_v36, %v707_v19  ;;  %v718_v27 = vsel %vm710_vm0, %v707_v19, %v709_v23  ;;  %v1400_v8 = vrot.slane %v10898_v28, %v10865_v7 }
 0x1f5   :  { %600 = vst [vmem:[#allocation4 + $0x30] sm:$0xc] %v584_v35  ;;  %601 = vst [vmem:[#allocation4 + $0x38] sm:$0xc] %v585_v21  ;;  %v733_v29 = vmul.f32 %v717_v11, %v635_v59  ;;  %v734_v34 = vmul.f32 %v718_v27, %v639_v15  ;;  %9321 = vmatprep.subr.bf16.mxu0 %v9320_v44  ;;  %v333_v11 = vrot.slane %v10937_v9, %v10858_v4 }
 0x1f6   :  { %9323 = vmatpush1.bf16.msra.mxu0 %v9322_v63  ;;  %v1696_v37 = vld [vmem:[#allocation4 + $0xa8] sm:$0x3]  ;;  %v1695_v14 = vld [vmem:[#allocation4 + $0xa0] sm:$0x3]  ;;  %v329_v63 = vrot.slane %v10937_v9, %v10865_v7 }
 0x1f7   :  { %v749_v39 = vrot.slane %v733_v29, 4  ;;  %v750_v40 = vrot.slane %v734_v34, 4  ;;  %v872_v60 = vpop.permute.xlu0 %871  ;;  %v874_v47 = vpop.permute.xlu1 %873  ;;  %8574 = vmatprep.subr.msk.mxu0 %vm1718_vm8, %v1696_v37 }
 0x1f8   :  { %v882_v36 = vsel %vm875_vm2, %v11087_v41, %v872_v60  ;;  %v883_v48 = vsel %vm875_vm2, %v872_v60, %v874_v47 }
 0x1f9   :  { %765 = vst [vmem:[#allocation4 + $0x30] sm:$0x30] %v749_v39  ;;  %766 = vst [vmem:[#allocation4 + $0x38] sm:$0x30] %v750_v40  ;;  %v898_v49 = vmul.f32 %v882_v36, %v800_v52  ;;  %v899_v56 = vmul.f32 %v883_v48, %v804_v61  ;;  %v1565_v39 = vrot.slane %v11032_v16, %v10865_v7 }
 0x1fa   :  { %8575 = vmatpush1.msk.msra.mxu0 %vm1718_vm8, %v1695_v14  ;;  %v1569_v40 = vrot.slane %v11032_v16, %v10858_v4 }
 0x1fb   :  { %v914_v20 = vrot.slane %v898_v49, 2  ;;  %v915_v57 = vrot.slane %v899_v56, 2  ;;  %v1142_v62 = vpop.permute.xlu0 %1141  ;;  %8576 = vmatmul.mubr.msk.f32.vlgmr.msra.gmra.mrb[4].mxu0 %vm1711_vm9, %v11067_v12  ;;  %v1144_v41 = vpop.permute.xlu1 %1143 }
 0x1fc   :  { %v1152_v54 = vsel %vm1145_vm3, %v11104_v32, %v1142_v62  ;;  %v1153_v55 = vsel %vm1145_vm3, %v1142_v62, %v1144_v41  ;;  %1967 = vmatprep.mubr.f32.mxu0 %v12876_v2 }
 0x1fd   :  { %930 = vst [vmem:[#allocation4 + $0x30] sm:$0xc0] %v914_v20  ;;  %931 = vst [vmem:[#allocation4 + $0x38] sm:$0xc0] %v915_v57  ;;  %v1168_v0 = vmul.f32 %v1152_v54, %v1070_v58  ;;  %v1169_v6 = vmul.f32 %v1153_v55, %v1074_v50 }
 0x1ff   :  { %v1184_v3 = vrot.slane %v1168_v0, 6  ;;  %v1185_v22 = vrot.slane %v1169_v6, 6  ;;  %v1307_v26 = vpop.permute.xlu0 %1306  ;;  %8577 = vmatmul.mubr.msk.f32.gmra.mrb[6].mxu0 %vm1711_vm9, %v11084_v33  ;;  %v1309_v32 = vpop.permute.xlu1 %1308 }
 0x200   :  { %v1317_v5 = vsel %vm1310_vm4, %v11117_v38, %v1307_v26  ;;  %v1318_v13 = vsel %vm1310_vm4, %v1307_v26, %v1309_v32 }
 0x201   :  { %1200 = vst [vmem:[#allocation4 + $0x70] sm:$0xc] %v1184_v3  ;;  %1201 = vst [vmem:[#allocation4 + $0x78] sm:$0xc] %v1185_v22  ;;  %v1333_v59 = vmul.f32 %v1317_v5, %v1235_v1  ;;  %v1334_v15 = vmul.f32 %v1318_v13, %v1239_v10 }
 0x203   :  { %v1349_v53 = vrot.slane %v1333_v59, 4  ;;  %v1350_v43 = vrot.slane %v1334_v15, 4  ;;  %v1472_v35 = vpop.permute.xlu0 %1471  ;;  %v1474_v21 = vpop.permute.xlu1 %1473 }
 0x204   :  { %v1482_v19 = vsel %vm1475_vm5, %v11127_v25, %v1472_v35  ;;  %v1483_v38 = vsel %vm1475_vm5, %v1472_v35, %v1474_v21 }
 0x205   :  { %1365 = vst [vmem:[#allocation4 + $0x70] sm:$0x30] %v1349_v53  ;;  %1366 = vst [vmem:[#allocation4 + $0x78] sm:$0x30] %v1350_v43  ;;  %v1498_v23 = vmul.f32 %v1482_v19, %v1400_v8  ;;  %v1499_v44 = vmul.f32 %v1483_v38, %v1404_v17 }
 0x207   :  { %v1514_v28 = vrot.slane %v1498_v23, 2  ;;  %v1515_v27 = vrot.slane %v1499_v44, 2  ;;  %v401_v29 = vpop.permute.xlu0 %400  ;;  %v403_v34 = vpop.permute.xlu1 %402 }
 0x208   :  { %v411_v52 = vsel %vm404_vm6, %v11137_v46, %v401_v29  ;;  %v412_v25 = vsel %vm404_vm6, %v401_v29, %v403_v34 }
 0x209   :  { %1530 = vst [vmem:[#allocation4 + $0x70] sm:$0xc0] %v1514_v28  ;;  %1531 = vst [vmem:[#allocation4 + $0x78] sm:$0xc0] %v1515_v27  ;;  %v427_v61 = vmul.f32 %v411_v52, %v329_v63  ;;  %v428_v37 = vmul.f32 %v412_v25, %v333_v11 }
 0x20b   :  { %435 = vst [vmem:[#allocation4 + $0x30] sm:$0x3] %v427_v61  ;;  %436 = vst [vmem:[#allocation4 + $0x38] sm:$0x3] %v428_v37  ;;  %v1637_v9 = vpop.permute.xlu0 %1636  ;;  %v1639_v60 = vpop.permute.xlu1 %1638 }
 0x20c   :  { %v1647_v47 = vsel %vm1640_vm7, %v11147_v51, %v1637_v9  ;;  %v1648_v46 = vsel %vm1640_vm7, %v1637_v9, %v1639_v60 }
 0x20d   :  { %v1663_v36 = vmul.f32 %v1647_v47, %v1565_v39  ;;  %v1664_v48 = vmul.f32 %v1648_v46, %v1569_v40  ;;  %v11395_v40 = vld.sshfl [vmem:[#allocation12] sm:$0x33 pattern:$0x76325410] }
 0x20e   :  { %12957 = vst [vmem:[#allocation59_spill] sm:$0xff] %v11395_v40  ;;  %v11401_v60 = vcombine.high %v11395_v40, %v11395_v40 }
 0x20f   :  { %1671 = vst [vmem:[#allocation4 + $0xb0] sm:$0x3] %v1663_v36  ;;  %1672 = vst [vmem:[#allocation4 + $0xb8] sm:$0x3] %v1664_v48 }
 0x210   :  { %v1690_v49 = vld [vmem:[#allocation4 + $0x78] sm:$0xff]  ;;  %v1689_v56 = vld [vmem:[#allocation4 + $0x70] sm:$0xff]  ;;  %12959 = vst [vmem:[#allocation61_spill] sm:$0xff] %v11401_v60  ;;  %8584 = vmatprep.mubr.msk.f32.mxu0 %vm3762_vm10, %v11401_v60 }
 0x212   :  { %v1682_v14 = vld [vmem:[#allocation4 + $0x38] sm:$0xff]  ;;  %v1681_v58 = vld [vmem:[#allocation4 + $0x30] sm:$0xff] }
 0x213   :  { %v9324_v50 = vpack.c.bf16 %v1690_v49, %v1682_v14  ;;  %v9326_v20 = vpack.c.bf16 %v1689_v56, %v1681_v58 }
 0x215   :  { %9325 = vmatprep.subr.bf16.mxu1 %v9324_v50 }
 0x216   :  { %9327 = vmatpush1.bf16.msra.mxu1 %v9326_v20  ;;  %v1698_v16 = vld [vmem:[#allocation4 + $0xb8] sm:$0x3]  ;;  %v1697_v57 = vld [vmem:[#allocation4 + $0xb0] sm:$0x3] }
 0x217   :  { %8578 = vmatprep.subr.msk.mxu1 %vm1718_vm8, %v1698_v16 }
 0x21a   :  { %8579 = vmatpush1.msk.msra.mxu1 %vm1718_vm8, %v1697_v57 }
 0x21b   :  { %8580 = vmatmul.mubr.msk.f32.vlgmr.msra.gmra.mrb[4].mxu1 %vm1711_vm9, %v11067_v12 }
 0x21c   :  { %2044 = vmatprep.mubr.f32.mxu1 %v12876_v2  ;;  %v11227_v51 = vpop.permute.xlu0 %1703  ;;  %v11289_v53 = vpop.permute.xlu1 %1708 }
 0x21f   :  { %8581 = vmatmul.mubr.msk.f32.gmra.mrb[6].mxu1 %vm1711_vm9, %v11084_v33  ;;  %vm8264_vm9 = vcmask 31744  }
 0x220   :  { %v11368_v27 = vpop.permute.xlu0 %9888  ;;  %v11380_v25 = vpop.permute.xlu1 %9883  ;;  %8585 = vmatprep.mubr.msk.f32.mxu1 %vm3762_vm10, %v11401_v60 }
 0x224   :  { %v11378_v52 = vpop.permute.xlu0 %9898  ;;  %v11393_v39 = vpop.permute.xlu1 %9893 }
 0x228   :  { %v11391_v37 = vpop.permute.xlu0 %9903 }
 0x229   :  { %12956 = vst [vmem:[#allocation58_spill] sm:$0xff] %v11391_v37 }
 0x2a8   :  { %v1809_v62 = vpop.f32.mrb[0].mxu0 }
 0x2a9   :  { %v1810_v41 = vadd.f32 %v1809_v62, %v11227_v51  ;;  %v1811_v54 = vpop.f32.mrb[1].mxu0 }
 0x2aa   :  { %v1812_v1 = vadd.f32 %v1811_v54, %v11227_v51 }
 0x2ab   :  { %v11230_v55 = vmax.f32 %v1810_v41, 0.0 }
 0x2ac   :  { %v1815_v12 = vpop.f32.mrb[2].mxu0  ;;  %v1886_v0 = vpop.f32.mrb[0].mxu1  ;;  %v11243_v22 = vmax.f32 %v1812_v1, 0.0 }
 0x2ad   :  { %v1817_v6 = vpop.f32.mrb[3].mxu0  ;;  %2341 = vrot.lane.b32.xlu0 %v11230_v55, %s10429_s5  ;;  %2163 = vrot.lane.b32.xlu1 %v11230_v55, %s10434_s27  ;;  %v1888_v33 = vpop.f32.mrb[1].mxu1  ;;  %v1887_v26 = vadd.f32 %v1886_v0, %v11227_v51  ;;  %v1816_v43 = vadd.f32 %v1815_v12, %v11289_v53 }
 0x2ae   :  { %v1889_v13 = vadd.f32 %v1888_v33, %v11227_v51  ;;  %v1818_v19 = vadd.f32 %v1817_v6, %v11289_v53 }
 0x2af   :  { %v11254_v32 = vmax.f32 %v1887_v26, 0.0  ;;  %v11300_v35 = vmax.f32 %v1816_v43, 0.0 }
 0x2b0   :  { %v1892_v10 = vpop.f32.mrb[2].mxu1  ;;  %v11285_v8 = vmax.f32 %v1889_v13, 0.0  ;;  %v11333_v44 = vmax.f32 %v1818_v19, 0.0 }
 0x2b1   :  { %2697 = vrot.lane.b32.xlu0 %v11230_v55, %s10430_s11  ;;  %2519 = vrot.lane.b32.xlu1 %v11230_v55, %s10428_s30  ;;  %v11241_v3 = vpop.f32.mrb[3].mxu1  ;;  %12952 = vst [vmem:[#allocation54_spill] sm:$0xff] %v11254_v32  ;;  %v1893_v11 = vadd.f32 %v1892_v10, %v11289_v53 }
 0x2b2   :  { %12953 = vst [vmem:[#allocation55_spill] sm:$0xff] %v11285_v8  ;;  %v1895_v29 = vadd.f32 %v11241_v3, %v11289_v53 }
 0x2b3   :  { %v11346_v28 = vmax.f32 %v1893_v11, 0.0 }
 0x2b4   :  { %v11376_v34 = vmax.f32 %v1895_v29, 0.0 }
 0x2b5   :  { %2165 = vrot.lane.b32.xlu0 %v11243_v22, %s10434_s27  ;;  %2963 = vrot.lane.b32.xlu1 %v11230_v55, %s10431_s23  ;;  %12954 = vst [vmem:[#allocation56_spill] sm:$0xff] %v11346_v28 }
 0x2b6   :  { %12955 = vst [vmem:[#allocation57_spill] sm:$0xff] %v11376_v34 }
 0x2b9   :  { %2521 = vrot.lane.b32.xlu0 %v11243_v22, %s10428_s30  ;;  %3141 = vrot.lane.b32.xlu1 %v11230_v55, %s10432_s17 }
 0x2bd   :  { %3319 = vrot.lane.b32.xlu1 %v11230_v55, %s10433_s2  ;;  %2167 = vrot.lane.b32.xlu0 %v11254_v32, %s10434_s27 }
 0x2c1   :  { %3497 = vrot.lane.b32.xlu1 %v11230_v55, %s10435_s9  ;;  %2523 = vrot.lane.b32.xlu0 %v11254_v32, %s10428_s30 }
 0x2c5   :  { %2343 = vrot.lane.b32.xlu1 %v11243_v22, %s10429_s5  ;;  %2967 = vrot.lane.b32.xlu0 %v11254_v32, %s10431_s23 }
 0x2c9   :  { %2699 = vrot.lane.b32.xlu1 %v11243_v22, %s10430_s11  ;;  %3145 = vrot.lane.b32.xlu0 %v11254_v32, %s10432_s17 }
 0x2cd   :  { %2965 = vrot.lane.b32.xlu1 %v11243_v22, %s10431_s23  ;;  %3323 = vrot.lane.b32.xlu0 %v11254_v32, %s10433_s2 }
 0x2ce   :  { %v1963_v5 = vpop.f32.mrb[4].mxu0 }
 0x2cf   :  { %v11277_v59 = vpop.f32.mrb[5].mxu0  ;;  %v1964_v61 = vadd.f32 %v1963_v5, %v11227_v51 }
 0x2d0   :  { %v1966_v49 = vadd.f32 %v11277_v59, %v11227_v51 }
 0x2d1   :  { %3143 = vrot.lane.b32.xlu1 %v11243_v22, %s10432_s17  ;;  %3501 = vrot.lane.b32.xlu0 %v11254_v32, %s10435_s9  ;;  %v11397_v9 = vmax.f32 %v1964_v61, 0.0 }
 0x2d2   :  { %v11283_v15 = vpop.f32.mrb[6].mxu0  ;;  %v11437_v58 = vmax.f32 %v1966_v49, 0.0 }
 0x2d3   :  { %v11287_v17 = vpop.f32.mrb[7].mxu0  ;;  %12958 = vst [vmem:[#allocation60_spill] sm:$0xff] %v11397_v9 }
 0x2d4   :  { %12961 = vst [vmem:[#allocation63_spill] sm:$0xff] %v11437_v58  ;;  %v1972_v37 = vadd.f32 %v11287_v17, %v11289_v53 }
 0x2d5   :  { %3321 = vrot.lane.b32.xlu1 %v11243_v22, %s10433_s2  ;;  %2347 = vrot.lane.b32.xlu0 %v11285_v8, %s10429_s5 }
 0x2d9   :  { %3499 = vrot.lane.b32.xlu1 %v11243_v22, %s10435_s9  ;;  %2703 = vrot.lane.b32.xlu0 %v11285_v8, %s10430_s11 }
 0x2dd   :  { %2345 = vrot.lane.b32.xlu1 %v11254_v32, %s10429_s5  ;;  %2359 = vrot.lane.b32.xlu0 %v11300_v35, %s10429_s5 }
 0x2e1   :  { %2701 = vrot.lane.b32.xlu1 %v11254_v32, %s10430_s11  ;;  %2715 = vrot.lane.b32.xlu0 %v11300_v35, %s10430_s11  ;;  %v11579_v32 = vld [vmem:[#allocation14] sm:$0xff] }
 0x2e5   :  { %2169 = vrot.lane.b32.xlu1 %v11285_v8, %s10434_s27  ;;  %2981 = vrot.lane.b32.xlu0 %v11300_v35, %s10431_s23 }
 0x2e9   :  { %2525 = vrot.lane.b32.xlu1 %v11285_v8, %s10428_s30  ;;  %3159 = vrot.lane.b32.xlu0 %v11300_v35, %s10432_s17 }
 0x2ed   :  { %2969 = vrot.lane.b32.xlu1 %v11285_v8, %s10431_s23  ;;  %3337 = vrot.lane.b32.xlu0 %v11300_v35, %s10433_s2 }
 0x2ee   :  { %v11322_v21 = vpop.f32.mrb[4].mxu1 }
 0x2ef   :  { %v11325_v38 = vpop.f32.mrb[5].mxu1  ;;  %v2041_v0 = vadd.f32 %v11322_v21, %v11227_v51 }
 0x2f0   :  { %v2043_v10 = vadd.f32 %v11325_v38, %v11227_v51  ;;  %v1970_v38 = vadd.f32 %v11283_v15, %v11289_v53 }
 0x2f1   :  { %3147 = vrot.lane.b32.xlu1 %v11285_v8, %s10432_s17  ;;  %3515 = vrot.lane.b32.xlu0 %v11300_v35, %s10435_s9  ;;  %v11481_v1 = vmax.f32 %v2041_v0, 0.0 }
 0x2f2   :  { %v11331_v23 = vpop.f32.mrb[6].mxu1  ;;  %v11493_v5 = vmax.f32 %v2043_v10, 0.0  ;;  %v11529_v61 = vmax.f32 %v1970_v38, 0.0 }
 0x2f3   :  { %v11335_v63 = vpop.f32.mrb[7].mxu1  ;;  %12966 = vst [vmem:[#allocation68_spill] sm:$0xff] %v11481_v1 }
 0x2f4   :  { %12967 = vst [vmem:[#allocation69_spill] sm:$0xff] %v11493_v5  ;;  %12971 = vst [vmem:[#allocation73_spill] sm:$0xff] %v11529_v61 }
 0x2f5   :  { %3325 = vrot.lane.b32.xlu1 %v11285_v8, %s10433_s2  ;;  %2183 = vrot.lane.b32.xlu0 %v11333_v44, %s10434_s27 }
 0x2f9   :  { %3503 = vrot.lane.b32.xlu1 %v11285_v8, %s10435_s9  ;;  %2539 = vrot.lane.b32.xlu0 %v11333_v44, %s10428_s30  ;;  %v2106_v8 = vrot.slane %v11579_v32, %v10719_v24 }
 0x2fd   :  { %2185 = vrot.lane.b32.xlu0 %v11346_v28, %s10434_s27  ;;  %2181 = vrot.lane.b32.xlu1 %v11300_v35, %s10434_s27 }
 0x301   :  { %2541 = vrot.lane.b32.xlu0 %v11346_v28, %s10428_s30  ;;  %2537 = vrot.lane.b32.xlu1 %v11300_v35, %s10428_s30 }
 0x305   :  { %2985 = vrot.lane.b32.xlu0 %v11346_v28, %s10431_s23  ;;  %2361 = vrot.lane.b32.xlu1 %v11333_v44, %s10429_s5 }
 0x309   :  { %3163 = vrot.lane.b32.xlu0 %v11346_v28, %s10432_s17  ;;  %2717 = vrot.lane.b32.xlu1 %v11333_v44, %s10430_s11 }
 0x30d   :  { %3341 = vrot.lane.b32.xlu0 %v11346_v28, %s10433_s2  ;;  %2983 = vrot.lane.b32.xlu1 %v11333_v44, %s10431_s23 }
 0x311   :  { %3519 = vrot.lane.b32.xlu0 %v11346_v28, %s10435_s9  ;;  %3161 = vrot.lane.b32.xlu1 %v11333_v44, %s10432_s17 }
 0x315   :  { %2365 = vrot.lane.b32.xlu0 %v11376_v34, %s10429_s5  ;;  %3339 = vrot.lane.b32.xlu1 %v11333_v44, %s10433_s2 }
 0x319   :  { %2721 = vrot.lane.b32.xlu0 %v11376_v34, %s10430_s11  ;;  %3517 = vrot.lane.b32.xlu1 %v11333_v44, %s10435_s9 }
 0x31d   :  { %2971 = vrot.lane.b32.xlu0 %v11397_v9, %s10431_s23  ;;  %2363 = vrot.lane.b32.xlu1 %v11346_v28, %s10429_s5 }
 0x31f   :  { %v11411_v47 = vpop.permute.xlu0 %2341  ;;  %v11413_v46 = vpop.permute.xlu1 %2163 }
 0x321   :  { %3149 = vrot.lane.b32.xlu0 %v11397_v9, %s10432_s17  ;;  %2719 = vrot.lane.b32.xlu1 %v11346_v28, %s10430_s11 }
 0x323   :  { %v11419_v36 = vpop.permute.xlu0 %2697  ;;  %v11421_v48 = vpop.permute.xlu1 %2519 }
 0x325   :  { %3327 = vrot.lane.b32.xlu0 %v11397_v9, %s10433_s2  ;;  %2187 = vrot.lane.b32.xlu1 %v11376_v34, %s10434_s27 }
 0x327   :  { %v11429_v56 = vpop.permute.xlu0 %2165  ;;  %v11431_v14 = vpop.permute.xlu1 %2963 }
 0x328   :  { %12960 = vst [vmem:[#allocation62_spill] sm:$0xff] %v11429_v56 }
 0x329   :  { %3505 = vrot.lane.b32.xlu0 %v11397_v9, %s10435_s9  ;;  %2543 = vrot.lane.b32.xlu1 %v11376_v34, %s10428_s30 }
 0x32b   :  { %v11439_v50 = vpop.permute.xlu0 %2521  ;;  %v11441_v20 = vpop.permute.xlu1 %3141 }
 0x32c   :  { %12962 = vst [vmem:[#allocation64_spill] sm:$0xff] %v11439_v50 }
 0x32d   :  { %2173 = vrot.lane.b32.xlu0 %v11437_v58, %s10434_s27  ;;  %2987 = vrot.lane.b32.xlu1 %v11376_v34, %s10431_s23 }
 0x32f   :  { %v11447_v16 = vpop.permute.xlu0 %2167  ;;  %v11449_v57 = vpop.permute.xlu1 %3319 }
 0x331   :  { %2351 = vrot.lane.b32.xlu0 %v11437_v58, %s10429_s5  ;;  %3165 = vrot.lane.b32.xlu1 %v11376_v34, %s10432_s17 }
 0x333   :  { %v11455_v62 = vpop.permute.xlu0 %2523  ;;  %v11457_v41 = vpop.permute.xlu1 %3497 }
 0x334   :  { %12963 = vst [vmem:[#allocation65_spill] sm:$0xff] %v11455_v62 }
 0x335   :  { %2529 = vrot.lane.b32.xlu0 %v11437_v58, %s10428_s30  ;;  %3343 = vrot.lane.b32.xlu1 %v11376_v34, %s10433_s2 }
 0x337   :  { %v11463_v54 = vpop.permute.xlu0 %2967  ;;  %v11465_v12 = vpop.permute.xlu1 %2343 }
 0x338   :  { %12964 = vst [vmem:[#allocation66_spill] sm:$0xff] %v11465_v12 }
 0x339   :  { %2707 = vrot.lane.b32.xlu0 %v11437_v58, %s10430_s11  ;;  %3521 = vrot.lane.b32.xlu1 %v11376_v34, %s10435_s9  ;;  %v2110_v34 = vrot.slane %v11579_v32, %v10703_v18 }
 0x33b   :  { %v11473_v6 = vpop.permute.xlu0 %3145  ;;  %v11475_v33 = vpop.permute.xlu1 %2699 }
 0x33c   :  { %12965 = vst [vmem:[#allocation67_spill] sm:$0xff] %v11475_v33 }
 0x33d   :  { %3151 = vrot.lane.b32.xlu0 %v11437_v58, %s10432_s17  ;;  %2171 = vrot.lane.b32.xlu1 %v11397_v9, %s10434_s27 }
 0x33f   :  { %v11485_v3 = vpop.permute.xlu0 %3323  ;;  %v11487_v26 = vpop.permute.xlu1 %2965 }
 0x341   :  { %2975 = vrot.lane.b32.xlu0 %v11481_v1, %s10431_s23  ;;  %2349 = vrot.lane.b32.xlu1 %v11397_v9, %s10429_s5 }
 0x343   :  { %v11495_v13 = vpop.permute.xlu0 %3501  ;;  %v11497_v59 = vpop.permute.xlu1 %3143 }
 0x345   :  { %2177 = vrot.lane.b32.xlu0 %v11493_v5, %s10434_s27  ;;  %2527 = vrot.lane.b32.xlu1 %v11397_v9, %s10428_s30 }
 0x347   :  { %v11503_v51 = vpop.permute.xlu0 %2347  ;;  %v11505_v43 = vpop.permute.xlu1 %3321 }
 0x348   :  { %12968 = vst [vmem:[#allocation70_spill] sm:$0xff] %v11503_v51 }
 0x349   :  { %2355 = vrot.lane.b32.xlu0 %v11493_v5, %s10429_s5  ;;  %2705 = vrot.lane.b32.xlu1 %v11397_v9, %s10430_s11  ;;  %v11565_v9 = vmax.f32 %v1972_v37, 0.0  ;;  %v9885_v37 = vunpack.i.l.bf16 %v11380_v25 }
 0x34b   :  { %v11511_v21 = vpop.permute.xlu0 %2703  ;;  %v11513_v19 = vpop.permute.xlu1 %3499  ;;  %12975 = vst [vmem:[#allocation77_spill] sm:$0xff] %v11565_v9 }
 0x34c   :  { %12969 = vst [vmem:[#allocation71_spill] sm:$0xff] %v11511_v21 }
 0x34d   :  { %2533 = vrot.lane.b32.xlu0 %v11493_v5, %s10428_s30  ;;  %2973 = vrot.lane.b32.xlu1 %v11437_v58, %s10431_s23 }
 0x34f   :  { %v11521_v11 = vpop.permute.xlu0 %2359  ;;  %v11523_v29 = vpop.permute.xlu1 %2345 }
 0x350   :  { %12970 = vst [vmem:[#allocation72_spill] sm:$0xff] %v11523_v29 }
 0x351   :  { %2711 = vrot.lane.b32.xlu0 %v11493_v5, %s10430_s11  ;;  %2175 = vrot.lane.b32.xlu1 %v11481_v1, %s10434_s27 }
 0x353   :  { %v11531_v49 = vpop.permute.xlu0 %2715  ;;  %v11533_v0 = vpop.permute.xlu1 %2701 }
 0x354   :  { %12972 = vst [vmem:[#allocation74_spill] sm:$0xff] %v11533_v0  ;;  %v9886_v0 = vunpack.i.h.bf16 %v11380_v25  ;;  %v2047_v25 = vadd.f32 %v11331_v23, %v11289_v53  ;;  %v9890_v23 = vunpack.i.l.bf16 %v11368_v27 }
 0x355   :  { %2989 = vrot.lane.b32.xlu0 %v11529_v61, %s10431_s23  ;;  %2353 = vrot.lane.b32.xlu1 %v11481_v1, %s10429_s5 }
 0x357   :  { %v11539_v15 = vpop.permute.xlu0 %2981  ;;  %v11541_v10 = vpop.permute.xlu1 %2169 }
 0x359   :  { %3167 = vrot.lane.b32.xlu0 %v11529_v61, %s10432_s17  ;;  %2531 = vrot.lane.b32.xlu1 %v11481_v1, %s10428_s30 }
 0x35b   :  { %v11547_v38 = vpop.permute.xlu0 %3159  ;;  %v11549_v2 = vpop.permute.xlu1 %2525 }
 0x35c   :  { %12973 = vst [vmem:[#allocation75_spill] sm:$0xff] %v11549_v2 }
 0x35d   :  { %3345 = vrot.lane.b32.xlu0 %v11529_v61, %s10433_s2  ;;  %2709 = vrot.lane.b32.xlu1 %v11481_v1, %s10430_s11 }
 0x35f   :  { %v11557_v4 = vpop.permute.xlu0 %3337  ;;  %v11559_v7 = vpop.permute.xlu1 %2969 }
 0x360   :  { %12974 = vst [vmem:[#allocation76_spill] sm:$0xff] %v11559_v7 }
 0x361   :  { %3523 = vrot.lane.b32.xlu0 %v11529_v61, %s10435_s9  ;;  %3153 = vrot.lane.b32.xlu1 %v11481_v1, %s10432_s17 }
 0x363   :  { %v11567_v45 = vpop.permute.xlu0 %3515  ;;  %v11569_v42 = vpop.permute.xlu1 %3147 }
 0x364   :  { %12976 = vst [vmem:[#allocation78_spill] sm:$0xff] %v11569_v42 }
 0x365   :  { %2191 = vrot.lane.b32.xlu0 %v11565_v9, %s10434_s27  ;;  %2977 = vrot.lane.b32.xlu1 %v11493_v5, %s10431_s23 }
 0x367   :  { %v11575_v17 = vpop.permute.xlu0 %2183  ;;  %v11577_v7 = vpop.permute.xlu1 %3325 }
 0x368   :  { %12977 = vst [vmem:[#allocation79_spill] sm:$0xff] %v11577_v7  ;;  %v2197_v7 = vsel %vm404_vm6, %v9885_v37, %v11413_v46 }
 0x369   :  { %2369 = vrot.lane.b32.xlu0 %v11565_v9, %s10429_s5  ;;  %2189 = vrot.lane.b32.xlu1 %v11529_v61, %s10434_s27  ;;  %v2229_v40 = vmul.f32 %v2197_v7, %v2106_v8 }
 0x36b   :  { %v11586_v42 = vpop.permute.xlu0 %2539  ;;  %v11588_v28 = vpop.permute.xlu1 %3503 }
 0x36c   :  { %12978 = vst [vmem:[#allocation80_spill] sm:$0xff] %v11586_v42  ;;  %12979 = vst [vmem:[#allocation81_spill] sm:$0xff] %v11588_v28  ;;  %v2198_v28 = vsel %vm404_vm6, %v11413_v46, %v11429_v56  ;;  %v9891_v56 = vunpack.i.h.bf16 %v11368_v27 }
 0x36d   :  { %2547 = vrot.lane.b32.xlu0 %v11565_v9, %s10428_s30  ;;  %2367 = vrot.lane.b32.xlu1 %v11529_v61, %s10429_s5  ;;  %v2230_v2 = vmul.f32 %v2198_v28, %v2110_v34  ;;  %v9896_v28 = vunpack.i.h.bf16 %v11393_v39 }
 0x36f   :  { %v11604_v21 = vpop.permute.xlu0 %2185  ;;  %v2182_v60 = vpop.permute.xlu1 %2181 }
 0x370   :  { %v2205_v37 = vsel %vm404_vm6, %v9886_v0, %v2182_v60  ;;  %v2206_v62 = vsel %vm404_vm6, %v2182_v60, %v11575_v17  ;;  %v11618_v60 = vld [vmem:[#allocation14 + $0x8] sm:$0xff] }
 0x371   :  { %v2237_v58 = vmul.f32 %v2205_v37, %v2106_v8  ;;  %v2238_v29 = vmul.f32 %v2206_v62, %v2110_v34  ;;  %2725 = vrot.lane.b32.xlu0 %v11565_v9, %s10430_s11  ;;  %2545 = vrot.lane.b32.xlu1 %v11529_v61, %s10428_s30  ;;  %12981 = vst [vmem:[#allocation83_spill] sm:$0xff] %v11618_v60 }
 0x372   :  { %v2288_v8 = vrot.slane %v11618_v60, %v10703_v18  ;;  %v2383_v34 = vsel %vm545_vm1, %v9891_v56, %v11521_v11  ;;  %v2284_v62 = vrot.slane %v11618_v60, %v10719_v24  ;;  %v2375_v56 = vsel %vm545_vm1, %v9890_v23, %v11411_v47 }
 0x373   :  { %v9330_v46 = vpack.c.bf16 %v2237_v58, %v2229_v40  ;;  %v11615_v51 = vpop.permute.xlu0 %2541  ;;  %v2538_v7 = vpop.permute.xlu1 %2537  ;;  %v9328_v0 = vpack.c.bf16 %v2238_v29, %v2230_v2  ;;  %v2376_v2 = vsel %vm545_vm1, %v11411_v47, %v11465_v12  ;;  %v11633_v40 = vmax.f32 %v2047_v25, 0.0  ;;  %v11639_v29 = vld [vmem:[#allocation14 + $0x10] sm:$0xff] }
 0x374   :  { %12980 = vst [vmem:[#allocation82_spill] sm:$0xff] %v11615_v51  ;;  %v2049_v58 = vadd.f32 %v11335_v63, %v11289_v53  ;;  %v2562_v27 = vsel %vm710_vm0, %v2538_v7, %v11586_v42  ;;  %v2466_v25 = vrot.slane %v11639_v29, %v10703_v18  ;;  %v2554_v53 = vsel %vm710_vm0, %v11421_v48, %v11439_v50 }
 0x375   :  { %3169 = vrot.lane.b32.xlu0 %v11565_v9, %s10432_s17  ;;  %2723 = vrot.lane.b32.xlu1 %v11529_v61, %s10430_s11  ;;  %12982 = vst [vmem:[#allocation84_spill] sm:$0xff] %v11633_v40  ;;  %v9901_v47 = vunpack.i.h.bf16 %v11378_v52  ;;  %v9895_v23 = vunpack.i.l.bf16 %v11393_v39  ;;  %v2561_v51 = vsel %vm710_vm0, %v9896_v28, %v2538_v7  ;;  %v2407_v60 = vmul.f32 %v2375_v56, %v2284_v62 }
 0x376   :  { %9329 = vmatprep.subr.bf16.mxu0 %v9328_v0  ;;  %v2408_v0 = vmul.f32 %v2376_v2, %v2288_v8  ;;  %v2594_v50 = vmul.f32 %v2562_v27, %v2466_v25  ;;  %v11664_v12 = vmax.f32 %v2049_v58, 0.0  ;;  %v2586_v39 = vmul.f32 %v2554_v53, %v2466_v25 }
 0x377   :  { %9331 = vmatpush1.bf16.msra.mxu0 %v9330_v46  ;;  %v11643_v37 = vpop.permute.xlu0 %2985  ;;  %v11645_v61 = vpop.permute.xlu1 %2361  ;;  %v2415_v46 = vmul.f32 %v2383_v34, %v2284_v62  ;;  %v2732_v58 = vsel %vm875_vm2, %v11419_v36, %v11475_v33  ;;  %v2739_v56 = vsel %vm875_vm2, %v9901_v47, %v11531_v49 }
 0x378   :  { %v2384_v63 = vsel %vm545_vm1, %v11521_v11, %v11645_v61  ;;  %12983 = vst [vmem:[#allocation85_spill] sm:$0xff] %v11664_v12  ;;  %v11666_v11 = vld [vmem:[#allocation14 + $0x18] sm:$0xff]  ;;  %v9336_v53 = vpack.c.bf16 %v2594_v50, %v2586_v39 }
 0x379   :  { %v2416_v42 = vmul.f32 %v2384_v63, %v2288_v8  ;;  %2993 = vrot.lane.b32.xlu0 %v11633_v40, %s10431_s23  ;;  %2991 = vrot.lane.b32.xlu1 %v11565_v9, %s10431_s23  ;;  %v2462_v8 = vrot.slane %v11639_v29, %v10719_v24  ;;  %v2553_v9 = vsel %vm710_vm0, %v9895_v23, %v11421_v48  ;;  %v9900_v48 = vunpack.i.l.bf16 %v11378_v52 }
 0x37a   :  { %v2644_v7 = vrot.slane %v11666_v11, %v10703_v18  ;;  %v9334_v62 = vpack.c.bf16 %v2415_v46, %v2407_v60  ;;  %v2640_v60 = vrot.slane %v11666_v11, %v10719_v24 }
 0x37b   :  { %v11670_v2 = vpop.permute.xlu0 %3163  ;;  %v11672_v34 = vpop.permute.xlu1 %2717  ;;  %v9332_v63 = vpack.c.bf16 %v2416_v42, %v2408_v0  ;;  %v2593_v27 = vmul.f32 %v2561_v51, %v2462_v8  ;;  %v11688_v42 = vld [vmem:[#allocation14 + $0x20] sm:$0xff]  ;;  %v2585_v51 = vmul.f32 %v2553_v9, %v2462_v8  ;;  %v2731_v23 = vsel %vm875_vm2, %v9900_v48, %v11419_v36 }
 0x37c   :  { %v2740_v28 = vsel %vm875_vm2, %v11531_v49, %v11672_v34  ;;  %v2764_v33 = vmul.f32 %v2732_v58, %v2644_v7  ;;  %v2820_v52 = vrot.slane %v11688_v42, %v10703_v18  ;;  %v11701_v49 = vld [vmem:[#allocation14 + $0x28] sm:$0xff]  ;;  %v2771_v47 = vmul.f32 %v2739_v56, %v2640_v60 }
 0x37d   :  { %2195 = vrot.lane.b32.xlu0 %v11664_v12, %s10434_s27  ;;  %2193 = vrot.lane.b32.xlu1 %v11633_v40, %s10434_s27  ;;  %v2772_v25 = vmul.f32 %v2740_v28, %v2644_v7  ;;  %v9338_v50 = vpack.c.bf16 %v2593_v27, %v2585_v51  ;;  %v2816_v28 = vrot.slane %v11688_v42, %v10719_v24 }
 0x37e   :  { %9333 = vmatprep.subr.bf16.mxu0 %v9332_v63  ;;  %v2862_v8 = vmul.f32 %v2820_v52, %v11333_v44  ;;  %v2763_v63 = vmul.f32 %v2731_v23, %v2640_v60  ;;  %v2912_v58 = vrot.slane %v11701_v49, %v10703_v18  ;;  %v3000_v44 = vsel %vm1145_vm3, %v11487_v26, %v11463_v54 }
 0x37f   :  { %9335 = vmatpush1.bf16.msra.mxu0 %v9334_v62  ;;  %v11695_v0 = vpop.permute.xlu0 %3341  ;;  %v2984_v46 = vpop.permute.xlu1 %2983  ;;  %v9340_v9 = vpack.c.bf16 %v2772_v25, %v2764_v33  ;;  %v2854_v62 = vmul.f32 %v2820_v52, %v11243_v22  ;;  %v11720_v33 = vld [vmem:[#allocation14 + $0x30] sm:$0xff]  ;;  %v2861_v48 = vmul.f32 %v2816_v28, %v11300_v35  ;;  %v2853_v52 = vmul.f32 %v2816_v28, %v11230_v55 }
 0x380   :  { %9337 = vmatprep.subr.bf16.mxu0 %v9336_v53  ;;  %v3008_v36 = vsel %vm1145_vm3, %v2984_v46, %v11643_v37  ;;  %v9342_v27 = vpack.c.bf16 %v2771_v47, %v2763_v63  ;;  %v3007_v56 = vsel %vm1145_vm3, %v11539_v15, %v2984_v46  ;;  %v2908_v53 = vrot.slane %v11701_v49, %v10719_v24 }
 0x381   :  { %2373 = vrot.lane.b32.xlu0 %v11664_v12, %s10429_s5  ;;  %2371 = vrot.lane.b32.xlu1 %v11633_v40, %s10429_s5  ;;  %v3040_v25 = vmul.f32 %v3008_v36, %v2912_v58  ;;  %v9344_v22 = vpack.c.bf16 %v2862_v8, %v2854_v62  ;;  %v2999_v35 = vsel %vm1145_vm3, %v11431_v14, %v11487_v26 }
 0x382   :  { %v3032_v47 = vmul.f32 %v3000_v44, %v2912_v58  ;;  %v3090_v15 = vrot.slane %v11720_v33, %v10703_v18  ;;  %v3178_v46 = vsel %vm1310_vm4, %v11497_v59, %v11473_v6  ;;  %v9346_v55 = vpack.c.bf16 %v2861_v48, %v2853_v52  ;;  %v11766_v48 = vld [vmem:[#allocation14 + $0x40] sm:$0xff] }
 0x383   :  { %9339 = vmatpush1.bf16.msra.mxu0 %v9338_v50  ;;  %v11710_v39 = vpop.permute.xlu0 %3519  ;;  %v3162_v7 = vpop.permute.xlu1 %3161  ;;  %v11744_v50 = vld [vmem:[#allocation14 + $0x38] sm:$0xff]  ;;  %v3031_v63 = vmul.f32 %v2999_v35, %v2908_v53  ;;  %v3086_v36 = vrot.slane %v11720_v33, %v10719_v24  ;;  %v3177_v44 = vsel %vm1310_vm4, %v11441_v20, %v11497_v59 }
 0x384   :  { %9341 = vmatprep.subr.bf16.mxu0 %v9340_v9  ;;  %v3186_v60 = vsel %vm1310_vm4, %v3162_v7, %v11670_v2  ;;  %v3039_v9 = vmul.f32 %v3007_v56, %v2908_v53  ;;  %v3185_v14 = vsel %vm1310_vm4, %v11547_v38, %v3162_v7  ;;  %v9348_v8 = vpack.c.bf16 %v3040_v25, %v3032_v47 }
 0x385   :  { %2551 = vrot.lane.b32.xlu0 %v11664_v12, %s10428_s30  ;;  %2549 = vrot.lane.b32.xlu1 %v11633_v40, %s10428_s30  ;;  %v3218_v26 = vmul.f32 %v3186_v60, %v3090_v15  ;;  %v3268_v38 = vrot.slane %v11744_v50, %v10703_v18  ;;  %v3356_v7 = vsel %vm1475_vm5, %v11505_v43, %v11485_v3 }
 0x386   :  { %v9350_v56 = vpack.c.bf16 %v3039_v9, %v3031_v63  ;;  %v3217_v25 = vmul.f32 %v3185_v14, %v3086_v36  ;;  %v3209_v53 = vmul.f32 %v3177_v44, %v3086_v36  ;;  %v3264_v60 = vrot.slane %v11744_v50, %v10719_v24 }
 0x387   :  { %9343 = vmatpush1.bf16.msra.mxu0 %v9342_v27  ;;  %v11733_v51 = vpop.permute.xlu0 %2365  ;;  %v3340_v23 = vpop.permute.xlu1 %3339  ;;  %v3210_v27 = vmul.f32 %v3178_v46, %v3090_v15  ;;  %v3355_v15 = vsel %vm1475_vm5, %v11449_v57, %v11505_v43  ;;  %v3388_v46 = vmul.f32 %v3356_v7, %v3268_v38  ;;  %v12985_v7 = vmov 0.0  }
 0x388   :  { %9345 = vmatprep.subr.bf16.mxu0 %v9344_v22  ;;  %v3364_v28 = vsel %vm1475_vm5, %v3340_v23, %v11695_v0  ;;  %v3363_v20 = vsel %vm1475_vm5, %v11557_v4, %v3340_v23  ;;  %v3446_v4 = vrot.slane %v11766_v48, %v10703_v18  ;;  %v3534_v23 = vsel %vm1640_vm7, %v11513_v19, %v11495_v13 }
 0x389   :  { %2729 = vrot.lane.b32.xlu0 %v11664_v12, %s10430_s11  ;;  %2727 = vrot.lane.b32.xlu1 %v11633_v40, %s10430_s11  ;;  %v3396_v59 = vmul.f32 %v3364_v28, %v3268_v38  ;;  %v9352_v22 = vpack.c.bf16 %v3218_v26, %v3210_v27  ;;  %v9354_v9 = vpack.c.bf16 %v3217_v25, %v3209_v53 }
 0x38a   :  { %v3387_v26 = vmul.f32 %v3355_v15, %v3264_v60  ;;  %v3533_v28 = vsel %vm1640_vm7, %v11457_v41, %v11513_v19  ;;  %v3566_v44 = vmul.f32 %v3534_v23, %v3446_v4  ;;  %v2118_v27 = vrot.slane %v11579_v32, %v10749_v31 }
 0x38b   :  { %9347 = vmatpush1.bf16.msra.mxu0 %v9346_v55  ;;  %v11756_v58 = vpop.permute.xlu0 %2721  ;;  %v3518_v62 = vpop.permute.xlu1 %3517  ;;  %v3395_v55 = vmul.f32 %v3363_v20, %v3264_v60  ;;  %v9356_v14 = vpack.c.bf16 %v3396_v59, %v3388_v46  ;;  %v2114_v41 = vrot.slane %v11579_v32, %v10746_v30  ;;  %v2207_v19 = vsel %vm404_vm6, %v11575_v17, %v11604_v21  ;;  %v12986_v20 = vld [vmem:[#allocation83_spill] sm:$0xff]  ;;  %v12988_v46 = vld [vmem:[#allocation70_spill] sm:$0xff] }
 0x38c   :  { %9349 = vmatprep.subr.bf16.mxu0 %v9348_v8  ;;  %v3542_v52 = vsel %vm1640_vm7, %v3518_v62, %v11710_v39  ;;  %v3541_v57 = vsel %vm1640_vm7, %v11567_v45, %v3518_v62  ;;  %v3442_v8 = vrot.slane %v11766_v48, %v10719_v24  ;;  %v2200_v45 = vsel %vm404_vm6, %v11447_v16, %v11541_v10 }
 0x38d   :  { %3155 = vrot.lane.b32.xlu0 %v11493_v5, %s10432_s17  ;;  %3171 = vrot.lane.b32.xlu1 %v11633_v40, %s10432_s17  ;;  %v3574_v43 = vmul.f32 %v3542_v52, %v3446_v4  ;;  %v9358_v62 = vpack.c.bf16 %v3395_v55, %v3387_v26  ;;  %v2296_v59 = vrot.slane %v12986_v20, %v10749_v31  ;;  %v12987_v52 = vld [vmem:[#allocation62_spill] sm:$0xff]  ;;  %v12989_v4 = vld [vmem:[#allocation72_spill] sm:$0xff] }
 0x38e   :  { %v3573_v38 = vmul.f32 %v3541_v57, %v3442_v8  ;;  %v3565_v25 = vmul.f32 %v3533_v28, %v3442_v8  ;;  %v2199_v15 = vsel %vm404_vm6, %v12987_v52, %v11447_v16  ;;  %v2378_v17 = vsel %vm545_vm1, %v12989_v4, %v12988_v46 }
 0x38f   :  { %9351 = vmatpush1.bf16.msra.mxu0 %v9350_v56  ;;  %v11778_v35 = vpop.permute.xlu0 %2971  ;;  %v2364_v47 = vpop.permute.xlu1 %2363  ;;  %v9360_v56 = vpack.c.bf16 %v3574_v43, %v3566_v44  ;;  %v2232_v23 = vmul.f32 %v2200_v45, %v2118_v27  ;;  %v2239_v55 = vmul.f32 %v2207_v19, %v2114_v41  ;;  %v2231_v8 = vmul.f32 %v2199_v15, %v2114_v41  ;;  %v12991_v45 = vld [vmem:[#allocation66_spill] sm:$0xff]  ;;  %v12993_v41 = vld [vmem:[#allocation75_spill] sm:$0xff]  ;;  %v12995_v15 = vld [vmem:[#allocation77_spill] sm:$0xff] }
 0x390   :  { %12984 = vst [vmem:[#allocation86_spill] sm:$0xff] %v11778_v35  ;;  %9353 = vmatprep.subr.bf16.mxu0 %v9352_v22  ;;  %v2386_v22 = vsel %vm545_vm1, %v2364_v47, %v11733_v51  ;;  %v9362_v57 = vpack.c.bf16 %v3573_v38, %v3565_v25  ;;  %v2385_v16 = vsel %vm545_vm1, %v11645_v61, %v2364_v47  ;;  %v12992_v61 = vld [vmem:[#allocation82_spill] sm:$0xff] }
 0x391   :  { %3173 = vrot.lane.b32.xlu0 %v11664_v12, %s10432_s17  ;;  %2995 = vrot.lane.b32.xlu1 %v11664_v12, %s10431_s23  ;;  %v2418_v26 = vmul.f32 %v2386_v22, %v2296_v59  ;;  %v2292_v28 = vrot.slane %v12986_v20, %v10746_v30  ;;  %v2410_v38 = vmul.f32 %v2378_v17, %v2296_v59  ;;  %v12996_v59 = vld [vmem:[#allocation80_spill] sm:$0xff] }
 0x392   :  { %v2474_v19 = vrot.slane %v11639_v29, %v10749_v31  ;;  %v9366_v22 = vpack.c.bf16 %v2239_v55, %v2231_v8 }
 0x393   :  { %9355 = vmatpush1.bf16.msra.mxu0 %v9354_v9  ;;  %v11796_v63 = vpop.permute.xlu0 %3149  ;;  %v11798_v36 = vpop.permute.xlu1 %2719  ;;  %v2417_v52 = vmul.f32 %v2385_v16, %v2292_v28 }
 0x394   :  { %9357 = vmatprep.subr.bf16.mxu0 %v9356_v14  ;;  %v12990_v14 = vld [vmem:[#allocation63_spill] sm:$0xff] }
 0x395   :  { %3331 = vrot.lane.b32.xlu0 %v11481_v1, %s10433_s2  ;;  %9908 = vrot.lane.b32.xlu1 %v12985_v7, %s10432_s17 }
 0x397   :  { %9359 = vmatpush1.bf16.msra.mxu0 %v9358_v62  ;;  %v11821_v53 = vpop.permute.xlu0 %3327  ;;  %v11823_v60 = vpop.permute.xlu1 %2187  ;;  %v2377_v62 = vsel %vm545_vm1, %v12991_v45, %v12989_v4  ;;  %v2563_v4 = vsel %vm710_vm0, %v12996_v59, %v12992_v61  ;;  %v12998_v45 = vld [vmem:[#allocation61_spill] sm:$0xff] }
 0x398   :  { %v2208_v9 = vsel %vm404_vm6, %v11604_v21, %v11823_v60  ;;  %9361 = vmatprep.subr.bf16.mxu0 %v9360_v56  ;;  %v12994_v56 = vld [vmem:[#allocation65_spill] sm:$0xff]  ;;  %v2409_v55 = vmul.f32 %v2377_v62, %v2292_v28  ;;  %v13000_v62 = vld [vmem:[#allocation71_spill] sm:$0xff] }
 0x399   :  { %v2240_v43 = vmul.f32 %v2208_v9, %v2118_v27  ;;  %3349 = vrot.lane.b32.xlu0 %v11633_v40, %s10433_s2  ;;  %3329 = vrot.lane.b32.xlu1 %v12990_v14, %s10433_s2  ;;  %v2556_v25 = vsel %vm710_vm0, %v12994_v56, %v12993_v41  ;;  %v9368_v9 = vpack.c.bf16 %v2418_v26, %v2410_v38  ;;  %v13001_v38 = vld [vmem:[#allocation74_spill] sm:$0xff] }
 0x39a   :  { %v2588_v28 = vmul.f32 %v2556_v25, %v2474_v19  ;;  %v9370_v59 = vpack.c.bf16 %v2417_v52, %v2409_v55  ;;  %v2648_v25 = vrot.slane %v11666_v11, %v10746_v30 }
 0x39b   :  { %9363 = vmatpush1.bf16.msra.mxu0 %v9362_v57  ;;  %v11842_v21 = vpop.permute.xlu0 %3505  ;;  %v11844_v44 = vpop.permute.xlu1 %2543  ;;  %v9364_v27 = vpack.c.bf16 %v2240_v43, %v2232_v23  ;;  %v12997_v23 = vld [vmem:[#allocation59_spill] sm:$0xff]  ;;  %v2470_v57 = vrot.slane %v11639_v29, %v10746_v30  ;;  %v2742_v43 = vsel %vm875_vm2, %v11798_v36, %v11756_v58 }
 0x39c   :  { %v2564_v47 = vsel %vm710_vm0, %v12992_v61, %v11844_v44  ;;  %v12999_v61 = vld [vmem:[#allocation64_spill] sm:$0xff] }
 0x39d   :  { %9913 = vrot.lane.b32.xlu0 %v12985_v7, %s10433_s2  ;;  %3347 = vrot.lane.b32.xlu1 %v12995_v15, %s10433_s2  ;;  %v2596_v17 = vmul.f32 %v2564_v47, %v2474_v19  ;;  %v2555_v26 = vsel %vm710_vm0, %v12999_v61, %v12994_v56  ;;  %v2734_v47 = vsel %vm875_vm2, %v13001_v38, %v13000_v62 }
 0x39e   :  { %3830 = vmatmul.mubr.f32.vlgmr.msra.gmra.mrb[8].mxu0 %v12997_v23  ;;  %9365 = vmatprep.subr.bf16.mxu1 %v9364_v27  ;;  %v2652_v27 = vrot.slane %v11666_v11, %v10749_v31  ;;  %v2741_v56 = vsel %vm875_vm2, %v11672_v34, %v11798_v36  ;;  %v2587_v19 = vmul.f32 %v2555_v26, %v2470_v57 }
 0x39f   :  { %9367 = vmatpush1.bf16.msra.mxu1 %v9366_v22  ;;  %v11870_v16 = vpop.permute.xlu0 %2173  ;;  %v11872_v8 = vpop.permute.xlu1 %2987  ;;  %8586 = vmatprep.mubr.msk.f32.mxu0 %vm3762_vm10, %v12998_v45  ;;  %v2595_v22 = vmul.f32 %v2563_v4, %v2470_v57  ;;  %v9372_v18 = vpack.c.bf16 %v2596_v17, %v2588_v28  ;;  %v13002_v4 = vld [vmem:[#allocation67_spill] sm:$0xff]  ;;  %v2828_v34 = vrot.slane %v11688_v42, %v10749_v31 }
 0x3a0   :  { %9369 = vmatprep.subr.bf16.mxu1 %v9368_v9  ;;  %v2774_v61 = vmul.f32 %v2742_v43, %v2652_v27  ;;  %v2733_v55 = vsel %vm875_vm2, %v13002_v4, %v13001_v38  ;;  %v2766_v24 = vmul.f32 %v2734_v47, %v2652_v27  ;;  %v2773_v17 = vmul.f32 %v2741_v56, %v2648_v25  ;;  %v13003_v43 = vld [vmem:[#allocation57_spill] sm:$0xff]  ;;  %v13004_v38 = vld [vmem:[#allocation55_spill] sm:$0xff]  ;;  %v13006_v4 = vld [vmem:[#allocation54_spill] sm:$0xff] }
 0x3a1   :  { %3507 = vrot.lane.b32.xlu0 %v12990_v14, %s10435_s9  ;;  %3333 = vrot.lane.b32.xlu1 %v11493_v5, %s10433_s2  ;;  %v9374_v36 = vpack.c.bf16 %v2595_v22, %v2587_v19  ;;  %v2864_v26 = vmul.f32 %v2828_v34, %v13003_v43  ;;  %v2765_v28 = vmul.f32 %v2733_v55, %v2648_v25 }
 0x3a2   :  { %v9376_v57 = vpack.c.bf16 %v2774_v61, %v2766_v24  ;;  %v2856_v47 = vmul.f32 %v2828_v34, %v13004_v38  ;;  %v13005_v24 = vld [vmem:[#allocation56_spill] sm:$0xff] }
 0x3a3   :  { %9371 = vmatpush1.bf16.msra.mxu1 %v9370_v59  ;;  %v11893_v9 = vpop.permute.xlu0 %2351  ;;  %v11895_v52 = vpop.permute.xlu1 %3165  ;;  %v9378_v22 = vpack.c.bf16 %v2773_v17, %v2765_v28 }
 0x3a4   :  { %9373 = vmatprep.subr.bf16.mxu1 %v9372_v18  ;;  %v2824_v18 = vrot.slane %v11688_v42, %v10746_v30  ;;  %v9380_v61 = vpack.c.bf16 %v2864_v26, %v2856_v47 }
 0x3a5   :  { %3525 = vrot.lane.b32.xlu0 %v12995_v15, %s10435_s9  ;;  %3351 = vrot.lane.b32.xlu1 %v11664_v12, %s10433_s2 }
 0x3a6   :  { %v2863_v56 = vmul.f32 %v2824_v18, %v13005_v24  ;;  %v2855_v55 = vmul.f32 %v2824_v18, %v13006_v4  ;;  %v2920_v4 = vrot.slane %v11701_v49, %v10749_v31 }
 0x3a7   :  { %9375 = vmatpush1.bf16.msra.mxu1 %v9374_v36  ;;  %v11907_v59 = vpop.permute.xlu0 %2529  ;;  %v11909_v27 = vpop.permute.xlu1 %3343 }
 0x3a8   :  { %9377 = vmatprep.subr.bf16.mxu1 %v9376_v57  ;;  %v9382_v34 = vpack.c.bf16 %v2863_v56, %v2855_v55  ;;  %v8582_v57 = vld [vmem:[#allocation8] ss:$0 sm:$0xff]  ;;  %v3009_v55 = vsel %vm1145_vm3, %v11643_v37, %v11872_v8 }
 0x3a9   :  { %3511 = vrot.lane.b32.xlu0 %v11493_v5, %s10435_s9  ;;  %3509 = vrot.lane.b32.xlu1 %v11481_v1, %s10435_s9 }
 0x3ab   :  { %9379 = vmatpush1.bf16.msra.mxu1 %v9378_v22  ;;  %v11919_v19 = vpop.permute.xlu0 %2707  ;;  %v11921_v25 = vpop.permute.xlu1 %3521 }
 0x3ac   :  { %9381 = vmatprep.subr.bf16.mxu1 %v9380_v61 }
 0x3ad   :  { %3529 = vrot.lane.b32.xlu0 %v11664_v12, %s10435_s9  ;;  %3527 = vrot.lane.b32.xlu1 %v11633_v40, %s10435_s9 }
 0x3af   :  { %9383 = vmatpush1.bf16.msra.mxu1 %v9382_v34  ;;  %v11928_v36 = vpop.permute.xlu0 %3151  ;;  %v11930_v17 = vpop.permute.xlu1 %2171  ;;  %v2916_v34 = vrot.slane %v11701_v49, %v10746_v30 }
 0x3b0   :  { %13007 = vst [vmem:[#allocation83_spill] sm:$0xff] %v11928_v36 }
 0x3b1   :  { %9918 = vrot.lane.b32.xlu1 %v12985_v7, %s10435_s9  ;;  %v3041_v36 = vmul.f32 %v3009_v55, %v2916_v34 }
 0x3b3   :  { %v11934_v43 = vpop.permute.xlu0 %2975  ;;  %v11936_v26 = vpop.permute.xlu1 %2349 }
 0x3b5   :  { %3749 = vperm.xlu1 %9881, %v8582_v57   ;;  %v13012_v57 = vld [vmem:[#allocation76_spill] sm:$0xff] }
 0x3b6   :  { %v3002_v7 = vsel %vm1145_vm3, %v13012_v57, %v11778_v35  ;;  %v3001_v1 = vsel %vm1145_vm3, %v11463_v54, %v13012_v57  ;;  %v3094_v54 = vrot.slane %v11720_v33, %v10746_v30  ;;  %v13015_v57 = vld [vmem:[#allocation78_spill] sm:$0xff] }
 0x3b7   :  { %v11938_v28 = vpop.permute.xlu0 %2177  ;;  %v11940_v18 = vpop.permute.xlu1 %2527  ;;  %v3034_v12 = vmul.f32 %v3002_v7, %v2920_v4  ;;  %v3033_v35 = vmul.f32 %v3001_v1, %v2916_v34  ;;  %v3180_v55 = vsel %vm1310_vm4, %v13015_v57, %v11796_v63  ;;  %v3179_v7 = vsel %vm1310_vm4, %v11473_v6, %v13015_v57 }
 0x3b8   :  { %13008 = vst [vmem:[#allocation62_spill] sm:$0xff] %v11938_v28  ;;  %v3276_v34 = vrot.slane %v11744_v50, %v10749_v31  ;;  %v3211_v57 = vmul.f32 %v3179_v7, %v3094_v54  ;;  %v3454_v7 = vrot.slane %v11766_v48, %v10749_v31 }
 0x3b9   :  { %v9386_v28 = vpack.c.bf16 %v3041_v36, %v3033_v35  ;;  %v13016_v35 = vld [vmem:[#allocation79_spill] sm:$0xff] }
 0x3ba   :  { %v3358_v36 = vsel %vm1475_vm5, %v13016_v35, %v11821_v53 }
 0x3bb   :  { %v11942_v38 = vpop.permute.xlu0 %2355  ;;  %v11944_v47 = vpop.permute.xlu1 %2705 }
 0x3bc   :  { %13009 = vst [vmem:[#allocation70_spill] sm:$0xff] %v11942_v38 }
 0x3bf   :  { %v11946_v22 = vpop.permute.xlu0 %2533  ;;  %v11948_v24 = vpop.permute.xlu1 %2973 }
 0x3c0   :  { %13010 = vst [vmem:[#allocation72_spill] sm:$0xff] %v11946_v22  ;;  %v3187_v22 = vsel %vm1310_vm4, %v11670_v2, %v11895_v52 }
 0x3c1   :  { %v3219_v2 = vmul.f32 %v3187_v22, %v3094_v54 }
 0x3c3   :  { %v11950_v56 = vpop.permute.xlu0 %2711  ;;  %v11952_v61 = vpop.permute.xlu1 %2175 }
 0x3c4   :  { %13011 = vst [vmem:[#allocation63_spill] sm:$0xff] %v11950_v56  ;;  %v3098_v56 = vrot.slane %v11720_v33, %v10749_v31  ;;  %v13018_v31 = vld [vmem:[#allocation50_spill] sm:$0xff] }
 0x3c7   :  { %v11967_v40 = vpop.permute.xlu0 %2989  ;;  %v11969_v5 = vpop.permute.xlu1 %2353 }
 0x3c8   :  { %13013 = vst [vmem:[#allocation66_spill] sm:$0xff] %v11967_v40  ;;  %13014 = vst [vmem:[#allocation82_spill] sm:$0xff] %v11969_v5  ;;  %v3010_v37 = vsel %vm1145_vm3, %v11872_v8, %v11967_v40 }
 0x3c9   :  { %v3042_v38 = vmul.f32 %v3010_v37, %v2920_v4  ;;  %v3212_v4 = vmul.f32 %v3180_v55, %v3098_v56  ;;  %v3365_v37 = vsel %vm1475_vm5, %v11695_v0, %v11909_v27  ;;  %v3390_v55 = vmul.f32 %v3358_v36, %v3276_v34 }
 0x3cb   :  { %v11987_v8 = vpop.permute.xlu0 %3167  ;;  %v11989_v5 = vpop.permute.xlu1 %2531  ;;  %v9384_v40 = vpack.c.bf16 %v3042_v38, %v3034_v12  ;;  %v3272_v12 = vrot.slane %v11744_v50, %v10746_v30 }
 0x3cc   :  { %v3188_v1 = vsel %vm1310_vm4, %v11895_v52, %v11987_v8  ;;  %v3357_v52 = vsel %vm1475_vm5, %v11485_v3, %v13016_v35 }
 0x3cd   :  { %v3220_v6 = vmul.f32 %v3188_v1, %v3098_v56  ;;  %9385 = vmatprep.subr.bf16.mxu1 %v9384_v40  ;;  %v9390_v56 = vpack.c.bf16 %v3219_v2, %v3211_v57  ;;  %v3397_v40 = vmul.f32 %v3365_v37, %v3272_v12  ;;  %v3389_v1 = vmul.f32 %v3357_v52, %v3272_v12  ;;  %v13017_v2 = vld [vmem:[#allocation81_spill] sm:$0xff] }
 0x3ce   :  { %9387 = vmatpush1.bf16.msra.mxu1 %v9386_v28  ;;  %v3543_v28 = vsel %vm1640_vm7, %v11710_v39, %v11921_v25  ;;  %v3536_v37 = vsel %vm1640_vm7, %v13017_v2, %v11842_v21 }
 0x3cf   :  { %v12007_v38 = vpop.permute.xlu0 %3345  ;;  %v12009_v22 = vpop.permute.xlu1 %2709  ;;  %v9388_v0 = vpack.c.bf16 %v3220_v6, %v3212_v4  ;;  %v3450_v4 = vrot.slane %v11766_v48, %v10746_v30  ;;  %v3568_v36 = vmul.f32 %v3536_v37, %v3454_v7 }
 0x3d0   :  { %v3366_v54 = vsel %vm1475_vm5, %v11909_v27, %v12007_v38  ;;  %v3535_v27 = vsel %vm1640_vm7, %v11495_v13, %v13017_v2 }
 0x3d1   :  { %v3398_v3 = vmul.f32 %v3366_v54, %v3276_v34  ;;  %9389 = vmatprep.subr.bf16.mxu1 %v9388_v0  ;;  %v9394_v34 = vpack.c.bf16 %v3397_v40, %v3389_v1  ;;  %v3575_v35 = vmul.f32 %v3543_v28, %v3450_v4  ;;  %v3567_v0 = vmul.f32 %v3535_v27, %v3450_v4  ;;  %v13019_v40 = vld [vmem:[#allocation51_spill] sm:$0xff] }
 0x3d2   :  { %9391 = vmatpush1.bf16.msra.mxu1 %v9390_v56  ;;  %v2126_v28 = vrot.slane %v11579_v32, %v13019_v40  ;;  %v2300_v4 = vrot.slane %v12986_v20, %v13018_v31  ;;  %v2304_v37 = vrot.slane %v12986_v20, %v13019_v40 }
 0x3d3   :  { %v12027_v6 = vpop.permute.xlu0 %3523  ;;  %v12029_v57 = vpop.permute.xlu1 %3153  ;;  %v9392_v39 = vpack.c.bf16 %v3398_v3, %v3390_v55  ;;  %v9398_v2 = vpack.c.bf16 %v3575_v35, %v3567_v0  ;;  %v2122_v55 = vrot.slane %v11579_v32, %v13018_v31 }
 0x3d4   :  { %v3544_v12 = vsel %vm1640_vm7, %v11921_v25, %v12027_v6  ;;  %v2201_v25 = vsel %vm404_vm6, %v11541_v10, %v11930_v17 }
 0x3d5   :  { %v3576_v52 = vmul.f32 %v3544_v12, %v3454_v7  ;;  %9393 = vmatprep.subr.bf16.mxu1 %v9392_v39  ;;  %v2202_v7 = vsel %vm404_vm6, %v11930_v17, %v11870_v16  ;;  %v2233_v39 = vmul.f32 %v2201_v25, %v2122_v55  ;;  %v2379_v12 = vsel %vm545_vm1, %v12988_v46, %v11936_v26 }
 0x3d6   :  { %9395 = vmatpush1.bf16.msra.mxu1 %v9394_v34  ;;  %v2234_v34 = vmul.f32 %v2202_v7, %v2126_v28  ;;  %v2557_v7 = vsel %vm710_vm0, %v12993_v41, %v11940_v18 }
 0x3d7   :  { %v12034_v56 = vpop.permute.xlu0 %2191  ;;  %v12036_v54 = vpop.permute.xlu1 %2977  ;;  %v9396_v13 = vpack.c.bf16 %v3576_v52, %v3568_v36  ;;  %v2380_v36 = vsel %vm545_vm1, %v11936_v26, %v11893_v9 }
 0x3d9   :  { %9397 = vmatprep.subr.bf16.mxu1 %v9396_v13 }
 0x3da   :  { %9399 = vmatpush1.bf16.msra.mxu1 %v9398_v2  ;;  %v2478_v2 = vrot.slane %v11639_v29, %v13018_v31 }
 0x3db   :  { %v12048_v3 = vpop.permute.xlu0 %2369  ;;  %v2190_v1 = vpop.permute.xlu1 %2189 }
 0x3dc   :  { %v2209_v27 = vsel %vm404_vm6, %v11823_v60, %v2190_v1  ;;  %v2210_v10 = vsel %vm404_vm6, %v2190_v1, %v12034_v56  ;;  %v2558_v1 = vsel %vm710_vm0, %v11940_v18, %v11907_v59 }
 0x3dd   :  { %v2241_v35 = vmul.f32 %v2209_v27, %v2122_v55  ;;  %v2242_v17 = vmul.f32 %v2210_v10, %v2126_v28  ;;  %3901 = vmatmul.mubr.f32.vlgmr.msra.gmra.mrb[8].mxu1 %v12997_v23  ;;  %v2482_v23 = vrot.slane %v11639_v29, %v13019_v40  ;;  %v2411_v55 = vmul.f32 %v2379_v12, %v2300_v4 }
 0x3de   :  { %8587 = vmatprep.mubr.msk.f32.mxu1 %vm3762_vm10, %v12998_v45  ;;  %v2412_v28 = vmul.f32 %v2380_v36, %v2304_v37  ;;  %v2735_v36 = vsel %vm875_vm2, %v13000_v62, %v11944_v47  ;;  %vm8357_vm10 = vcmask 523264  }
 0x3df   :  { %v9402_v60 = vpack.c.bf16 %v2241_v35, %v2233_v39  ;;  %v12067_v52 = vpop.permute.xlu0 %2547  ;;  %v2368_v0 = vpop.permute.xlu1 %2367  ;;  %v9400_v13 = vpack.c.bf16 %v2242_v17, %v2234_v34  ;;  %v2656_v34 = vrot.slane %v11666_v11, %v13018_v31  ;;  %v2589_v35 = vmul.f32 %v2557_v7, %v2478_v2 }
 0x3e0   :  { %v2387_v46 = vsel %vm545_vm1, %v11733_v51, %v2368_v0  ;;  %v2388_v26 = vsel %vm545_vm1, %v2368_v0, %v12048_v3  ;;  %v2590_v18 = vmul.f32 %v2558_v1, %v2482_v23  ;;  %v2832_v0 = vrot.slane %v11688_v42, %v13018_v31  ;;  %v13020_v1 = vld [vmem:[#allocation60_spill] sm:$0xff] }
 0x3e1   :  { %v2419_v45 = vmul.f32 %v2387_v46, %v2300_v4  ;;  %v2420_v25 = vmul.f32 %v2388_v26, %v2304_v37  ;;  %9401 = vmatprep.subr.bf16.mxu0 %v9400_v13  ;;  %v2660_v4 = vrot.slane %v11666_v11, %v13019_v40 }
 0x3e2   :  { %9403 = vmatpush1.bf16.msra.mxu0 %v9402_v60  ;;  %v2736_v60 = vsel %vm875_vm2, %v11944_v47, %v11919_v19 }
 0x3e3   :  { %v9406_v27 = vpack.c.bf16 %v2419_v45, %v2411_v55  ;;  %v12083_v10 = vpop.permute.xlu0 %2725  ;;  %v2546_v51 = vpop.permute.xlu1 %2545  ;;  %v9404_v39 = vpack.c.bf16 %v2420_v25, %v2412_v28  ;;  %v2767_v55 = vmul.f32 %v2735_v36, %v2656_v34  ;;  %v2768_v28 = vmul.f32 %v2736_v60, %v2660_v4  ;;  %v13024_v60 = vld [vmem:[#allocation62_spill] sm:$0xff] }
 0x3e4   :  { %v2565_v37 = vsel %vm710_vm0, %v11844_v44, %v2546_v51  ;;  %v2566_v41 = vsel %vm710_vm0, %v2546_v51, %v12067_v52  ;;  %v2836_v44 = vrot.slane %v11688_v42, %v13019_v40  ;;  %v13021_v51 = vld [vmem:[#allocation73_spill] sm:$0xff] }
 0x3e5   :  { %v2597_v17 = vmul.f32 %v2565_v37, %v2478_v2  ;;  %v2598_v12 = vmul.f32 %v2566_v41, %v2482_v23  ;;  %9405 = vmatprep.subr.bf16.mxu0 %v9404_v39  ;;  %v2865_v39 = vmul.f32 %v2832_v0, %v13021_v51  ;;  %v13022_v37 = vld [vmem:[#allocation53_spill] sm:$0xff] }
 0x3e6   :  { %9407 = vmatpush1.bf16.msra.mxu0 %v9406_v27  ;;  %v2866_v47 = vmul.f32 %v2836_v44, %v12995_v15  ;;  %v2858_v7 = vmul.f32 %v2836_v44, %v12990_v14  ;;  %v2857_v27 = vmul.f32 %v2832_v0, %v13020_v1  ;;  %v2130_v41 = vrot.slane %v11579_v32, %v13022_v37  ;;  %v13023_v14 = vld [vmem:[#allocation52_spill] sm:$0xff]  ;;  %v13025_v0 = vld [vmem:[#allocation66_spill] sm:$0xff] }
 0x3e7   :  { %v9410_v13 = vpack.c.bf16 %v2597_v17, %v2589_v35  ;;  %v12103_v46 = vpop.permute.xlu0 %3169  ;;  %v2724_v2 = vpop.permute.xlu1 %2723  ;;  %v9408_v23 = vpack.c.bf16 %v2598_v12, %v2590_v18  ;;  %v2134_v17 = vrot.slane %v11579_v32, %v13023_v14  ;;  %v2203_v12 = vsel %vm404_vm6, %v11870_v16, %v11952_v61 }
 0x3e8   :  { %v2743_v26 = vsel %vm875_vm2, %v11756_v58, %v2724_v2  ;;  %v2744_v62 = vsel %vm875_vm2, %v2724_v2, %v12083_v10  ;;  %v2928_v58 = vrot.slane %v11701_v49, %v13019_v40  ;;  %v2204_v44 = vsel %vm404_vm6, %v11952_v61, %v13024_v60 }
 0x3e9   :  { %v2775_v45 = vmul.f32 %v2743_v26, %v2656_v34  ;;  %v2776_v25 = vmul.f32 %v2744_v62, %v2660_v4  ;;  %9409 = vmatprep.subr.bf16.mxu0 %v9408_v23  ;;  %v3004_v4 = vsel %vm1145_vm3, %v11948_v24, %v11934_v43  ;;  %v9416_v23 = vpack.c.bf16 %v2866_v47, %v2858_v7  ;;  %v13026_v62 = vld [vmem:[#allocation86_spill] sm:$0xff] }
 0x3ea   :  { %9411 = vmatpush1.bf16.msra.mxu0 %v9410_v13  ;;  %v2924_v32 = vrot.slane %v11701_v49, %v13018_v31  ;;  %v2308_v26 = vrot.slane %v12986_v20, %v13022_v37  ;;  %v9418_v16 = vpack.c.bf16 %v2865_v39, %v2857_v27  ;;  %v2235_v61 = vmul.f32 %v2203_v12, %v2130_v41  ;;  %v13027_v27 = vld [vmem:[#allocation82_spill] sm:$0xff] }
 0x3eb   :  { %v9414_v35 = vpack.c.bf16 %v2775_v45, %v2767_v55  ;;  %v12117_v15 = vpop.permute.xlu0 %2993  ;;  %v2992_v18 = vpop.permute.xlu1 %2991  ;;  %v9412_v34 = vpack.c.bf16 %v2776_v25, %v2768_v28  ;;  %v3003_v55 = vsel %vm1145_vm3, %v13026_v62, %v11948_v24  ;;  %v3036_v28 = vmul.f32 %v3004_v4, %v2928_v58  ;;  %v13028_v4 = vld [vmem:[#allocation70_spill] sm:$0xff] }
 0x3ec   :  { %v3012_v36 = vsel %vm1145_vm3, %v2992_v18, %v12117_v15  ;;  %v3011_v13 = vsel %vm1145_vm3, %v13025_v0, %v2992_v18  ;;  %v2312_v45 = vrot.slane %v12986_v20, %v13023_v14  ;;  %v2236_v47 = vmul.f32 %v2204_v44, %v2134_v17 }
 0x3ed   :  { %v3044_v2 = vmul.f32 %v3012_v36, %v2928_v58  ;;  %9413 = vmatprep.subr.bf16.mxu0 %v9412_v34  ;;  %v3043_v7 = vmul.f32 %v3011_v13, %v2924_v32  ;;  %v2381_v39 = vsel %vm545_vm1, %v11893_v9, %v13027_v27  ;;  %v3035_v34 = vmul.f32 %v3003_v55, %v2924_v32 }
 0x3ee   :  { %9415 = vmatpush1.bf16.msra.mxu0 %v9414_v35  ;;  %v2382_v20 = vsel %vm545_vm1, %v13027_v27, %v13028_v4  ;;  %v2486_v12 = vrot.slane %v11639_v29, %v13022_v37  ;;  %v2664_v55 = vrot.slane %v11666_v11, %v13022_v37  ;;  %v13030_v27 = vld [vmem:[#allocation63_spill] sm:$0xff]  ;;  %v2840_v4 = vrot.slane %v11688_v42, %v13022_v37 }
 0x3ef   :  { %v2196_v25 = vpop.permute.xlu0 %2195  ;;  %v2194_v1 = vpop.permute.xlu1 %2193  ;;  %9417 = vmatprep.subr.bf16.mxu0 %v9416_v23  ;;  %v9420_v18 = vpack.c.bf16 %v3044_v2, %v3036_v28  ;;  %v2414_v2 = vmul.f32 %v2382_v20, %v2312_v45  ;;  %v2559_v23 = vsel %vm710_vm0, %v11907_v59, %v11989_v5 }
 0x3f0   :  { %v2211_v51 = vsel %vm404_vm6, %v12034_v56, %v2194_v1  ;;  %v2212_v35 = vsel %vm404_vm6, %v2194_v1, %v2196_v25  ;;  %v2490_v56 = vrot.slane %v11639_v29, %v13023_v14  ;;  %v13029_v29 = vld [vmem:[#allocation72_spill] sm:$0xff]  ;;  %v2844_v1 = vrot.slane %v11688_v42, %v13023_v14 }
 0x3f1   :  { %v2243_v24 = vmul.f32 %v2211_v51, %v2130_v41  ;;  %v2244_v58 = vmul.f32 %v2212_v35, %v2134_v17  ;;  %v2413_v41 = vmul.f32 %v2381_v39, %v2308_v26  ;;  %v9422_v17 = vpack.c.bf16 %v3043_v7, %v3035_v34 }
 0x3f2   :  { %9419 = vmatpush1.bf16.msra.mxu0 %v9418_v16  ;;  %v2560_v62 = vsel %vm710_vm0, %v11989_v5, %v13029_v29  ;;  %v2591_v59 = vmul.f32 %v2559_v23, %v2486_v12  ;;  %v2737_v7 = vsel %vm875_vm2, %v11919_v19, %v12009_v22  ;;  %v2738_v39 = vsel %vm875_vm2, %v12009_v22, %v13030_v27 }
 0x3f3   :  { %v9438_v36 = vpack.c.bf16 %v2243_v24, %v2235_v61  ;;  %v2374_v60 = vpop.permute.xlu0 %2373  ;;  %v2372_v44 = vpop.permute.xlu1 %2371  ;;  %9421 = vmatprep.subr.bf16.mxu0 %v9420_v18  ;;  %v9436_v9 = vpack.c.bf16 %v2244_v58, %v2236_v47  ;;  %v2592_v47 = vmul.f32 %v2560_v62, %v2490_v56  ;;  %v2769_v20 = vmul.f32 %v2737_v7, %v2664_v55 }
 0x3f4   :  { %v2389_v0 = vsel %vm545_vm1, %v12048_v3, %v2372_v44  ;;  %v2390_v13 = vsel %vm545_vm1, %v2372_v44, %v2374_v60  ;;  %v3106_v19 = vrot.slane %v11720_v33, %v13019_v40  ;;  %v3102_v42 = vrot.slane %v11720_v33, %v13018_v31 }
 0x3f5   :  { %v2421_v32 = vmul.f32 %v2389_v0, %v2308_v26  ;;  %v2422_v16 = vmul.f32 %v2390_v13, %v2312_v45  ;;  %9437 = vmatprep.subr.bf16.mxu1 %v9436_v9  ;;  %v2668_v26 = vrot.slane %v11666_v11, %v13023_v14  ;;  %v13032_v9 = vld [vmem:[#allocation58_spill] sm:$0xff]  ;;  %vm5837_vm6 = vcmask 293888  }
 0x3f6   :  { %9423 = vmatpush1.bf16.msra.mxu0 %v9422_v17  ;;  %9439 = vmatpush1.bf16.msra.mxu1 %v9438_v36  ;;  %v3189_v36 = vsel %vm1310_vm4, %v11987_v8, %v12103_v46  ;;  %v13033_v17 = vld [vmem:[#allocation83_spill] sm:$0xff] }
 0x3f7   :  { %v9442_v3 = vpack.c.bf16 %v2421_v32, %v2413_v41  ;;  %v2552_v28 = vpop.permute.xlu0 %2551  ;;  %v2550_v61 = vpop.permute.xlu1 %2549  ;;  %v9440_v25 = vpack.c.bf16 %v2422_v16, %v2414_v2  ;;  %v2770_v22 = vmul.f32 %v2738_v39, %v2668_v26  ;;  %v9906_v41 = vunpack.i.h.bf16 %v13032_v9 }
 0x3f8   :  { %v2567_v45 = vsel %vm710_vm0, %v12067_v52, %v2550_v61  ;;  %v2568_v5 = vsel %vm710_vm0, %v2550_v61, %v2552_v28  ;;  %v13031_v52 = vld [vmem:[#allocation85_spill] sm:$0xff]  ;;  %v3182_v0 = vsel %vm1310_vm4, %v13033_v17, %v12029_v57  ;;  %v9905_v2 = vunpack.i.l.bf16 %v13032_v9  ;;  %v13035_v28 = vld [vmem:[#allocation84_spill] sm:$0xff]  ;;  %vm12395_vm0 = vmpackc.low %vm4782_vm12, %vm4782_vm12 }
 0x3f9   :  { %v2599_v51 = vmul.f32 %v2567_v45, %v2486_v12  ;;  %v2600_v35 = vmul.f32 %v2568_v5, %v2490_v56  ;;  %9441 = vmatprep.subr.bf16.mxu1 %v9440_v25  ;;  %v2868_v34 = vmul.f32 %v2844_v1, %v13031_v52  ;;  %v3181_v8 = vsel %vm1310_vm4, %v11796_v63, %v13033_v17  ;;  %v13036_v5 = vld [vmem:[#allocation68_spill] sm:$0xff] }
 0x3fa   :  { %9443 = vmatpush1.bf16.msra.mxu1 %v9442_v3  ;;  %v3221_v62 = vmul.f32 %v3189_v36, %v3102_v42  ;;  %v2867_v61 = vmul.f32 %v2840_v4, %v13035_v28  ;;  %v3214_v25 = vmul.f32 %v3182_v0, %v3106_v19  ;;  %v3213_v63 = vmul.f32 %v3181_v8, %v3102_v42 }
 0x3fb   :  { %v9446_v24 = vpack.c.bf16 %v2599_v51, %v2591_v59  ;;  %v2730_v11 = vpop.permute.xlu0 %2729  ;;  %v2728_v58 = vpop.permute.xlu1 %2727  ;;  %v9444_v18 = vpack.c.bf16 %v2600_v35, %v2592_v47  ;;  %v2936_v59 = vrot.slane %v11701_v49, %v13023_v14  ;;  %v3005_v45 = vsel %vm1145_vm3, %v11934_v43, %v12036_v54 }
 0x3fc   :  { %v2745_v12 = vsel %vm875_vm2, %v12083_v10, %v2728_v58  ;;  %v2746_v56 = vsel %vm875_vm2, %v2728_v58, %v2730_v11  ;;  %v13034_v10 = vld [vmem:[#allocation69_spill] sm:$0xff]  ;;  %v2859_v47 = vmul.f32 %v2840_v4, %v13036_v5  ;;  %v9426_v27 = vpack.c.bf16 %v3221_v62, %v3213_v63 }
 0x3fd   :  { %v2777_v60 = vmul.f32 %v2745_v12, %v2664_v55  ;;  %v2778_v44 = vmul.f32 %v2746_v56, %v2668_v26  ;;  %9445 = vmatprep.subr.bf16.mxu1 %v9444_v18  ;;  %v2860_v13 = vmul.f32 %v2844_v1, %v13034_v10  ;;  %v2932_v1 = vrot.slane %v11701_v49, %v13022_v37 }
 0x3fe   :  { %9447 = vmatpush1.bf16.msra.mxu1 %v9446_v24  ;;  %v9454_v24 = vpack.c.bf16 %v2867_v61, %v2859_v47  ;;  %v3284_v10 = vrot.slane %v11744_v50, %v13019_v40  ;;  %v3288_v63 = vrot.slane %v11744_v50, %v13022_v37  ;;  %vm5035_vm2 = vcmask 80896  }
 0x3ff   :  { %v9450_v23 = vpack.c.bf16 %v2777_v60, %v2769_v20  ;;  %v3156_v32 = vpop.permute.xlu0 %3155  ;;  %v3172_v16 = vpop.permute.xlu1 %3171  ;;  %v9448_v29 = vpack.c.bf16 %v2778_v44, %v2770_v22  ;;  %v9452_v3 = vpack.c.bf16 %v2868_v34, %v2860_v13  ;;  %v3037_v11 = vmul.f32 %v3005_v45, %v2932_v1 }
 0x400   :  { %v3190_v55 = vsel %vm1310_vm4, %v12103_v46, %v3172_v16  ;;  %v3006_v46 = vsel %vm1145_vm3, %v12036_v54, %v9905_v2  ;;  %v3183_v22 = vsel %vm1310_vm4, %v12029_v57, %v3156_v32  ;;  %v3292_v45 = vrot.slane %v11744_v50, %v13023_v14 }
 0x401   :  { %v3222_v26 = vmul.f32 %v3190_v55, %v3106_v19  ;;  %9449 = vmatprep.subr.bf16.mxu1 %v9448_v29  ;;  %v3038_v58 = vmul.f32 %v3006_v46, %v2936_v59  ;;  %v3114_v19 = vrot.slane %v11720_v33, %v13023_v14 }
 0x402   :  { %9451 = vmatpush1.bf16.msra.mxu1 %v9450_v23 }
 0x403   :  { %v3174_v7 = vpop.permute.xlu0 %3173  ;;  %9453 = vmatprep.subr.bf16.mxu1 %v9452_v3  ;;  %v2996_v51 = vpop.permute.xlu1 %2995  ;;  %v9424_v35 = vpack.c.bf16 %v3222_v26, %v3214_v25 }
 0x404   :  { %v3013_v49 = vsel %vm1145_vm3, %v12117_v15, %v2996_v51  ;;  %v3014_v39 = vsel %vm1145_vm3, %v2996_v51, %v9906_v41  ;;  %v3191_v54 = vsel %vm1310_vm4, %v3172_v16, %v3174_v7  ;;  %v3110_v15 = vrot.slane %v11720_v33, %v13022_v37 }
 0x405   :  { %v3045_v43 = vmul.f32 %v3013_v49, %v2932_v1  ;;  %v3046_v18 = vmul.f32 %v3014_v39, %v2936_v59  ;;  %9425 = vmatprep.subr.bf16.mxu0 %v9424_v35  ;;  %v3280_v33 = vrot.slane %v11744_v50, %v13018_v31  ;;  %vm5039_vm3 = vcmask 74752  }
 0x406   :  { %9427 = vmatpush1.bf16.msra.mxu0 %v9426_v27  ;;  %9455 = vmatpush1.bf16.msra.mxu1 %v9454_v24  ;;  %v3223_v36 = vmul.f32 %v3191_v54, %v3110_v15  ;;  %v3215_v0 = vmul.f32 %v3183_v22, %v3110_v15  ;;  %v3458_v54 = vrot.slane %v11766_v48, %v13018_v31 }
 0x407   :  { %v9458_v52 = vpack.c.bf16 %v3045_v43, %v3037_v11  ;;  %v3332_v34 = vpop.permute.xlu0 %3331  ;;  %v9909_v4 = vpop.permute.xlu1 %9908  ;;  %v9456_v20 = vpack.c.bf16 %v3046_v18, %v3038_v58  ;;  %v3462_v18 = vrot.slane %v11766_v48, %v13019_v40 }
 0x408   :  { %v9911_v12 = vunpack.i.h.bf16 %v9909_v4  ;;  %v9910_v56 = vunpack.i.l.bf16 %v9909_v4  ;;  %v9462_v57 = vpack.c.bf16 %v3223_v36, %v3215_v0 }
 0x409   :  { %9457 = vmatprep.subr.bf16.mxu1 %v9456_v20 }
 0x40a   :  { %v3192_v60 = vsel %vm1310_vm4, %v3174_v7, %v9911_v12  ;;  %v3184_v44 = vsel %vm1310_vm4, %v3156_v32, %v9910_v56  ;;  %9459 = vmatpush1.bf16.msra.mxu1 %v9458_v52  ;;  %v4388_v12 = vld [vmem:[#allocation17 + $0x80] sm:$0xff]  ;;  %vm12444_vm4 = vmpackc.low %vm1718_vm8, %vm10437_vm14  ;;  %vm8244_vm8 = vcmask 25600  }
 0x40b   :  { %v3350_v9 = vpop.permute.xlu0 %3349  ;;  %v3330_v41 = vpop.permute.xlu1 %3329  ;;  %v3216_v42 = vmul.f32 %v3184_v44, %v3114_v19  ;;  %v3224_v17 = vmul.f32 %v3192_v60, %v3114_v19 }
 0x40c   :  { %v3359_v2 = vsel %vm1475_vm5, %v11821_v53, %v3330_v41  ;;  %v3360_v8 = vsel %vm1475_vm5, %v3330_v41, %v3332_v34  ;;  %v3470_v41 = vrot.slane %v11766_v48, %v13023_v14 }
 0x40d   :  { %v9460_v13 = vpack.c.bf16 %v3224_v17, %v3216_v42  ;;  %v3391_v62 = vmul.f32 %v3359_v2, %v3280_v33  ;;  %v3392_v55 = vmul.f32 %v3360_v8, %v3284_v10  ;;  %v4372_v17 = vld [vmem:[#allocation17] sm:$0xff]  ;;  %v4391_v2 = vld [vmem:[#allocation17 + $0x98] sm:$0xff] }
 0x40f   :  { %v9914_v23 = vpop.permute.xlu0 %9913  ;;  %v3348_v32 = vpop.permute.xlu1 %3347  ;;  %9461 = vmatprep.subr.bf16.mxu1 %v9460_v13 }
 0x410   :  { %v3367_v16 = vsel %vm1475_vm5, %v12007_v38, %v3348_v32  ;;  %v3368_v29 = vsel %vm1475_vm5, %v3348_v32, %v3350_v9  ;;  %9463 = vmatpush1.bf16.msra.mxu1 %v9462_v57  ;;  %v9915_v61 = vunpack.i.l.bf16 %v9914_v23  ;;  %v9916_v26 = vunpack.i.h.bf16 %v9914_v23  ;;  %v4390_v57 = vld [vmem:[#allocation17 + $0x90] sm:$0xff] }
 0x411   :  { %v3399_v3 = vmul.f32 %v3367_v16, %v3280_v33  ;;  %v3400_v28 = vmul.f32 %v3368_v29, %v3284_v10  ;;  %v3466_v33 = vrot.slane %v11766_v48, %v13022_v37  ;;  %v9476_v48 = vpack.c.bf16 %v4391_v2, %v4390_v57  ;;  %v4428_v2 = vld [vmem:[#allocation17 + $0x1c0] sm:$0xff] }
 0x413   :  { %v9430_v25 = vpack.c.bf16 %v3399_v3, %v3391_v62  ;;  %v3508_v1 = vpop.permute.xlu0 %3507  ;;  %v3334_v59 = vpop.permute.xlu1 %3333  ;;  %v9428_v53 = vpack.c.bf16 %v3400_v28, %v3392_v55  ;;  %v4420_v62 = vld [vmem:[#allocation17 + $0x180] sm:$0xff]  ;;  %v4421_v55 = vld [vmem:[#allocation17 + $0x188] sm:$0xff] }
 0x414   :  { %v3361_v38 = vsel %vm1475_vm5, %v3332_v34, %v3334_v59  ;;  %v3362_v46 = vsel %vm1475_vm5, %v3334_v59, %v9915_v61  ;;  %v3537_v34 = vsel %vm1640_vm7, %v11842_v21, %v3508_v1  ;;  %v4373_v21 = vld [vmem:[#allocation17 + $0x8] sm:$0xff]  ;;  %v4374_v61 = vld [vmem:[#allocation17 + $0x10] sm:$0xff]  ;;  %v4392_v59 = vld [vmem:[#allocation17 + $0xa0] sm:$0xff] }
 0x415   :  { %9429 = vmatprep.subr.bf16.mxu0 %v9428_v53  ;;  %v3393_v35 = vmul.f32 %v3361_v38, %v3288_v63  ;;  %v3394_v27 = vmul.f32 %v3362_v46, %v3292_v45  ;;  %v3569_v36 = vmul.f32 %v3537_v34, %v3458_v54  ;;  %v9474_v29 = vpack.c.bf16 %v4373_v21, %v4372_v17  ;;  %v4393_v53 = vld [vmem:[#allocation17 + $0xa8] sm:$0xff]  ;;  %v4404_v38 = vld [vmem:[#allocation17 + $0x100] sm:$0xff]  ;;  %v4398_v17 = vld [vmem:[#allocation17 + $0xd0] sm:$0xff] }
 0x416   :  { %9431 = vmatpush1.bf16.msra.mxu0 %v9430_v25  ;;  %v4375_v25 = vld [vmem:[#allocation17 + $0x18] sm:$0xff]  ;;  %v4405_v46 = vld [vmem:[#allocation17 + $0x108] sm:$0xff] }
 0x417   :  { %v3526_v5 = vpop.permute.xlu0 %3525  ;;  %v3352_v47 = vpop.permute.xlu1 %3351  ;;  %v4399_v21 = vld [vmem:[#allocation17 + $0xd8] sm:$0xff] }
 0x418   :  { %v3369_v7 = vsel %vm1475_vm5, %v3350_v9, %v3352_v47  ;;  %v3370_v51 = vsel %vm1475_vm5, %v3352_v47, %v9916_v26  ;;  %v3545_v43 = vsel %vm1640_vm7, %v12027_v6, %v3526_v5  ;;  %v4389_v6 = vld [vmem:[#allocation17 + $0x88] sm:$0xff]  ;;  %v10099_v26 = vld.sshfl [vmem:[#allocation12] sm:$0x33 pattern:$0x76325410]  ;;  %v9478_v47 = vpack.c.bf16 %v4375_v25, %v4374_v61 }
 0x419   :  { %v3401_v49 = vmul.f32 %v3369_v7, %v3288_v63  ;;  %v3402_v39 = vmul.f32 %v3370_v51, %v3292_v45  ;;  %v3577_v20 = vmul.f32 %v3545_v43, %v3458_v54  ;;  %v9472_v42 = vpack.c.bf16 %v4389_v6, %v4388_v12  ;;  %v4422_v7 = vld [vmem:[#allocation17 + $0x190] sm:$0xff]  ;;  %v4423_v51 = vld [vmem:[#allocation17 + $0x198] sm:$0xff]  ;;  %v4424_v54 = vld [vmem:[#allocation17 + $0x1a0] sm:$0xff] }
 0x41a   :  { %v9504_v45 = vpack.c.bf16 %v4421_v55, %v4420_v62  ;;  %v4407_v43 = vld [vmem:[#allocation17 + $0x118] sm:$0xff]  ;;  %v4401_v62 = vld [vmem:[#allocation17 + $0xe8] sm:$0xff]  ;;  %v4430_v25 = vld [vmem:[#allocation17 + $0x1d0] sm:$0xff]  ;;  %vm5844_vm5 = vcmask 1043456  }
 0x41b   :  { %v9466_v24 = vpack.c.bf16 %v3401_v49, %v3393_v35  ;;  %v3512_v11 = vpop.permute.xlu0 %3511  ;;  %v3510_v58 = vpop.permute.xlu1 %3509  ;;  %v9464_v50 = vpack.c.bf16 %v3402_v39, %v3394_v27  ;;  %v9434_v0 = vpack.c.bf16 %v3577_v20, %v3569_v36  ;;  %v9480_v35 = vpack.c.bf16 %v4393_v53, %v4392_v59  ;;  %v4376_v27 = vld [vmem:[#allocation17 + $0x20] sm:$0xff]  ;;  %v4377_v49 = vld [vmem:[#allocation17 + $0x28] sm:$0xff]  ;;  %v4394_v39 = vld [vmem:[#allocation17 + $0xb0] sm:$0xff] }
 0x41c   :  { %v3538_v52 = vsel %vm1640_vm7, %v3508_v1, %v3510_v58  ;;  %v3539_v8 = vsel %vm1640_vm7, %v3510_v58, %v3512_v11  ;;  %v9508_v58 = vpack.c.bf16 %v4423_v51, %v4422_v7  ;;  %v4379_v20 = vld [vmem:[#allocation17 + $0x38] sm:$0xff]  ;;  %v4384_v53 = vld [vmem:[#allocation17 + $0x60] sm:$0xff] }
 0x41d   :  { %9465 = vmatprep.subr.bf16.mxu1 %v9464_v50  ;;  %v3570_v56 = vmul.f32 %v3538_v52, %v3462_v18  ;;  %v3571_v1 = vmul.f32 %v3539_v8, %v3466_v33  ;;  %v4406_v50 = vld [vmem:[#allocation17 + $0x110] sm:$0xff]  ;;  %v4425_v52 = vld [vmem:[#allocation17 + $0x1a8] sm:$0xff]  ;;  %v4432_v51 = vld [vmem:[#allocation17 + $0x1e0] sm:$0xff] }
 0x41e   :  { %9467 = vmatpush1.bf16.msra.mxu1 %v9466_v24  ;;  %v4395_v24 = vld [vmem:[#allocation17 + $0xb8] sm:$0xff]  ;;  %v9510_v12 = vpack.c.bf16 %v4407_v43, %v4406_v50  ;;  %v9512_v6 = vpack.c.bf16 %v4425_v52, %v4424_v54  ;;  %v4429_v8 = vld [vmem:[#allocation17 + $0x1c8] sm:$0xff]  ;;  %v4452_v52 = vld [vmem:[#allocation17 + $0x280] sm:$0xff] }
 0x41f   :  { %v3528_v4 = vpop.permute.xlu1 %3527  ;;  %v3530_v19 = vpop.permute.xlu0 %3529  ;;  %v9484_v34 = vpack.c.bf16 %v4395_v24, %v4394_v39  ;;  %v4387_v39 = vld [vmem:[#allocation17 + $0x78] sm:$0xff]  ;;  %v4417_v50 = vld [vmem:[#allocation17 + $0x168] sm:$0xff] }
 0x420   :  { %v3546_v15 = vsel %vm1640_vm7, %v3526_v5, %v3528_v4  ;;  %v3547_v60 = vsel %vm1640_vm7, %v3528_v4, %v3530_v19  ;;  %v4378_v4 = vld [vmem:[#allocation17 + $0x30] sm:$0xff]  ;;  %v4435_v54 = vld [vmem:[#allocation17 + $0x1f8] sm:$0xff] }
 0x421   :  { %v3578_v22 = vmul.f32 %v3546_v15, %v3462_v18  ;;  %v3579_v23 = vmul.f32 %v3547_v60, %v3466_v33  ;;  %v9482_v18 = vpack.c.bf16 %v4377_v49, %v4376_v27  ;;  %v4397_v15 = vld [vmem:[#allocation17 + $0xc8] sm:$0xff]  ;;  %v9486_v36 = vpack.c.bf16 %v4379_v20, %v4378_v4  ;;  %v4426_v60 = vld [vmem:[#allocation17 + $0x1b0] sm:$0xff] }
 0x422   :  { %v4386_v49 = vld [vmem:[#allocation17 + $0x70] sm:$0xff] }
 0x423   :  { %v9919_v44 = vpop.permute.xlu1 %9918  ;;  %v9432_v9 = vpack.c.bf16 %v3578_v22, %v3570_v56  ;;  %v9470_v5 = vpack.c.bf16 %v3579_v23, %v3571_v1  ;;  %v4408_v56 = vld [vmem:[#allocation17 + $0x120] sm:$0xff]  ;;  %v4409_v22 = vld [vmem:[#allocation17 + $0x128] sm:$0xff]  ;;  %v9492_v23 = vpack.c.bf16 %v4399_v21, %v4398_v17  ;;  %v4431_v1 = vld [vmem:[#allocation17 + $0x1d8] sm:$0xff]  ;;  %v9502_v43 = vpack.c.bf16 %v4387_v39, %v4386_v49 }
 0x424   :  { %v9921_v10 = vunpack.i.h.bf16 %v9919_v44  ;;  %v9920_v13 = vunpack.i.l.bf16 %v9919_v44  ;;  %v4427_v44 = vld [vmem:[#allocation17 + $0x1b8] sm:$0xff]  ;;  %v13037_v21 = vld [vmem:[#allocation48_spill] sm:$0xff] }
 0x425   :  { %9433 = vmatprep.subr.bf16.mxu0 %v9432_v9  ;;  %v9516_v33 = vpack.c.bf16 %v4427_v44, %v4426_v60  ;;  %v12263_v60 = vld [vmem:[#allocation15] sm:$0xff]  ;;  %v12265_v44 = vld [vmem:[#allocation15 + $0x8] sm:$0xff] }
 0x426   :  { %v3548_v32 = vsel %vm1640_vm7, %v3530_v19, %v9921_v10  ;;  %v3540_v16 = vsel %vm1640_vm7, %v3512_v11, %v9920_v13  ;;  %9435 = vmatpush1.bf16.msra.mxu0 %v9434_v0  ;;  %v9506_v11 = vpack.c.bf16 %v4405_v46, %v4404_v38  ;;  %v4396_v19 = vld [vmem:[#allocation17 + $0xc0] sm:$0xff]  ;;  %v9514_v0 = vpack.c.bf16 %v4409_v22, %v4408_v56  ;;  %v4410_v10 = vld [vmem:[#allocation17 + $0x130] sm:$0xff]  ;;  %v4411_v13 = vld [vmem:[#allocation17 + $0x138] sm:$0xff] }
 0x427   :  { %v3572_v3 = vmul.f32 %v3540_v16, %v3470_v41  ;;  %v3580_v28 = vmul.f32 %v3548_v32, %v3470_v41  ;;  %9473 = vmatprep.subr.bf16.mxu0 %v9472_v42  ;;  %v9488_v9 = vpack.c.bf16 %v4397_v15, %v4396_v19  ;;  %v4380_v41 = vld [vmem:[#allocation17 + $0x40] sm:$0xff]  ;;  %v4381_v42 = vld [vmem:[#allocation17 + $0x48] sm:$0xff]  ;;  %v4382_v32 = vld [vmem:[#allocation17 + $0x50] sm:$0xff]  ;;  %v9518_v55 = vpack.c.bf16 %v4411_v13, %v4410_v10 }
 0x428   :  { %v9490_v57 = vpack.c.bf16 %v4381_v42, %v4380_v41  ;;  %v4383_v16 = vld [vmem:[#allocation17 + $0x58] sm:$0xff]  ;;  %v9524_v46 = vpack.c.bf16 %v4431_v1, %v4430_v25  ;;  %v4418_v15 = vld [vmem:[#allocation17 + $0x170] sm:$0xff]  ;;  %v4485_v56 = vld [vmem:[#allocation17 + $0x388] sm:$0xff]  ;;  %vm10442_vm7 = vmmov 0  }
 0x429   :  { %3972 = vmatmul.mubr.f32.vlgmr.msra.gmra.mrb[10].mxu0 %v10099_v26  ;;  %v9468_v63 = vpack.c.bf16 %v3580_v28, %v3572_v3  ;;  %v9520_v3 = vpack.c.bf16 %v4429_v8, %v4428_v2  ;;  %v4412_v28 = vld [vmem:[#allocation17 + $0x140] sm:$0xff]  ;;  %v9494_v61 = vpack.c.bf16 %v4383_v16, %v4382_v32  ;;  %v12269_v41 = vld [vmem:[#allocation15 + $0x18] sm:$0xff] }
 0x42a   :  { %9475 = vmatpush3.bf16.msra.mxu0 %v9474_v29  ;;  %v4400_v29 = vld [vmem:[#allocation17 + $0xe0] sm:$0xff] }
 0x42b   :  { %9469 = vmatprep.subr.bf16.mxu1 %v9468_v63  ;;  %9477 = vmatprep.subr.bf16.mxu0 %v9476_v48  ;;  %v4413_v48 = vld [vmem:[#allocation17 + $0x148] sm:$0xff]  ;;  %v9496_v59 = vpack.c.bf16 %v4401_v62, %v4400_v29  ;;  %v4402_v63 = vld [vmem:[#allocation17 + $0xf0] sm:$0xff]  ;;  %v13038_v8 = vld [vmem:[#allocation47_spill] sm:$0xff] }
 0x42c   :  { %9471 = vmatpush1.bf16.msra.mxu1 %v9470_v5  ;;  %v9522_v38 = vpack.c.bf16 %v4413_v48, %v4412_v28  ;;  %v4414_v5 = vld [vmem:[#allocation17 + $0x150] sm:$0xff]  ;;  %v4125_v16 = vrot.slane %v12265_v44, %v13038_v8  ;;  %v4291_v62 = vrot.slane %v12269_v41, %v13038_v8 }
 0x42d   :  { %9505 = vmatprep.subr.bf16.mxu1 %v9504_v45  ;;  %v4403_v45 = vld [vmem:[#allocation17 + $0xf8] sm:$0xff] }
 0x42e   :  { %9479 = vmatpush3.bf16.msra.mxu0 %v9478_v47  ;;  %v4415_v47 = vld [vmem:[#allocation17 + $0x158] sm:$0xff]  ;;  %v9500_v27 = vpack.c.bf16 %v4403_v45, %v4402_v63 }
 0x42f   :  { %4043 = vmatmul.mubr.f32.vlgmr.msra.gmra.mrb[10].mxu1 %v10099_v26  ;;  %9481 = vmatprep.subr.bf16.mxu0 %v9480_v35  ;;  %v4385_v26 = vld [vmem:[#allocation17 + $0x68] sm:$0xff]  ;;  %v9526_v24 = vpack.c.bf16 %v4415_v47, %v4414_v5 }
 0x430   :  { %9507 = vmatpush3.bf16.msra.mxu1 %v9506_v11  ;;  %v9498_v7 = vpack.c.bf16 %v4385_v26, %v4384_v53  ;;  %v4433_v35 = vld [vmem:[#allocation17 + $0x1e8] sm:$0xff] }
 0x431   :  { %9509 = vmatprep.subr.bf16.mxu1 %v9508_v58  ;;  %v9528_v11 = vpack.c.bf16 %v4433_v35, %v4432_v51  ;;  %v4416_v58 = vld [vmem:[#allocation17 + $0x160] sm:$0xff]  ;;  %v4437_v51 = vld [vmem:[#allocation17 + $0x208] sm:$0xff]  ;;  %v4454_v35 = vld [vmem:[#allocation17 + $0x290] sm:$0xff] }
 0x432   :  { %9483 = vmatpush3.bf16.msra.mxu0 %v9482_v18  ;;  %v4434_v18 = vld [vmem:[#allocation17 + $0x1f0] sm:$0xff]  ;;  %v9530_v4 = vpack.c.bf16 %v4417_v50, %v4416_v58  ;;  %v4439_v58 = vld [vmem:[#allocation17 + $0x218] sm:$0xff] }
 0x433   :  { %9485 = vmatprep.subr.bf16.mxu0 %v9484_v34  ;;  %v4453_v34 = vld [vmem:[#allocation17 + $0x288] sm:$0xff]  ;;  %v9532_v19 = vpack.c.bf16 %v4435_v54, %v4434_v18 }
 0x434   :  { %9511 = vmatpush3.bf16.msra.mxu1 %v9510_v12  ;;  %v9536_v20 = vpack.c.bf16 %v4453_v34, %v4452_v52  ;;  %v4419_v12 = vld [vmem:[#allocation17 + $0x178] sm:$0xff]  ;;  %v12271_v42 = vpop.permute.xlu1 %3749  ;;  %v4457_v18 = vld [vmem:[#allocation17 + $0x2a8] sm:$0xff]  ;;  %v4440_v34 = vld [vmem:[#allocation17 + $0x220] sm:$0xff] }
 0x435   :  { %9513 = vmatprep.subr.bf16.mxu1 %v9512_v6  ;;  %v4484_v6 = vld [vmem:[#allocation17 + $0x380] sm:$0xff]  ;;  %v9534_v22 = vpack.c.bf16 %v4419_v12, %v4418_v15 }
 0x436   :  { %9487 = vmatpush3.bf16.msra.mxu0 %v9486_v36  ;;  %v9568_v36 = vpack.c.bf16 %v4485_v56, %v4484_v6  ;;  %v4442_v6 = vld [vmem:[#allocation17 + $0x230] sm:$0xff]  ;;  %v4443_v56 = vld [vmem:[#allocation17 + $0x238] sm:$0xff] }
 0x437   :  { %9489 = vmatprep.subr.bf16.mxu0 %v9488_v9  ;;  %v12267_v9 = vld [vmem:[#allocation15 + $0x10] sm:$0xff] }
 0x438   :  { %9515 = vmatpush3.bf16.msra.mxu1 %v9514_v0  ;;  %v4062_v0 = vrot.slane %v12263_v60, %v13037_v21  ;;  %v4204_v13 = vrot.slane %v12267_v9, %v13037_v21  ;;  %v4208_v29 = vrot.slane %v12267_v9, %v13038_v8 }
 0x439   :  { %9517 = vmatprep.subr.bf16.mxu1 %v9516_v33  ;;  %v4121_v33 = vrot.slane %v12265_v44, %v13037_v21 }
 0x43a   :  { %9491 = vmatpush3.bf16.msra.mxu0 %v9490_v57  ;;  %v4287_v57 = vrot.slane %v12269_v41, %v13037_v21 }
 0x43b   :  { %9493 = vmatprep.subr.bf16.mxu0 %v9492_v23  ;;  %v4066_v23 = vrot.slane %v12263_v60, %v13038_v8  ;;  %v4446_v8 = vld [vmem:[#allocation17 + $0x250] sm:$0xff] }
 0x43c   :  { %9519 = vmatpush3.bf16.msra.mxu1 %v9518_v55 }
 0x43d   :  { %9521 = vmatprep.subr.bf16.mxu1 %v9520_v3 }
 0x43e   :  { %9495 = vmatpush3.bf16.msra.mxu0 %v9494_v61 }
 0x43f   :  { %9497 = vmatprep.subr.bf16.mxu0 %v9496_v59 }
 0x440   :  { %9523 = vmatpush3.bf16.msra.mxu1 %v9522_v38 }
 0x441   :  { %9525 = vmatprep.subr.bf16.mxu1 %v9524_v46 }
 0x442   :  { %9499 = vmatpush3.bf16.msra.mxu0 %v9498_v7  ;;  %v4436_v7 = vld [vmem:[#allocation17 + $0x200] sm:$0xff] }
 0x443   :  { %9501 = vmatprep.subr.bf16.mxu0 %v9500_v27  ;;  %v4455_v27 = vld [vmem:[#allocation17 + $0x298] sm:$0xff]  ;;  %v9538_v49 = vpack.c.bf16 %v4437_v51, %v4436_v7  ;;  %v13039_v7 = vld [vmem:[#allocation49_spill] sm:$0xff] }
 0x444   :  { %9527 = vmatpush3.bf16.msra.mxu1 %v9526_v24  ;;  %v9540_v24 = vpack.c.bf16 %v4455_v27, %v4454_v35  ;;  %v4074_v51 = vrot.slane %v12263_v60, %v13039_v7  ;;  %v4133_v27 = vrot.slane %v12265_v44, %v13039_v7 }
 0x445   :  { %9529 = vmatprep.subr.bf16.mxu1 %v9528_v11  ;;  %v4438_v11 = vld [vmem:[#allocation17 + $0x210] sm:$0xff] }
 0x446   :  { %9503 = vmatpush3.bf16.msra.mxu0 %v9502_v43  ;;  %v4456_v43 = vld [vmem:[#allocation17 + $0x2a0] sm:$0xff]  ;;  %v9542_v54 = vpack.c.bf16 %v4439_v58, %v4438_v11 }
 0x447   :  { %9537 = vmatprep.subr.bf16.mxu0 %v9536_v20  ;;  %v9544_v52 = vpack.c.bf16 %v4457_v18, %v4456_v43  ;;  %v4458_v20 = vld [vmem:[#allocation17 + $0x2b0] sm:$0xff] }
 0x448   :  { %9531 = vmatpush3.bf16.msra.mxu1 %v9530_v4  ;;  %v4441_v4 = vld [vmem:[#allocation17 + $0x228] sm:$0xff] }
 0x449   :  { %9533 = vmatprep.subr.bf16.mxu1 %v9532_v19  ;;  %v4459_v19 = vld [vmem:[#allocation17 + $0x2b8] sm:$0xff]  ;;  %v9546_v15 = vpack.c.bf16 %v4441_v4, %v4440_v34 }
 0x44a   :  { %v9548_v12 = vpack.c.bf16 %v4459_v19, %v4458_v20 }
 0x44c   :  { %9535 = vmatpush3.bf16.msra.mxu1 %v9534_v22  ;;  %v4460_v22 = vld [vmem:[#allocation17 + $0x2c0] sm:$0xff] }
 0x44d   :  { %9569 = vmatprep.subr.bf16.mxu1 %v9568_v36  ;;  %v4461_v36 = vld [vmem:[#allocation17 + $0x2c8] sm:$0xff] }
 0x44e   :  { %v9552_v21 = vpack.c.bf16 %v4461_v36, %v4460_v22  ;;  %v4469_v22 = vld [vmem:[#allocation17 + $0x308] sm:$0xff]  ;;  %v4486_v36 = vld [vmem:[#allocation17 + $0x390] sm:$0xff] }
 0x471   :  { %v3831_v17 = vpop.f32.mrb[8].mxu0 }
 0x472   :  { %v3832_v10 = vadd.f32 %v3831_v17, %v12271_v42  ;;  %v3833_v2 = vpop.f32.mrb[9].mxu0  ;;  %v9550_v17 = vpack.c.bf16 %v4443_v56, %v4442_v6  ;;  %v4468_v56 = vld [vmem:[#allocation17 + $0x300] sm:$0xff] }
 0x473   :  { %v3834_v32 = vadd.f32 %v3833_v2, %v12271_v42 }
 0x474   :  { %v4049_v55 = vmax.f32 %v3832_v10, 0.0  ;;  %v4462_v10 = vld [vmem:[#allocation17 + $0x2d0] sm:$0xff] }
 0x475   :  { %v4050_v3 = vmax.f32 %v3834_v32, 0.0  ;;  %v4464_v32 = vld [vmem:[#allocation17 + $0x2e0] sm:$0xff] }
 0x476   :  { %v4099_v28 = vmul.f32 %v4062_v0, %v4049_v55  ;;  %v4158_v48 = vmul.f32 %v4121_v33, %v4049_v55  ;;  %v4241_v61 = vmul.f32 %v4204_v13, %v4049_v55  ;;  %v4324_v25 = vmul.f32 %v4287_v57, %v4049_v55  ;;  %v4444_v0 = vld [vmem:[#allocation17 + $0x240] sm:$0xff]  ;;  %v4445_v33 = vld [vmem:[#allocation17 + $0x248] sm:$0xff]  ;;  %v4463_v13 = vld [vmem:[#allocation17 + $0x2d8] sm:$0xff] }
 0x477   :  { %v4100_v1 = vmul.f32 %v4066_v23, %v4050_v3  ;;  %v4159_v59 = vmul.f32 %v4125_v16, %v4050_v3  ;;  %v4242_v53 = vmul.f32 %v4208_v29, %v4050_v3  ;;  %v4325_v26 = vmul.f32 %v4291_v62, %v4050_v3  ;;  %v4447_v23 = vld [vmem:[#allocation17 + $0x258] sm:$0xff]  ;;  %v4465_v16 = vld [vmem:[#allocation17 + $0x2e8] sm:$0xff]  ;;  %v4448_v55 = vld [vmem:[#allocation17 + $0x260] sm:$0xff] }
 0x478   :  { %4107 = vst [vmem:[#allocation6] sm:$0x3] %v4099_v28  ;;  %v4174_v63 = vrot.slane %v4158_v48, 6  ;;  %v4257_v45 = vrot.slane %v4241_v61, 4  ;;  %v4340_v38 = vrot.slane %v4324_v25, 2  ;;  %v9554_v57 = vpack.c.bf16 %v4445_v33, %v4444_v0  ;;  %v4449_v3 = vld [vmem:[#allocation17 + $0x268] sm:$0xff] }
 0x479   :  { %4108 = vst [vmem:[#allocation6 + $0x8] sm:$0x3] %v4100_v1  ;;  %v4175_v46 = vrot.slane %v4159_v59, 6  ;;  %v4258_v5 = vrot.slane %v4242_v53, 4  ;;  %v4341_v47 = vrot.slane %v4325_v26, 2  ;;  %v9556_v2 = vpack.c.bf16 %v4463_v13, %v4462_v10  ;;  %v4466_v28 = vld [vmem:[#allocation17 + $0x2f0] sm:$0xff] }
 0x47a   :  { %4190 = vst [vmem:[#allocation6] sm:$0xc] %v4174_v63  ;;  %4273 = vst [vmem:[#allocation6] sm:$0x30] %v4257_v45  ;;  %v9558_v29 = vpack.c.bf16 %v4447_v23, %v4446_v8  ;;  %v9560_v62 = vpack.c.bf16 %v4465_v16, %v4464_v32  ;;  %v4467_v48 = vld [vmem:[#allocation17 + $0x2f8] sm:$0xff]  ;;  %v9562_v61 = vpack.c.bf16 %v4449_v3, %v4448_v55  ;;  %v4450_v1 = vld [vmem:[#allocation17 + $0x270] sm:$0xff] }
 0x47b   :  { %4356 = vst [vmem:[#allocation6] sm:$0xc0] %v4340_v38  ;;  %4191 = vst [vmem:[#allocation6 + $0x8] sm:$0xc] %v4175_v46  ;;  %v9564_v25 = vpack.c.bf16 %v4467_v48, %v4466_v28  ;;  %v4451_v59 = vld [vmem:[#allocation17 + $0x278] sm:$0xff]  ;;  %v4070_v63 = vrot.slane %v12263_v60, %v10746_v30  ;;  %v4129_v45 = vrot.slane %v12265_v44, %v10746_v30  ;;  %v4470_v10 = vld [vmem:[#allocation17 + $0x310] sm:$0xff] }
 0x47c   :  { %4274 = vst [vmem:[#allocation6 + $0x8] sm:$0x30] %v4258_v5  ;;  %4357 = vst [vmem:[#allocation6 + $0x8] sm:$0xc0] %v4341_v47  ;;  %v9566_v53 = vpack.c.bf16 %v4451_v59, %v4450_v1  ;;  %v4212_v46 = vrot.slane %v12267_v9, %v10746_v30  ;;  %v4295_v5 = vrot.slane %v12269_v41, %v10746_v30  ;;  %v4471_v13 = vld [vmem:[#allocation17 + $0x318] sm:$0xff]  ;;  %v4489_v8 = vld [vmem:[#allocation17 + $0x3a8] sm:$0xff] }
 0x47d   :  { %v9574_v23 = vpack.c.bf16 %v4471_v13, %v4470_v10  ;;  %v4472_v16 = vld [vmem:[#allocation17 + $0x320] sm:$0xff]  ;;  %v4491_v55 = vld [vmem:[#allocation17 + $0x3b8] sm:$0xff]  ;;  %v4474_v48 = vld [vmem:[#allocation17 + $0x330] sm:$0xff]  ;;  %v4311_v10 = vrot.slane %v12269_v41, %v13022_v37  ;;  %v4090_v13 = vrot.slane %v12263_v60, %v13023_v14 }
 0x47e   :  { %v4493_v1 = vld [vmem:[#allocation17 + $0x3c8] sm:$0xff] }
 0x482   :  { %v4364_v50 = vld [vmem:[#allocation6] sm:$0xff] }
 0x483   :  { %v4365_v39 = vld [vmem:[#allocation6 + $0x8] sm:$0xff] }
 0x484   :  { %4564 = vmatprep.mubr.f32.mxu0 %v4365_v39  ;;  %v4299_v39 = vrot.slane %v12269_v41, %v13039_v7 }
 0x485   :  { %4565 = vmatmul.mubr.f32.vlgmr.msra.gmra.mrb[12].mxu0 %v4364_v50 }
 0x486   :  { %9539 = vmatpush3.bf16.msra.mxu0 %v9538_v49  ;;  %v4216_v49 = vrot.slane %v12267_v9, %v13039_v7  ;;  %v4479_v7 = vld [vmem:[#allocation17 + $0x358] sm:$0xff] }
 0x487   :  { %9541 = vmatprep.subr.bf16.mxu0 %v9540_v24 }
 0x48a   :  { %9543 = vmatpush3.bf16.msra.mxu0 %v9542_v54 }
 0x48b   :  { %9545 = vmatprep.subr.bf16.mxu0 %v9544_v52 }
 0x48e   :  { %9547 = vmatpush3.bf16.msra.mxu0 %v9546_v15 }
 0x48f   :  { %9549 = vmatprep.subr.bf16.mxu0 %v9548_v12 }
 0x492   :  { %9551 = vmatpush3.bf16.msra.mxu0 %v9550_v17  ;;  %v4487_v17 = vld [vmem:[#allocation17 + $0x398] sm:$0xff] }
 0x493   :  { %9553 = vmatprep.subr.bf16.mxu0 %v9552_v21  ;;  %v9570_v21 = vpack.c.bf16 %v4469_v22, %v4468_v56  ;;  %v9572_v33 = vpack.c.bf16 %v4487_v17, %v4486_v36  ;;  %v4141_v56 = vrot.slane %v12265_v44, %v13019_v40  ;;  %v4224_v22 = vrot.slane %v12267_v9, %v13019_v40 }
 0x494   :  { %v4307_v17 = vrot.slane %v12269_v41, %v13019_v40 }
 0x496   :  { %9555 = vmatpush3.bf16.msra.mxu0 %v9554_v57 }
 0x497   :  { %9557 = vmatprep.subr.bf16.mxu0 %v9556_v2  ;;  %v4488_v2 = vld [vmem:[#allocation17 + $0x3a0] sm:$0xff] }
 0x498   :  { %v9576_v32 = vpack.c.bf16 %v4489_v8, %v4488_v2  ;;  %v4232_v2 = vrot.slane %v12267_v9, %v13023_v14  ;;  %v4315_v8 = vrot.slane %v12269_v41, %v13023_v14 }
 0x49a   :  { %9559 = vmatpush3.bf16.msra.mxu0 %v9558_v29  ;;  %v4473_v29 = vld [vmem:[#allocation17 + $0x328] sm:$0xff] }
 0x49b   :  { %9561 = vmatprep.subr.bf16.mxu0 %v9560_v62  ;;  %v4490_v62 = vld [vmem:[#allocation17 + $0x3b0] sm:$0xff]  ;;  %v9578_v3 = vpack.c.bf16 %v4473_v29, %v4472_v16 }
 0x49c   :  { %v9580_v28 = vpack.c.bf16 %v4491_v55, %v4490_v62 }
 0x49e   :  { %9563 = vmatpush3.bf16.msra.mxu0 %v9562_v61  ;;  %v4475_v61 = vld [vmem:[#allocation17 + $0x338] sm:$0xff] }
 0x49f   :  { %9565 = vmatprep.subr.bf16.mxu0 %v9564_v25  ;;  %v4492_v25 = vld [vmem:[#allocation17 + $0x3c0] sm:$0xff]  ;;  %v9582_v59 = vpack.c.bf16 %v4475_v61, %v4474_v48 }
 0x4a2   :  { %9567 = vmatpush3.bf16.msra.mxu0 %v9566_v53  ;;  %v9584_v53 = vpack.c.bf16 %v4493_v1, %v4492_v25 }
 0x4b0   :  { %v3902_v26 = vpop.f32.mrb[8].mxu1 }
 0x4b1   :  { %v3903_v38 = vadd.f32 %v3902_v26, %v12271_v42  ;;  %v3904_v47 = vpop.f32.mrb[9].mxu1  ;;  %v4476_v26 = vld [vmem:[#allocation17 + $0x340] sm:$0xff] }
 0x4b2   :  { %v3905_v35 = vadd.f32 %v3904_v47, %v12271_v42  ;;  %v4478_v47 = vld [vmem:[#allocation17 + $0x350] sm:$0xff] }
 0x4b3   :  { %v4051_v24 = vmax.f32 %v3903_v38, 0.0  ;;  %v4495_v38 = vld [vmem:[#allocation17 + $0x3d8] sm:$0xff] }
 0x4b4   :  { %v4052_v11 = vmax.f32 %v3905_v35, 0.0  ;;  %v4497_v35 = vld [vmem:[#allocation17 + $0x3e8] sm:$0xff] }
 0x4b5   :  { %v4101_v58 = vmul.f32 %v4070_v63, %v4051_v24  ;;  %v4160_v50 = vmul.f32 %v4129_v45, %v4051_v24  ;;  %v4243_v30 = vmul.f32 %v4212_v46, %v4051_v24  ;;  %v4326_v43 = vmul.f32 %v4295_v5, %v4051_v24  ;;  %v4477_v63 = vld [vmem:[#allocation17 + $0x348] sm:$0xff]  ;;  %v4494_v45 = vld [vmem:[#allocation17 + $0x3d0] sm:$0xff] }
 0x4b6   :  { %v4102_v18 = vmul.f32 %v4074_v51, %v4052_v11  ;;  %v4161_v54 = vmul.f32 %v4133_v27, %v4052_v11  ;;  %v4244_v52 = vmul.f32 %v4216_v49, %v4052_v11  ;;  %v4327_v34 = vmul.f32 %v4299_v39, %v4052_v11  ;;  %v4496_v51 = vld [vmem:[#allocation17 + $0x3e0] sm:$0xff]  ;;  %v4481_v24 = vld [vmem:[#allocation17 + $0x368] sm:$0xff]  ;;  %v4498_v11 = vld [vmem:[#allocation17 + $0x3f0] sm:$0xff] }
 0x4b7   :  { %4109 = vst [vmem:[#allocation6 + $0x10] sm:$0x3] %v4101_v58  ;;  %v4176_v4 = vrot.slane %v4160_v50, 6  ;;  %v4259_v20 = vrot.slane %v4243_v30, 4  ;;  %v4342_v19 = vrot.slane %v4326_v43, 2  ;;  %v9586_v46 = vpack.c.bf16 %v4477_v63, %v4476_v26  ;;  %v4480_v39 = vld [vmem:[#allocation17 + $0x360] sm:$0xff] }
 0x4b8   :  { %4110 = vst [vmem:[#allocation6 + $0x18] sm:$0x3] %v4102_v18  ;;  %v4177_v15 = vrot.slane %v4161_v54, 6  ;;  %v4260_v12 = vrot.slane %v4244_v52, 4  ;;  %v4343_v6 = vrot.slane %v4327_v34, 2  ;;  %v9588_v5 = vpack.c.bf16 %v4495_v38, %v4494_v45  ;;  %v4499_v58 = vld [vmem:[#allocation17 + $0x3f8] sm:$0xff] }
 0x4b9   :  { %4192 = vst [vmem:[#allocation6 + $0x10] sm:$0xc] %v4176_v4  ;;  %4275 = vst [vmem:[#allocation6 + $0x10] sm:$0x30] %v4259_v20  ;;  %v9590_v27 = vpack.c.bf16 %v4479_v7, %v4478_v47  ;;  %v9592_v49 = vpack.c.bf16 %v4497_v35, %v4496_v51  ;;  %v9594_v50 = vpack.c.bf16 %v4481_v24, %v4480_v39  ;;  %v4482_v43 = vld [vmem:[#allocation17 + $0x370] sm:$0xff]  ;;  %v4483_v18 = vld [vmem:[#allocation17 + $0x378] sm:$0xff] }
 0x4ba   :  { %4358 = vst [vmem:[#allocation6 + $0x10] sm:$0xc0] %v4342_v19  ;;  %4193 = vst [vmem:[#allocation6 + $0x18] sm:$0xc] %v4177_v15  ;;  %v9596_v30 = vpack.c.bf16 %v4499_v58, %v4498_v11  ;;  %v9598_v54 = vpack.c.bf16 %v4483_v18, %v4482_v43  ;;  %v4078_v34 = vrot.slane %v12263_v60, %v13018_v31 }
 0x4bb   :  { %4276 = vst [vmem:[#allocation6 + $0x18] sm:$0x30] %v4260_v12  ;;  %4359 = vst [vmem:[#allocation6 + $0x18] sm:$0xc0] %v4343_v6  ;;  %v4137_v4 = vrot.slane %v12265_v44, %v13018_v31  ;;  %v4220_v20 = vrot.slane %v12267_v9, %v13018_v31  ;;  %v4303_v19 = vrot.slane %v12269_v41, %v13018_v31 }
 0x4bc   :  { %v4082_v6 = vrot.slane %v12263_v60, %v13019_v40  ;;  %v4086_v31 = vrot.slane %v12263_v60, %v13022_v37  ;;  %v4149_v40 = vrot.slane %v12265_v44, %v13023_v14 }
 0x4c1   :  { %v4366_v57 = vld [vmem:[#allocation6 + $0x10] sm:$0xff] }
 0x4c2   :  { %v4367_v0 = vld [vmem:[#allocation6 + $0x18] sm:$0xff] }
 0x4c3   :  { %4634 = vmatprep.mubr.f32.mxu1 %v4367_v0 }
 0x4c4   :  { %4635 = vmatmul.mubr.f32.vlgmr.msra.gmra.mrb[12].mxu1 %v4366_v57 }
 0x4c5   :  { %9571 = vmatpush3.bf16.msra.mxu1 %v9570_v21  ;;  %v4145_v21 = vrot.slane %v12265_v44, %v13022_v37 }
 0x4c6   :  { %9573 = vmatprep.subr.bf16.mxu1 %v9572_v33  ;;  %v4228_v33 = vrot.slane %v12267_v9, %v13022_v37 }
 0x4c9   :  { %9575 = vmatpush3.bf16.msra.mxu1 %v9574_v23 }
 0x4ca   :  { %9577 = vmatprep.subr.bf16.mxu1 %v9576_v32 }
 0x4cd   :  { %9579 = vmatpush3.bf16.msra.mxu1 %v9578_v3 }
 0x4ce   :  { %9581 = vmatprep.subr.bf16.mxu1 %v9580_v28 }
 0x4d1   :  { %9583 = vmatpush3.bf16.msra.mxu1 %v9582_v59 }
 0x4d2   :  { %9585 = vmatprep.subr.bf16.mxu1 %v9584_v53 }
 0x4d5   :  { %9587 = vmatpush3.bf16.msra.mxu1 %v9586_v46 }
 0x4d6   :  { %9589 = vmatprep.subr.bf16.mxu1 %v9588_v5 }
 0x4d9   :  { %9591 = vmatpush3.bf16.msra.mxu1 %v9590_v27 }
 0x4da   :  { %9593 = vmatprep.subr.bf16.mxu1 %v9592_v49 }
 0x4dd   :  { %9595 = vmatpush3.bf16.msra.mxu1 %v9594_v50 }
 0x4de   :  { %9597 = vmatprep.subr.bf16.mxu1 %v9596_v30 }
 0x4e1   :  { %9599 = vmatpush3.bf16.msra.mxu1 %v9598_v54  ;;  %v13040_v54 = vmov 0.0  }
 0x4e2   :  { %4781 = vst.msk [vmem:[#allocation7] sm:$0x3] %vm4780_vm11, %v13040_v54 }
 0x4fc   :  { %v3973_v52 = vpop.f32.mrb[10].mxu0 }
 0x4fd   :  { %v3974_v15 = vadd.f32 %v3973_v52, %v12271_v42  ;;  %v3975_v12 = vpop.f32.mrb[11].mxu0 }
 0x4fe   :  { %v3976_v36 = vadd.f32 %v3975_v12, %v12271_v42 }
 0x4ff   :  { %v4053_v0 = vmax.f32 %v3974_v15, 0.0 }
 0x500   :  { %v4054_v57 = vmax.f32 %v3976_v36, 0.0 }
 0x501   :  { %v4103_v23 = vmul.f32 %v4078_v34, %v4053_v0  ;;  %v4162_v32 = vmul.f32 %v4137_v4, %v4053_v0  ;;  %v4245_v16 = vmul.f32 %v4220_v20, %v4053_v0  ;;  %v4328_v29 = vmul.f32 %v4303_v19, %v4053_v0 }
 0x502   :  { %v4104_v62 = vmul.f32 %v4082_v6, %v4054_v57  ;;  %v4163_v55 = vmul.f32 %v4141_v56, %v4054_v57  ;;  %v4246_v37 = vmul.f32 %v4224_v22, %v4054_v57  ;;  %v4329_v3 = vmul.f32 %v4307_v17, %v4054_v57  ;;  %v4044_v28 = vpop.f32.mrb[10].mxu1 }
 0x503   :  { %4111 = vst [vmem:[#allocation6 + $0x20] sm:$0x3] %v4103_v23  ;;  %v4178_v60 = vrot.slane %v4162_v32, 6  ;;  %v4261_v48 = vrot.slane %v4245_v16, 4  ;;  %v4344_v61 = vrot.slane %v4328_v29, 2  ;;  %v4045_v44 = vadd.f32 %v4044_v28, %v12271_v42  ;;  %v4046_v25 = vpop.f32.mrb[11].mxu1 }
 0x504   :  { %4112 = vst [vmem:[#allocation6 + $0x28] sm:$0x3] %v4104_v62  ;;  %v4179_v9 = vrot.slane %v4163_v55, 6  ;;  %v4262_v1 = vrot.slane %v4246_v37, 4  ;;  %v4345_v14 = vrot.slane %v4329_v3, 2  ;;  %v4047_v41 = vadd.f32 %v4046_v25, %v12271_v42 }
 0x505   :  { %4194 = vst [vmem:[#allocation6 + $0x20] sm:$0xc] %v4178_v60  ;;  %4277 = vst [vmem:[#allocation6 + $0x20] sm:$0x30] %v4261_v48  ;;  %v4055_v59 = vmax.f32 %v4045_v44, 0.0  ;;  %v4837_v60 = vld [vmem:[#allocation21] sm:$0xff] }
 0x506   :  { %4360 = vst [vmem:[#allocation6 + $0x20] sm:$0xc0] %v4344_v61  ;;  %4195 = vst [vmem:[#allocation6 + $0x28] sm:$0xc] %v4179_v9  ;;  %v4056_v53 = vmax.f32 %v4047_v41, 0.0 }
 0x507   :  { %4278 = vst [vmem:[#allocation6 + $0x28] sm:$0x30] %v4262_v1  ;;  %4361 = vst [vmem:[#allocation6 + $0x28] sm:$0xc0] %v4345_v14  ;;  %v4105_v26 = vmul.f32 %v4086_v31, %v4055_v59  ;;  %v4164_v63 = vmul.f32 %v4145_v21, %v4055_v59  ;;  %v4247_v45 = vmul.f32 %v4228_v33, %v4055_v59  ;;  %v4787_v31 = vld [vmem:[#allocation18 + $0x8] sm:$0x3] }
 0x508   :  { %v4330_v38 = vmul.f32 %v4311_v10, %v4055_v59  ;;  %v4106_v46 = vmul.f32 %v4090_v13, %v4056_v53  ;;  %v4165_v5 = vmul.f32 %v4149_v40, %v4056_v53  ;;  %v4248_v47 = vmul.f32 %v4232_v2, %v4056_v53  ;;  %v4786_v21 = vld [vmem:[#allocation18] sm:$0xff]  ;;  %v4838_v48 = vld [vmem:[#allocation21 + $0x8] sm:$0x1] }
 0x509   :  { %v4331_v7 = vmul.f32 %v4315_v8, %v4056_v53  ;;  %4113 = vst [vmem:[#allocation6 + $0x30] sm:$0x3] %v4105_v26  ;;  %v4180_v51 = vrot.slane %v4164_v63, 6  ;;  %v4263_v35 = vrot.slane %v4247_v45, 4  ;;  %v9600_v61 = vpack.c.bf16 %v4838_v48, %v4837_v60  ;;  %v8588_v53 = vld [vmem:[%s10524_s18] ss:$0 sm:$0xff] }
 0x50a   :  { %v4346_v42 = vrot.slane %v4330_v38, 2  ;;  %4114 = vst [vmem:[#allocation6 + $0x38] sm:$0x3] %v4106_v46  ;;  %v4181_v27 = vrot.slane %v4165_v5, 6  ;;  %v4264_v49 = vrot.slane %v4248_v47, 4 }
 0x50b   :  { %v4347_v39 = vrot.slane %v4331_v7, 2  ;;  %4196 = vst [vmem:[#allocation6 + $0x30] sm:$0xc] %v4180_v51  ;;  %4279 = vst [vmem:[#allocation6 + $0x30] sm:$0x30] %v4263_v35  ;;  %9602 = vmatprep.subr.msk.bf16.mxu0 %vm12361_vm15, %v9600_v61 }
 0x50c   :  { %4362 = vst [vmem:[#allocation6 + $0x30] sm:$0xc0] %v4346_v42  ;;  %4197 = vst [vmem:[#allocation6 + $0x38] sm:$0xc] %v4181_v27  ;;  %v8589_v63 = vld [vmem:[%s13043_s13] ss:$0 sm:$0xff] }
 0x50d   :  { %4280 = vst [vmem:[#allocation6 + $0x38] sm:$0x30] %v4264_v49  ;;  %4363 = vst [vmem:[#allocation6 + $0x38] sm:$0xc0] %v4347_v39  ;;  %v4368_v11 = vld [vmem:[#allocation6 + $0x20] sm:$0xff] }
 0x50e   :  { %v4369_v24 = vld [vmem:[#allocation6 + $0x28] sm:$0xff]  ;;  %v8590_v51 = vld [vmem:[%s13044_s28] ss:$0 sm:$0xff]  ;;  %v12380_v39 = vld [vmem:[%s13045_s29 + $0x1] ss:$0 sm:$0xff] }
 0x50f   :  { %4704 = vmatprep.mubr.f32.mxu0 %v4369_v24  ;;  %v12377_v49 = vld [vmem:[%s13045_s29] ss:$0 sm:$0xff] }
 0x510   :  { %4705 = vmatmul.mubr.f32.vlgmr.msra.gmra.mrb[14].mxu0 %v4368_v11 }
 0x511   :  { %9605 = vmatpush3.bf16.msk.msra.mxu0 %vm12361_vm15, %v9600_v61 }
 0x513   :  { %v4370_v50 = vld [vmem:[#allocation6 + $0x30] sm:$0xff] }
 0x514   :  { %v4371_v58 = vld [vmem:[#allocation6 + $0x38] sm:$0xff] }
 0x515   :  { %4774 = vmatprep.mubr.f32.mxu1 %v4371_v58 }
 0x516   :  { %4775 = vmatmul.mubr.f32.vlgmr.msra.gmra.mrb[14].mxu1 %v4370_v50 }
 0x558   :  { %v8786_v30 = vpop.f32.mrb[12].mxu0 }
 0x559   :  { %v8787_v43 = vpop.f32.mrb[13].mxu0 }
 0x55a   :  { %v8788_v18 = vadd.f32 %v8787_v43, %v8786_v30 }
 0x597   :  { %v8821_v52 = vpop.f32.mrb[12].mxu1 }
 0x598   :  { %v8822_v34 = vpop.f32.mrb[13].mxu1 }
 0x599   :  { %v8823_v4 = vadd.f32 %v8822_v34, %v8821_v52 }
 0x59b   :  { %v4637_v20 = vadd.f32 %v8823_v4, %v8788_v18 }
 0x5e3   :  { %v8856_v19 = vpop.f32.mrb[14].mxu0 }
 0x5e4   :  { %v8857_v15 = vpop.f32.mrb[15].mxu0 }
 0x5e5   :  { %v8858_v12 = vadd.f32 %v8857_v15, %v8856_v19 }
 0x5e7   :  { %v4707_v6 = vadd.f32 %v8858_v12, %v4637_v20  ;;  %v12419_v12 = vld [vmem:[#allocation20] sm:$0xff] }
 0x5e9   :  { %v8891_v56 = vpop.f32.mrb[14].mxu1 }
 0x5ea   :  { %v8892_v22 = vpop.f32.mrb[15].mxu1 }
 0x5eb   :  { %v8893_v36 = vadd.f32 %v8892_v22, %v8891_v56 }
 0x5ed   :  { %v4777_v17 = vadd.f32 %v8893_v36, %v4707_v6 }
 0x5ef   :  { %4783 = vst.msk [vmem:[#allocation7 + $0x2] sm:$0xff] %vm4782_vm12, %v4777_v17  ;;  %v12421_v17 = vld [vmem:[#allocation20 + $0x8] sm:$0x3] }
 0x5f6   :  { %v4785_v0 = vld [vmem:[#allocation7 + $0x8] sm:$0x3]  ;;  %v4784_v33 = vld [vmem:[#allocation7] sm:$0xff] }
 0x5f7   :  { %v12348_v10 = vadd.f32 %v4787_v31, %v4785_v0  ;;  %v12350_v13 = vadd.f32 %v4786_v21, %v4784_v33 }
 0x5f9   :  { %v4797_v57 = vsel %vm4780_vm11, %v12348_v10, 0.0  ;;  %v4794_v40 = vsel %vm4782_vm12, %v12350_v13, 0.0 }
 0x5fa   :  { %4798 = vadd.xlane.f32.xlu1 %v4797_v57  ;;  %4795 = vadd.xlane.f32.xlu0 %v4794_v40 }
 0x687   :  { %v4799_v2 = vpop.xlane.xlu1 %4798  ;;  %v4796_v8 = vpop.xlane.xlu0 %4795 }
 0x688   :  { %v4802_v23 = vmul.f32 0.11111111, %v4799_v2  ;;  %v4801_v32 = vmul.f32 0.11111111, %v4796_v8 }
 0x68a   :  { %v4804_v16 = vsub.f32 %v12348_v10, %v4802_v23  ;;  %v4803_v29 = vsub.f32 %v12350_v13, %v4801_v32 }
 0x68c   :  { %v4805_v62 = vmul.f32 %v4803_v29, %v4803_v29  ;;  %v4806_v37 = vmul.f32 %v4804_v16, %v4804_v16 }
 0x68e   :  { %v4807_v55 = vsel %vm4782_vm12, %v4805_v62, 0.0  ;;  %v4810_v3 = vsel %vm4780_vm11, %v4806_v37, 0.0 }
 0x68f   :  { %4808 = vadd.xlane.f32.xlu0 %v4807_v55 }
 0x693   :  { %4811 = vadd.xlane.f32.xlu0 %v4810_v3 }
 0x71c   :  { %v4809_v44 = vpop.xlane.xlu0 %4808 }
 0x71d   :  { %v4813_v25 = vmul.f32 0.11111111, %v4809_v44 }
 0x71f   :  { %v4815_v9 = vadd.f32 1e-05, %v4813_v25 }
 0x720   :  { %v4812_v1 = vpop.xlane.xlu0 %4811 }
 0x721   :  { %9987 = vrsqrt.f32 %v4815_v9  ;;  %v4814_v14 = vmul.f32 0.11111111, %v4812_v1 }
 0x723   :  { %v4816_v41 = vadd.f32 1e-05, %v4814_v14 }
 0x725   :  { %9989 = vrsqrt.f32 %v4816_v41 }
 0x72b   :  { %v9988_v59 = vpop.eup %9987 }
 0x72c   :  { %v4819_v26 = vmul.f32 %v9988_v59, %v4803_v29 }
 0x72e   :  { %v4827_v45 = vmul.f32 %v8588_v53, %v4819_v26 }
 0x72f   :  { %v9990_v38 = vpop.eup %9989 }
 0x730   :  { %v4820_v46 = vmul.f32 %v9990_v38, %v4804_v16  ;;  %v4835_v5 = vadd.f32 %v8589_v63, %v4827_v45  ;;  %v8721_v45 = vld [vmem:[%s13050_s25 + $0x2] ss:$0 sm:$0xff] }
 0x732   :  { %v4828_v47 = vmul.f32 %v8588_v53, %v4820_v46  ;;  %9046 = vmatprep.mubr.msk.f32.mxu0 %vm4782_vm12, %v4835_v5 }
 0x734   :  { %v4836_v7 = vadd.f32 %v8589_v63, %v4828_v47  ;;  %v12457_v47 = vld [vmem:[%s13045_s29 + $0x2] ss:$0 sm:$0xff] }
 0x736   :  { %9047 = vmatmul.mubr.msk.f32.vlgmr.msra.gmra.mrb[16].mxu0 %vm4782_vm12, %v4836_v7 }
 0x809   :  { %v9048_v35 = vpop.f32.mrb[16].mxu0 }
 0x80a   :  { %v12374_v42 = vadd.f32 %v9048_v35, %v8590_v51  ;;  %v4922_v27 = vpop.f32.mrb[17].mxu0 }
 0x80b   :  { %v12382_v24 = vadd.f32 %v8590_v51, %v4922_v27 }
 0x80c   :  { %v4939_v4 = vmul.f32 %v12377_v49, %v12374_v42  ;;  %v5073_v20 = vmul.f32 %v12380_v39, %v12374_v42  ;;  %v5375_v27 = vmul.f32 %v12457_v47, %v12374_v42 }
 0x80d   :  { %v9922_v11 = vpack.i.bf16 %v12374_v42, %v12382_v24  ;;  %v4938_v58 = vmul.f32 %v12377_v49, %v12382_v24  ;;  %v5072_v50 = vmul.f32 %v12380_v39, %v12382_v24  ;;  %v5374_v35 = vmul.f32 %v12457_v47, %v12382_v24 }
 0x80f   :  { %9923 = vrot.lane.b32.xlu1 %v9922_v11, %s10438_s1  ;;  %9053 = vmatprep.mubr.msk.f32.mxu1 %vm4782_vm12, %v4938_v58 }
 0x810   :  { %9060 = vmatprep.mubr.msk.f32.mxu0 %vm4782_vm12, %v5072_v50 }
 0x881   :  { %v9924_v30 = vpop.permute.xlu1 %9923 }
 0x882   :  { %v9926_v43 = vunpack.i.h.bf16 %v9924_v30  ;;  %v9925_v18 = vunpack.i.l.bf16 %v9924_v30 }
 0x884   :  { %v12399_v34 = vpack.c.bf16 %v9926_v43, %v9925_v18 }
 0x886   :  { %9608 = vmatprep.subr.msk.bf16.mxu1 %vm12395_vm0, %v12399_v34  ;;  %9614 = vmatprep.subr.msk.bf16.mxu0 %vm12395_vm0, %v12399_v34 }
 0x887   :  { %9611 = vmatpush3.bf16.xpose.msk.msra.mxu1 %vm12395_vm0, %v12399_v34  ;;  %9617 = vmatpush3.bf16.xpose.msk.msra.mxu0 %vm12395_vm0, %v12399_v34 }
 0x88e   :  { %9054 = vmatmul.mubr.msk.f32.vlgmr.msra.gmra.mrb[16].mxu1 %vm4782_vm12, %v4939_v4  ;;  %9061 = vmatmul.mubr.msk.f32.vlgmr.msra.gmra.mrb[18].mxu0 %vm4782_vm12, %v5073_v20 }
 0x961   :  { %v9055_v19 = vpop.f32.mrb[16].mxu1  ;;  %v9062_v15 = vpop.f32.mrb[18].mxu0 }
 0x962   :  { %v5022_v6 = vpop.f32.mrb[17].mxu1  ;;  %v5146_v56 = vpop.f32.mrb[19].mxu0  ;;  %v5156_v22 = vmul.f32 0.57735026, %v9062_v15  ;;  %v5032_v37 = vmul.f32 0.57735026, %v9055_v19 }
 0x963   :  { %v5155_v36 = vmul.f32 0.57735026, %v5146_v56  ;;  %v5031_v29 = vmul.f32 0.57735026, %v5022_v6 }
 0x964   :  { %v5158_v21 = vadd.f32 %v5156_v22, %v12421_v17  ;;  %v5034_v48 = vadd.f32 %v5032_v37, %v12421_v17 }
 0x965   :  { %v5157_v31 = vadd.f32 %v5155_v36, %v12419_v12  ;;  %v5033_v3 = vadd.f32 %v5031_v29, %v12419_v12 }
 0x966   :  { %v5162_v33 = vsel %vm5039_vm3, %v5158_v21, -inf  ;;  %v5040_v25 = vsel %vm5039_vm3, %v5034_v48, -inf }
 0x967   :  { %v5159_v0 = vsel %vm5035_vm2, %v5157_v31, -inf  ;;  %v5036_v61 = vsel %vm5035_vm2, %v5033_v3, -inf }
 0x968   :  { %5160 = vmax.xlane.f32.xlu0 %v5159_v0 }
 0x96c   :  { %5163 = vmax.xlane.f32.xlu0 %v5162_v33 }
 0x982   :  { %5181 = vrot.lane.b32.xlu0 %v12380_v39, %s10439_s4 }
 0x9f5   :  { %v5161_v57 = vpop.xlane.xlu0 %5160 }
 0x9f6   :  { %v5165_v40 = vsub.f32 %v5157_v31, %v5161_v57 }
 0x9f8   :  { %v5167_v2 = vmul.f32 1.442695, %v5165_v40 }
 0x9f9   :  { %v5164_v8 = vpop.xlane.xlu0 %5163 }
 0x9fa   :  { %9991 = vpow2.f32 %v5167_v2  ;;  %v5166_v23 = vsub.f32 %v5158_v21, %v5164_v8 }
 0x9fc   :  { %v5169_v32 = vmul.f32 1.442695, %v5166_v23 }
 0x9fd   :  { %v12434_v44 = vpop.permute.xlu0 %5181 }
 0x9fe   :  { %9993 = vpow2.f32 %v5169_v32  ;;  %v5184_v9 = vmul.f32 %v12434_v44, %v12382_v24  ;;  %v5185_v1 = vmul.f32 %v12434_v44, %v12374_v42 }
 0xa00   :  { %v9927_v14 = vpack.i.bf16 %v5185_v1, %v5184_v9 }
 0xa04   :  { %v9992_v16 = vpop.eup %9991 }
 0xa05   :  { %v5171_v62 = vsel %vm5035_vm2, %v9992_v16, 0.0 }
 0xa06   :  { %5172 = vadd.xlane.f32.xlu1 %v5171_v62 }
 0xa08   :  { %v9994_v55 = vpop.eup %9993 }
 0xa09   :  { %v5174_v60 = vsel %vm5039_vm3, %v9994_v55, 0.0 }
 0xa0a   :  { %5175 = vadd.xlane.f32.xlu0 %v5174_v60 }
 0xa0e   :  { %5037 = vmax.xlane.f32.xlu0 %v5036_v61 }
 0xa12   :  { %5041 = vmax.xlane.f32.xlu0 %v5040_v25 }
 0xa17   :  { %9928 = vrot.lane.b32.xlu1 %v9927_v14, %s10440_s21 }
 0xa93   :  { %v5173_v41 = vpop.xlane.xlu1 %5172 }
 0xa94   :  { %9995 = vrcp.f32 %v5173_v41 }
 0xa97   :  { %v9929_v59 = vpop.permute.xlu1 %9928  ;;  %v5176_v53 = vpop.xlane.xlu0 %5175 }
 0xa98   :  { %v9931_v26 = vunpack.i.h.bf16 %v9929_v59  ;;  %v9930_v63 = vunpack.i.l.bf16 %v9929_v59  ;;  %9997 = vrcp.f32 %v5176_v53 }
 0xa9a   :  { %v9618_v38 = vpack.c.bf16 %v9931_v26, %v9930_v63 }
 0xa9b   :  { %v5038_v11 = vpop.xlane.xlu0 %5037 }
 0xa9c   :  { %9620 = vmatprep.subr.msk.bf16.mxu0 %vm12444_vm4, %v9618_v38  ;;  %v5043_v21 = vsub.f32 %v5033_v3, %v5038_v11 }
 0xa9d   :  { %9623 = vmatpush3.bf16.msk.msra.mxu0 %vm12444_vm4, %v9618_v38 }
 0xa9e   :  { %v9996_v46 = vpop.eup %9995  ;;  %9632 = vmatprep.subr.msk.bf16.mxu0 %vm12395_vm0, %v12399_v34  ;;  %v5045_v0 = vmul.f32 1.442695, %v5043_v21 }
 0xa9f   :  { %v5179_v5 = vmul.f32 %v9996_v46, %v9992_v16  ;;  %v5042_v58 = vpop.xlane.xlu0 %5041 }
 0xaa0   :  { %v5044_v50 = vsub.f32 %v5034_v48, %v5042_v58 }
 0xaa1   :  { %9067 = vmatprep.mubr.msk.f32.mxu0 %vm5035_vm2, %v5179_v5 }
 0xaa2   :  { %v9998_v7 = vpop.eup %9997  ;;  %v5047_v43 = vmul.f32 1.442695, %v5044_v50 }
 0xaa3   :  { %v5180_v51 = vmul.f32 %v9998_v7, %v9994_v55 }
 0xaa4   :  { %9999 = vpow2.f32 %v5047_v43 }
 0xaa5   :  { %9068 = vmatmul.mubr.msk.f32.vlgmr.msra.gmra.mrb[20].mxu0 %vm5035_vm2, %v5180_v51  ;;  %10001 = vpow2.f32 %v5045_v0 }
 0xaa6   :  { %9635 = vmatpush3.bf16.xpose.msk.msra.mxu0 %vm12395_vm0, %v12399_v34  ;;  %9081 = vmatprep.mubr.msk.f32.mxu0 %vm4782_vm12, %v5374_v35 }
 0xaad   :  { %9082 = vmatmul.mubr.msk.f32.vlgmr.msra.gmra.mrb[22].mxu0 %vm4782_vm12, %v5375_v27 }
 0xaae   :  { %v10000_v36 = vpop.eup %9999 }
 0xaaf   :  { %v5052_v31 = vsel %vm5039_vm3, %v10000_v36, 0.0  ;;  %v10002_v33 = vpop.eup %10001 }
 0xab0   :  { %v5049_v57 = vsel %vm5035_vm2, %v10002_v33, 0.0 }
 0xb78   :  { %v12469_v30 = vpop.f32.mrb[20].mxu0 }
 0xb79   :  { %v12471_v18 = vpop.f32.mrb[21].mxu0 }
 0xb80   :  { %v9083_v4 = vpop.f32.mrb[22].mxu0 }
 0xb81   :  { %v5458_v20 = vmul.f32 0.57735026, %v9083_v4  ;;  %v5448_v19 = vpop.f32.mrb[23].mxu0 }
 0xb82   :  { %v5457_v34 = vmul.f32 0.57735026, %v5448_v19  ;;  %v5580_v19 = vld [vmem:[#allocation23] sm:$0xff] }
 0xb83   :  { %v5460_v15 = vadd.f32 %v5458_v20, %v12421_v17 }
 0xb84   :  { %v5459_v6 = vadd.f32 %v5457_v34, %v12419_v12  ;;  %v5581_v34 = vld [vmem:[#allocation23 + $0x8] sm:$0x1] }
 0xb85   :  { %v5464_v56 = vsel %vm5039_vm3, %v5460_v15, -inf }
 0xb86   :  { %5465 = vmax.xlane.f32.xlu0 %v5464_v56  ;;  %v5461_v22 = vsel %vm5035_vm2, %v5459_v6, -inf }
 0xb87   :  { %5462 = vmax.xlane.f32.xlu1 %v5461_v22 }
 0xb8b   :  { %5053 = vadd.xlane.f32.xlu1 %v5052_v31  ;;  %v8620_v31 = vld [vmem:[%s13050_s25] ss:$0 sm:$0xff] }
 0xb9c   :  { %5059 = vrot.lane.b32.xlu0 %v12377_v49, %s10439_s4 }
 0xba0   :  { %5483 = vrot.lane.b32.xlu0 %v12457_v47, %s10439_s4 }
 0xbbf   :  { %5050 = vadd.xlane.f32.xlu0 %v5049_v57 }
 0xc13   :  { %v5466_v40 = vpop.xlane.xlu0 %5465 }
 0xc14   :  { %v5468_v2 = vsub.f32 %v5460_v15, %v5466_v40  ;;  %v5463_v8 = vpop.xlane.xlu1 %5462  ;;  %v9642_v15 = vpack.c.bf16 %v5581_v34, %v5580_v19  ;;  %v8628_v19 = vld [vmem:[%s13052_s3] ss:$0 sm:$0xff] }
 0xc15   :  { %v5467_v23 = vsub.f32 %v5459_v6, %v5463_v8 }
 0xc16   :  { %v5471_v32 = vmul.f32 1.442695, %v5468_v2  ;;  %9644 = vmatprep.subr.msk.bf16.mxu0 %vm12361_vm15, %v9642_v15 }
 0xc17   :  { %v5469_v16 = vmul.f32 1.442695, %v5467_v23  ;;  %v12483_v29 = vpop.permute.xlu0 %5059  ;;  %9647 = vmatpush3.bf16.msk.msra.mxu0 %vm12361_vm15, %v9642_v15 }
 0xc18   :  { %10003 = vpow2.f32 %v5471_v32  ;;  %v5062_v9 = vmul.f32 %v12483_v29, %v12382_v24  ;;  %v5063_v1 = vmul.f32 %v12483_v29, %v12374_v42  ;;  %v5054_v26 = vpop.xlane.xlu1 %5053 }
 0xc19   :  { %10005 = vpow2.f32 %v5469_v16 }
 0xc1a   :  { %v9932_v14 = vpack.i.bf16 %v5063_v1, %v5062_v9 }
 0xc1b   :  { %v12485_v62 = vpop.permute.xlu0 %5483 }
 0xc1c   :  { %v5486_v55 = vmul.f32 %v12485_v62, %v12382_v24  ;;  %v5487_v37 = vmul.f32 %v12485_v62, %v12374_v42 }
 0xc1e   :  { %v9937_v3 = vpack.i.bf16 %v5487_v37, %v5486_v55 }
 0xc20   :  { %9938 = vrot.lane.b32.xlu0 %v9937_v3, %s10440_s21 }
 0xc22   :  { %v10004_v60 = vpop.eup %10003 }
 0xc23   :  { %v5476_v48 = vsel %vm5039_vm3, %v10004_v60, 0.0  ;;  %v10006_v61 = vpop.eup %10005 }
 0xc24   :  { %5477 = vadd.xlane.f32.xlu1 %v5476_v48  ;;  %v5473_v25 = vsel %vm5035_vm2, %v10006_v61, 0.0  ;;  %v5721_v48 = vld [vmem:[#allocation24] sm:$0xff] }
 0xc28   :  { %5474 = vadd.xlane.f32.xlu1 %v5473_v25 }
 0xc39   :  { %9933 = vrot.lane.b32.xlu1 %v9932_v14, %s10440_s21 }
 0xc4c   :  { %v5051_v41 = vpop.xlane.xlu0 %5050 }
 0xc4d   :  { %10007 = vrcp.f32 %v5051_v41 }
 0xc4e   :  { %10009 = vrcp.f32 %v5054_v26 }
 0xc57   :  { %v10008_v59 = vpop.eup %10007 }
 0xc58   :  { %v5057_v53 = vmul.f32 %v10008_v59, %v10002_v33  ;;  %v10010_v27 = vpop.eup %10009 }
 0xc59   :  { %v5058_v50 = vmul.f32 %v10010_v27, %v10000_v36  ;;  %v5832_v27 = vld [vmem:[%s13051_s7] sm:$0xff] }
 0xc5a   :  { %9074 = vmatprep.mubr.msk.f32.mxu1 %vm5035_vm2, %v5057_v53 }
 0xc92   :  { %v9939_v46 = vpop.permute.xlu0 %9938 }
 0xc93   :  { %v9941_v24 = vunpack.i.h.bf16 %v9939_v46  ;;  %v9940_v7 = vunpack.i.l.bf16 %v9939_v46  ;;  %v8627_v46 = vld [vmem:[%s13043_s13 + $0x1] ss:$0 sm:$0xff] }
 0xc95   :  { %v9636_v11 = vpack.c.bf16 %v9941_v24, %v9940_v7 }
 0xcb1   :  { %v5478_v63 = vpop.xlane.xlu1 %5477 }
 0xcb5   :  { %v5475_v38 = vpop.xlane.xlu1 %5474 }
 0xcb6   :  { %10011 = vrcp.f32 %v5475_v38 }
 0xcb7   :  { %10013 = vrcp.f32 %v5478_v63  ;;  %v8626_v63 = vld [vmem:[%s10524_s18 + $0x1] ss:$0 sm:$0xff] }
 0xcb9   :  { %v9934_v5 = vpop.permute.xlu1 %9933 }
 0xcba   :  { %v9936_v51 = vunpack.i.h.bf16 %v9934_v5  ;;  %v9935_v42 = vunpack.i.l.bf16 %v9934_v5 }
 0xcbc   :  { %v9624_v35 = vpack.c.bf16 %v9936_v51, %v9935_v42 }
 0xcbe   :  { %9626 = vmatprep.subr.msk.bf16.mxu1 %vm12444_vm4, %v9624_v35 }
 0xcbf   :  { %9629 = vmatpush3.bf16.msk.msra.mxu1 %vm12444_vm4, %v9624_v35 }
 0xcc0   :  { %v10012_v58 = vpop.eup %10011  ;;  %9638 = vmatprep.subr.msk.bf16.mxu1 %vm12444_vm4, %v9636_v11 }
 0xcc1   :  { %v5481_v43 = vmul.f32 %v10012_v58, %v10006_v61  ;;  %v10014_v4 = vpop.eup %10013  ;;  %v5722_v61 = vld [vmem:[#allocation24 + $0x8] sm:$0x1] }
 0xcc2   :  { %9075 = vmatmul.mubr.msk.f32.vlgmr.msra.gmra.mrb[18].mxu1 %vm5035_vm2, %v5058_v50  ;;  %v5482_v20 = vmul.f32 %v10014_v4, %v10004_v60  ;;  %v9648_v25 = vpack.c.bf16 %v5722_v61, %v5721_v48  ;;  %v5834_v50 = vld [vmem:[%s13051_s7 + $0x10] sm:$0xff]  ;;  %v8635_v48 = vld [vmem:[%s13053_s0] ss:$0 sm:$0xff] }
 0xcc3   :  { %9641 = vmatpush3.bf16.msk.msra.mxu1 %vm12444_vm4, %v9636_v11  ;;  %9088 = vmatprep.mubr.msk.f32.mxu1 %vm5035_vm2, %v5481_v43  ;;  %v5833_v11 = vld [vmem:[%s13051_s7 + $0x8] sm:$0xff]  ;;  %v5835_v43 = vld [vmem:[%s13051_s7 + $0x18] sm:$0xff] }
 0xcc4   :  { %9650 = vmatprep.subr.msk.bf16.mxu1 %vm12361_vm15, %v9648_v25  ;;  %v9654_v58 = vpack.c.bf16 %v5833_v11, %v5832_v27  ;;  %v9658_v4 = vpack.c.bf16 %v5835_v43, %v5834_v50 }
 0xcc6   :  { %9655 = vmatprep.subr.bf16.mxu0 %v9654_v58 }
 0xcca   :  { %9089 = vmatmul.mubr.msk.f32.vlgmr.msra.gmra.mrb[18].mxu1 %vm5035_vm2, %v5482_v20  ;;  %v5836_v20 = vld [vmem:[%s13051_s7 + $0x20] sm:$0xf] }
 0xccb   :  { %9653 = vmatpush3.bf16.msk.msra.mxu1 %vm12361_vm15, %v9648_v25 }
 0xd9d   :  { %v9090_v6 = vpop.f32.mrb[18].mxu1 }
 0xd9e   :  { %v9808_v56 = vadd.f32 %v9090_v6, %v12469_v30  ;;  %v5569_v22 = vpop.f32.mrb[19].mxu1 }
 0xd9f   :  { %v9809_v36 = vadd.f32 %v5569_v22, %v12471_v18 }
 0xda1   :  { %9095 = vmatprep.mubr.msk.f32.mxu0 %vm4782_vm12, %v9809_v36 }
 0xda2   :  { %9096 = vmatmul.mubr.msk.f32.vlgmr.msra.gmra.mrb[24].mxu0 %vm4782_vm12, %v9808_v56 }
 0xda3   :  { %9657 = vmatpush3.bf16.msra.mxu0 %v9654_v58 }
 0xda4   :  { %9659 = vmatprep.subr.bf16.mxu0 %v9658_v4 }
 0xda7   :  { %9661 = vmatpush3.bf16.msra.mxu0 %v9658_v4 }
 0xda8   :  { %9113 = vmatprep.subr.msk.mxu0 %vm5844_vm5, %v5836_v20 }
 0xdab   :  { %9114 = vmatpush3.msk.msra.mxu0 %vm5844_vm5, %v5836_v20 }
 0xe75   :  { %v9097_v21 = vpop.f32.mrb[24].mxu0 }
 0xe76   :  { %v5670_v0 = vadd.f32 %v9097_v21, %v8620_v31  ;;  %v5664_v33 = vpop.f32.mrb[25].mxu0 }
 0xe77   :  { %v5665_v57 = vadd.f32 %v8620_v31, %v5664_v33 }
 0xe78   :  { %v12521_v40 = vadd.f32 %v5670_v0, %v12348_v10 }
 0xe79   :  { %v12524_v2 = vadd.f32 %v5665_v57, %v12350_v13 }
 0xe7a   :  { %v5682_v30 = vsel %vm4780_vm11, %v12521_v40, 0.0 }
 0xe7b   :  { %5683 = vadd.xlane.f32.xlu0 %v5682_v30  ;;  %v5679_v18 = vsel %vm4782_vm12, %v12524_v2, 0.0 }
 0xe7c   :  { %5680 = vadd.xlane.f32.xlu1 %v5679_v18 }
 0xf08   :  { %v5684_v8 = vpop.xlane.xlu0 %5683 }
 0xf09   :  { %v5686_v23 = vmul.f32 0.11111111, %v5684_v8  ;;  %v5681_v32 = vpop.xlane.xlu1 %5680 }
 0xf0a   :  { %v5685_v16 = vmul.f32 0.11111111, %v5681_v32 }
 0xf0b   :  { %v5688_v55 = vsub.f32 %v12521_v40, %v5686_v23 }
 0xf0c   :  { %v5687_v10 = vsub.f32 %v12524_v2, %v5685_v16 }
 0xf0d   :  { %v5690_v3 = vmul.f32 %v5688_v55, %v5688_v55 }
 0xf0e   :  { %v5689_v37 = vmul.f32 %v5687_v10, %v5687_v10 }
 0xf0f   :  { %v5694_v60 = vsel %vm4780_vm11, %v5690_v3, 0.0 }
 0xf10   :  { %v5691_v13 = vsel %vm4782_vm12, %v5689_v37, 0.0 }
 0xf11   :  { %5692 = vadd.xlane.f32.xlu1 %v5691_v13 }
 0xf15   :  { %5695 = vadd.xlane.f32.xlu1 %v5694_v60 }
 0xf9e   :  { %v5693_v9 = vpop.xlane.xlu1 %5692 }
 0xf9f   :  { %v5697_v1 = vmul.f32 0.11111111, %v5693_v9 }
 0xfa1   :  { %v5699_v14 = vadd.f32 1e-05, %v5697_v1 }
 0xfa2   :  { %v5696_v41 = vpop.xlane.xlu1 %5695 }
 0xfa3   :  { %10015 = vrsqrt.f32 %v5699_v14  ;;  %v5698_v59 = vmul.f32 0.11111111, %v5696_v41 }
 0xfa5   :  { %v5700_v53 = vadd.f32 1e-05, %v5698_v59 }
 0xfa7   :  { %10017 = vrsqrt.f32 %v5700_v53 }
 0xfad   :  { %v10016_v26 = vpop.eup %10015 }
 0xfae   :  { %v5703_v38 = vmul.f32 %v10016_v26, %v5687_v10 }
 0xfb0   :  { %v5711_v5 = vmul.f32 %v8626_v63, %v5703_v38 }
 0xfb1   :  { %v10018_v24 = vpop.eup %10017 }
 0xfb2   :  { %v5704_v7 = vmul.f32 %v10018_v24, %v5688_v55  ;;  %v5719_v51 = vadd.f32 %v8627_v46, %v5711_v5 }
 0xfb4   :  { %v5712_v42 = vmul.f32 %v8626_v63, %v5704_v7  ;;  %9102 = vmatprep.mubr.msk.f32.mxu1 %vm4782_vm12, %v5719_v51  ;;  %v5981_v51 = vld [vmem:[#allocation21 + $0x10] sm:$0xff] }
 0xfb6   :  { %v5720_v35 = vadd.f32 %v8627_v46, %v5712_v42  ;;  %v5982_v42 = vld [vmem:[#allocation21 + $0x18] sm:$0x1] }
 0xfb8   :  { %9103 = vmatmul.mubr.msk.f32.vlgmr.msra.gmra.mrb[20].mxu1 %vm4782_vm12, %v5720_v35  ;;  %v9662_v35 = vpack.c.bf16 %v5982_v42, %v5981_v51 }
 0xfba   :  { %9664 = vmatprep.subr.msk.bf16.mxu1 %vm12361_vm15, %v9662_v35 }
 0xfbb   :  { %9667 = vmatpush3.bf16.msk.msra.mxu1 %vm12361_vm15, %v9662_v35 }
0x108b   :  { %v9104_v34 = vpop.f32.mrb[20].mxu1 }
0x108c   :  { %v5811_v15 = vadd.f32 %v9104_v34, %v8628_v19  ;;  %v5805_v6 = vpop.f32.mrb[21].mxu1 }
0x108d   :  { %v5806_v56 = vadd.f32 %v8628_v19, %v5805_v6  ;;  %v8638_v19 = vld [vmem:[%s10524_s18 + $0x2] ss:$0 sm:$0xff] }
0x108e   :  { %v5815_v22 = vmul.f32 %v5811_v15, %v5811_v15 }
0x108f   :  { %v5814_v36 = vmul.f32 %v5806_v56, %v5806_v56 }
0x1090   :  { %v5817_v31 = vmul.f32 %v5815_v22, %v5811_v15 }
0x1091   :  { %v5816_v21 = vmul.f32 %v5814_v36, %v5806_v56 }
0x1092   :  { %v5819_v0 = vmul.f32 0.044715, %v5817_v31 }
0x1093   :  { %v5818_v33 = vmul.f32 0.044715, %v5816_v21 }
0x1094   :  { %v5821_v57 = vadd.f32 %v5819_v0, %v5811_v15  ;;  %v8641_v0 = vld [vmem:[%s13044_s28 + $0x1] ss:$0 sm:$0xff] }
0x1095   :  { %v5820_v30 = vadd.f32 %v5818_v33, %v5806_v56 }
0x1096   :  { %v5823_v18 = vmul.f32 0.7978846, %v5821_v57 }
0x1097   :  { %v5822_v8 = vmul.f32 0.7978846, %v5820_v30 }
0x1098   :  { %10019 = vtanh.f32 %v5823_v18 }
0x1099   :  { %10021 = vtanh.f32 %v5822_v8 }
0x10a2   :  { %v10020_v23 = vpop.eup %10019 }
0x10a3   :  { %v10022_v32 = vpop.eup %10021  ;;  %v5827_v16 = vadd.f32 1.0, %v10020_v23 }
0x10a4   :  { %v5826_v55 = vadd.f32 1.0, %v10022_v32 }
0x10a5   :  { %v5829_v10 = vmul.f32 0.5, %v5827_v16 }
0x10a6   :  { %v5828_v37 = vmul.f32 0.5, %v5826_v55 }
0x10a7   :  { %v5831_v3 = vmul.f32 %v5829_v10, %v5811_v15  ;;  %v8639_v15 = vld [vmem:[%s13043_s13 + $0x2] ss:$0 sm:$0xff] }
0x10a8   :  { %v5830_v13 = vmul.f32 %v5828_v37, %v5806_v56 }
0x10aa   :  { %9115 = vmatprep.mubr.msk.f32.mxu0 %vm5837_vm6, %v5830_v13 }
0x10ab   :  { %9116 = vmatmul.mubr.msk.f32.vlgmr.msra.gmra.mrb[26].mxu0 %vm5837_vm6, %v5831_v3 }
0x117e   :  { %v9117_v60 = vpop.f32.mrb[26].mxu0 }
0x117f   :  { %v5914_v61 = vpop.f32.mrb[27].mxu0  ;;  %v5924_v25 = vadd.f32 %v9117_v60, %v12521_v40 }
0x1180   :  { %v5923_v9 = vadd.f32 %v5914_v61, %v12524_v2 }
0x1181   :  { %v12557_v14 = vadd.f32 %v8635_v48, %v5924_v25 }
0x1182   :  { %v12555_v1 = vadd.f32 %v8635_v48, %v5923_v9 }
0x1183   :  { %v5941_v59 = vsel %vm4780_vm11, %v12557_v14, 0.0 }
0x1184   :  { %v5938_v41 = vsel %vm4782_vm12, %v12555_v1, 0.0 }
0x1185   :  { %5939 = vadd.xlane.f32.xlu1 %v5938_v41 }
0x1189   :  { %5942 = vadd.xlane.f32.xlu1 %v5941_v59 }
0x1212   :  { %v5940_v53 = vpop.xlane.xlu1 %5939 }
0x1213   :  { %v5944_v26 = vmul.f32 0.11111111, %v5940_v53 }
0x1215   :  { %v5946_v63 = vsub.f32 %v12555_v1, %v5944_v26 }
0x1216   :  { %v5943_v38 = vpop.xlane.xlu1 %5942 }
0x1217   :  { %v5945_v40 = vmul.f32 0.11111111, %v5943_v38  ;;  %v5948_v46 = vmul.f32 %v5946_v63, %v5946_v63 }
0x1219   :  { %v5947_v2 = vsub.f32 %v12557_v14, %v5945_v40  ;;  %v5950_v5 = vsel %vm4782_vm12, %v5948_v46, 0.0 }
0x121a   :  { %5951 = vadd.xlane.f32.xlu0 %v5950_v5 }
0x121b   :  { %v5949_v24 = vmul.f32 %v5947_v2, %v5947_v2 }
0x121d   :  { %v5953_v7 = vsel %vm4780_vm11, %v5949_v24, 0.0 }
0x121e   :  { %5954 = vadd.xlane.f32.xlu1 %v5953_v7 }
0x12a7   :  { %v5952_v27 = vpop.xlane.xlu0 %5951 }
0x12a8   :  { %v5956_v11 = vmul.f32 0.11111111, %v5952_v27 }
0x12aa   :  { %v5958_v58 = vadd.f32 1e-05, %v5956_v11 }
0x12ab   :  { %v5955_v50 = vpop.xlane.xlu1 %5954 }
0x12ac   :  { %10023 = vrsqrt.f32 %v5958_v58  ;;  %v5957_v43 = vmul.f32 0.11111111, %v5955_v50 }
0x12ae   :  { %v5959_v4 = vadd.f32 1e-05, %v5957_v43 }
0x12b0   :  { %10025 = vrsqrt.f32 %v5959_v4 }
0x12b6   :  { %v10024_v20 = vpop.eup %10023 }
0x12b7   :  { %v5962_v34 = vmul.f32 %v10024_v20, %v5946_v63 }
0x12b9   :  { %v5970_v6 = vmul.f32 %v8638_v19, %v5962_v34 }
0x12ba   :  { %v10026_v56 = vpop.eup %10025 }
0x12bb   :  { %v5963_v22 = vmul.f32 %v10026_v56, %v5947_v2  ;;  %v5978_v36 = vadd.f32 %v8639_v15, %v5970_v6 }
0x12bd   :  { %v5971_v31 = vmul.f32 %v8638_v19, %v5963_v22  ;;  %9122 = vmatprep.mubr.msk.f32.mxu1 %vm4782_vm12, %v5978_v36 }
0x12bf   :  { %v5979_v21 = vadd.f32 %v8639_v15, %v5971_v31 }
0x12c1   :  { %9123 = vmatmul.mubr.msk.f32.vlgmr.msra.gmra.mrb[22].mxu1 %vm4782_vm12, %v5979_v21 }
0x1394   :  { %v9124_v33 = vpop.f32.mrb[22].mxu1 }
0x1395   :  { %v6072_v57 = vadd.f32 %v9124_v33, %v8641_v0  ;;  %v6066_v30 = vpop.f32.mrb[23].mxu1 }
0x1396   :  { %v6067_v18 = vadd.f32 %v8641_v0, %v6066_v30 }
0x1397   :  { %v12577_v8 = vmul.f32 %v6072_v57, %v12434_v44  ;;  %v12586_v37 = vmul.f32 %v6072_v57, %v12483_v29  ;;  %v12594_v3 = vmul.f32 %v6072_v57, %v12485_v62  ;;  %v6076_v53 = vmul.f32 %v12377_v49, %v6072_v57 }
0x1398   :  { %v9942_v23 = vpack.i.bf16 %v6072_v57, %v6067_v18  ;;  %v6075_v32 = vmul.f32 %v12377_v49, %v6067_v18  ;;  %v6196_v16 = vmul.f32 %v12380_v39, %v6067_v18  ;;  %v6305_v55 = vmul.f32 %v6067_v18, %v12434_v44 }
0x1399   :  { %v12583_v10 = vmul.f32 %v6067_v18, %v12483_v29  ;;  %v12589_v13 = vmul.f32 %v6067_v18, %v12485_v62  ;;  %v6197_v26 = vmul.f32 %v12380_v39, %v6072_v57  ;;  %v6487_v63 = vmul.f32 %v12457_v47, %v6067_v18 }
0x139a   :  { %9943 = vrot.lane.b32.xlu0 %v9942_v23, %s10438_s1  ;;  %9129 = vmatprep.mubr.msk.f32.mxu1 %vm4782_vm12, %v6075_v32  ;;  %v9947_v60 = vpack.i.bf16 %v12577_v8, %v6305_v55  ;;  %v6488_v38 = vmul.f32 %v12457_v47, %v6072_v57 }
0x139b   :  { %9136 = vmatprep.mubr.msk.f32.mxu0 %vm4782_vm12, %v6196_v16  ;;  %v9952_v48 = vpack.i.bf16 %v12586_v37, %v12583_v10  ;;  %v9957_v61 = vpack.i.bf16 %v12594_v3, %v12589_v13 }
0x140c   :  { %v9944_v25 = vpop.permute.xlu0 %9943 }
0x140d   :  { %v9946_v9 = vunpack.i.h.bf16 %v9944_v25  ;;  %v9945_v41 = vunpack.i.l.bf16 %v9944_v25 }
0x140f   :  { %v9668_v59 = vpack.c.bf16 %v9946_v9, %v9945_v41 }
0x1411   :  { %9670 = vmatprep.subr.msk.bf16.mxu1 %vm12395_vm0, %v9668_v59  ;;  %9676 = vmatprep.subr.msk.bf16.mxu0 %vm12395_vm0, %v9668_v59 }
0x1412   :  { %9673 = vmatpush3.bf16.xpose.msk.msra.mxu1 %vm12395_vm0, %v9668_v59  ;;  %9679 = vmatpush3.bf16.xpose.msk.msra.mxu0 %vm12395_vm0, %v9668_v59 }
0x1413   :  { %9694 = vmatprep.subr.msk.bf16.mxu0 %vm12395_vm0, %v9668_v59 }
0x1419   :  { %9130 = vmatmul.mubr.msk.f32.vlgmr.msra.gmra.mrb[24].mxu1 %vm4782_vm12, %v6076_v53  ;;  %9137 = vmatmul.mubr.msk.f32.vlgmr.msra.gmra.mrb[28].mxu0 %vm4782_vm12, %v6197_v26 }
0x141a   :  { %9697 = vmatpush3.bf16.xpose.msk.msra.mxu0 %vm12395_vm0, %v9668_v59  ;;  %9157 = vmatprep.mubr.msk.f32.mxu0 %vm4782_vm12, %v6487_v63 }
0x1421   :  { %9158 = vmatmul.mubr.msk.f32.vlgmr.msra.gmra.mrb[30].mxu0 %vm4782_vm12, %v6488_v38 }
0x14ec   :  { %v9131_v40 = vpop.f32.mrb[24].mxu1  ;;  %v9138_v46 = vpop.f32.mrb[28].mxu0 }
0x14ed   :  { %v6159_v49 = vpop.f32.mrb[25].mxu1  ;;  %v6270_v2 = vpop.f32.mrb[29].mxu0  ;;  %v6280_v39 = vmul.f32 0.57735026, %v9138_v46  ;;  %v6169_v11 = vmul.f32 0.57735026, %v9131_v40 }
0x14ee   :  { %v6279_v5 = vmul.f32 0.57735026, %v6270_v2  ;;  %v6168_v51 = vmul.f32 0.57735026, %v6159_v49 }
0x14ef   :  { %v6282_v7 = vadd.f32 %v6280_v39, %v12421_v17  ;;  %v6171_v50 = vadd.f32 %v6169_v11, %v12421_v17 }
0x14f0   :  { %v6281_v24 = vadd.f32 %v6279_v5, %v12419_v12  ;;  %v6170_v47 = vadd.f32 %v6168_v51, %v12419_v12 }
0x14f1   :  { %v6286_v58 = vsel %vm5039_vm3, %v6282_v7, -inf  ;;  %v6175_v34 = vsel %vm5039_vm3, %v6171_v50, -inf }
0x14f2   :  { %v6283_v42 = vsel %vm5035_vm2, %v6281_v24, -inf  ;;  %v6172_v4 = vsel %vm5035_vm2, %v6170_v47, -inf }
0x14f3   :  { %6284 = vmax.xlane.f32.xlu1 %v6283_v42 }
0x14f4   :  { %v9159_v35 = vpop.f32.mrb[30].mxu0 }
0x14f5   :  { %v6561_v27 = vpop.f32.mrb[31].mxu0  ;;  %v6571_v20 = vmul.f32 0.57735026, %v9159_v35 }
0x14f6   :  { %v6570_v43 = vmul.f32 0.57735026, %v6561_v27 }
0x14f7   :  { %6287 = vmax.xlane.f32.xlu1 %v6286_v58  ;;  %v6573_v15 = vadd.f32 %v6571_v20, %v12421_v17 }
0x14f8   :  { %v6572_v19 = vadd.f32 %v6570_v43, %v12419_v12 }
0x14f9   :  { %v6577_v56 = vsel %vm5039_vm3, %v6573_v15, -inf }
0x14fa   :  { %v6574_v6 = vsel %vm5035_vm2, %v6572_v19, -inf }
0x14fb   :  { %6173 = vmax.xlane.f32.xlu1 %v6172_v4 }
0x14ff   :  { %6176 = vmax.xlane.f32.xlu1 %v6175_v34 }
0x1503   :  { %6575 = vmax.xlane.f32.xlu1 %v6574_v6  ;;  %v6692_v6 = vld [vmem:[#allocation23 + $0x18] sm:$0x1] }
0x1507   :  { %6578 = vmax.xlane.f32.xlu1 %v6577_v56 }
0x1518   :  { %9948 = vrot.lane.b32.xlu1 %v9947_v60, %s10440_s21 }
0x1580   :  { %v6285_v22 = vpop.xlane.xlu1 %6284 }
0x1581   :  { %v6289_v36 = vsub.f32 %v6281_v24, %v6285_v22 }
0x1583   :  { %v6291_v31 = vmul.f32 1.442695, %v6289_v36 }
0x1584   :  { %v6288_v21 = vpop.xlane.xlu1 %6287 }
0x1585   :  { %10027 = vpow2.f32 %v6291_v31  ;;  %v6290_v0 = vsub.f32 %v6282_v7, %v6288_v21 }
0x1587   :  { %v6293_v12 = vmul.f32 1.442695, %v6290_v0 }
0x1588   :  { %v6174_v33 = vpop.xlane.xlu1 %6173 }
0x1589   :  { %10029 = vpow2.f32 %v6293_v12  ;;  %v6178_v57 = vsub.f32 %v6170_v47, %v6174_v33 }
0x158b   :  { %v6180_v8 = vmul.f32 1.442695, %v6178_v57 }
0x158c   :  { %v6177_v30 = vpop.xlane.xlu1 %6176 }
0x158d   :  { %v6179_v17 = vsub.f32 %v6171_v50, %v6177_v30 }
0x158f   :  { %v10028_v18 = vpop.eup %10027  ;;  %v6182_v23 = vmul.f32 1.442695, %v6179_v17 }
0x1590   :  { %v6576_v32 = vpop.xlane.xlu1 %6575  ;;  %v6295_v16 = vsel %vm5035_vm2, %v10028_v18, 0.0 }
0x1591   :  { %10031 = vpow2.f32 %v6182_v23  ;;  %6296 = vadd.xlane.f32.xlu0 %v6295_v16  ;;  %v6580_v60 = vsub.f32 %v6572_v19, %v6576_v32 }
0x1592   :  { %10033 = vpow2.f32 %v6180_v8 }
0x1593   :  { %v10030_v55 = vpop.eup %10029  ;;  %v6582_v59 = vmul.f32 1.442695, %v6580_v60 }
0x1594   :  { %v6579_v25 = vpop.xlane.xlu1 %6578  ;;  %v6298_v9 = vsel %vm5039_vm3, %v10030_v55, 0.0 }
0x1595   :  { %v6581_v41 = vsub.f32 %v6573_v15, %v6579_v25  ;;  %6299 = vadd.xlane.f32.xlu1 %v6298_v9  ;;  %v6691_v15 = vld [vmem:[#allocation23 + $0x10] sm:$0xff] }
0x1596   :  { %v9704_v21 = vpack.c.bf16 %v6692_v6, %v6691_v15  ;;  %v8684_v15 = vld [vmem:[%s13051_s7 + $0x48] sm:$0xf]  ;;  %v8676_v6 = vld [vmem:[%s13052_s3 + $0x1] ss:$0 sm:$0xff] }
0x1597   :  { %v6584_v53 = vmul.f32 1.442695, %v6581_v41 }
0x1598   :  { %v9949_v26 = vpop.permute.xlu1 %9948 }
0x1599   :  { %10035 = vpow2.f32 %v6584_v53  ;;  %v9951_v63 = vunpack.i.h.bf16 %v9949_v26  ;;  %v9950_v38 = vunpack.i.l.bf16 %v9949_v26 }
0x159a   :  { %10037 = vpow2.f32 %v6582_v59 }
0x159b   :  { %v10032_v40 = vpop.eup %10031  ;;  %v9680_v46 = vpack.c.bf16 %v9951_v63, %v9950_v38 }
0x159c   :  { %v6187_v49 = vsel %vm5039_vm3, %v10032_v40, 0.0  ;;  %v10034_v2 = vpop.eup %10033 }
0x159d   :  { %6188 = vadd.xlane.f32.xlu1 %v6187_v49  ;;  %9682 = vmatprep.subr.msk.bf16.mxu1 %vm12444_vm4, %v9680_v46  ;;  %v6184_v39 = vsel %vm5035_vm2, %v10034_v2, 0.0  ;;  %v6834_v49 = vld [vmem:[#allocation24 + $0x10] sm:$0xff] }
0x159e   :  { %9685 = vmatpush3.bf16.msk.msra.mxu1 %vm12444_vm4, %v9680_v46 }
0x15a1   :  { %6185 = vadd.xlane.f32.xlu1 %v6184_v39 }
0x15a3   :  { %v10036_v5 = vpop.eup %10035 }
0x15a4   :  { %v6589_v24 = vsel %vm5039_vm3, %v10036_v5, 0.0  ;;  %v10038_v7 = vpop.eup %10037 }
0x15a5   :  { %6590 = vadd.xlane.f32.xlu1 %v6589_v24  ;;  %v6586_v51 = vsel %vm5035_vm2, %v10038_v7, 0.0 }
0x15a7   :  { %9953 = vrot.lane.b32.xlu0 %v9952_v48, %s10440_s21 }
0x15a9   :  { %6587 = vadd.xlane.f32.xlu1 %v6586_v51 }
0x15ba   :  { %9958 = vrot.lane.b32.xlu1 %v9957_v61, %s10440_s21 }
0x161e   :  { %v6297_v42 = vpop.xlane.xlu0 %6296 }
0x161f   :  { %10039 = vrcp.f32 %v6297_v42 }
0x1622   :  { %v9954_v35 = vpop.permute.xlu0 %9953  ;;  %v6300_v27 = vpop.xlane.xlu1 %6299 }
0x1623   :  { %v9956_v11 = vunpack.i.h.bf16 %v9954_v35  ;;  %v9955_v47 = vunpack.i.l.bf16 %v9954_v35  ;;  %10041 = vrcp.f32 %v6300_v27 }
0x1625   :  { %v9686_v58 = vpack.c.bf16 %v9956_v11, %v9955_v47  ;;  %v8673_v11 = vld [vmem:[%s10524_s18 + $0x3] ss:$0 sm:$0xff] }
0x1627   :  { %9688 = vmatprep.subr.msk.bf16.mxu1 %vm12444_vm4, %v9686_v58 }
0x1629   :  { %v10040_v10 = vpop.eup %10039 }
0x162a   :  { %v6189_v37 = vpop.xlane.xlu1 %6188  ;;  %v6303_v48 = vmul.f32 %v10040_v10, %v10028_v18  ;;  %v8667_v18 = vld [vmem:[%s13050_s25 + $0x1] ss:$0 sm:$0xff] }
0x162b   :  { %10043 = vrcp.f32 %v6189_v37  ;;  %v8674_v37 = vld [vmem:[%s13043_s13 + $0x3] ss:$0 sm:$0xff] }
0x162c   :  { %9143 = vmatprep.mubr.msk.f32.mxu1 %vm5035_vm2, %v6303_v48 }
0x162d   :  { %v10042_v50 = vpop.eup %10041 }
0x162e   :  { %v6304_v43 = vmul.f32 %v10042_v50, %v10030_v55  ;;  %v6186_v13 = vpop.xlane.xlu1 %6185 }
0x162f   :  { %10045 = vrcp.f32 %v6186_v13 }
0x1630   :  { %9144 = vmatmul.mubr.msk.f32.vlgmr.msra.gmra.mrb[26].mxu1 %vm5035_vm2, %v6304_v43 }
0x1631   :  { %9691 = vmatpush3.bf16.msk.msra.mxu1 %vm12444_vm4, %v9686_v58 }
0x1632   :  { %v6591_v3 = vpop.xlane.xlu1 %6590 }
0x1633   :  { %10047 = vrcp.f32 %v6591_v3  ;;  %v8680_v3 = vld [vmem:[%s13051_s7 + $0x28] sm:$0xff] }
0x1635   :  { %v10044_v4 = vpop.eup %10043 }
0x1636   :  { %v6588_v61 = vpop.xlane.xlu1 %6587  ;;  %v6193_v56 = vmul.f32 %v10044_v4, %v10032_v40 }
0x1637   :  { %10049 = vrcp.f32 %v6588_v61  ;;  %v8681_v61 = vld [vmem:[%s13051_s7 + $0x30] sm:$0xff] }
0x1638   :  { %v9716_v4 = vpack.c.bf16 %v8681_v61, %v8680_v3 }
0x1639   :  { %v10046_v20 = vpop.eup %10045 }
0x163a   :  { %v9959_v19 = vpop.permute.xlu1 %9958  ;;  %v6192_v34 = vmul.f32 %v10046_v20, %v10034_v2  ;;  %v6835_v2 = vld [vmem:[#allocation24 + $0x18] sm:$0x1]  ;;  %v8682_v20 = vld [vmem:[%s13051_s7 + $0x38] sm:$0xff] }
0x163b   :  { %v9961_v22 = vunpack.i.h.bf16 %v9959_v19  ;;  %v9960_v36 = vunpack.i.l.bf16 %v9959_v19  ;;  %v9710_v39 = vpack.c.bf16 %v6835_v2, %v6834_v49  ;;  %v8683_v19 = vld [vmem:[%s13051_s7 + $0x40] sm:$0xff] }
0x163c   :  { %9150 = vmatprep.mubr.msk.f32.mxu1 %vm5035_vm2, %v6192_v34  ;;  %v9720_v34 = vpack.c.bf16 %v8683_v19, %v8682_v20 }
0x163d   :  { %v9698_v31 = vpack.c.bf16 %v9961_v22, %v9960_v36  ;;  %9151 = vmatmul.mubr.msk.f32.vlgmr.msra.gmra.mrb[26].mxu1 %vm5035_vm2, %v6193_v56  ;;  %v10048_v0 = vpop.eup %10047  ;;  %9712 = vmatprep.subr.msk.bf16.mxu0 %vm12361_vm15, %v9710_v39 }
0x163e   :  { %v6595_v57 = vmul.f32 %v10048_v0, %v10036_v5  ;;  %9715 = vmatpush3.bf16.msk.msra.mxu0 %vm12361_vm15, %v9710_v39 }
0x163f   :  { %9700 = vmatprep.subr.msk.bf16.mxu1 %vm12444_vm4, %v9698_v31 }
0x1640   :  { %9703 = vmatpush3.bf16.msk.msra.mxu1 %vm12444_vm4, %v9698_v31 }
0x1641   :  { %v10050_v12 = vpop.eup %10049  ;;  %9706 = vmatprep.subr.msk.bf16.mxu1 %vm12361_vm15, %v9704_v21 }
0x1642   :  { %v6594_v33 = vmul.f32 %v10050_v12, %v10038_v7 }
0x1644   :  { %9164 = vmatprep.mubr.msk.f32.mxu1 %vm5035_vm2, %v6594_v33 }
0x1645   :  { %9165 = vmatmul.mubr.msk.f32.vlgmr.msra.gmra.mrb[26].mxu1 %vm5035_vm2, %v6595_v57 }
0x1646   :  { %9709 = vmatpush3.bf16.msk.msra.mxu1 %vm12361_vm15, %v9704_v21 }
0x1647   :  { %9717 = vmatprep.subr.bf16.mxu1 %v9716_v4 }
0x1718   :  { %v9166_v30 = vpop.f32.mrb[26].mxu1 }
0x1719   :  { %v6679_v17 = vpop.f32.mrb[27].mxu1 }
0x171a   :  { %9171 = vmatprep.mubr.msk.f32.mxu1 %vm4782_vm12, %v6679_v17 }
0x171b   :  { %9172 = vmatmul.mubr.msk.f32.vlgmr.msra.gmra.mrb[28].mxu1 %vm4782_vm12, %v9166_v30 }
0x171c   :  { %9719 = vmatpush3.bf16.msra.mxu1 %v9716_v4  ;;  %v8692_v4 = vld [vmem:[%s10524_s18 + $0x4] ss:$0 sm:$0xff] }
0x171d   :  { %9721 = vmatprep.subr.bf16.mxu1 %v9720_v34 }
0x1720   :  { %9723 = vmatpush3.bf16.msra.mxu1 %v9720_v34 }
0x1721   :  { %9189 = vmatprep.subr.msk.mxu1 %vm5844_vm5, %v8684_v15 }
0x1724   :  { %9190 = vmatpush3.msk.msra.mxu1 %vm5844_vm5, %v8684_v15  ;;  %v8693_v15 = vld [vmem:[%s13043_s13 + $0x4] ss:$0 sm:$0xff] }
0x17ee   :  { %v9173_v8 = vpop.f32.mrb[28].mxu1 }
0x17ef   :  { %v6782_v23 = vadd.f32 %v9173_v8, %v8667_v18  ;;  %v6776_v32 = vpop.f32.mrb[29].mxu1 }
0x17f0   :  { %v6777_v16 = vadd.f32 %v8667_v18, %v6776_v32 }
0x17f1   :  { %v12675_v55 = vadd.f32 %v6782_v23, %v12557_v14 }
0x17f2   :  { %v12678_v60 = vadd.f32 %v6777_v16, %v12555_v1 }
0x17f3   :  { %v6794_v25 = vsel %vm4780_vm11, %v12675_v55, 0.0 }
0x17f4   :  { %6795 = vadd.xlane.f32.xlu0 %v6794_v25  ;;  %v6791_v9 = vsel %vm4782_vm12, %v12678_v60, 0.0 }
0x17f5   :  { %6792 = vadd.xlane.f32.xlu1 %v6791_v9 }
0x1881   :  { %v6796_v41 = vpop.xlane.xlu0 %6795 }
0x1882   :  { %v6798_v59 = vmul.f32 0.11111111, %v6796_v41  ;;  %v6793_v53 = vpop.xlane.xlu1 %6792 }
0x1883   :  { %v6797_v26 = vmul.f32 0.11111111, %v6793_v53 }
0x1884   :  { %v6800_v63 = vsub.f32 %v12675_v55, %v6798_v59 }
0x1885   :  { %v6799_v14 = vsub.f32 %v12678_v60, %v6797_v26 }
0x1886   :  { %v6802_v38 = vmul.f32 %v6800_v63, %v6800_v63 }
0x1887   :  { %v6801_v40 = vmul.f32 %v6799_v14, %v6799_v14 }
0x1888   :  { %v6806_v1 = vsel %vm4780_vm11, %v6802_v38, 0.0 }
0x1889   :  { %6807 = vadd.xlane.f32.xlu0 %v6806_v1  ;;  %v6803_v46 = vsel %vm4782_vm12, %v6801_v40, 0.0 }
0x188a   :  { %6804 = vadd.xlane.f32.xlu1 %v6803_v46 }
0x1916   :  { %v6808_v5 = vpop.xlane.xlu0 %6807 }
0x1917   :  { %v6810_v24 = vmul.f32 0.11111111, %v6808_v5  ;;  %v6805_v7 = vpop.xlane.xlu1 %6804 }
0x1918   :  { %v6809_v51 = vmul.f32 0.11111111, %v6805_v7 }
0x1919   :  { %v6812_v42 = vadd.f32 1e-05, %v6810_v24 }
0x191a   :  { %v6811_v35 = vadd.f32 1e-05, %v6809_v51 }
0x191b   :  { %10051 = vrsqrt.f32 %v6812_v42 }
0x191c   :  { %10053 = vrsqrt.f32 %v6811_v35 }
0x1925   :  { %v10052_v27 = vpop.eup %10051 }
0x1926   :  { %v10054_v47 = vpop.eup %10053  ;;  %v6816_v58 = vmul.f32 %v10052_v27, %v6800_v63 }
0x1927   :  { %v6815_v10 = vmul.f32 %v10054_v47, %v6799_v14  ;;  %v8689_v14 = vld [vmem:[%s13053_s0 + $0x1] ss:$0 sm:$0xff]  ;;  %v7095_v47 = vld [vmem:[#allocation21 + $0x20] sm:$0xff] }
0x1928   :  { %v6824_v48 = vmul.f32 %v8673_v11, %v6816_v58  ;;  %v7096_v58 = vld [vmem:[#allocation21 + $0x28] sm:$0x1] }
0x1929   :  { %v6823_v50 = vmul.f32 %v8673_v11, %v6815_v10  ;;  %v9724_v10 = vpack.c.bf16 %v7096_v58, %v7095_v47 }
0x192a   :  { %v6832_v13 = vadd.f32 %v8674_v37, %v6824_v48 }
0x192b   :  { %v6831_v43 = vadd.f32 %v8674_v37, %v6823_v50  ;;  %9726 = vmatprep.subr.msk.bf16.mxu0 %vm12361_vm15, %v9724_v10 }
0x192d   :  { %9178 = vmatprep.mubr.msk.f32.mxu0 %vm4782_vm12, %v6831_v43 }
0x192e   :  { %9179 = vmatmul.mubr.msk.f32.vlgmr.msra.gmra.mrb[32].mxu0 %vm4782_vm12, %v6832_v13 }
0x192f   :  { %9729 = vmatpush3.bf16.msk.msra.mxu0 %vm12361_vm15, %v9724_v10 }
0x1a01   :  { %v9180_v56 = vpop.f32.mrb[32].mxu0 }
0x1a02   :  { %v6925_v22 = vadd.f32 %v9180_v56, %v8676_v6  ;;  %v6919_v36 = vpop.f32.mrb[33].mxu0 }
0x1a03   :  { %v6920_v31 = vadd.f32 %v8676_v6, %v6919_v36 }
0x1a04   :  { %v6929_v21 = vmul.f32 %v6925_v22, %v6925_v22 }
0x1a05   :  { %v6928_v0 = vmul.f32 %v6920_v31, %v6920_v31 }
0x1a06   :  { %v6931_v12 = vmul.f32 %v6929_v21, %v6925_v22 }
0x1a07   :  { %v6930_v33 = vmul.f32 %v6928_v0, %v6920_v31 }
0x1a08   :  { %v6933_v57 = vmul.f32 0.044715, %v6931_v12 }
0x1a09   :  { %v6932_v30 = vmul.f32 0.044715, %v6930_v33 }
0x1a0a   :  { %v6935_v17 = vadd.f32 %v6933_v57, %v6925_v22 }
0x1a0b   :  { %v6934_v18 = vadd.f32 %v6932_v30, %v6920_v31 }
0x1a0c   :  { %v6937_v8 = vmul.f32 0.7978846, %v6935_v17  ;;  %v10100_v17 = vld [vmem:[%s13045_s29] ss:$0 sm:$0xff] }
0x1a0d   :  { %v6936_v23 = vmul.f32 0.7978846, %v6934_v18 }
0x1a0e   :  { %10055 = vtanh.f32 %v6937_v8  ;;  %v10101_v8 = vld [vmem:[%s13045_s29 + $0x1] ss:$0 sm:$0xff] }
0x1a0f   :  { %10057 = vtanh.f32 %v6936_v23 }
0x1a18   :  { %v10056_v32 = vpop.eup %10055 }
0x1a19   :  { %v10058_v16 = vpop.eup %10057  ;;  %v6941_v25 = vadd.f32 1.0, %v10056_v32 }
0x1a1a   :  { %v6940_v9 = vadd.f32 1.0, %v10058_v16 }
0x1a1b   :  { %v6943_v41 = vmul.f32 0.5, %v6941_v25 }
0x1a1c   :  { %v6942_v59 = vmul.f32 0.5, %v6940_v9 }
0x1a1d   :  { %v6945_v26 = vmul.f32 %v6943_v41, %v6925_v22 }
0x1a1e   :  { %v6944_v53 = vmul.f32 %v6942_v59, %v6920_v31  ;;  %v8695_v31 = vld [vmem:[%s13044_s28 + $0x2] ss:$0 sm:$0xff] }
0x1a20   :  { %9191 = vmatprep.mubr.msk.f32.mxu1 %vm5837_vm6, %v6944_v53 }
0x1a21   :  { %9192 = vmatmul.mubr.msk.f32.vlgmr.msra.gmra.mrb[30].mxu1 %vm5837_vm6, %v6945_v26 }
0x1af4   :  { %v9193_v63 = vpop.f32.mrb[30].mxu1 }
0x1af5   :  { %v7037_v38 = vadd.f32 %v9193_v63, %v12675_v55  ;;  %v7027_v40 = vpop.f32.mrb[31].mxu1 }
0x1af6   :  { %v7036_v1 = vadd.f32 %v7027_v40, %v12678_v60  ;;  %v10102_v40 = vld [vmem:[%s13045_s29 + $0x2] ss:$0 sm:$0xff] }
0x1af7   :  { %v12709_v46 = vadd.f32 %v8689_v14, %v7037_v38 }
0x1af8   :  { %v12711_v49 = vadd.f32 %v8689_v14, %v7036_v1 }
0x1af9   :  { %v7055_v2 = vsel %vm4780_vm11, %v12709_v46, 0.0 }
0x1afa   :  { %7056 = vadd.xlane.f32.xlu0 %v7055_v2  ;;  %v7052_v39 = vsel %vm4782_vm12, %v12711_v49, 0.0 }
0x1afb   :  { %7053 = vadd.xlane.f32.xlu1 %v7052_v39 }
0x1b87   :  { %v7057_v5 = vpop.xlane.xlu0 %7056 }
0x1b88   :  { %v7059_v24 = vmul.f32 0.11111111, %v7057_v5  ;;  %v7054_v7 = vpop.xlane.xlu1 %7053 }
0x1b89   :  { %v7058_v51 = vmul.f32 0.11111111, %v7054_v7 }
0x1b8a   :  { %v7061_v55 = vsub.f32 %v12709_v46, %v7059_v24 }
0x1b8b   :  { %v7060_v60 = vsub.f32 %v12711_v49, %v7058_v51 }
0x1b8c   :  { %v7063_v42 = vmul.f32 %v7061_v55, %v7061_v55 }
0x1b8d   :  { %v7062_v35 = vmul.f32 %v7060_v60, %v7060_v60 }
0x1b8e   :  { %v7067_v27 = vsel %vm4780_vm11, %v7063_v42, 0.0 }
0x1b8f   :  { %7068 = vadd.xlane.f32.xlu0 %v7067_v27  ;;  %v7064_v11 = vsel %vm4782_vm12, %v7062_v35, 0.0  ;;  %v10104_v35 = vld [vmem:[#allocation20 + $0x8] sm:$0x3] }
0x1b90   :  { %7065 = vadd.xlane.f32.xlu1 %v7064_v11 }
0x1c1c   :  { %v7069_v37 = vpop.xlane.xlu0 %7068 }
0x1c1d   :  { %v7071_v48 = vmul.f32 0.11111111, %v7069_v37  ;;  %v7066_v50 = vpop.xlane.xlu1 %7065 }
0x1c1e   :  { %v7070_v43 = vmul.f32 0.11111111, %v7066_v50 }
0x1c1f   :  { %v7073_v13 = vadd.f32 1e-05, %v7071_v48 }
0x1c20   :  { %v7072_v3 = vadd.f32 1e-05, %v7070_v43 }
0x1c21   :  { %10059 = vrsqrt.f32 %v7073_v13 }
0x1c22   :  { %10061 = vrsqrt.f32 %v7072_v3 }
0x1c2b   :  { %v10060_v61 = vpop.eup %10059 }
0x1c2c   :  { %v10062_v20 = vpop.eup %10061  ;;  %v7077_v19 = vmul.f32 %v10060_v61, %v7061_v55 }
0x1c2d   :  { %v7076_v34 = vmul.f32 %v10062_v20, %v7060_v60  ;;  %v10103_v60 = vld [vmem:[#allocation20] sm:$0xff] }
0x1c2e   :  { %v7085_v6 = vmul.f32 %v8692_v4, %v7077_v19 }
0x1c2f   :  { %v7084_v56 = vmul.f32 %v8692_v4, %v7076_v34 }
0x1c30   :  { %v7093_v36 = vadd.f32 %v8693_v15, %v7085_v6 }
0x1c31   :  { %v7092_v22 = vadd.f32 %v8693_v15, %v7084_v56 }
0x1c33   :  { %9198 = vmatprep.mubr.msk.f32.mxu0 %vm4782_vm12, %v7092_v22 }
0x1c34   :  { %9199 = vmatmul.mubr.msk.f32.vlgmr.msra.gmra.mrb[34].mxu0 %vm4782_vm12, %v7093_v36 }
0x1d07   :  { %v9200_v21 = vpop.f32.mrb[34].mxu0 }
0x1d08   :  { %v7186_v0 = vadd.f32 %v9200_v21, %v8695_v31  ;;  %v7180_v12 = vpop.f32.mrb[35].mxu0 }
0x1d09   :  { %v7181_v33 = vadd.f32 %v8695_v31, %v7180_v12 }
0x1d0a   :  { %v12731_v57 = vmul.f32 %v7186_v0, %v12483_v29  ;;  %v7420_v25 = vmul.f32 %v7186_v0, %v12434_v44  ;;  %v12744_v41 = vmul.f32 %v7186_v0, %v12485_v62  ;;  %v7311_v38 = vmul.f32 %v10101_v8, %v7186_v0 }
0x1d0b   :  { %v9962_v30 = vpack.i.bf16 %v7186_v0, %v7181_v33  ;;  %v7189_v18 = vmul.f32 %v10100_v17, %v7181_v33  ;;  %v7310_v23 = vmul.f32 %v10101_v8, %v7181_v33  ;;  %v7308_v32 = vmul.f32 %v7181_v33, %v12483_v29 }
0x1d0c   :  { %v7419_v16 = vmul.f32 %v7181_v33, %v12434_v44  ;;  %v12739_v9 = vmul.f32 %v7181_v33, %v12485_v62  ;;  %v7190_v62 = vmul.f32 %v10100_v17, %v7186_v0  ;;  %v7601_v1 = vmul.f32 %v10102_v40, %v7181_v33 }
0x1d0d   :  { %9963 = vrot.lane.b32.xlu1 %v9962_v30, %s10438_s1  ;;  %9205 = vmatprep.mubr.msk.f32.mxu0 %vm4782_vm12, %v7189_v18  ;;  %v9972_v59 = vpack.i.bf16 %v12731_v57, %v7308_v32  ;;  %v7602_v2 = vmul.f32 %v10102_v40, %v7186_v0 }
0x1d0e   :  { %9212 = vmatprep.mubr.msk.f32.mxu1 %vm4782_vm12, %v7310_v23  ;;  %v9967_v29 = vpack.i.bf16 %v7420_v25, %v7419_v16  ;;  %v9977_v53 = vpack.i.bf16 %v12744_v41, %v12739_v9 }
0x1d7f   :  { %v9964_v44 = vpop.permute.xlu1 %9963 }
0x1d80   :  { %v9966_v26 = vunpack.i.h.bf16 %v9964_v44  ;;  %v9965_v63 = vunpack.i.l.bf16 %v9964_v44 }
0x1d82   :  { %v9730_v14 = vpack.c.bf16 %v9966_v26, %v9965_v63 }
0x1d84   :  { %9732 = vmatprep.subr.msk.bf16.mxu0 %vm12395_vm0, %v9730_v14  ;;  %9738 = vmatprep.subr.msk.bf16.mxu1 %vm12395_vm0, %v9730_v14 }
0x1d85   :  { %9735 = vmatpush3.bf16.xpose.msk.msra.mxu0 %vm12395_vm0, %v9730_v14  ;;  %9741 = vmatpush3.bf16.xpose.msk.msra.mxu1 %vm12395_vm0, %v9730_v14 }
0x1d86   :  { %9756 = vmatprep.subr.msk.bf16.mxu1 %vm12395_vm0, %v9730_v14 }
0x1d8c   :  { %9206 = vmatmul.mubr.msk.f32.vlgmr.msra.gmra.mrb[36].mxu0 %vm4782_vm12, %v7190_v62  ;;  %9213 = vmatmul.mubr.msk.f32.vlgmr.msra.gmra.mrb[32].mxu1 %vm4782_vm12, %v7311_v38 }
0x1d8d   :  { %9759 = vmatpush3.bf16.xpose.msk.msra.mxu1 %vm12395_vm0, %v9730_v14  ;;  %9233 = vmatprep.mubr.msk.f32.mxu1 %vm4782_vm12, %v7601_v1 }
0x1d94   :  { %9234 = vmatmul.mubr.msk.f32.vlgmr.msra.gmra.mrb[34].mxu1 %vm4782_vm12, %v7602_v2 }
0x1e5f   :  { %v9207_v39 = vpop.f32.mrb[36].mxu0  ;;  %v9214_v5 = vpop.f32.mrb[32].mxu1 }
0x1e60   :  { %v7273_v24 = vpop.f32.mrb[37].mxu0  ;;  %v7384_v7 = vpop.f32.mrb[33].mxu1  ;;  %v7394_v51 = vmul.f32 0.57735026, %v9214_v5  ;;  %v7283_v10 = vmul.f32 0.57735026, %v9207_v39 }
0x1e61   :  { %v7393_v55 = vmul.f32 0.57735026, %v7384_v7  ;;  %v7282_v11 = vmul.f32 0.57735026, %v7273_v24 }
0x1e62   :  { %v7396_v27 = vadd.f32 %v10104_v35, %v7394_v51  ;;  %v7285_v13 = vadd.f32 %v10104_v35, %v7283_v10 }
0x1e63   :  { %v7395_v42 = vadd.f32 %v10103_v60, %v7393_v55  ;;  %v7284_v37 = vadd.f32 %v10103_v60, %v7282_v11 }
0x1e64   :  { %v7400_v50 = vsel %vm5039_vm3, %v7396_v27, -inf  ;;  %v7289_v19 = vsel %vm5039_vm3, %v7285_v13, -inf }
0x1e65   :  { %v7397_v47 = vsel %vm5035_vm2, %v7395_v42, -inf  ;;  %v7286_v4 = vsel %vm5035_vm2, %v7284_v37, -inf }
0x1e66   :  { %7398 = vmax.xlane.f32.xlu0 %v7397_v47 }
0x1e67   :  { %v9235_v52 = vpop.f32.mrb[34].mxu1 }
0x1e68   :  { %v7675_v58 = vpop.f32.mrb[35].mxu1  ;;  %v7685_v3 = vmul.f32 0.57735026, %v9235_v52 }
0x1e69   :  { %v7684_v48 = vmul.f32 0.57735026, %v7675_v58 }
0x1e6a   :  { %7401 = vmax.xlane.f32.xlu0 %v7400_v50  ;;  %v7687_v20 = vadd.f32 %v10104_v35, %v7685_v3 }
0x1e6b   :  { %v7686_v43 = vadd.f32 %v10103_v60, %v7684_v48 }
0x1e6c   :  { %v7691_v34 = vsel %vm5039_vm3, %v7687_v20, -inf }
0x1e6d   :  { %v7688_v61 = vsel %vm5035_vm2, %v7686_v43, -inf }
0x1e6e   :  { %7689 = vmax.xlane.f32.xlu1 %v7688_v61  ;;  %7287 = vmax.xlane.f32.xlu0 %v7286_v4  ;;  %v7805_v61 = vld [vmem:[#allocation23 + $0x20] sm:$0xff]  ;;  %v7806_v4 = vld [vmem:[#allocation23 + $0x28] sm:$0x1] }
0x1e72   :  { %7290 = vmax.xlane.f32.xlu0 %v7289_v19 }
0x1e76   :  { %7692 = vmax.xlane.f32.xlu0 %v7691_v34  ;;  %v9766_v34 = vpack.c.bf16 %v7806_v4, %v7805_v61 }
0x1e7f   :  { %9973 = vrot.lane.b32.xlu1 %v9972_v59, %s10440_s21 }
0x1e8c   :  { %9968 = vrot.lane.b32.xlu0 %v9967_v29, %s10440_s21 }
0x1ef3   :  { %v7399_v15 = vpop.xlane.xlu0 %7398 }
0x1ef4   :  { %v7403_v31 = vsub.f32 %v7395_v42, %v7399_v15 }
0x1ef6   :  { %v7405_v33 = vmul.f32 1.442695, %v7403_v31 }
0x1ef7   :  { %v7402_v6 = vpop.xlane.xlu0 %7401 }
0x1ef8   :  { %v7404_v56 = vsub.f32 %v7396_v27, %v7402_v6 }
0x1efa   :  { %v7407_v22 = vmul.f32 1.442695, %v7404_v56 }
0x1efb   :  { %v7288_v36 = vpop.xlane.xlu0 %7287  ;;  %v7690_v21 = vpop.xlane.xlu1 %7689 }
0x1efc   :  { %10063 = vpow2.f32 %v7407_v22  ;;  %v7292_v57 = vsub.f32 %v7284_v37, %v7288_v36  ;;  %v7694_v63 = vsub.f32 %v7686_v43, %v7690_v21 }
0x1efe   :  { %v7294_v23 = vmul.f32 1.442695, %v7292_v57  ;;  %v7696_v1 = vmul.f32 1.442695, %v7694_v63  ;;  %v7949_v63 = vld [vmem:[#allocation24 + $0x28] sm:$0x1] }
0x1eff   :  { %v7291_v0 = vpop.xlane.xlu0 %7290  ;;  %v9974_v18 = vpop.permute.xlu1 %9973 }
0x1f00   :  { %v7293_v12 = vsub.f32 %v7285_v13, %v7291_v0  ;;  %v9976_v59 = vunpack.i.h.bf16 %v9974_v18  ;;  %v9975_v29 = vunpack.i.l.bf16 %v9974_v18 }
0x1f02   :  { %v7296_v30 = vmul.f32 1.442695, %v7293_v12  ;;  %v9748_v38 = vpack.c.bf16 %v9976_v59, %v9975_v29 }
0x1f03   :  { %v7693_v17 = vpop.xlane.xlu0 %7692 }
0x1f04   :  { %10065 = vpow2.f32 %v7296_v30  ;;  %v7695_v32 = vsub.f32 %v7687_v20, %v7693_v17 }
0x1f05   :  { %10067 = vpow2.f32 %v7405_v33 }
0x1f06   :  { %v10064_v8 = vpop.eup %10063  ;;  %10069 = vpow2.f32 %v7294_v23  ;;  %v7698_v14 = vmul.f32 1.442695, %v7695_v32 }
0x1f07   :  { %v9969_v16 = vpop.permute.xlu0 %9968  ;;  %v7412_v25 = vsel %vm5039_vm3, %v10064_v8, 0.0 }
0x1f08   :  { %v9971_v44 = vunpack.i.h.bf16 %v9969_v16  ;;  %v9970_v26 = vunpack.i.l.bf16 %v9969_v16  ;;  %7413 = vadd.xlane.f32.xlu0 %v7412_v25  ;;  %10071 = vpow2.f32 %v7698_v14 }
0x1f09   :  { %10073 = vpow2.f32 %v7696_v1 }
0x1f0a   :  { %v9742_v62 = vpack.c.bf16 %v9971_v44, %v9970_v26  ;;  %v7948_v26 = vld [vmem:[#allocation24 + $0x20] sm:$0xff] }
0x1f0b   :  { %v9772_v14 = vpack.c.bf16 %v7949_v63, %v7948_v26 }
0x1f0c   :  { %9744 = vmatprep.subr.msk.bf16.mxu0 %vm12444_vm4, %v9742_v62 }
0x1f0d   :  { %9747 = vmatpush3.bf16.msk.msra.mxu0 %vm12444_vm4, %v9742_v62  ;;  %9774 = vmatprep.subr.msk.bf16.mxu1 %vm12361_vm15, %v9772_v14 }
0x1f0e   :  { %v10066_v40 = vpop.eup %10065  ;;  %9750 = vmatprep.subr.msk.bf16.mxu0 %vm12444_vm4, %v9748_v38  ;;  %9777 = vmatpush3.bf16.msk.msra.mxu1 %vm12361_vm15, %v9772_v14 }
0x1f0f   :  { %v7301_v2 = vsel %vm5039_vm3, %v10066_v40, 0.0  ;;  %v10068_v39 = vpop.eup %10067 }
0x1f10   :  { %7302 = vadd.xlane.f32.xlu0 %v7301_v2  ;;  %v7409_v5 = vsel %vm5035_vm2, %v10068_v39, 0.0  ;;  %v10070_v24 = vpop.eup %10069 }
0x1f11   :  { %v7298_v7 = vsel %vm5035_vm2, %v10070_v24, 0.0 }
0x1f12   :  { %v10072_v51 = vpop.eup %10071 }
0x1f13   :  { %v7703_v55 = vsel %vm5039_vm3, %v10072_v51, 0.0  ;;  %v10074_v60 = vpop.eup %10073 }
0x1f14   :  { %7410 = vadd.xlane.f32.xlu0 %v7409_v5  ;;  %v7700_v42 = vsel %vm5035_vm2, %v10074_v60, 0.0 }
0x1f18   :  { %7299 = vadd.xlane.f32.xlu0 %v7298_v7 }
0x1f1c   :  { %7704 = vadd.xlane.f32.xlu0 %v7703_v55 }
0x1f20   :  { %7701 = vadd.xlane.f32.xlu0 %v7700_v42 }
0x1f36   :  { %9978 = vrot.lane.b32.xlu0 %v9977_v53, %s10440_s21 }
0x1f95   :  { %v7414_v35 = vpop.xlane.xlu0 %7413 }
0x1f96   :  { %10075 = vrcp.f32 %v7414_v35 }
0x1f9d   :  { %v7303_v27 = vpop.xlane.xlu0 %7302 }
0x1fa0   :  { %v10076_v58 = vpop.eup %10075 }
0x1fa1   :  { %v7411_v11 = vpop.xlane.xlu0 %7410  ;;  %v7418_v50 = vmul.f32 %v10076_v58, %v10064_v8 }
0x1fa2   :  { %10077 = vrcp.f32 %v7411_v11 }
0x1fa5   :  { %v7300_v47 = vpop.xlane.xlu0 %7299 }
0x1fa6   :  { %10079 = vrcp.f32 %v7300_v47  ;;  %v8734_v47 = vld [vmem:[%s13051_s7 + $0x50] sm:$0xff] }
0x1fa7   :  { %10081 = vrcp.f32 %v7303_v27 }
0x1fa9   :  { %v7705_v52 = vpop.xlane.xlu0 %7704 }
0x1fac   :  { %v10078_v10 = vpop.eup %10077 }
0x1fad   :  { %v7702_v37 = vpop.xlane.xlu0 %7701  ;;  %v7417_v48 = vmul.f32 %v10078_v10, %v10068_v39  ;;  %v8736_v10 = vld [vmem:[%s13051_s7 + $0x60] sm:$0xff] }
0x1fae   :  { %10083 = vrcp.f32 %v7702_v37  ;;  %v8737_v37 = vld [vmem:[%s13051_s7 + $0x68] sm:$0xff] }
0x1faf   :  { %9219 = vmatprep.mubr.msk.f32.mxu0 %vm5035_vm2, %v7417_v48  ;;  %10085 = vrcp.f32 %v7705_v52  ;;  %v8735_v52 = vld [vmem:[%s13051_s7 + $0x58] sm:$0xff]  ;;  %v9782_v48 = vpack.c.bf16 %v8737_v37, %v8736_v10 }
0x1fb0   :  { %v10080_v43 = vpop.eup %10079  ;;  %9220 = vmatmul.mubr.msk.f32.vlgmr.msra.gmra.mrb[38].mxu0 %vm5035_vm2, %v7418_v50  ;;  %v9778_v58 = vpack.c.bf16 %v8735_v52, %v8734_v47  ;;  %v8738_v50 = vld [vmem:[%s13051_s7 + $0x70] sm:$0xf]  ;;  %v8349_v47 = vld [vmem:[%s13056_s26 + $0x38] sm:$0xff] }
0x1fb1   :  { %9753 = vmatpush3.bf16.msk.msra.mxu0 %vm12444_vm4, %v9748_v38  ;;  %v9979_v9 = vpop.permute.xlu0 %9978  ;;  %v7306_v41 = vmul.f32 %v10080_v43, %v10070_v24  ;;  %v10082_v3 = vpop.eup %10081  ;;  %v8727_v24 = vld [vmem:[%s10524_s18 + $0x5] ss:$0 sm:$0xff]  ;;  %v8730_v43 = vld [vmem:[%s13052_s3 + $0x2] ss:$0 sm:$0xff]  ;;  %s13054_s18 = sld [smem:[#allocation43_spill]]  ;;  %v8433_v10 = vld [vmem:[#allocation27 + $0x8] sm:$0xff] }
0x1fb2   :  { %v9981_v53 = vunpack.i.h.bf16 %v9979_v9  ;;  %v9980_v13 = vunpack.i.l.bf16 %v9979_v9  ;;  %v7307_v19 = vmul.f32 %v10082_v3, %v10066_v40 }
0x1fb3   :  { %9226 = vmatprep.mubr.msk.f32.mxu0 %vm5035_vm2, %v7306_v41 }
0x1fb4   :  { %v9760_v20 = vpack.c.bf16 %v9981_v53, %v9980_v13 }
0x1fb6   :  { %9762 = vmatprep.subr.msk.bf16.mxu0 %vm12444_vm4, %v9760_v20 }
0x1fb7   :  { %v8744_v28 = vld [vmem:[%s13054_s18] ss:$0 sm:$0xff] }
0x1fb8   :  { %v10084_v15 = vpop.eup %10083  ;;  %9227 = vmatmul.mubr.msk.f32.vlgmr.msra.gmra.mrb[38].mxu0 %vm5035_vm2, %v7307_v19 }
0x1fb9   :  { %9765 = vmatpush3.bf16.msk.msra.mxu0 %vm12444_vm4, %v9760_v20  ;;  %v7708_v6 = vmul.f32 %v10084_v15, %v10074_v60  ;;  %v10086_v56 = vpop.eup %10085  ;;  %v8728_v60 = vld [vmem:[%s13043_s13 + $0x5] ss:$0 sm:$0xff] }
0x1fba   :  { %9768 = vmatprep.subr.msk.bf16.mxu0 %vm12361_vm15, %v9766_v34  ;;  %v7709_v22 = vmul.f32 %v10086_v56, %v10072_v51 }
0x1fbb   :  { %9240 = vmatprep.mubr.msk.f32.mxu0 %vm5035_vm2, %v7708_v6 }
0x1fc0   :  { %9241 = vmatmul.mubr.msk.f32.vlgmr.msra.gmra.mrb[38].mxu0 %vm5035_vm2, %v7709_v22 }
0x1fc1   :  { %9771 = vmatpush3.bf16.msk.msra.mxu0 %vm12361_vm15, %v9766_v34 }
0x1fc2   :  { %9779 = vmatprep.subr.bf16.mxu0 %v9778_v58 }
0x2093   :  { %v9242_v36 = vpop.f32.mrb[38].mxu0 }
0x2094   :  { %v7793_v31 = vpop.f32.mrb[39].mxu0 }
0x2095   :  { %9247 = vmatprep.mubr.msk.f32.mxu0 %vm4782_vm12, %v7793_v31 }
0x2096   :  { %9248 = vmatmul.mubr.msk.f32.vlgmr.msra.gmra.mrb[40].mxu0 %vm4782_vm12, %v9242_v36 }
0x2097   :  { %9781 = vmatpush3.bf16.msra.mxu0 %v9778_v58  ;;  %v8432_v58 = vld [vmem:[#allocation27] sm:$0xff] }
0x2098   :  { %9783 = vmatprep.subr.bf16.mxu0 %v9782_v48  ;;  %v9803_v37 = vpack.c.bf16 %v8433_v10, %v8432_v58 }
0x209b   :  { %9785 = vmatpush3.bf16.msra.mxu0 %v9782_v48 }
0x209c   :  { %9265 = vmatprep.subr.msk.mxu0 %vm5844_vm5, %v8738_v50 }
0x209f   :  { %9266 = vmatpush3.msk.msra.mxu0 %vm5844_vm5, %v8738_v50 }
0x2169   :  { %v9249_v21 = vpop.f32.mrb[40].mxu0 }
0x216a   :  { %v7896_v0 = vadd.f32 %v9249_v21, %v8721_v45  ;;  %v7890_v12 = vpop.f32.mrb[41].mxu0 }
0x216b   :  { %v7891_v33 = vadd.f32 %v8721_v45, %v7890_v12 }
0x216c   :  { %v7900_v57 = vadd.f32 %v7896_v0, %v12709_v46 }
0x216d   :  { %v12812_v30 = vadd.f32 %v7891_v33, %v12711_v49 }
0x216e   :  { %v7908_v17 = vsel %vm4780_vm11, %v7900_v57, 0.0 }
0x216f   :  { %7909 = vadd.xlane.f32.xlu0 %v7908_v17  ;;  %v7905_v18 = vsel %vm4782_vm12, %v12812_v30, 0.0  ;;  %v8159_v17 = vld [vmem:[#allocation26] sm:$0xff] }
0x2170   :  { %7906 = vadd.xlane.f32.xlu1 %v7905_v18  ;;  %v8160_v18 = vld [vmem:[#allocation26 + $0x8] sm:$0x1] }
0x21fc   :  { %v7910_v8 = vpop.xlane.xlu0 %7909 }
0x21fd   :  { %v7912_v23 = vmul.f32 0.11111111, %v7910_v8  ;;  %v7907_v32 = vpop.xlane.xlu1 %7906  ;;  %v9787_v8 = vpack.c.bf16 %v8160_v18, %v8159_v17 }
0x21fe   :  { %v7911_v16 = vmul.f32 0.11111111, %v7907_v32 }
0x21ff   :  { %v7914_v25 = vsub.f32 %v7900_v57, %v7912_v23  ;;  %v10441_v23 = vmov 0.0|0.0  }
0x2200   :  { %v7913_v59 = vsub.f32 %v12812_v30, %v7911_v16  ;;  %9786 = vmatprep.subr.bf16.mxu1 %v10441_v23  ;;  %9802 = vmatprep.subr.bf16.mxu0 %v10441_v23 }
0x2201   :  { %v7916_v29 = vmul.f32 %v7914_v25, %v7914_v25 }
0x2202   :  { %v7915_v44 = vmul.f32 %v7913_v59, %v7913_v59 }
0x2203   :  { %v7920_v46 = vsel %vm4780_vm11, %v7916_v29, 0.0  ;;  %vm8516_vm11 = vcmask 1024  }
0x2204   :  { %7921 = vadd.xlane.f32.xlu1 %v7920_v46  ;;  %v7917_v49 = vsel %vm4782_vm12, %v7915_v44, 0.0 }
0x2205   :  { %7918 = vadd.xlane.f32.xlu0 %v7917_v49 }
0x2291   :  { %v7922_v62 = vpop.xlane.xlu1 %7921 }
0x2292   :  { %v7924_v38 = vmul.f32 0.11111111, %v7922_v62  ;;  %v7919_v40 = vpop.xlane.xlu0 %7918 }
0x2293   :  { %v7923_v1 = vmul.f32 0.11111111, %v7919_v40  ;;  %v8256_v40 = vld [vmem:[%s13055_s8] sm:$0xf] }
0x2294   :  { %v7926_v2 = vadd.f32 1e-05, %v7924_v38 }
0x2295   :  { %v7925_v39 = vadd.f32 1e-05, %v7923_v1 }
0x2296   :  { %10087 = vrsqrt.f32 %v7926_v2  ;;  %v8342_v2 = vld [vmem:[%s13056_s26] sm:$0xff] }
0x2297   :  { %10089 = vrsqrt.f32 %v7925_v39  ;;  %v8343_v39 = vld [vmem:[%s13056_s26 + $0x8] sm:$0xff] }
0x22a0   :  { %v10088_v5 = vpop.eup %10087 }
0x22a1   :  { %v10090_v7 = vpop.eup %10089  ;;  %v7930_v51 = vmul.f32 %v10088_v5, %v7914_v25  ;;  %v8743_v25 = vld [vmem:[%s13053_s0 + $0x2] ss:$0 sm:$0xff] }
0x22a2   :  { %v7929_v55 = vmul.f32 %v10090_v7, %v7913_v59 }
0x22a3   :  { %v7938_v42 = vmul.f32 %v8727_v24, %v7930_v51  ;;  %v8344_v51 = vld [vmem:[%s13056_s26 + $0x10] sm:$0xff] }
0x22a4   :  { %v7937_v35 = vmul.f32 %v8727_v24, %v7929_v55  ;;  %v9791_v24 = vpack.c.bf16 %v8343_v39, %v8342_v2  ;;  %v8345_v55 = vld [vmem:[%s13056_s26 + $0x18] sm:$0xff] }
0x22a5   :  { %v7946_v11 = vadd.f32 %v8728_v60, %v7938_v42  ;;  %v8346_v42 = vld [vmem:[%s13056_s26 + $0x20] sm:$0xff] }
0x22a6   :  { %v7945_v27 = vadd.f32 %v8728_v60, %v7937_v35  ;;  %v9794_v60 = vpack.c.bf16 %v8345_v55, %v8344_v51  ;;  %v8347_v35 = vld [vmem:[%s13056_s26 + $0x28] sm:$0xff] }
0x22a8   :  { %9254 = vmatprep.mubr.msk.f32.mxu1 %vm4782_vm12, %v7945_v27  ;;  %v9797_v27 = vpack.c.bf16 %v8347_v35, %v8346_v42 }
0x22a9   :  { %9255 = vmatmul.mubr.msk.f32.vlgmr.msra.gmra.mrb[36].mxu1 %vm4782_vm12, %v7946_v11  ;;  %v8348_v11 = vld [vmem:[%s13056_s26 + $0x30] sm:$0xff] }
0x22aa   :  { %9274 = vmatprep.mubr.msk.f32.mxu1 %vm10442_vm7, %v13040_v54  ;;  %9789 = vmatpush3.bf16.msk.msra.mxu1 %vm12361_vm15, %v9787_v8  ;;  %v9800_v52 = vpack.c.bf16 %v8349_v47, %v8348_v11 }
0x22ab   :  { %9277 = vmatprep.subr.mxu1 %v13040_v54 }
0x237c   :  { %v9256_v9 = vpop.f32.mrb[36].mxu1 }
0x237d   :  { %v8039_v41 = vadd.f32 %v9256_v9, %v8730_v43  ;;  %v8033_v53 = vpop.f32.mrb[37].mxu1 }
0x237e   :  { %v8034_v13 = vadd.f32 %v8730_v43, %v8033_v53  ;;  %v8435_v53 = vld [vmem:[#allocation27 + $0x18] sm:$0xff] }
0x237f   :  { %v8043_v3 = vmul.f32 %v8039_v41, %v8039_v41 }
0x2380   :  { %v8042_v61 = vmul.f32 %v8034_v13, %v8034_v13 }
0x2381   :  { %v8045_v4 = vmul.f32 %v8043_v3, %v8039_v41  ;;  %v8750_v3 = vld [vmem:[%s10579_s10] ss:$0 sm:$0xff] }
0x2382   :  { %v8044_v20 = vmul.f32 %v8042_v61, %v8034_v13 }
0x2383   :  { %v8047_v19 = vmul.f32 0.044715, %v8045_v4 }
0x2384   :  { %v8046_v34 = vmul.f32 0.044715, %v8044_v20 }
0x2385   :  { %v8049_v15 = vadd.f32 %v8047_v19, %v8039_v41 }
0x2386   :  { %v8048_v6 = vadd.f32 %v8046_v34, %v8034_v13  ;;  %v8752_v34 = vld [vmem:[#allocation9] ss:$0 sm:$0xff] }
0x2387   :  { %v8051_v56 = vmul.f32 0.7978846, %v8049_v15 }
0x2388   :  { %v8050_v22 = vmul.f32 0.7978846, %v8048_v6 }
0x2389   :  { %10091 = vtanh.f32 %v8051_v56 }
0x238a   :  { %10093 = vtanh.f32 %v8050_v22 }
0x2393   :  { %v10092_v36 = vpop.eup %10091 }
0x2394   :  { %v10094_v31 = vpop.eup %10093  ;;  %v8055_v45 = vadd.f32 1.0, %v10092_v36 }
0x2395   :  { %v8054_v21 = vadd.f32 1.0, %v10094_v31 }
0x2396   :  { %v8057_v0 = vmul.f32 0.5, %v8055_v45 }
0x2397   :  { %v8056_v12 = vmul.f32 0.5, %v8054_v21 }
0x2398   :  { %v8059_v57 = vmul.f32 %v8057_v0, %v8039_v41  ;;  %v8434_v41 = vld [vmem:[#allocation27 + $0x10] sm:$0xff] }
0x2399   :  { %v8058_v33 = vmul.f32 %v8056_v12, %v8034_v13  ;;  %v9806_v13 = vpack.c.bf16 %v8435_v53, %v8434_v41 }
0x239b   :  { %9267 = vmatprep.mubr.msk.f32.mxu0 %vm5837_vm6, %v8058_v33 }
0x239c   :  { %9268 = vmatmul.mubr.msk.f32.vlgmr.msra.gmra.mrb[42].mxu0 %vm5837_vm6, %v8059_v57 }
0x239d   :  { %9309 = vmatprep.mubr.msk.f32.mxu0 %vm10442_vm7, %v13040_v54  ;;  %9804 = vmatpush3.bf16.msra.mxu0 %v9803_v37 }
0x239e   :  { %9805 = vmatprep.subr.bf16.mxu0 %v10441_v23 }
0x23a1   :  { %9807 = vmatpush3.bf16.msra.mxu0 %v9806_v13 }
0x246f   :  { %v9269_v32 = vpop.f32.mrb[42].mxu0 }
0x2470   :  { %v8141_v16 = vpop.f32.mrb[43].mxu0 }
0x2471   :  { %v8149_v59 = vadd.f32 %v8141_v16, %v12812_v30 }
0x2473   :  { %v8158_v29 = vadd.f32 %v8743_v25, %v8149_v59 }
0x2475   :  { %9275 = vmatmul.mubr.msk.f32.vlgmr.msra.gmra.mrb[38].mxu1 %vm4782_vm12, %v8158_v29 }
0x2476   :  { %9279 = vmatprep.mubr.msk.f32.mxu1 %vm10442_vm7, %v13040_v54  ;;  %9278 = vmatpush3.msk.msra.mxu1 %vm5844_vm5, %v8256_v40 }
0x2477   :  { %9790 = vmatprep.subr.bf16.mxu1 %v10441_v23 }
0x2548   :  { %v8240_v44 = vpop.f32.mrb[38].mxu1 }
0x2549   :  { %v8241_v46 = vadd.f32 %v8744_v28, %v8240_v44  ;;  %v9276_v49 = vpop.f32.mrb[39].mxu1 }
0x254b   :  { %v8245_v26 = vsel %vm8244_vm8, %v8241_v46, -inf }
0x254c   :  { %8246 = vmax.xlane.f32.xlu0 %v8245_v26 }
0x25d9   :  { %v8247_v63 = vpop.xlane.xlu0 %8246 }
0x25da   :  { %v8248_v14 = vsub.f32 %v8241_v46, %v8247_v63 }
0x25dc   :  { %v8249_v62 = vmul.f32 1.442695, %v8248_v14 }
0x25de   :  { %10095 = vpow2.f32 %v8249_v62 }
0x25e8   :  { %v10096_v30 = vpop.eup %10095 }
0x25e9   :  { %v8251_v38 = vsel %vm8244_vm8, %v10096_v30, 0.0 }
0x25ea   :  { %8252 = vadd.xlane.f32.xlu1 %v8251_v38 }
0x2677   :  { %v8253_v1 = vpop.xlane.xlu1 %8252 }
0x2678   :  { %10097 = vrcp.f32 %v8253_v1 }
0x2682   :  { %v10098_v5 = vpop.eup %10097 }
0x2683   :  { %v8255_v7 = vmul.f32 %v10098_v5, %v10096_v30 }
0x2685   :  { %9280 = vmatmul.mubr.msk.f32.vlgmr.msra.gmra.mrb[40].mxu1 %vm8264_vm9, %v8255_v7 }
0x2686   :  { %9792 = vmatpush3.bf16.msra.mxu1 %v9791_v24  ;;  %9298 = vmatprep.mubr.msk.f32.mxu1 %vm10442_vm7, %v13040_v54  ;;  %v8747_v54 = vld [vmem:[%s13057_s24] ss:$0 sm:$0xff] }
0x2687   :  { %9793 = vmatprep.subr.bf16.mxu1 %v10441_v23 }
0x268a   :  { %9795 = vmatpush3.bf16.msra.mxu1 %v9794_v60 }
0x268b   :  { %9796 = vmatprep.subr.bf16.mxu1 %v10441_v23 }
0x268e   :  { %9798 = vmatpush3.bf16.msra.mxu1 %v9797_v27 }
0x268f   :  { %9799 = vmatprep.subr.bf16.mxu1 %v10441_v23 }
0x2692   :  { %9801 = vmatpush3.bf16.msra.mxu1 %v9800_v52 }
0x2758   :  { %v8337_v48 = vpop.f32.mrb[40].mxu1 }
0x2759   :  { %v8338_v50 = vadd.f32 %v8747_v54, %v8337_v48  ;;  %v9281_v43 = vpop.f32.mrb[41].mxu1 }
0x275b   :  { %v8341_v9 = vmax.f32 %v8338_v50, 0.0 }
0x275d   :  { %9299 = vmatmul.mubr.msk.f32.vlgmr.msra.gmra.mrb[42].mxu1 %vm8357_vm10, %v8341_v9 }
0x2830   :  { %v8427_v61 = vpop.f32.mrb[42].mxu1 }
0x2831   :  { %v8428_v4 = vadd.f32 %v8750_v3, %v8427_v61  ;;  %v9300_v20 = vpop.f32.mrb[43].mxu1 }
0x2833   :  { %v8431_v19 = vmax.f32 %v8428_v4, 0.0 }
0x2835   :  { %9310 = vmatmul.mubr.msk.f32.vlgmr.msra.gmra.mrb[44].mxu0 %vm545_vm1, %v8431_v19 }
0x2908   :  { %v8512_v15 = vpop.f32.mrb[44].mxu0 }
0x2909   :  { %v8513_v6 = vadd.f32 %v8752_v34, %v8512_v15  ;;  %v9311_v56 = vpop.f32.mrb[45].mxu0 }
0x290b   :  { %8517 = vst.msk [vmem:[%s10589_s19] sm:$0x3] %vm8516_vm11, %v8513_v6 }
0x290c   :  { %8522 = vsyncpa [#allocation11], 1 }
0x290d   :  { %8523 = vsyncpa [#allocation13], 1 }
0x290e   :  { %8524 = vsyncpa [#allocation16], 1 }
0x290f   :  { %8525 = vsyncpa [#allocation19], 1 }
0x2910   :  { %8526 = vsyncpa [#allocation22], 1 }
0x2911   :  { %8527 = vsyncpa [#allocation25], 1 }
0x2912   :  { %8528 = vsyncpa [#allocation28], 1 }

</bundles_post_ra>
